<compile_context>
chip_gen: v5e
topology: v5e:2x2
jax: 0.10.0
libtpu: 0.0.40
codegen_flags: <defaults>
</compile_context>

<pallas_src>
import functools

import jax
import jax.numpy as jnp
import numpy as np
from jax.experimental import pallas as pl
from jax.experimental.pallas import tpu as pltpu


# ------------------------------ Pallas kernels -------------------------------

def _dc_block_kernel(x_ref, d_ref, w_ref, b_ref, o_ref, *, nb, tk, apply_relu):
    """One output block of  y = relu?((x * d) @ C^T + b)  via block-circulant reuse.

    x_ref : (B, n)         full input, VMEM-resident (constant index map)
    d_ref : (1, n)         diagonal, resident
    w_ref : (nb, tk, tk)   Toeplitz blocks  W[s, jj, ii] = c[(s*tk + ii - jj) % n], resident
    b_ref : (1, tk)        bias slice for this output block
    o_ref : (B, tk)        output block bi
    """
    bi = pl.program_id(0)
    z = x_ref[...] * d_ref[...]                       # (B, n), cheap VPU work
    acc = jnp.zeros(o_ref.shape, jnp.float32) + b_ref[...]   # init with bias
    for bj in range(nb):                               # static, short reduction loop
        s = (bi + (nb - bj)) % nb                      # (bi - bj) mod nb, traced scalar
        zb = z[:, bj * tk:(bj + 1) * tk]               # static, tile-aligned slice
        acc = acc + jnp.dot(zb, w_ref[s], preferred_element_type=jnp.float32)
    if apply_relu:
        acc = jnp.maximum(acc, 0.0)
    o_ref[...] = acc.astype(o_ref.dtype)


def _dc_dense_kernel(x_ref, d_ref, w_ref, b_ref, o_ref, *, apply_relu):
    """Small-output layer (classifier head): single-step dense matmul."""
    z = x_ref[...] * d_ref[...]
    out = jnp.dot(z, w_ref[...], preferred_element_type=jnp.float32) + b_ref[...]
    if apply_relu:
        out = jnp.maximum(out, 0.0)
    o_ref[...] = out.astype(o_ref.dtype)


# ------------------------------ layer wrappers --------------------------------

def dc_layer_square(x, d2, wblk, b2):
    """Hidden layer (n_out == n_in): block-circulant weight reuse, ReLU fused."""
    B, n = x.shape
    nb, tk, _ = wblk.shape
    assert nb * tk == n
    return pl.pallas_call(
        functools.partial(_dc_block_kernel, nb=nb, tk=tk, apply_relu=True),
        out_shape=jax.ShapeDtypeStruct((B, n), jnp.float32),
        grid_spec=pltpu.PrefetchScalarGridSpec(
            num_scalar_prefetch=0,
            grid=(nb,),
            in_specs=[
                pl.BlockSpec((B, n), lambda bi: (0, 0)),          # x (resident)
                pl.BlockSpec((1, n), lambda bi: (0, 0)),          # diag (resident)
                pl.BlockSpec((nb, tk, tk), lambda bi: (0, 0, 0)),  # W blocks (resident)
                pl.BlockSpec((1, tk), lambda bi: (0, bi)),        # bias slice
            ],
            out_specs=pl.BlockSpec((B, tk), lambda bi: (0, bi)),
        ),
        compiler_params=pltpu.CompilerParams(
            dimension_semantics=("parallel",),     # output blocks split across TCs (v7x)
            vmem_limit_bytes=32 * 1024 * 1024,
        ),
    )(x, d2, wblk, b2)


def dc_layer_dense(x, d2, w, b_pad, n_out, apply_relu):
    """Classifier head: dense (n, n_out_pad) weight, one grid step."""
    B, n = x.shape
    n_out_pad = w.shape[1]
    out = pl.pallas_call(
        functools.partial(_dc_dense_kernel, apply_relu=apply_relu),
        out_shape=jax.ShapeDtypeStruct((B, n_out_pad), jnp.float32),
        grid_spec=pltpu.PrefetchScalarGridSpec(
            num_scalar_prefetch=0,
            grid=(1,),
            in_specs=[
                pl.BlockSpec((B, n), lambda i: (0, 0)),
                pl.BlockSpec((1, n), lambda i: (0, 0)),
                pl.BlockSpec((n, n_out_pad), lambda i: (0, 0)),
                pl.BlockSpec((1, n_out_pad), lambda i: (0, 0)),
            ],
            out_specs=pl.BlockSpec((B, n_out_pad), lambda i: (0, 0)),
        ),
        compiler_params=pltpu.CompilerParams(
            dimension_semantics=("arbitrary",),
        ),
    )(x, d2, w, b_pad)
    return out[:, :n_out]


# --------------------- parameters: raw init + one-time prep -------------------

def init_raw_params(key, n_layers, dim=3072, num_classes=10):
    """Raw per-layer (diag, circ, bias), like the torch module's parameters."""
    hidden = []
    for _ in range(n_layers):
        key, k1, k2, k3 = jax.random.split(key, 4)
        diag = jnp.where(jax.random.bernoulli(k1, 0.5, (dim,)), 1.0, -1.0).astype(jnp.float32)
        circ = jax.random.normal(k2, (dim,), jnp.float32) / jnp.sqrt(dim)
        bias = 0.01 * jax.random.normal(k3, (dim,), jnp.float32)
        hidden.append((diag, circ, bias))
    key, k1, k2, k3 = jax.random.split(key, 4)
    diag = jnp.where(jax.random.bernoulli(k1, 0.5, (dim,)), 1.0, -1.0).astype(jnp.float32)
    circ = jax.random.normal(k2, (dim,), jnp.float32) / jnp.sqrt(dim)
    bias = 0.01 * jax.random.normal(k3, (num_classes,), jnp.float32)
    return hidden, (diag, circ, bias)


def prepare_params(hidden_raw, last_raw, num_classes=10, tk=512):
    """Precompute kernel-ready weights ONCE (never inside the forward pass).

    Hidden layers: nb = n//tk Toeplitz blocks  Wblk[s, jj, ii] = c[(s*tk + ii - jj) % n]
                   (n*tk f32 = 6 MiB at tk=512, vs 36 MiB for the dense circulant).
    Last layer   : dense W[j, i] = c[(i - j) % n] for the padded class columns only.
    """
    hidden_prep = []
    for diag, circ, bias in hidden_raw:
        n = diag.shape[0]
        assert n % tk == 0
        nb = n // tk
        s = jnp.arange(nb)[:, None, None]
        jj = jnp.arange(tk)[None, :, None]
        ii = jnp.arange(tk)[None, None, :]
        idx = (s * tk + ii - jj) % n
        wblk = circ[idx].astype(jnp.float32)                      # (nb, tk, tk)
        hidden_prep.append((diag.reshape(1, n).astype(jnp.float32),
                            wblk,
                            bias.reshape(1, n).astype(jnp.float32)))

    diag, circ, bias = last_raw
    n = diag.shape[0]
    n_out_pad = ((num_classes + 127) // 128) * 128
    idx = (jnp.arange(n_out_pad)[None, :] - jnp.arange(n)[:, None]) % n
    w_last = circ[idx].astype(jnp.float32)                        # (n, n_out_pad)
    b_last = jnp.zeros((1, n_out_pad), jnp.float32).at[0, :num_classes].set(bias)
    last_prep = (diag.reshape(1, n).astype(jnp.float32), w_last, b_last)
    return hidden_prep, last_prep


# --------------------------------- model --------------------------------------

def diagonal_circulant_model(x_nchw, hidden_prep, last_prep, num_classes=10):
    B = x_nchw.shape[0]
    x = x_nchw.reshape(B, -1).astype(jnp.float32)      # == torch x.view(B, -1)
    for d2, wblk, b2 in hidden_prep:
        x = dc_layer_square(x, d2, wblk, b2)           # diag * circulant + bias + ReLU
    d2, w_last, b_last = last_prep
    return dc_layer_dense(x, d2, w_last, b_last, n_out=num_classes, apply_relu=False)


# ---------------------------- pure-JAX reference -------------------------------

def _ref_layer(x, diag, circ, bias, n_out):
    n = x.shape[-1]
    idx = (jnp.arange(n)[:, None] - jnp.arange(n)[None, :]) % n
    C = circ[idx]                                      # C[i, j] = c[(i - j) % n]
    y = (x * diag[None, :]) @ C.T
    return y[:, :n_out] + bias[None, :]


def _ref_model(x_nchw, hidden_raw, last_raw, num_classes=10):
    B = x_nchw.shape[0]
    x = x_nchw.reshape(B, -1).astype(jnp.float32)
    for diag, circ, bias in hidden_raw:
        x = jnp.maximum(_ref_layer(x, diag, circ, bias, x.shape[-1]), 0.0)
    diag, circ, bias = last_raw
    return _ref_layer(x, diag, circ, bias, num_classes)


# ----------------------------------- main --------------------------------------

if __name__ == "__main__":
    key = jax.random.PRNGKey(0)
    key, xk = jax.random.split(key)

    # CIFAR-10-like input: NCHW, 3*32*32 = 3072 features after flattening.
    x = jax.random.normal(xk, (2, 3, 32, 32), jnp.float32)

    n_layers = 2   # small synthetic configuration
    hidden_raw, last_raw = init_raw_params(key, n_layers)
    hidden_prep, last_prep = prepare_params(hidden_raw, last_raw)   # weights built ONCE

    forward = jax.jit(diagonal_circulant_model)
    out = jax.block_until_ready(forward(x, hidden_prep, last_prep))
    assert out.shape == (2, 10)

    ref = jax.block_until_ready(_ref_model(x, hidden_raw, last_raw))
    np.testing.assert_allclose(np.asarray(out), np.asarray(ref), rtol=1e-3, atol=1e-3)

    print("KERNEL_OK")
</pallas_src>

<mosaic_0001>
module attributes {stable_mosaic.version = 11 : i64} {
  func.func @_dc_dense_kernel(%arg0: i32, %arg1: memref<2x3072xf32, #tpu.memory_space<vmem>>, %arg2: memref<1x3072xf32, #tpu.memory_space<vmem>>, %arg3: memref<3072x128xf32, #tpu.memory_space<vmem>>, %arg4: memref<1x128xf32, #tpu.memory_space<vmem>>, %arg5: memref<2x128xf32, #tpu.memory_space<vmem>>) attributes {dimension_semantics = [#tpu.dimension_semantics<arbitrary>], iteration_bounds = array<i64: 1>, scalar_prefetch = 0 : i64, scratch_operands = 0 : i64, tpu.core_type = #tpu.core_type<tc>, window_params = [{pipeline_mode = #tpu.pipeline_mode<synchronous>, transform_indices = @transform_0, window_bounds = array<i64: 2, 3072>}, {pipeline_mode = #tpu.pipeline_mode<synchronous>, transform_indices = @transform_1, window_bounds = array<i64: 1, 3072>}, {pipeline_mode = #tpu.pipeline_mode<synchronous>, transform_indices = @transform_2, window_bounds = array<i64: 3072, 128>}, {pipeline_mode = #tpu.pipeline_mode<synchronous>, transform_indices = @transform_3, window_bounds = array<i64: 1, 128>}, {pipeline_mode = #tpu.pipeline_mode<synchronous>, transform_indices = @transform_4, window_bounds = array<i64: 2, 128>}]} {
    %c0 = arith.constant 0 : index
    %c0_0 = arith.constant 0 : index
    %0 = vector.load %arg1[%c0, %c0_0] : memref<2x3072xf32, #tpu.memory_space<vmem>>, vector<2x3072xf32>
    %c0_1 = arith.constant 0 : index
    %c0_2 = arith.constant 0 : index
    %1 = vector.load %arg2[%c0_1, %c0_2] : memref<1x3072xf32, #tpu.memory_space<vmem>>, vector<1x3072xf32>
    %2 = vector.broadcast %1 : vector<1x3072xf32> to vector<2x3072xf32>
    %3 = arith.mulf %0, %2 : vector<2x3072xf32>
    %c0_3 = arith.constant 0 : index
    %c0_4 = arith.constant 0 : index
    %4 = vector.load %arg3[%c0_3, %c0_4] : memref<3072x128xf32, #tpu.memory_space<vmem>>, vector<3072x128xf32>
    %cst = arith.constant dense<0.000000e+00> : vector<2x128xf32>
    %5 = tpu.matmul %3, %4, %cst {dimension_numbers = #tpu.dot_dimension_numbers<[1], [0], [0], [1], [0, 0, 1, 1], [], []>} : vector<2x3072xf32>, vector<3072x128xf32>, vector<2x128xf32> -> vector<2x128xf32>
    %c0_5 = arith.constant 0 : index
    %c0_6 = arith.constant 0 : index
    %6 = vector.load %arg4[%c0_5, %c0_6] : memref<1x128xf32, #tpu.memory_space<vmem>>, vector<1x128xf32>
    %7 = vector.broadcast %6 : vector<1x128xf32> to vector<2x128xf32>
    %8 = arith.addf %5, %7 : vector<2x128xf32>
    %c0_7 = arith.constant 0 : index
    %c0_8 = arith.constant 0 : index
    %9 = vector.load %arg5[%c0_7, %c0_8] : memref<2x128xf32, #tpu.memory_space<vmem>>, vector<2x128xf32>
    tpu.vector_store %arg5[%c0_7, %c0_8], %8 {strides = array<i32>} : memref<2x128xf32, #tpu.memory_space<vmem>>, vector<2x128xf32>,
    return
  }
  func.func @transform_0(%arg0: i32) -> (i32, i32) {
    %c0_i32 = arith.constant 0 : i32
    %c0_i32_0 = arith.constant 0 : i32
    %c0_i32_1 = arith.constant 0 : i32
    return %c0_i32, %c0_i32_0 : i32, i32
  }
  func.func @transform_1(%arg0: i32) -> (i32, i32) {
    %c0_i32 = arith.constant 0 : i32
    %c0_i32_0 = arith.constant 0 : i32
    %c0_i32_1 = arith.constant 0 : i32
    return %c0_i32, %c0_i32_0 : i32, i32
  }
  func.func @transform_2(%arg0: i32) -> (i32, i32) {
    %c0_i32 = arith.constant 0 : i32
    %c0_i32_0 = arith.constant 0 : i32
    %c0_i32_1 = arith.constant 0 : i32
    return %c0_i32, %c0_i32_0 : i32, i32
  }
  func.func @transform_3(%arg0: i32) -> (i32, i32) {
    %c0_i32 = arith.constant 0 : i32
    %c0_i32_0 = arith.constant 0 : i32
    %c0_i32_1 = arith.constant 0 : i32
    return %c0_i32, %c0_i32_0 : i32, i32
  }
  func.func @transform_4(%arg0: i32) -> (i32, i32) {
    %c0_i32 = arith.constant 0 : i32
    %c0_i32_0 = arith.constant 0 : i32
    %c0_i32_1 = arith.constant 0 : i32
    return %c0_i32, %c0_i32_0 : i32, i32
  }
}

module attributes {stable_mosaic.version = 11 : i64} {
  func.func @_dc_block_kernel(%arg0: i32, %arg1: memref<2x3072xf32, #tpu.memory_space<vmem>>, %arg2: memref<1x3072xf32, #tpu.memory_space<vmem>>, %arg3: memref<6x512x512xf32, #tpu.memory_space<vmem>>, %arg4: memref<1x512xf32, #tpu.memory_space<vmem>>, %arg5: memref<2x512xf32, #tpu.memory_space<vmem>>) attributes {dimension_semantics = [#tpu.dimension_semantics<parallel>], iteration_bounds = array<i64: 6>, scalar_prefetch = 0 : i64, scratch_operands = 0 : i64, tpu.core_type = #tpu.core_type<tc>, window_params = [{pipeline_mode = #tpu.pipeline_mode<synchronous>, transform_indices = @transform_0, window_bounds = array<i64: 2, 3072>}, {pipeline_mode = #tpu.pipeline_mode<synchronous>, transform_indices = @transform_1, window_bounds = array<i64: 1, 3072>}, {pipeline_mode = #tpu.pipeline_mode<synchronous>, transform_indices = @transform_2, window_bounds = array<i64: 6, 512, 512>}, {transform_indices = @transform_3, window_bounds = array<i64: 1, 512>}, {transform_indices = @transform_4, window_bounds = array<i64: 2, 512>}]} {
    %c0 = arith.constant 0 : index
    %c0_0 = arith.constant 0 : index
    %0 = vector.load %arg1[%c0, %c0_0] : memref<2x3072xf32, #tpu.memory_space<vmem>>, vector<2x3072xf32>
    %c0_1 = arith.constant 0 : index
    %c0_2 = arith.constant 0 : index
    %1 = vector.load %arg2[%c0_1, %c0_2] : memref<1x3072xf32, #tpu.memory_space<vmem>>, vector<1x3072xf32>
    %2 = vector.broadcast %1 : vector<1x3072xf32> to vector<2x3072xf32>
    %3 = arith.mulf %0, %2 : vector<2x3072xf32>
    %cst = arith.constant 0.000000e+00 : f32
    %4 = vector.broadcast %cst : f32 to vector<2x512xf32>
    %c0_3 = arith.constant 0 : index
    %c0_4 = arith.constant 0 : index
    %5 = vector.load %arg4[%c0_3, %c0_4] : memref<1x512xf32, #tpu.memory_space<vmem>>, vector<1x512xf32>
    %6 = vector.broadcast %5 : vector<1x512xf32> to vector<2x512xf32>
    %7 = arith.addf %4, %6 : vector<2x512xf32>
    %c6_i32 = arith.constant 6 : i32
    %8 = arith.addi %arg0, %c6_i32 : i32
    %c6_i32_5 = arith.constant 6 : i32
    %c0_i32 = arith.constant 0 : i32
    %9 = arith.cmpi eq, %c6_i32_5, %c0_i32 : i32
    %c1_i32 = arith.constant 1 : i32
    %10 = arith.select %9, %c1_i32, %c6_i32_5 : i32
    %11 = arith.remsi %8, %10 : i32
    %c0_i32_6 = arith.constant 0 : i32
    %12 = arith.cmpi ne, %11, %c0_i32_6 : i32
    %c0_i32_7 = arith.constant 0 : i32
    %13 = arith.cmpi slt, %11, %c0_i32_7 : i32
    %c0_i32_8 = arith.constant 0 : i32
    %14 = arith.cmpi slt, %10, %c0_i32_8 : i32
    %15 = arith.xori %13, %14 : i1
    %16 = arith.andi %15, %12 : i1
    %17 = arith.addi %11, %10 : i32
    %18 = arith.select %16, %17, %11 : i32
    %19 = vector.extract_strided_slice %3 {offsets = [0, 0], sizes = [2, 512], strides = [1, 1]} : vector<2x3072xf32> to vector<2x512xf32>
    %20 = arith.index_cast %18 : i32 to index
    %c0_9 = arith.constant 0 : index
    %c0_10 = arith.constant 0 : index
    %21 = vector.load %arg3[%20, %c0_9, %c0_10] : memref<6x512x512xf32, #tpu.memory_space<vmem>>, vector<1x512x512xf32>
    %22 = vector.shape_cast %21 : vector<1x512x512xf32> to vector<512x512xf32>
    %cst_11 = arith.constant dense<0.000000e+00> : vector<2x512xf32>
    %23 = tpu.matmul %19, %22, %cst_11 {dimension_numbers = #tpu.dot_dimension_numbers<[1], [0], [0], [1], [0, 0, 1, 1], [], []>} : vector<2x512xf32>, vector<512x512xf32>, vector<2x512xf32> -> vector<2x512xf32>
    %24 = arith.addf %7, %23 : vector<2x512xf32>
    %c5_i32 = arith.constant 5 : i32
    %25 = arith.addi %arg0, %c5_i32 : i32
    %c6_i32_12 = arith.constant 6 : i32
    %c0_i32_13 = arith.constant 0 : i32
    %26 = arith.cmpi eq, %c6_i32_12, %c0_i32_13 : i32
    %c1_i32_14 = arith.constant 1 : i32
    %27 = arith.select %26, %c1_i32_14, %c6_i32_12 : i32
    %28 = arith.remsi %25, %27 : i32
    %c0_i32_15 = arith.constant 0 : i32
    %29 = arith.cmpi ne, %28, %c0_i32_15 : i32
    %c0_i32_16 = arith.constant 0 : i32
    %30 = arith.cmpi slt, %28, %c0_i32_16 : i32
    %c0_i32_17 = arith.constant 0 : i32
    %31 = arith.cmpi slt, %27, %c0_i32_17 : i32
    %32 = arith.xori %30, %31 : i1
    %33 = arith.andi %32, %29 : i1
    %34 = arith.addi %28, %27 : i32
    %35 = arith.select %33, %34, %28 : i32
    %36 = vector.extract_strided_slice %3 {offsets = [0, 512], sizes = [2, 512], strides = [1, 1]} : vector<2x3072xf32> to vector<2x512xf32>
    %37 = arith.index_cast %35 : i32 to index
    %c0_18 = arith.constant 0 : index
    %c0_19 = arith.constant 0 : index
    %38 = vector.load %arg3[%37, %c0_18, %c0_19] : memref<6x512x512xf32, #tpu.memory_space<vmem>>, vector<1x512x512xf32>
    %39 = vector.shape_cast %38 : vector<1x512x512xf32> to vector<512x512xf32>
    %cst_20 = arith.constant dense<0.000000e+00> : vector<2x512xf32>
    %40 = tpu.matmul %36, %39, %cst_20 {dimension_numbers = #tpu.dot_dimension_numbers<[1], [0], [0], [1], [0, 0, 1, 1], [], []>} : vector<2x512xf32>, vector<512x512xf32>, vector<2x512xf32> -> vector<2x512xf32>
    %41 = arith.addf %24, %40 : vector<2x512xf32>
    %c4_i32 = arith.constant 4 : i32
    %42 = arith.addi %arg0, %c4_i32 : i32
    %c6_i32_21 = arith.constant 6 : i32
    %c0_i32_22 = arith.constant 0 : i32
    %43 = arith.cmpi eq, %c6_i32_21, %c0_i32_22 : i32
    %c1_i32_23 = arith.constant 1 : i32
    %44 = arith.select %43, %c1_i32_23, %c6_i32_21 : i32
    %45 = arith.remsi %42, %44 : i32
    %c0_i32_24 = arith.constant 0 : i32
    %46 = arith.cmpi ne, %45, %c0_i32_24 : i32
    %c0_i32_25 = arith.constant 0 : i32
    %47 = arith.cmpi slt, %45, %c0_i32_25 : i32
    %c0_i32_26 = arith.constant 0 : i32
    %48 = arith.cmpi slt, %44, %c0_i32_26 : i32
    %49 = arith.xori %47, %48 : i1
    %50 = arith.andi %49, %46 : i1
    %51 = arith.addi %45, %44 : i32
    %52 = arith.select %50, %51, %45 : i32
    %53 = vector.extract_strided_slice %3 {offsets = [0, 1024], sizes = [2, 512], strides = [1, 1]} : vector<2x3072xf32> to vector<2x512xf32>
    %54 = arith.index_cast %52 : i32 to index
    %c0_27 = arith.constant 0 : index
    %c0_28 = arith.constant 0 : index
    %55 = vector.load %arg3[%54, %c0_27, %c0_28] : memref<6x512x512xf32, #tpu.memory_space<vmem>>, vector<1x512x512xf32>
    %56 = vector.shape_cast %55 : vector<1x512x512xf32> to vector<512x512xf32>
    %cst_29 = arith.constant dense<0.000000e+00> : vector<2x512xf32>
    %57 = tpu.matmul %53, %56, %cst_29 {dimension_numbers = #tpu.dot_dimension_numbers<[1], [0], [0], [1], [0, 0, 1, 1], [], []>} : vector<2x512xf32>, vector<512x512xf32>, vector<2x512xf32> -> vector<2x512xf32>
    %58 = arith.addf %41, %57 : vector<2x512xf32>
    %c3_i32 = arith.constant 3 : i32
    %59 = arith.addi %arg0, %c3_i32 : i32
    %c6_i32_30 = arith.constant 6 : i32
    %c0_i32_31 = arith.constant 0 : i32
    %60 = arith.cmpi eq, %c6_i32_30, %c0_i32_31 : i32
    %c1_i32_32 = arith.constant 1 : i32
    %61 = arith.select %60, %c1_i32_32, %c6_i32_30 : i32
    %62 = arith.remsi %59, %61 : i32
    %c0_i32_33 = arith.constant 0 : i32
    %63 = arith.cmpi ne, %62, %c0_i32_33 : i32
    %c0_i32_34 = arith.constant 0 : i32
    %64 = arith.cmpi slt, %62, %c0_i32_34 : i32
    %c0_i32_35 = arith.constant 0 : i32
    %65 = arith.cmpi slt, %61, %c0_i32_35 : i32
    %66 = arith.xori %64, %65 : i1
    %67 = arith.andi %66, %63 : i1
    %68 = arith.addi %62, %61 : i32
    %69 = arith.select %67, %68, %62 : i32
    %70 = vector.extract_strided_slice %3 {offsets = [0, 1536], sizes = [2, 512], strides = [1, 1]} : vector<2x3072xf32> to vector<2x512xf32>
    %71 = arith.index_cast %69 : i32 to index
    %c0_36 = arith.constant 0 : index
    %c0_37 = arith.constant 0 : index
    %72 = vector.load %arg3[%71, %c0_36, %c0_37] : memref<6x512x512xf32, #tpu.memory_space<vmem>>, vector<1x512x512xf32>
    %73 = vector.shape_cast %72 : vector<1x512x512xf32> to vector<512x512xf32>
    %cst_38 = arith.constant dense<0.000000e+00> : vector<2x512xf32>
    %74 = tpu.matmul %70, %73, %cst_38 {dimension_numbers = #tpu.dot_dimension_numbers<[1], [0], [0], [1], [0, 0, 1, 1], [], []>} : vector<2x512xf32>, vector<512x512xf32>, vector<2x512xf32> -> vector<2x512xf32>
    %75 = arith.addf %58, %74 : vector<2x512xf32>
    %c2_i32 = arith.constant 2 : i32
    %76 = arith.addi %arg0, %c2_i32 : i32
    %c6_i32_39 = arith.constant 6 : i32
    %c0_i32_40 = arith.constant 0 : i32
    %77 = arith.cmpi eq, %c6_i32_39, %c0_i32_40 : i32
    %c1_i32_41 = arith.constant 1 : i32
    %78 = arith.select %77, %c1_i32_41, %c6_i32_39 : i32
    %79 = arith.remsi %76, %78 : i32
    %c0_i32_42 = arith.constant 0 : i32
    %80 = arith.cmpi ne, %79, %c0_i32_42 : i32
    %c0_i32_43 = arith.constant 0 : i32
    %81 = arith.cmpi slt, %79, %c0_i32_43 : i32
    %c0_i32_44 = arith.constant 0 : i32
    %82 = arith.cmpi slt, %78, %c0_i32_44 : i32
    %83 = arith.xori %81, %82 : i1
    %84 = arith.andi %83, %80 : i1
    %85 = arith.addi %79, %78 : i32
    %86 = arith.select %84, %85, %79 : i32
    %87 = vector.extract_strided_slice %3 {offsets = [0, 2048], sizes = [2, 512], strides = [1, 1]} : vector<2x3072xf32> to vector<2x512xf32>
    %88 = arith.index_cast %86 : i32 to index
    %c0_45 = arith.constant 0 : index
    %c0_46 = arith.constant 0 : index
    %89 = vector.load %arg3[%88, %c0_45, %c0_46] : memref<6x512x512xf32, #tpu.memory_space<vmem>>, vector<1x512x512xf32>
    %90 = vector.shape_cast %89 : vector<1x512x512xf32> to vector<512x512xf32>
    %cst_47 = arith.constant dense<0.000000e+00> : vector<2x512xf32>
    %91 = tpu.matmul %87, %90, %cst_47 {dimension_numbers = #tpu.dot_dimension_numbers<[1], [0], [0], [1], [0, 0, 1, 1], [], []>} : vector<2x512xf32>, vector<512x512xf32>, vector<2x512xf32> -> vector<2x512xf32>
    %92 = arith.addf %75, %91 : vector<2x512xf32>
    %c1_i32_48 = arith.constant 1 : i32
    %93 = arith.addi %arg0, %c1_i32_48 : i32
    %c6_i32_49 = arith.constant 6 : i32
    %c0_i32_50 = arith.constant 0 : i32
    %94 = arith.cmpi eq, %c6_i32_49, %c0_i32_50 : i32
    %c1_i32_51 = arith.constant 1 : i32
    %95 = arith.select %94, %c1_i32_51, %c6_i32_49 : i32
    %96 = arith.remsi %93, %95 : i32
    %c0_i32_52 = arith.constant 0 : i32
    %97 = arith.cmpi ne, %96, %c0_i32_52 : i32
    %c0_i32_53 = arith.constant 0 : i32
    %98 = arith.cmpi slt, %96, %c0_i32_53 : i32
    %c0_i32_54 = arith.constant 0 : i32
    %99 = arith.cmpi slt, %95, %c0_i32_54 : i32
    %100 = arith.xori %98, %99 : i1
    %101 = arith.andi %100, %97 : i1
    %102 = arith.addi %96, %95 : i32
    %103 = arith.select %101, %102, %96 : i32
    %104 = vector.extract_strided_slice %3 {offsets = [0, 2560], sizes = [2, 512], strides = [1, 1]} : vector<2x3072xf32> to vector<2x512xf32>
    %105 = arith.index_cast %103 : i32 to index
    %c0_55 = arith.constant 0 : index
    %c0_56 = arith.constant 0 : index
    %106 = vector.load %arg3[%105, %c0_55, %c0_56] : memref<6x512x512xf32, #tpu.memory_space<vmem>>, vector<1x512x512xf32>
    %107 = vector.shape_cast %106 : vector<1x512x512xf32> to vector<512x512xf32>
    %cst_57 = arith.constant dense<0.000000e+00> : vector<2x512xf32>
    %108 = tpu.matmul %104, %107, %cst_57 {dimension_numbers = #tpu.dot_dimension_numbers<[1], [0], [0], [1], [0, 0, 1, 1], [], []>} : vector<2x512xf32>, vector<512x512xf32>, vector<2x512xf32> -> vector<2x512xf32>
    %109 = arith.addf %92, %108 : vector<2x512xf32>
    %cst_58 = arith.constant 0.000000e+00 : f32
    %110 = vector.broadcast %cst_58 : f32 to vector<2x512xf32>
    %111 = arith.maximumf %109, %110 : vector<2x512xf32>
    %c0_59 = arith.constant 0 : index
    %c0_60 = arith.constant 0 : index
    %112 = vector.load %arg5[%c0_59, %c0_60] : memref<2x512xf32, #tpu.memory_space<vmem>>, vector<2x512xf32>
    tpu.vector_store %arg5[%c0_59, %c0_60], %111 {strides = array<i32>} : memref<2x512xf32, #tpu.memory_space<vmem>>, vector<2x512xf32>,
    return
  }
  func.func @transform_0(%arg0: i32) -> (i32, i32) {
    %c0_i32 = arith.constant 0 : i32
    %c0_i32_0 = arith.constant 0 : i32
    %c0_i32_1 = arith.constant 0 : i32
    return %c0_i32, %c0_i32_0 : i32, i32
  }
  func.func @transform_1(%arg0: i32) -> (i32, i32) {
    %c0_i32 = arith.constant 0 : i32
    %c0_i32_0 = arith.constant 0 : i32
    %c0_i32_1 = arith.constant 0 : i32
    return %c0_i32, %c0_i32_0 : i32, i32
  }
  func.func @transform_2(%arg0: i32) -> (i32, i32, i32) {
    %c0_i32 = arith.constant 0 : i32
    %c0_i32_0 = arith.constant 0 : i32
    %c0_i32_1 = arith.constant 0 : i32
    %c0_i32_2 = arith.constant 0 : i32
    return %c0_i32, %c0_i32_0, %c0_i32_1 : i32, i32, i32
  }
  func.func @transform_3(%arg0: i32) -> (i32, i32) {
    %c0_i32 = arith.constant 0 : i32
    %c0_i32_0 = arith.constant 0 : i32
    return %c0_i32, %arg0 : i32, i32
  }
  func.func @transform_4(%arg0: i32) -> (i32, i32) {
    %c0_i32 = arith.constant 0 : i32
    %c0_i32_0 = arith.constant 0 : i32
    return %c0_i32, %arg0 : i32, i32
  }
}

</mosaic_0001>

<bundles_post_ra>
// kernel: diagonal_circulant_model.5
= control target key start
LH: loop header
LB: loop body
LE: loop exit
PB: predicated region body
PF: predicated region fallthrough
CT: control target
= control target key end

     0   :  { %9 = vsyncpa [#allocation3], 0  ;;  %s1338_s0 = inlined_call_operand.vmem [shape: f32[2,3072], index: 0, kind: input, shape index: {}]   ;;  %s1339_s1 = inlined_call_operand.hbm [shape: f32[1,3072], index: 1, kind: input, shape index: {}]   ;;  %s1340_s2 = inlined_call_operand.hbm [shape: f32[3072,128], index: 2, kind: input, shape index: {}]   ;;  %s1341_s3 = inlined_call_operand.hbm [shape: f32[1,128], index: 3, kind: input, shape index: {}]   ;;  %s1342_s4 = inlined_call_operand.hbm [shape: f32[2,128], index: 4, kind: output, shape index: {}]  }
   0x1   :  { %10 = vsyncpa [#allocation6], 0  ;;  %s29_s17 = sshll.u32 %s1340_s2, 4  ;;  %s30_s17 = int_to_ptr.hbm [resolvable:$true] %s29_s17 }
   0x2   :  { %11 = vsyncpa [#allocation4], 0  ;;  %s1205_s18 = smov [#allocation5]   ;;  %s19_s22 = sshll.u32 %s1339_s1, 4  ;;  %s20_s22 = int_to_ptr.hbm [resolvable:$true] %s19_s22 }
   0x3   :  { %s31_s19 = sshll.u32 %s1205_s18, 4  ;;  %s1206_s23 = smov 128   ;;  %s32_s19 = int_to_ptr.vmem [resolvable:$true] %s31_s19 }
   0x4   :  { %s1207_s24 = smov 8   ;;  %s1208_s25 = smov [#allocation2]  }
   0x5   :  { %37 = dma.hbm_to_vmem [thread:$0]  %s30_s17, 49152, %s32_s19, [#allocation6], %s1206_s23, %s1206_s23, %s1207_s24  }
   0x6   :  { %s21_s26 = sshll.u32 %s1208_s25, 4  ;;  %s43_s29 = sshll.u32 %s1341_s3, 4  ;;  %s22_s26 = int_to_ptr.vmem [resolvable:$true] %s21_s26  ;;  %s44_s29 = int_to_ptr.hbm [resolvable:$true] %s43_s29 }
   0x7   :  { %24 = dma.hbm_to_vmem [thread:$0]  %s20_s22, 384, %s22_s26, [#allocation3]  }
   0x8   :  { %s1209_s2 = smov [#allocation7]  }
   0x9   :  { %s45_s30 = sshll.u32 %s1209_s2, 4  ;;  %s46_s30 = int_to_ptr.vmem [resolvable:$true] %s45_s30 }
   0xa   :  { %48 = dma.hbm_to_vmem [thread:$0]  %s44_s29, 16, %s46_s30, [#allocation6]  }
   0xb   :  { %1199 = dma.done.wait [#allocation3], 384  }
   0xc   :  { %1200 = vsyncadd [#allocation3], 4294966912 }
   0xd   :  { %1201 = dma.done.wait [#allocation6], 49168  }
   0xe   :  { %1202 = vsyncadd [#allocation6], 4294918128  ;;  %v163_v0 = vld [vmem:[#allocation5 + $0x78] sm:$0xff]  ;;  %v162_v2 = vld [vmem:[#allocation5 + $0x70] sm:$0xff]  ;;  %vm115_vm0 = vcmask 1041408   ;;  %vm117_vm1 = vcmask 1045508  }
   0xf   :  { %v195_v1 = vld [vmem:[#allocation5 + $0x178] sm:$0xff]  ;;  %597 = vmatpush.msra.mxu0 %v163_v0  ;;  %v194_v4 = vld [vmem:[#allocation5 + $0x170] sm:$0xff]  ;;  %v161_v6 = vld [vmem:[#allocation5 + $0x68] sm:$0xff]  ;;  %vm119_vm2 = vcmask 1043456   ;;  %s1085_s18 = sshll.u32 %s1342_s4, 4  ;;  %s1086_s18 = int_to_ptr.hbm [resolvable:$true] %s1085_s18 }
  0x10   :  { %637 = vmatpush.msra.mxu2 %v195_v1  ;;  %v179_v3 = vld [vmem:[#allocation5 + $0xf8] sm:$0xff]  ;;  %v178_v7 = vld [vmem:[#allocation5 + $0xf0] sm:$0xff]  ;;  %v193_v8 = vld [vmem:[#allocation5 + $0x168] sm:$0xff] }
  0x11   :  { %v211_v5 = vld [vmem:[#allocation5 + $0x1f8] sm:$0xff]  ;;  %617 = vmatpush.msra.mxu1 %v179_v3  ;;  %598 = vmatpush.msra.mxu0 %v162_v2  ;;  %v210_v9 = vld [vmem:[#allocation5 + $0x1f0] sm:$0xff]  ;;  %v177_v10 = vld [vmem:[#allocation5 + $0xe8] sm:$0xff] }
  0x12   :  { %657 = vmatpush.msra.mxu3 %v211_v5  ;;  %638 = vmatpush.msra.mxu2 %v194_v4  ;;  %v160_v11 = vld [vmem:[#allocation5 + $0x60] sm:$0xff]  ;;  %v209_v13 = vld [vmem:[#allocation5 + $0x1e8] sm:$0xff]  ;;  %v159_v16 = vld [vmem:[#allocation5 + $0x58] sm:$0xff] }
  0x13   :  { %618 = vmatpush.msra.mxu1 %v178_v7  ;;  %v192_v12 = vld [vmem:[#allocation5 + $0x160] sm:$0xff]  ;;  %599 = vmatpush.msra.mxu0 %v161_v6  ;;  %v191_v17 = vld [vmem:[#allocation5 + $0x158] sm:$0xff]  ;;  %v158_v20 = vld [vmem:[#allocation5 + $0x50] sm:$0xff] }
  0x14   :  { %658 = vmatpush.msra.mxu3 %v210_v9  ;;  %639 = vmatpush.msra.mxu2 %v193_v8  ;;  %v176_v14 = vld [vmem:[#allocation5 + $0xe0] sm:$0xff]  ;;  %v175_v18 = vld [vmem:[#allocation5 + $0xd8] sm:$0xff]  ;;  %v190_v21 = vld [vmem:[#allocation5 + $0x150] sm:$0xff] }
  0x15   :  { %v208_v15 = vld [vmem:[#allocation5 + $0x1e0] sm:$0xff]  ;;  %619 = vmatpush.msra.mxu1 %v177_v10  ;;  %600 = vmatpush.msra.mxu0 %v160_v11  ;;  %v207_v19 = vld [vmem:[#allocation5 + $0x1d8] sm:$0xff]  ;;  %v174_v22 = vld [vmem:[#allocation5 + $0xd0] sm:$0xff] }
  0x16   :  { %659 = vmatpush.msra.mxu3 %v209_v13  ;;  %640 = vmatpush.msra.mxu2 %v192_v12  ;;  %v206_v23 = vld [vmem:[#allocation5 + $0x1d0] sm:$0xff]  ;;  %v157_v24 = vld [vmem:[#allocation5 + $0x48] sm:$0xff]  ;;  %v156_v28 = vld [vmem:[#allocation5 + $0x40] sm:$0xff] }
  0x17   :  { %620 = vmatpush.msra.mxu1 %v176_v14  ;;  %601 = vmatpush.msra.mxu0 %v159_v16  ;;  %v189_v25 = vld [vmem:[#allocation5 + $0x148] sm:$0xff]  ;;  %v188_v29 = vld [vmem:[#allocation5 + $0x140] sm:$0xff]  ;;  %v155_v32 = vld [vmem:[#allocation5 + $0x38] sm:$0xff] }
  0x18   :  { %660 = vmatpush.msra.mxu3 %v208_v15  ;;  %641 = vmatpush.msra.mxu2 %v191_v17  ;;  %v173_v26 = vld [vmem:[#allocation5 + $0xc8] sm:$0xff]  ;;  %v172_v30 = vld [vmem:[#allocation5 + $0xc0] sm:$0xff]  ;;  %v187_v33 = vld [vmem:[#allocation5 + $0x138] sm:$0xff] }
  0x19   :  { %621 = vmatpush.msra.mxu1 %v175_v18  ;;  %602 = vmatpush.msra.mxu0 %v158_v20  ;;  %v205_v27 = vld [vmem:[#allocation5 + $0x1c8] sm:$0xff]  ;;  %v204_v31 = vld [vmem:[#allocation5 + $0x1c0] sm:$0xff]  ;;  %v171_v34 = vld [vmem:[#allocation5 + $0xb8] sm:$0xff] }
  0x1a   :  { %661 = vmatpush.msra.mxu3 %v207_v19  ;;  %642 = vmatpush.msra.mxu2 %v190_v21  ;;  %v203_v35 = vld [vmem:[#allocation5 + $0x1b8] sm:$0xff]  ;;  %v154_v36 = vld [vmem:[#allocation5 + $0x30] sm:$0xff]  ;;  %v153_v40 = vld [vmem:[#allocation5 + $0x28] sm:$0xff] }
  0x1b   :  { %622 = vmatpush.msra.mxu1 %v174_v22  ;;  %603 = vmatpush.msra.mxu0 %v157_v24  ;;  %v186_v37 = vld [vmem:[#allocation5 + $0x130] sm:$0xff]  ;;  %v185_v41 = vld [vmem:[#allocation5 + $0x128] sm:$0xff]  ;;  %v152_v44 = vld [vmem:[#allocation5 + $0x20] sm:$0xff] }
  0x1c   :  { %662 = vmatpush.msra.mxu3 %v206_v23  ;;  %643 = vmatpush.msra.mxu2 %v189_v25  ;;  %v170_v38 = vld [vmem:[#allocation5 + $0xb0] sm:$0xff]  ;;  %v169_v42 = vld [vmem:[#allocation5 + $0xa8] sm:$0xff]  ;;  %v184_v45 = vld [vmem:[#allocation5 + $0x120] sm:$0xff] }
  0x1d   :  { %623 = vmatpush.msra.mxu1 %v173_v26  ;;  %604 = vmatpush.msra.mxu0 %v156_v28  ;;  %v202_v39 = vld [vmem:[#allocation5 + $0x1b0] sm:$0xff]  ;;  %v201_v43 = vld [vmem:[#allocation5 + $0x1a8] sm:$0xff]  ;;  %v168_v46 = vld [vmem:[#allocation5 + $0xa0] sm:$0xff] }
  0x1e   :  { %663 = vmatpush.msra.mxu3 %v205_v27  ;;  %644 = vmatpush.msra.mxu2 %v188_v29  ;;  %v200_v47 = vld [vmem:[#allocation5 + $0x1a0] sm:$0xff]  ;;  %v151_v48 = vld [vmem:[#allocation5 + $0x18] sm:$0xff]  ;;  %v150_v52 = vld [vmem:[#allocation5 + $0x10] sm:$0xff] }
  0x1f   :  { %624 = vmatpush.msra.mxu1 %v172_v30  ;;  %605 = vmatpush.msra.mxu0 %v155_v32  ;;  %v183_v49 = vld [vmem:[#allocation5 + $0x118] sm:$0xff]  ;;  %v182_v53 = vld [vmem:[#allocation5 + $0x110] sm:$0xff]  ;;  %v149_v56 = vld [vmem:[#allocation5 + $0x8] sm:$0xff] }
  0x20   :  { %664 = vmatpush.msra.mxu3 %v204_v31  ;;  %645 = vmatpush.msra.mxu2 %v187_v33  ;;  %v167_v50 = vld [vmem:[#allocation5 + $0x98] sm:$0xff]  ;;  %v166_v54 = vld [vmem:[#allocation5 + $0x90] sm:$0xff]  ;;  %v181_v57 = vld [vmem:[#allocation5 + $0x108] sm:$0xff] }
  0x21   :  { %625 = vmatpush.msra.mxu1 %v171_v34  ;;  %606 = vmatpush.msra.mxu0 %v154_v36  ;;  %v199_v51 = vld [vmem:[#allocation5 + $0x198] sm:$0xff]  ;;  %v198_v55 = vld [vmem:[#allocation5 + $0x190] sm:$0xff]  ;;  %v165_v58 = vld [vmem:[#allocation5 + $0x88] sm:$0xff] }
  0x22   :  { %665 = vmatpush.msra.mxu3 %v203_v35  ;;  %646 = vmatpush.msra.mxu2 %v186_v37  ;;  %v197_v59 = vld [vmem:[#allocation5 + $0x188] sm:$0xff]  ;;  %v148_v60 = vld [vmem:[#allocation5] sm:$0xff]  ;;  %v227_v62 = vld [vmem:[#allocation5 + $0x278] sm:$0xff] }
  0x23   :  { %626 = vmatpush.msra.mxu1 %v170_v38  ;;  %607 = vmatpush.msra.mxu0 %v153_v40  ;;  %v180_v61 = vld [vmem:[#allocation5 + $0x100] sm:$0xff]  ;;  %v259_v63 = vld [vmem:[#allocation5 + $0x378] sm:$0xff]  ;;  %v226_v2 = vld [vmem:[#allocation5 + $0x270] sm:$0xff] }
  0x24   :  { %666 = vmatpush.msra.mxu3 %v202_v39  ;;  %647 = vmatpush.msra.mxu2 %v185_v41  ;;  %v164_v0 = vld [vmem:[#allocation5 + $0x80] sm:$0xff]  ;;  %v243_v3 = vld [vmem:[#allocation5 + $0x2f8] sm:$0xff]  ;;  %v258_v4 = vld [vmem:[#allocation5 + $0x370] sm:$0xff] }
  0x25   :  { %627 = vmatpush.msra.mxu1 %v169_v42  ;;  %608 = vmatpush.msra.mxu0 %v152_v44  ;;  %v196_v1 = vld [vmem:[#allocation5 + $0x180] sm:$0xff]  ;;  %v275_v5 = vld [vmem:[#allocation5 + $0x3f8] sm:$0xff]  ;;  %v225_v6 = vld [vmem:[#allocation5 + $0x268] sm:$0xff] }
  0x26   :  { %667 = vmatpush.msra.mxu3 %v201_v43  ;;  %648 = vmatpush.msra.mxu2 %v184_v45  ;;  %v242_v7 = vld [vmem:[#allocation5 + $0x2f0] sm:$0xff]  ;;  %v257_v8 = vld [vmem:[#allocation5 + $0x368] sm:$0xff]  ;;  %v224_v10 = vld [vmem:[#allocation5 + $0x260] sm:$0xff] }
  0x27   :  { %628 = vmatpush.msra.mxu1 %v168_v46  ;;  %609 = vmatpush.msra.mxu0 %v151_v48  ;;  %v274_v9 = vld [vmem:[#allocation5 + $0x3f0] sm:$0xff]  ;;  %v241_v11 = vld [vmem:[#allocation5 + $0x2e8] sm:$0xff]  ;;  %v256_v12 = vld [vmem:[#allocation5 + $0x360] sm:$0xff] }
  0x28   :  { %668 = vmatpush.msra.mxu3 %v200_v47  ;;  %649 = vmatpush.msra.mxu2 %v183_v49  ;;  %v273_v13 = vld [vmem:[#allocation5 + $0x3e8] sm:$0xff]  ;;  %v223_v14 = vld [vmem:[#allocation5 + $0x258] sm:$0xff]  ;;  %v240_v15 = vld [vmem:[#allocation5 + $0x2e0] sm:$0xff] }
  0x29   :  { %629 = vmatpush.msra.mxu1 %v167_v50  ;;  %610 = vmatpush.msra.mxu0 %v150_v52  ;;  %v255_v16 = vld [vmem:[#allocation5 + $0x358] sm:$0xff]  ;;  %v272_v17 = vld [vmem:[#allocation5 + $0x3e0] sm:$0xff]  ;;  %v222_v18 = vld [vmem:[#allocation5 + $0x250] sm:$0xff] }
  0x2a   :  { %669 = vmatpush.msra.mxu3 %v199_v51  ;;  %650 = vmatpush.msra.mxu2 %v182_v53  ;;  %v239_v19 = vld [vmem:[#allocation5 + $0x2d8] sm:$0xff]  ;;  %v254_v20 = vld [vmem:[#allocation5 + $0x350] sm:$0xff]  ;;  %v221_v22 = vld [vmem:[#allocation5 + $0x248] sm:$0xff] }
  0x2b   :  { %630 = vmatpush.msra.mxu1 %v166_v54  ;;  %611 = vmatpush.msra.mxu0 %v149_v56  ;;  %v271_v21 = vld [vmem:[#allocation5 + $0x3d8] sm:$0xff]  ;;  %v238_v23 = vld [vmem:[#allocation5 + $0x2d0] sm:$0xff]  ;;  %v253_v24 = vld [vmem:[#allocation5 + $0x348] sm:$0xff] }
  0x2c   :  { %670 = vmatpush.msra.mxu3 %v198_v55  ;;  %651 = vmatpush.msra.mxu2 %v181_v57  ;;  %v270_v25 = vld [vmem:[#allocation5 + $0x3d0] sm:$0xff]  ;;  %v220_v26 = vld [vmem:[#allocation5 + $0x240] sm:$0xff]  ;;  %v237_v27 = vld [vmem:[#allocation5 + $0x2c8] sm:$0xff] }
  0x2d   :  { %631 = vmatpush.msra.mxu1 %v165_v58  ;;  %612 = vmatpush.msra.mxu0 %v148_v60  ;;  %v1245_v28 = vld [vmem:[#allocation2] sm:$0xff]  ;;  %v252_v29 = vld [vmem:[#allocation5 + $0x340] sm:$0xff]  ;;  %v219_v34 = vld [vmem:[#allocation5 + $0x238] sm:$0xff] }
  0x2e   :  { %671 = vmatpush.msra.mxu3 %v197_v59  ;;  %652 = vmatpush.msra.mxu2 %v180_v61  ;;  %v269_v30 = vld [vmem:[#allocation5 + $0x3c8] sm:$0xff]  ;;  %v74_v31 = vperm.slane %v1245_v28, 1  ;;  %v75_v32 = vperm.slane %v1245_v28, 2  ;;  %v76_v33 = vperm.slane %v1245_v28, 3  ;;  %v236_v35 = vld [vmem:[#allocation5 + $0x2c0] sm:$0xff]  ;;  %v73_v36 = vperm.slane %v1245_v28, 0 }
  0x2f   :  { %677 = vmatpush.msrb.mxu0 %v227_v62  ;;  %632 = vmatpush.msra.mxu1 %v164_v0  ;;  %v251_v37 = vld [vmem:[#allocation5 + $0x338] sm:$0xff]  ;;  %v268_v38 = vld [vmem:[#allocation5 + $0x3c0] sm:$0xff]  ;;  %v218_v39 = vld [vmem:[#allocation5 + $0x230] sm:$0xff] }
  0x30   :  { %717 = vmatpush.msrb.mxu2 %v259_v63  ;;  %672 = vmatpush.msra.mxu3 %v196_v1  ;;  %v235_v40 = vld [vmem:[#allocation5 + $0x2b8] sm:$0xff]  ;;  %v250_v41 = vld [vmem:[#allocation5 + $0x330] sm:$0xff]  ;;  %v97_v42 = vrot.slane %v74_v31, 6  ;;  %v98_v43 = vrot.slane %v75_v32, 4  ;;  %v99_v44 = vrot.slane %v76_v33, 2  ;;  %v61_v46 = vld [vmem:[%s1338_s0] sm:$0xff] }
  0x31   :  { %678 = vmatpush.msrb.mxu0 %v226_v2  ;;  %697 = vmatpush.msrb.mxu1 %v243_v3  ;;  %v267_v45 = vld [vmem:[#allocation5 + $0x3b8] sm:$0xff]  ;;  %v1254_v47 = vld [vmem:[#allocation2 + $0x8] sm:$0xff]  ;;  %v217_v48 = vld [vmem:[#allocation5 + $0x228] sm:$0xff] }
  0x32   :  { %718 = vmatpush.msrb.mxu2 %v258_v4  ;;  %737 = vmatpush.msrb.mxu3 %v275_v5  ;;  %v234_v49 = vld [vmem:[#allocation5 + $0x2b0] sm:$0xff]  ;;  %v116_v50 = vsel %vm115_vm0, %v73_v36, %v97_v42  ;;  %v118_v51 = vsel %vm117_vm1, %v98_v43, %v99_v44  ;;  %v249_v52 = vld [vmem:[#allocation5 + $0x328] sm:$0xff]  ;;  %v216_v55 = vld [vmem:[#allocation5 + $0x220] sm:$0xff]  ;;  %v81_v59 = vperm.slane %v1254_v47, 0  ;;  %v82_v60 = vperm.slane %v1254_v47, 1 }
  0x33   :  { %679 = vmatpush.msrb.mxu0 %v225_v6  ;;  %698 = vmatpush.msrb.mxu1 %v242_v7  ;;  %v266_v53 = vld [vmem:[#allocation5 + $0x3b0] sm:$0xff]  ;;  %v120_v54 = vsel %vm119_vm2, %v116_v50, %v118_v51  ;;  %v233_v56 = vld [vmem:[#allocation5 + $0x2a8] sm:$0xff]  ;;  %v248_v57 = vld [vmem:[#allocation5 + $0x320] sm:$0xff]  ;;  %v83_v0 = vperm.slane %v1254_v47, 2  ;;  %v84_v1 = vperm.slane %v1254_v47, 3  ;;  %v77_v4 = vperm.slane %v1245_v28, 4 }
  0x34   :  { %719 = vmatpush.msrb.mxu2 %v257_v8  ;;  %738 = vmatpush.msrb.mxu3 %v274_v9  ;;  %v142_v58 = vmul.f32 %v120_v54, %v61_v46  ;;  %v265_v61 = vld [vmem:[#allocation5 + $0x3a8] sm:$0xff]  ;;  %v215_v62 = vld [vmem:[#allocation5 + $0x218] sm:$0xff]  ;;  %v232_v2 = vld [vmem:[#allocation5 + $0x2a0] sm:$0xff]  ;;  %v103_v3 = vrot.slane %v82_v60, 6  ;;  %v78_v5 = vperm.slane %v1245_v28, 5  ;;  %v88_v31 = vperm.slane %v1254_v47, 7 }
  0x35   :  { %680 = vmatpush.msrb.mxu0 %v224_v10  ;;  %699 = vmatpush.msrb.mxu1 %v241_v11  ;;  %v1261_v63 = vld [vmem:[#allocation2 + $0x10] sm:$0xff]  ;;  %v264_v7 = vld [vmem:[#allocation5 + $0x3a0] sm:$0xff]  ;;  %v104_v8 = vrot.slane %v83_v0, 4  ;;  %v105_v9 = vrot.slane %v84_v1, 2  ;;  %v79_v10 = vperm.slane %v1245_v28, 6  ;;  %v80_v11 = vperm.slane %v1245_v28, 7 }
  0x36   :  { %720 = vmatpush.msrb.mxu2 %v256_v12  ;;  %739 = vmatpush.msrb.mxu3 %v273_v13  ;;  %542 = vst [vmem:[#allocation1] ss:$4 sm:$0xff] %v142_v58  ;;  %v247_v6 = vld [vmem:[#allocation5 + $0x318] sm:$0xff]  ;;  %v214_v12 = vld [vmem:[#allocation5 + $0x210] sm:$0xff]  ;;  %v62_v28 = vld [vmem:[%s1338_s0 + $0x8] sm:$0xff]  ;;  %v91_v42 = vperm.slane %v1261_v63, 2 }
  0x37   :  { %681 = vmatpush.msrb.mxu0 %v223_v14  ;;  %700 = vmatpush.msrb.mxu1 %v240_v15  ;;  %v231_v13 = vld [vmem:[#allocation5 + $0x298] sm:$0xff]  ;;  %v90_v14 = vperm.slane %v1261_v63, 1  ;;  %v63_v15 = vld [vmem:[%s1338_s0 + $0x10] sm:$0xff]  ;;  %v245_v32 = vld [vmem:[#allocation5 + $0x308] sm:$0xff]  ;;  %v92_v43 = vperm.slane %v1261_v63, 3  ;;  %v89_v51 = vperm.slane %v1261_v63, 0 }
  0x38   :  { %721 = vmatpush.msrb.mxu2 %v255_v16  ;;  %740 = vmatpush.msrb.mxu3 %v272_v17  ;;  %v124_v16 = vsel %vm115_vm0, %v81_v59, %v103_v3  ;;  %v100_v17 = vrot.slane %v78_v5, 6  ;;  %v262_v33 = vld [vmem:[#allocation5 + $0x390] sm:$0xff]  ;;  %v228_v54 = vld [vmem:[#allocation5 + $0x280] sm:$0xff]  ;;  %v110_v58 = vrot.slane %v91_v42, 4  ;;  %v64_v0 = vld [vmem:[%s1338_s0 + $0x18] sm:$0xff] }
  0x39   :  { %682 = vmatpush.msrb.mxu0 %v222_v18  ;;  %701 = vmatpush.msrb.mxu1 %v239_v19  ;;  %v86_v18 = vperm.slane %v1254_v47, 5  ;;  %v246_v19 = vld [vmem:[#allocation5 + $0x310] sm:$0xff]  ;;  %v111_v59 = vrot.slane %v92_v43, 2  ;;  %v260_v60 = vld [vmem:[#allocation5 + $0x380] sm:$0xff]  ;;  %v339_v3 = vld [vmem:[#allocation5 + $0x5f8] sm:$0xff] }
  0x3a   :  { %722 = vmatpush.msrb.mxu2 %v254_v20  ;;  %741 = vmatpush.msrb.mxu3 %v271_v21  ;;  %v263_v20 = vld [vmem:[#allocation5 + $0x398] sm:$0xff]  ;;  %v125_v21 = vsel %vm117_vm1, %v104_v8, %v105_v9  ;;  %v321_v8 = vld [vmem:[#allocation5 + $0x568] sm:$0xff]  ;;  %v65_v9 = vld [vmem:[%s1338_s0 + $0x20] sm:$0xff] }
  0x3b   :  { %683 = vmatpush.msrb.mxu0 %v221_v22  ;;  %702 = vmatpush.msrb.mxu1 %v238_v23  ;;  %v101_v22 = vrot.slane %v79_v10, 4  ;;  %v102_v23 = vrot.slane %v80_v11, 2  ;;  %v131_v5 = vsel %vm117_vm1, %v110_v58, %v111_v59  ;;  %v338_v10 = vld [vmem:[#allocation5 + $0x5f0] sm:$0xff]  ;;  %v288_v11 = vld [vmem:[#allocation5 + $0x460] sm:$0xff]  ;;  %v283_v42 = vld [vmem:[#allocation5 + $0x438] sm:$0xff] }
  0x3c   :  { %723 = vmatpush.msrb.mxu2 %v253_v24  ;;  %742 = vmatpush.msrb.mxu3 %v270_v25  ;;  %v87_v24 = vperm.slane %v1254_v47, 6  ;;  %v213_v25 = vld [vmem:[#allocation5 + $0x208] sm:$0xff]  ;;  %v300_v43 = vld [vmem:[#allocation5 + $0x4c0] sm:$0xff] }
  0x3d   :  { %684 = vmatpush.msrb.mxu0 %v220_v26  ;;  %703 = vmatpush.msrb.mxu1 %v237_v27  ;;  %v230_v26 = vld [vmem:[#allocation5 + $0x290] sm:$0xff]  ;;  %v126_v27 = vsel %vm119_vm2, %v124_v16, %v125_v21  ;;  %v122_v36 = vsel %vm117_vm1, %v101_v22, %v102_v23  ;;  %v545_v46 = vld.sshfl [vmem:[#allocation1] sm:$0xff pattern:$0x73625140]  ;;  %v287_v16 = vld [vmem:[#allocation5 + $0x458] sm:$0xff] }
  0x3e   :  { %724 = vmatpush.msrb.mxu2 %v252_v29  ;;  %743 = vmatpush.msrb.mxu3 %v269_v30  ;;  %v121_v29 = vsel %vm115_vm0, %v77_v4, %v100_v17  ;;  %v85_v30 = vperm.slane %v1254_v47, 4  ;;  %v547_v47 = vld.sshfl [vmem:[#allocation1 + $0x10] sm:$0xff pattern:$0x73625140]  ;;  %v304_v22 = vld [vmem:[#allocation5 + $0x4e0] sm:$0xff]  ;;  %v319_v23 = vld [vmem:[#allocation5 + $0x558] sm:$0xff] }
  0x3f   :  { %685 = vmatpush.msrb.mxu0 %v219_v34  ;;  %704 = vmatpush.msrb.mxu1 %v236_v35  ;;  %v212_v34 = vld [vmem:[#allocation5 + $0x200] sm:$0xff]  ;;  %v144_v35 = vmul.f32 %v126_v27, %v63_v15  ;;  %v123_v44 = vsel %vm119_vm2, %v121_v29, %v122_v36  ;;  %v548_v50 = vld.sshfl [vmem:[#allocation1 + $0x18] sm:$0xff pattern:$0x73625140]  ;;  %v337_v15 = vld [vmem:[#allocation5 + $0x5e8] sm:$0xff] }
  0x40   :  { %725 = vmatpush.msrb.mxu2 %v251_v37  ;;  %744 = vmatpush.msrb.mxu3 %v268_v38  ;;  %v106_v37 = vrot.slane %v86_v18, 6  ;;  %v107_v38 = vrot.slane %v87_v24, 4  ;;  %v303_v27 = vld [vmem:[#allocation5 + $0x4d8] sm:$0xff]  ;;  %v317_v36 = vld [vmem:[#allocation5 + $0x548] sm:$0xff]  ;;  %v312_v59 = vld [vmem:[#allocation5 + $0x520] sm:$0xff] }
  0x41   :  { %686 = vmatpush.msrb.mxu0 %v218_v39  ;;  %705 = vmatpush.msrb.mxu1 %v235_v40  ;;  %v229_v39 = vld [vmem:[#allocation5 + $0x288] sm:$0xff]  ;;  %v244_v40 = vld [vmem:[#allocation5 + $0x300] sm:$0xff]  ;;  %v335_v29 = vld [vmem:[#allocation5 + $0x5d8] sm:$0xff] }
  0x42   :  { %726 = vmatpush.msrb.mxu2 %v250_v41  ;;  %745 = vmatpush.msrb.mxu3 %v267_v45  ;;  %v261_v41 = vld [vmem:[#allocation5 + $0x388] sm:$0xff]  ;;  %v108_v45 = vrot.slane %v88_v31, 2 }
  0x43   :  { %687 = vmatpush.msrb.mxu0 %v217_v48  ;;  %706 = vmatpush.msrb.mxu1 %v234_v49  ;;  %v143_v48 = vmul.f32 %v123_v44, %v62_v28  ;;  %v546_v49 = vld.sshfl [vmem:[#allocation1 + $0x8] sm:$0xff pattern:$0x73625140]  ;;  %v318_v28 = vld [vmem:[#allocation5 + $0x550] sm:$0xff]  ;;  %v315_v44 = vld [vmem:[#allocation5 + $0x538] sm:$0xff] }
  0x44   :  { %727 = vmatpush.msrb.mxu2 %v249_v52  ;;  %746 = vmatpush.msrb.mxu3 %v266_v53  ;;  %v291_v52 = vld [vmem:[#allocation5 + $0x478] sm:$0xff]  ;;  %553 = vst [vmem:[#allocation1] ss:$4 sm:$0xff] %v144_v35  ;;  %v302_v35 = vld [vmem:[#allocation5 + $0x4d0] sm:$0xff]  ;;  %v297_v58 = vld [vmem:[#allocation5 + $0x4a8] sm:$0xff] }
  0x45   :  { %688 = vmatpush.msrb.mxu0 %v216_v55  ;;  %707 = vmatpush.msrb.mxu1 %v233_v56  ;;  %v323_v53 = vld [vmem:[#allocation5 + $0x578] sm:$0xff]  ;;  %v127_v55 = vsel %vm115_vm0, %v85_v30, %v106_v37  ;;  %v128_v56 = vsel %vm117_vm1, %v107_v38, %v108_v45  ;;  %544 = vst [vmem:[#allocation1 + $0x20] ss:$4 sm:$0xff] %v143_v48  ;;  %v334_v37 = vld [vmem:[#allocation5 + $0x5d0] sm:$0xff]  ;;  %v284_v38 = vld [vmem:[#allocation5 + $0x440] sm:$0xff] }
  0x46   :  { %728 = vmatpush.msrb.mxu2 %v248_v57  ;;  %747 = vmatpush.msrb.mxu3 %v265_v61  ;;  %v109_v57 = vrot.slane %v90_v14, 6  ;;  %v290_v61 = vld [vmem:[#allocation5 + $0x470] sm:$0xff]  ;;  %v129_v1 = vsel %vm119_vm2, %v127_v55, %v128_v56  ;;  %v320_v14 = vld [vmem:[#allocation5 + $0x560] sm:$0xff]  ;;  %v95_v55 = vperm.slane %v1261_v63, 6  ;;  %v96_v56 = vperm.slane %v1261_v63, 7 }
  0x47   :  { %689 = vmatpush.msrb.mxu0 %v215_v62  ;;  %708 = vmatpush.msrb.mxu1 %v232_v2  ;;  %v307_v62 = vld [vmem:[#allocation5 + $0x4f8] sm:$0xff]  ;;  %v322_v2 = vld [vmem:[#allocation5 + $0x570] sm:$0xff]  ;;  %v332_v45 = vld [vmem:[#allocation5 + $0x5c0] sm:$0xff] }
  0x48   :  { %729 = vmatpush.msrb.mxu2 %v247_v6  ;;  %748 = vmatpush.msrb.mxu3 %v264_v7  ;;  %v130_v4 = vsel %vm115_vm0, %v89_v51, %v109_v57  ;;  %v289_v6 = vld [vmem:[#allocation5 + $0x468] sm:$0xff]  ;;  %v306_v7 = vld [vmem:[#allocation5 + $0x4f0] sm:$0xff]  ;;  %v280_v57 = vld [vmem:[#allocation5 + $0x420] sm:$0xff] }
  0x49   :  { %690 = vmatpush.msrb.mxu0 %v214_v12  ;;  %709 = vmatpush.msrb.mxu1 %v231_v13  ;;  %v305_v12 = vld [vmem:[#allocation5 + $0x4e8] sm:$0xff]  ;;  %v145_v13 = vmul.f32 %v129_v1, %v64_v0  ;;  %v132_v17 = vsel %vm119_vm2, %v130_v4, %v131_v5  ;;  %v314_v48 = vld [vmem:[#allocation5 + $0x530] sm:$0xff]  ;;  %v311_v0 = vld [vmem:[#allocation5 + $0x518] sm:$0xff]  ;;  %v113_v4 = vrot.slane %v95_v55, 4  ;;  %v114_v5 = vrot.slane %v96_v56, 2 }
  0x4a   :  { %730 = vmatpush.msrb.mxu2 %v246_v19  ;;  %749 = vmatpush.msrb.mxu3 %v263_v20  ;;  %v146_v24 = vmul.f32 %v132_v17, %v65_v9  ;;  %v298_v51 = vld [vmem:[#allocation5 + $0x4b0] sm:$0xff]  ;;  %v328_v1 = vld [vmem:[#allocation5 + $0x5a0] sm:$0xff]  ;;  %v327_v9 = vld [vmem:[#allocation5 + $0x598] sm:$0xff] }
  0x4b   :  { %691 = vmatpush.msrb.mxu0 %v213_v25  ;;  %710 = vmatpush.msrb.mxu1 %v230_v26  ;;  %v336_v25 = vld [vmem:[#allocation5 + $0x5e0] sm:$0xff]  ;;  %v286_v26 = vld [vmem:[#allocation5 + $0x450] sm:$0xff]  ;;  %v365_v55 = vld [vmem:[#allocation5 + $0x6c8] sm:$0xff] }
  0x4c   :  { %731 = vmatpush.msrb.mxu2 %v245_v32  ;;  %750 = vmatpush.msrb.mxu3 %v262_v33  ;;  %v551_v18 = vld.sshfl [vmem:[#allocation1 + $0x30] sm:$0xff pattern:$0x73625140]  ;;  %v549_v19 = vld.sshfl [vmem:[#allocation1 + $0x20] sm:$0xff pattern:$0x73625140] }
  0x4d   :  { %692 = vmatpush.msrb.mxu0 %v212_v34  ;;  %711 = vmatpush.msrb.mxu1 %v229_v39  ;;  %v552_v20 = vld.sshfl [vmem:[#allocation1 + $0x38] sm:$0xff pattern:$0x73625140]  ;;  %v550_v21 = vld.sshfl [vmem:[#allocation1 + $0x28] sm:$0xff pattern:$0x73625140] }
  0x4e   :  { %732 = vmatpush.msrb.mxu2 %v244_v40  ;;  %751 = vmatpush.msrb.mxu3 %v261_v41  ;;  %554 = vst [vmem:[#allocation1 + $0x20] ss:$4 sm:$0xff] %v145_v13  ;;  %v1301_v30 = vld.sshfl [vmem:[#allocation1] sm:$0xff pattern:$0x73625140]  ;;  %v285_v34 = vld [vmem:[#allocation5 + $0x448] sm:$0xff] }
  0x4f   :  { %613 = vmatmul.f32.vlgmr.msra.gmra.mxu0 %v545_v46  ;;  %653 = vmatmul.f32.vlgmr.msra.gmra.mxu2 %v547_v47  ;;  %v1303_v31 = vld.sshfl [vmem:[#allocation1 + $0x10] sm:$0xff pattern:$0x73625140]  ;;  %v1305_v32 = vld.sshfl [vmem:[#allocation1 + $0x8] sm:$0xff pattern:$0x73625140] }
  0x50   :  { %757 = vmatpush.msra.mxu0 %v291_v52  ;;  %797 = vmatpush.msra.mxu2 %v323_v53  ;;  %v1307_v33 = vld.sshfl [vmem:[#allocation1 + $0x18] sm:$0xff pattern:$0x73625140]  ;;  %v301_v39 = vld [vmem:[#allocation5 + $0x4c8] sm:$0xff]  ;;  %v316_v40 = vld [vmem:[#allocation5 + $0x540] sm:$0xff] }
  0x51   :  { %712 = vmatpush.msrb.mxu1 %v228_v54  ;;  %752 = vmatpush.msrb.mxu3 %v260_v60  ;;  %563 = vst [vmem:[#allocation1] ss:$4 sm:$0xff] %v146_v24  ;;  %v333_v41 = vld [vmem:[#allocation5 + $0x5c8] sm:$0xff]  ;;  %v282_v46 = vld [vmem:[#allocation5 + $0x430] sm:$0xff]  ;;  %v299_v47 = vld [vmem:[#allocation5 + $0x4b8] sm:$0xff]  ;;  %v94_v54 = vperm.slane %v1261_v63, 5 }
  0x52   :  { %633 = vmatmul.f32.vlgmr.msra.gmra.mxu1 %v546_v49  ;;  %673 = vmatmul.f32.vlgmr.msra.gmra.mxu3 %v548_v50  ;;  %v331_v49 = vld [vmem:[#allocation5 + $0x5b8] sm:$0xff]  ;;  %v281_v50 = vld [vmem:[#allocation5 + $0x428] sm:$0xff]  ;;  %v330_v53 = vld [vmem:[#allocation5 + $0x5b0] sm:$0xff] }
  0x53   :  { %758 = vmatpush.msra.mxu0 %v290_v61  ;;  %777 = vmatpush.msra.mxu1 %v307_v62  ;;  %v313_v52 = vld [vmem:[#allocation5 + $0x528] sm:$0xff]  ;;  %v279_v61 = vld [vmem:[#allocation5 + $0x418] sm:$0xff]  ;;  %v296_v62 = vld [vmem:[#allocation5 + $0x4a0] sm:$0xff] }
  0x54   :  { %798 = vmatpush.msra.mxu2 %v322_v2  ;;  %817 = vmatpush.msra.mxu3 %v339_v3  ;;  %v329_v60 = vld [vmem:[#allocation5 + $0x5a8] sm:$0xff]  ;;  %v93_v2 = vperm.slane %v1261_v63, 4  ;;  %v112_v3 = vrot.slane %v94_v54, 6  ;;  %v326_v13 = vld [vmem:[#allocation5 + $0x590] sm:$0xff]  ;;  %v308_v17 = vld [vmem:[#allocation5 + $0x500] sm:$0xff] }
  0x55   :  { %759 = vmatpush.msra.mxu0 %v289_v6  ;;  %778 = vmatpush.msra.mxu1 %v306_v7  ;;  %v278_v6 = vld [vmem:[#allocation5 + $0x410] sm:$0xff]  ;;  %v295_v7 = vld [vmem:[#allocation5 + $0x498] sm:$0xff]  ;;  %v324_v24 = vld [vmem:[#allocation5 + $0x580] sm:$0xff] }
  0x56   :  { %799 = vmatpush.msra.mxu2 %v321_v8  ;;  %818 = vmatpush.msra.mxu3 %v338_v10  ;;  %v310_v8 = vld [vmem:[#allocation5 + $0x510] sm:$0xff]  ;;  %v277_v10 = vld [vmem:[#allocation5 + $0x408] sm:$0xff]  ;;  %v133_v63 = vsel %vm115_vm0, %v93_v2, %v112_v3  ;;  %v348_v54 = vld [vmem:[#allocation5 + $0x640] sm:$0xff] }
  0x57   :  { %760 = vmatpush.msra.mxu0 %v288_v11  ;;  %779 = vmatpush.msra.mxu1 %v305_v12  ;;  %v294_v11 = vld [vmem:[#allocation5 + $0x490] sm:$0xff]  ;;  %v309_v12 = vld [vmem:[#allocation5 + $0x508] sm:$0xff]  ;;  %v380_v56 = vld [vmem:[#allocation5 + $0x740] sm:$0xff] }
  0x58   :  { %800 = vmatpush.msra.mxu2 %v320_v14  ;;  %819 = vmatpush.msra.mxu3 %v337_v15  ;;  %v134_v14 = vsel %vm117_vm1, %v113_v4, %v114_v5  ;;  %v276_v15 = vld [vmem:[#allocation5 + $0x400] sm:$0xff]  ;;  %v395_v2 = vld [vmem:[#allocation5 + $0x7b8] sm:$0xff]  ;;  %v345_v3 = vld [vmem:[#allocation5 + $0x628] sm:$0xff] }
  0x59   :  { %733 = vmatmul.f32.vlgmr.msrb.gmra.mxu2 %v551_v18  ;;  %761 = vmatpush.msra.mxu0 %v287_v16  ;;  %v293_v16 = vld [vmem:[#allocation5 + $0x488] sm:$0xff]  ;;  %v362_v4 = vld [vmem:[#allocation5 + $0x6b0] sm:$0xff] }
  0x5a   :  { %780 = vmatpush.msra.mxu1 %v304_v22  ;;  %801 = vmatpush.msra.mxu2 %v319_v23  ;;  %v325_v18 = vld [vmem:[#allocation5 + $0x588] sm:$0xff]  ;;  %v387_v22 = vld [vmem:[#allocation5 + $0x778] sm:$0xff]  ;;  %v292_v23 = vld [vmem:[#allocation5 + $0x480] sm:$0xff] }
  0x5b   :  { %820 = vmatpush.msra.mxu3 %v336_v25  ;;  %693 = vmatmul.f32.vlgmr.msrb.gmra.mxu0 %v549_v19  ;;  %v66_v19 = vld [vmem:[%s1338_s0 + $0x28] sm:$0xff]  ;;  %v354_v25 = vld [vmem:[#allocation5 + $0x670] sm:$0xff]  ;;  %s1210_s0 = smov [#allocation8]  }
  0x5c   :  { %753 = vmatmul.f32.vlgmr.msrb.gmra.mxu3 %v552_v20  ;;  %762 = vmatpush.msra.mxu0 %v286_v26  ;;  %v135_v20 = vsel %vm119_vm2, %v133_v63, %v134_v14  ;;  %v371_v26 = vld [vmem:[#allocation5 + $0x6f8] sm:$0xff]  ;;  %v377_v5 = vld [vmem:[#allocation5 + $0x728] sm:$0xff]  ;;  %v392_v63 = vld [vmem:[#allocation5 + $0x7a0] sm:$0xff]  ;;  %s1083_s15 = sshll.u32 %s1210_s0, 4  ;;  %s1084_s15 = int_to_ptr.vmem [resolvable:$true] %s1083_s15 }
  0x5d   :  { %781 = vmatpush.msra.mxu1 %v303_v27  ;;  %802 = vmatpush.msra.mxu2 %v318_v28  ;;  %v147_v27 = vmul.f32 %v135_v20, %v66_v19  ;;  %v386_v28 = vld [vmem:[#allocation5 + $0x770] sm:$0xff]  ;;  %v373_v20 = vld [vmem:[#allocation5 + $0x708] sm:$0xff] }
  0x5e   :  { %821 = vmatpush.msra.mxu3 %v335_v29  ;;  %713 = vmatmul.f32.vlgmr.msrb.gmra.mxu1 %v550_v21  ;;  %v355_v21 = vld [vmem:[#allocation5 + $0x678] sm:$0xff]  ;;  %v342_v14 = vld [vmem:[#allocation5 + $0x610] sm:$0xff] }
  0x5f   :  { %763 = vmatpush.msra.mxu0 %v285_v34  ;;  %782 = vmatpush.msra.mxu1 %v302_v35  ;;  %v403_v29 = vld [vmem:[#allocation5 + $0x7f8] sm:$0xff]  ;;  %v353_v34 = vld [vmem:[#allocation5 + $0x668] sm:$0xff]  ;;  %v370_v35 = vld [vmem:[#allocation5 + $0x6f0] sm:$0xff] }
  0x60   :  { %803 = vmatpush.msra.mxu2 %v317_v36  ;;  %822 = vmatpush.msra.mxu3 %v334_v37  ;;  %v385_v36 = vld [vmem:[#allocation5 + $0x768] sm:$0xff]  ;;  %v402_v37 = vld [vmem:[#allocation5 + $0x7f0] sm:$0xff] }
  0x61   :  { %764 = vmatpush.msra.mxu0 %v284_v38  ;;  %783 = vmatpush.msra.mxu1 %v301_v39  ;;  %v1327_v38 = vld.sshfl [vmem:[#allocation1 + $0x28] sm:$0xff pattern:$0x73625140]  ;;  %v1329_v39 = vld.sshfl [vmem:[#allocation1 + $0x38] sm:$0xff pattern:$0x73625140] }
  0x62   :  { %804 = vmatpush.msra.mxu2 %v316_v40  ;;  %823 = vmatpush.msra.mxu3 %v333_v41  ;;  %v352_v40 = vld [vmem:[#allocation5 + $0x660] sm:$0xff]  ;;  %v369_v41 = vld [vmem:[#allocation5 + $0x6e8] sm:$0xff]  ;;  %v358_v19 = vld [vmem:[#allocation5 + $0x690] sm:$0xff] }
  0x63   :  { %765 = vmatpush.msra.mxu0 %v283_v42  ;;  %784 = vmatpush.msra.mxu1 %v300_v43  ;;  %v401_v42 = vld [vmem:[#allocation5 + $0x7e8] sm:$0xff]  ;;  %v368_v43 = vld [vmem:[#allocation5 + $0x6e0] sm:$0xff] }
  0x64   :  { %805 = vmatpush.msra.mxu2 %v315_v44  ;;  %824 = vmatpush.msra.mxu3 %v332_v45  ;;  %v383_v44 = vld [vmem:[#allocation5 + $0x758] sm:$0xff]  ;;  %v400_v45 = vld [vmem:[#allocation5 + $0x7e0] sm:$0xff] }
  0x65   :  { %766 = vmatpush.msra.mxu0 %v282_v46  ;;  %785 = vmatpush.msra.mxu1 %v299_v47  ;;  %v350_v46 = vld [vmem:[#allocation5 + $0x650] sm:$0xff]  ;;  %v367_v47 = vld [vmem:[#allocation5 + $0x6d8] sm:$0xff] }
  0x66   :  { %806 = vmatpush.msra.mxu2 %v314_v48  ;;  %825 = vmatpush.msra.mxu3 %v331_v49  ;;  %v382_v48 = vld [vmem:[#allocation5 + $0x750] sm:$0xff]  ;;  %v399_v49 = vld [vmem:[#allocation5 + $0x7d8] sm:$0xff] }
  0x67   :  { %767 = vmatpush.msra.mxu0 %v281_v50  ;;  %786 = vmatpush.msra.mxu1 %v298_v51  ;;  %v349_v50 = vld [vmem:[#allocation5 + $0x648] sm:$0xff]  ;;  %v366_v51 = vld [vmem:[#allocation5 + $0x6d0] sm:$0xff] }
  0x68   :  { %807 = vmatpush.msra.mxu2 %v313_v52  ;;  %826 = vmatpush.msra.mxu3 %v330_v53  ;;  %v381_v52 = vld [vmem:[#allocation5 + $0x748] sm:$0xff]  ;;  %v398_v53 = vld [vmem:[#allocation5 + $0x7d0] sm:$0xff] }
  0x69   :  { %768 = vmatpush.msra.mxu0 %v280_v57  ;;  %787 = vmatpush.msra.mxu1 %v297_v58  ;;  %v397_v57 = vld [vmem:[#allocation5 + $0x7c8] sm:$0xff]  ;;  %v347_v58 = vld [vmem:[#allocation5 + $0x638] sm:$0xff] }
  0x6a   :  { %808 = vmatpush.msra.mxu2 %v312_v59  ;;  %827 = vmatpush.msra.mxu3 %v329_v60  ;;  %v364_v59 = vld [vmem:[#allocation5 + $0x6c0] sm:$0xff]  ;;  %v379_v60 = vld [vmem:[#allocation5 + $0x738] sm:$0xff] }
  0x6b   :  { %769 = vmatpush.msra.mxu0 %v279_v61  ;;  %788 = vmatpush.msra.mxu1 %v296_v62  ;;  %v396_v61 = vld [vmem:[#allocation5 + $0x7c0] sm:$0xff]  ;;  %v346_v62 = vld [vmem:[#allocation5 + $0x630] sm:$0xff] }
  0x6c   :  { %809 = vmatpush.msra.mxu2 %v311_v0  ;;  %828 = vmatpush.msra.mxu3 %v328_v1  ;;  %v363_v0 = vld [vmem:[#allocation5 + $0x6b8] sm:$0xff]  ;;  %v378_v1 = vld [vmem:[#allocation5 + $0x730] sm:$0xff] }
  0x6d   :  { %770 = vmatpush.msra.mxu0 %v278_v6  ;;  %789 = vmatpush.msra.mxu1 %v295_v7  ;;  %v394_v6 = vld [vmem:[#allocation5 + $0x7b0] sm:$0xff]  ;;  %v344_v7 = vld [vmem:[#allocation5 + $0x620] sm:$0xff] }
  0x6e   :  { %810 = vmatpush.msra.mxu2 %v310_v8  ;;  %829 = vmatpush.msra.mxu3 %v327_v9  ;;  %v361_v8 = vld [vmem:[#allocation5 + $0x6a8] sm:$0xff]  ;;  %v376_v9 = vld [vmem:[#allocation5 + $0x720] sm:$0xff] }
  0x6f   :  { %771 = vmatpush.msra.mxu0 %v277_v10  ;;  %790 = vmatpush.msra.mxu1 %v294_v11  ;;  %v393_v10 = vld [vmem:[#allocation5 + $0x7a8] sm:$0xff]  ;;  %v343_v11 = vld [vmem:[#allocation5 + $0x618] sm:$0xff] }
  0x70   :  { %811 = vmatpush.msra.mxu2 %v309_v12  ;;  %830 = vmatpush.msra.mxu3 %v326_v13  ;;  %v360_v12 = vld [vmem:[#allocation5 + $0x6a0] sm:$0xff]  ;;  %v375_v13 = vld [vmem:[#allocation5 + $0x718] sm:$0xff] }
  0x71   :  { %772 = vmatpush.msra.mxu0 %v276_v15  ;;  %791 = vmatpush.msra.mxu1 %v293_v16  ;;  %v359_v15 = vld [vmem:[#allocation5 + $0x698] sm:$0xff]  ;;  %v374_v16 = vld [vmem:[#allocation5 + $0x710] sm:$0xff] }
  0x72   :  { %812 = vmatpush.msra.mxu2 %v308_v17  ;;  %831 = vmatpush.msra.mxu3 %v325_v18  ;;  %v391_v17 = vld [vmem:[#allocation5 + $0x798] sm:$0xff]  ;;  %v341_v18 = vld [vmem:[#allocation5 + $0x608] sm:$0xff] }
  0x73   :  { %773 = vmatmul.f32.vlgmr.msra.gmra.mxu0 %v1301_v30  ;;  %813 = vmatmul.f32.vlgmr.msra.gmra.mxu2 %v1303_v31  ;;  %v1323_v30 = vld.sshfl [vmem:[#allocation1 + $0x20] sm:$0xff pattern:$0x73625140]  ;;  %v1325_v31 = vld.sshfl [vmem:[#allocation1 + $0x30] sm:$0xff pattern:$0x73625140] }
  0x74   :  { %837 = vmatpush.msrb.mxu0 %v355_v21  ;;  %877 = vmatpush.msrb.mxu2 %v387_v22  ;;  %564 = vst [vmem:[#allocation1 + $0x20] ss:$4 sm:$0xff] %v147_v27  ;;  %v390_v21 = vld [vmem:[#allocation5 + $0x790] sm:$0xff]  ;;  %v340_v22 = vld [vmem:[#allocation5 + $0x600] sm:$0xff]  ;;  %v451_v27 = vld [vmem:[#allocation5 + $0x978] sm:$0xff] }
  0x75   :  { %792 = vmatpush.msra.mxu1 %v292_v23  ;;  %832 = vmatpush.msra.mxu3 %v324_v24  ;;  %v357_v23 = vld [vmem:[#allocation5 + $0x688] sm:$0xff]  ;;  %v372_v24 = vld [vmem:[#allocation5 + $0x700] sm:$0xff] }
  0x76   :  { %793 = vmatmul.f32.vlgmr.msra.gmra.mxu1 %v1305_v32  ;;  %833 = vmatmul.f32.vlgmr.msra.gmra.mxu3 %v1307_v33  ;;  %v384_v32 = vld [vmem:[#allocation5 + $0x760] sm:$0xff]  ;;  %v351_v33 = vld [vmem:[#allocation5 + $0x658] sm:$0xff] }
  0x77   :  { %838 = vmatpush.msrb.mxu0 %v354_v25  ;;  %857 = vmatpush.msrb.mxu1 %v371_v26  ;;  %v389_v25 = vld [vmem:[#allocation5 + $0x788] sm:$0xff]  ;;  %v419_v26 = vld [vmem:[#allocation5 + $0x878] sm:$0xff] }
  0x78   :  { %878 = vmatpush.msrb.mxu2 %v386_v28  ;;  %897 = vmatpush.msrb.mxu3 %v403_v29  ;;  %v356_v28 = vld [vmem:[#allocation5 + $0x680] sm:$0xff] }
  0x79   :  { %839 = vmatpush.msrb.mxu0 %v353_v34  ;;  %858 = vmatpush.msrb.mxu1 %v370_v35  ;;  %v388_v29 = vld [vmem:[#allocation5 + $0x780] sm:$0xff]  ;;  %v418_v34 = vld [vmem:[#allocation5 + $0x870] sm:$0xff]  ;;  %v435_v35 = vld [vmem:[#allocation5 + $0x8f8] sm:$0xff] }
  0x7a   :  { %879 = vmatpush.msrb.mxu2 %v385_v36  ;;  %898 = vmatpush.msrb.mxu3 %v402_v37  ;;  %v450_v36 = vld [vmem:[#allocation5 + $0x970] sm:$0xff]  ;;  %v467_v37 = vld [vmem:[#allocation5 + $0x9f8] sm:$0xff] }
  0x7b   :  { %840 = vmatpush.msrb.mxu0 %v352_v40  ;;  %859 = vmatpush.msrb.mxu1 %v369_v41  ;;  %v417_v40 = vld [vmem:[#allocation5 + $0x868] sm:$0xff]  ;;  %v434_v41 = vld [vmem:[#allocation5 + $0x8f0] sm:$0xff] }
  0x7c   :  { %880 = vmatpush.msrb.mxu2 %v384_v32  ;;  %899 = vmatpush.msrb.mxu3 %v401_v42  ;;  %v449_v32 = vld [vmem:[#allocation5 + $0x968] sm:$0xff] }
  0x7d   :  { %841 = vmatpush.msrb.mxu0 %v351_v33  ;;  %860 = vmatpush.msrb.mxu1 %v368_v43  ;;  %v433_v42 = vld [vmem:[#allocation5 + $0x8e8] sm:$0xff]  ;;  %v448_v33 = vld [vmem:[#allocation5 + $0x960] sm:$0xff] }
  0x7e   :  { %881 = vmatpush.msrb.mxu2 %v383_v44  ;;  %900 = vmatpush.msrb.mxu3 %v400_v45  ;;  %v465_v43 = vld [vmem:[#allocation5 + $0x9e8] sm:$0xff]  ;;  %v415_v44 = vld [vmem:[#allocation5 + $0x858] sm:$0xff]  ;;  %v464_v45 = vld [vmem:[#allocation5 + $0x9e0] sm:$0xff] }
  0x7f   :  { %842 = vmatpush.msrb.mxu0 %v350_v46  ;;  %861 = vmatpush.msrb.mxu1 %v367_v47  ;;  %v414_v46 = vld [vmem:[#allocation5 + $0x850] sm:$0xff]  ;;  %v431_v47 = vld [vmem:[#allocation5 + $0x8d8] sm:$0xff] }
  0x80   :  { %882 = vmatpush.msrb.mxu2 %v382_v48  ;;  %901 = vmatpush.msrb.mxu3 %v399_v49  ;;  %v446_v48 = vld [vmem:[#allocation5 + $0x950] sm:$0xff]  ;;  %v463_v49 = vld [vmem:[#allocation5 + $0x9d8] sm:$0xff] }
  0x81   :  { %843 = vmatpush.msrb.mxu0 %v349_v50  ;;  %862 = vmatpush.msrb.mxu1 %v366_v51  ;;  %v413_v50 = vld [vmem:[#allocation5 + $0x848] sm:$0xff]  ;;  %v430_v51 = vld [vmem:[#allocation5 + $0x8d0] sm:$0xff] }
  0x82   :  { %883 = vmatpush.msrb.mxu2 %v381_v52  ;;  %902 = vmatpush.msrb.mxu3 %v398_v53  ;;  %v445_v52 = vld [vmem:[#allocation5 + $0x948] sm:$0xff]  ;;  %v462_v53 = vld [vmem:[#allocation5 + $0x9d0] sm:$0xff] }
  0x83   :  { %844 = vmatpush.msrb.mxu0 %v348_v54  ;;  %863 = vmatpush.msrb.mxu1 %v365_v55  ;;  %v412_v54 = vld [vmem:[#allocation5 + $0x840] sm:$0xff]  ;;  %v429_v55 = vld [vmem:[#allocation5 + $0x8c8] sm:$0xff] }
  0x84   :  { %884 = vmatpush.msrb.mxu2 %v380_v56  ;;  %903 = vmatpush.msrb.mxu3 %v397_v57  ;;  %v444_v56 = vld [vmem:[#allocation5 + $0x940] sm:$0xff]  ;;  %v461_v57 = vld [vmem:[#allocation5 + $0x9c8] sm:$0xff] }
  0x85   :  { %845 = vmatpush.msrb.mxu0 %v347_v58  ;;  %864 = vmatpush.msrb.mxu1 %v364_v59  ;;  %v411_v58 = vld [vmem:[#allocation5 + $0x838] sm:$0xff]  ;;  %v428_v59 = vld [vmem:[#allocation5 + $0x8c0] sm:$0xff] }
  0x86   :  { %885 = vmatpush.msrb.mxu2 %v379_v60  ;;  %904 = vmatpush.msrb.mxu3 %v396_v61  ;;  %v443_v60 = vld [vmem:[#allocation5 + $0x938] sm:$0xff]  ;;  %v460_v61 = vld [vmem:[#allocation5 + $0x9c0] sm:$0xff] }
  0x87   :  { %846 = vmatpush.msrb.mxu0 %v346_v62  ;;  %865 = vmatpush.msrb.mxu1 %v363_v0  ;;  %v410_v62 = vld [vmem:[#allocation5 + $0x830] sm:$0xff]  ;;  %v427_v0 = vld [vmem:[#allocation5 + $0x8b8] sm:$0xff] }
  0x88   :  { %886 = vmatpush.msrb.mxu2 %v378_v1  ;;  %905 = vmatpush.msrb.mxu3 %v395_v2  ;;  %v442_v1 = vld [vmem:[#allocation5 + $0x930] sm:$0xff]  ;;  %v459_v2 = vld [vmem:[#allocation5 + $0x9b8] sm:$0xff] }
  0x89   :  { %847 = vmatpush.msrb.mxu0 %v345_v3  ;;  %866 = vmatpush.msrb.mxu1 %v362_v4  ;;  %v409_v3 = vld [vmem:[#allocation5 + $0x828] sm:$0xff]  ;;  %v426_v4 = vld [vmem:[#allocation5 + $0x8b0] sm:$0xff] }
  0x8a   :  { %887 = vmatpush.msrb.mxu2 %v377_v5  ;;  %906 = vmatpush.msrb.mxu3 %v394_v6  ;;  %v441_v5 = vld [vmem:[#allocation5 + $0x928] sm:$0xff]  ;;  %v458_v6 = vld [vmem:[#allocation5 + $0x9b0] sm:$0xff] }
  0x8b   :  { %848 = vmatpush.msrb.mxu0 %v344_v7  ;;  %867 = vmatpush.msrb.mxu1 %v361_v8  ;;  %v408_v7 = vld [vmem:[#allocation5 + $0x820] sm:$0xff]  ;;  %v425_v8 = vld [vmem:[#allocation5 + $0x8a8] sm:$0xff] }
  0x8c   :  { %888 = vmatpush.msrb.mxu2 %v376_v9  ;;  %907 = vmatpush.msrb.mxu3 %v393_v10  ;;  %v440_v9 = vld [vmem:[#allocation5 + $0x920] sm:$0xff]  ;;  %v457_v10 = vld [vmem:[#allocation5 + $0x9a8] sm:$0xff] }
  0x8d   :  { %849 = vmatpush.msrb.mxu0 %v343_v11  ;;  %868 = vmatpush.msrb.mxu1 %v360_v12  ;;  %v407_v11 = vld [vmem:[#allocation5 + $0x818] sm:$0xff]  ;;  %v424_v12 = vld [vmem:[#allocation5 + $0x8a0] sm:$0xff] }
  0x8e   :  { %889 = vmatpush.msrb.mxu2 %v375_v13  ;;  %908 = vmatpush.msrb.mxu3 %v392_v63  ;;  %v439_v13 = vld [vmem:[#allocation5 + $0x918] sm:$0xff]  ;;  %v456_v63 = vld [vmem:[#allocation5 + $0x9a0] sm:$0xff] }
  0x8f   :  { %850 = vmatpush.msrb.mxu0 %v342_v14  ;;  %869 = vmatpush.msrb.mxu1 %v359_v15  ;;  %v406_v14 = vld [vmem:[#allocation5 + $0x810] sm:$0xff]  ;;  %v423_v15 = vld [vmem:[#allocation5 + $0x898] sm:$0xff] }
  0x90   :  { %890 = vmatpush.msrb.mxu2 %v374_v16  ;;  %909 = vmatpush.msrb.mxu3 %v391_v17  ;;  %v438_v16 = vld [vmem:[#allocation5 + $0x910] sm:$0xff]  ;;  %v455_v17 = vld [vmem:[#allocation5 + $0x998] sm:$0xff] }
  0x91   :  { %851 = vmatpush.msrb.mxu0 %v341_v18  ;;  %870 = vmatpush.msrb.mxu1 %v358_v19  ;;  %v405_v18 = vld [vmem:[#allocation5 + $0x808] sm:$0xff]  ;;  %v422_v19 = vld [vmem:[#allocation5 + $0x890] sm:$0xff] }
  0x92   :  { %891 = vmatpush.msrb.mxu2 %v373_v20  ;;  %910 = vmatpush.msrb.mxu3 %v390_v21  ;;  %v437_v20 = vld [vmem:[#allocation5 + $0x908] sm:$0xff]  ;;  %v454_v21 = vld [vmem:[#allocation5 + $0x990] sm:$0xff] }
  0x93   :  { %852 = vmatpush.msrb.mxu0 %v340_v22  ;;  %871 = vmatpush.msrb.mxu1 %v357_v23  ;;  %v404_v22 = vld [vmem:[#allocation5 + $0x800] sm:$0xff]  ;;  %v421_v23 = vld [vmem:[#allocation5 + $0x888] sm:$0xff] }
  0x94   :  { %892 = vmatpush.msrb.mxu2 %v372_v24  ;;  %911 = vmatpush.msrb.mxu3 %v389_v25  ;;  %v436_v24 = vld [vmem:[#allocation5 + $0x900] sm:$0xff]  ;;  %v453_v25 = vld [vmem:[#allocation5 + $0x988] sm:$0xff] }
  0x95   :  { %853 = vmatmul.f32.vlgmr.msrb.gmra.mxu0 %v1323_v30  ;;  %893 = vmatmul.f32.vlgmr.msrb.gmra.mxu2 %v1325_v31  ;;  %v466_v30 = vld [vmem:[#allocation5 + $0x9f0] sm:$0xff]  ;;  %v416_v31 = vld [vmem:[#allocation5 + $0x860] sm:$0xff] }
  0x96   :  { %917 = vmatpush.msra.mxu0 %v419_v26  ;;  %957 = vmatpush.msra.mxu2 %v451_v27  ;;  %v565_v26 = vld.sshfl [vmem:[#allocation1] sm:$0xff pattern:$0x73625140]  ;;  %v567_v27 = vld.sshfl [vmem:[#allocation1 + $0x10] sm:$0xff pattern:$0x73625140] }
  0x97   :  { %872 = vmatpush.msrb.mxu1 %v356_v28  ;;  %912 = vmatpush.msrb.mxu3 %v388_v29  ;;  %v483_v28 = vld [vmem:[#allocation5 + $0xa78] sm:$0xff] }
  0x98   :  { %873 = vmatmul.f32.vlgmr.msrb.gmra.mxu1 %v1327_v38  ;;  %913 = vmatmul.f32.vlgmr.msrb.gmra.mxu3 %v1329_v39  ;;  %v432_v38 = vld [vmem:[#allocation5 + $0x8e0] sm:$0xff]  ;;  %v447_v39 = vld [vmem:[#allocation5 + $0x958] sm:$0xff] }
  0x99   :  { %918 = vmatpush.msra.mxu0 %v418_v34  ;;  %937 = vmatpush.msra.mxu1 %v435_v35  ;;  %v515_v29 = vld [vmem:[#allocation5 + $0xb78] sm:$0xff]  ;;  %v420_v34 = vld [vmem:[#allocation5 + $0x880] sm:$0xff] }
  0x9a   :  { %958 = vmatpush.msra.mxu2 %v450_v36  ;;  %977 = vmatpush.msra.mxu3 %v467_v37  ;;  %v452_v35 = vld [vmem:[#allocation5 + $0x980] sm:$0xff]  ;;  %v566_v36 = vld.sshfl [vmem:[#allocation1 + $0x8] sm:$0xff pattern:$0x73625140] }
  0x9b   :  { %919 = vmatpush.msra.mxu0 %v417_v40  ;;  %938 = vmatpush.msra.mxu1 %v434_v41  ;;  %v568_v37 = vld.sshfl [vmem:[#allocation1 + $0x18] sm:$0xff pattern:$0x73625140]  ;;  %v482_v40 = vld [vmem:[#allocation5 + $0xa70] sm:$0xff] }
  0x9c   :  { %959 = vmatpush.msra.mxu2 %v449_v32  ;;  %978 = vmatpush.msra.mxu3 %v466_v30  ;;  %v499_v41 = vld [vmem:[#allocation5 + $0xaf8] sm:$0xff]  ;;  %v514_v32 = vld [vmem:[#allocation5 + $0xb70] sm:$0xff] }
  0x9d   :  { %920 = vmatpush.msra.mxu0 %v416_v31  ;;  %939 = vmatpush.msra.mxu1 %v433_v42  ;;  %v531_v30 = vld [vmem:[#allocation5 + $0xbf8] sm:$0xff]  ;;  %v481_v31 = vld [vmem:[#allocation5 + $0xa68] sm:$0xff]  ;;  %v498_v42 = vld [vmem:[#allocation5 + $0xaf0] sm:$0xff] }
  0x9e   :  { %960 = vmatpush.msra.mxu2 %v448_v33  ;;  %979 = vmatpush.msra.mxu3 %v465_v43  ;;  %v513_v33 = vld [vmem:[#allocation5 + $0xb68] sm:$0xff]  ;;  %v530_v43 = vld [vmem:[#allocation5 + $0xbf0] sm:$0xff] }
  0x9f   :  { %921 = vmatpush.msra.mxu0 %v415_v44  ;;  %940 = vmatpush.msra.mxu1 %v432_v38  ;;  %v480_v44 = vld [vmem:[#allocation5 + $0xa60] sm:$0xff]  ;;  %v497_v38 = vld [vmem:[#allocation5 + $0xae8] sm:$0xff] }
  0xa0   :  { %961 = vmatpush.msra.mxu2 %v447_v39  ;;  %980 = vmatpush.msra.mxu3 %v464_v45  ;;  %v512_v39 = vld [vmem:[#allocation5 + $0xb60] sm:$0xff]  ;;  %v529_v45 = vld [vmem:[#allocation5 + $0xbe8] sm:$0xff] }
  0xa1   :  { %922 = vmatpush.msra.mxu0 %v414_v46  ;;  %941 = vmatpush.msra.mxu1 %v431_v47  ;;  %v479_v46 = vld [vmem:[#allocation5 + $0xa58] sm:$0xff]  ;;  %v496_v47 = vld [vmem:[#allocation5 + $0xae0] sm:$0xff] }
  0xa2   :  { %962 = vmatpush.msra.mxu2 %v446_v48  ;;  %981 = vmatpush.msra.mxu3 %v463_v49  ;;  %v511_v48 = vld [vmem:[#allocation5 + $0xb58] sm:$0xff]  ;;  %v528_v49 = vld [vmem:[#allocation5 + $0xbe0] sm:$0xff] }
  0xa3   :  { %923 = vmatpush.msra.mxu0 %v413_v50  ;;  %942 = vmatpush.msra.mxu1 %v430_v51  ;;  %v478_v50 = vld [vmem:[#allocation5 + $0xa50] sm:$0xff]  ;;  %v495_v51 = vld [vmem:[#allocation5 + $0xad8] sm:$0xff] }
  0xa4   :  { %963 = vmatpush.msra.mxu2 %v445_v52  ;;  %982 = vmatpush.msra.mxu3 %v462_v53  ;;  %v510_v52 = vld [vmem:[#allocation5 + $0xb50] sm:$0xff]  ;;  %v527_v53 = vld [vmem:[#allocation5 + $0xbd8] sm:$0xff] }
  0xa5   :  { %924 = vmatpush.msra.mxu0 %v412_v54  ;;  %943 = vmatpush.msra.mxu1 %v429_v55  ;;  %v477_v54 = vld [vmem:[#allocation5 + $0xa48] sm:$0xff]  ;;  %v494_v55 = vld [vmem:[#allocation5 + $0xad0] sm:$0xff] }
  0xa6   :  { %964 = vmatpush.msra.mxu2 %v444_v56  ;;  %983 = vmatpush.msra.mxu3 %v461_v57  ;;  %v509_v56 = vld [vmem:[#allocation5 + $0xb48] sm:$0xff]  ;;  %v526_v57 = vld [vmem:[#allocation5 + $0xbd0] sm:$0xff] }
  0xa7   :  { %925 = vmatpush.msra.mxu0 %v411_v58  ;;  %944 = vmatpush.msra.mxu1 %v428_v59  ;;  %v476_v58 = vld [vmem:[#allocation5 + $0xa40] sm:$0xff]  ;;  %v493_v59 = vld [vmem:[#allocation5 + $0xac8] sm:$0xff] }
  0xa8   :  { %965 = vmatpush.msra.mxu2 %v443_v60  ;;  %984 = vmatpush.msra.mxu3 %v460_v61  ;;  %v508_v60 = vld [vmem:[#allocation5 + $0xb40] sm:$0xff]  ;;  %v525_v61 = vld [vmem:[#allocation5 + $0xbc8] sm:$0xff] }
  0xa9   :  { %926 = vmatpush.msra.mxu0 %v410_v62  ;;  %945 = vmatpush.msra.mxu1 %v427_v0  ;;  %v475_v62 = vld [vmem:[#allocation5 + $0xa38] sm:$0xff]  ;;  %v492_v0 = vld [vmem:[#allocation5 + $0xac0] sm:$0xff] }
  0xaa   :  { %966 = vmatpush.msra.mxu2 %v442_v1  ;;  %985 = vmatpush.msra.mxu3 %v459_v2  ;;  %v507_v1 = vld [vmem:[#allocation5 + $0xb38] sm:$0xff]  ;;  %v524_v2 = vld [vmem:[#allocation5 + $0xbc0] sm:$0xff] }
  0xab   :  { %927 = vmatpush.msra.mxu0 %v409_v3  ;;  %946 = vmatpush.msra.mxu1 %v426_v4  ;;  %v474_v3 = vld [vmem:[#allocation5 + $0xa30] sm:$0xff]  ;;  %v491_v4 = vld [vmem:[#allocation5 + $0xab8] sm:$0xff] }
  0xac   :  { %967 = vmatpush.msra.mxu2 %v441_v5  ;;  %986 = vmatpush.msra.mxu3 %v458_v6  ;;  %v506_v5 = vld [vmem:[#allocation5 + $0xb30] sm:$0xff]  ;;  %v523_v6 = vld [vmem:[#allocation5 + $0xbb8] sm:$0xff] }
  0xad   :  { %928 = vmatpush.msra.mxu0 %v408_v7  ;;  %947 = vmatpush.msra.mxu1 %v425_v8  ;;  %v473_v7 = vld [vmem:[#allocation5 + $0xa28] sm:$0xff]  ;;  %v490_v8 = vld [vmem:[#allocation5 + $0xab0] sm:$0xff] }
  0xae   :  { %968 = vmatpush.msra.mxu2 %v440_v9  ;;  %987 = vmatpush.msra.mxu3 %v457_v10  ;;  %v505_v9 = vld [vmem:[#allocation5 + $0xb28] sm:$0xff]  ;;  %v522_v10 = vld [vmem:[#allocation5 + $0xbb0] sm:$0xff] }
  0xaf   :  { %929 = vmatpush.msra.mxu0 %v407_v11  ;;  %948 = vmatpush.msra.mxu1 %v424_v12  ;;  %v472_v11 = vld [vmem:[#allocation5 + $0xa20] sm:$0xff]  ;;  %v489_v12 = vld [vmem:[#allocation5 + $0xaa8] sm:$0xff] }
  0xb0   :  { %969 = vmatpush.msra.mxu2 %v439_v13  ;;  %988 = vmatpush.msra.mxu3 %v456_v63  ;;  %v504_v13 = vld [vmem:[#allocation5 + $0xb20] sm:$0xff]  ;;  %v521_v63 = vld [vmem:[#allocation5 + $0xba8] sm:$0xff] }
  0xb1   :  { %930 = vmatpush.msra.mxu0 %v406_v14  ;;  %949 = vmatpush.msra.mxu1 %v423_v15  ;;  %v471_v14 = vld [vmem:[#allocation5 + $0xa18] sm:$0xff]  ;;  %v488_v15 = vld [vmem:[#allocation5 + $0xaa0] sm:$0xff] }
  0xb2   :  { %970 = vmatpush.msra.mxu2 %v438_v16  ;;  %989 = vmatpush.msra.mxu3 %v455_v17  ;;  %v503_v16 = vld [vmem:[#allocation5 + $0xb18] sm:$0xff]  ;;  %v520_v17 = vld [vmem:[#allocation5 + $0xba0] sm:$0xff] }
  0xb3   :  { %931 = vmatpush.msra.mxu0 %v405_v18  ;;  %950 = vmatpush.msra.mxu1 %v422_v19  ;;  %v470_v18 = vld [vmem:[#allocation5 + $0xa10] sm:$0xff]  ;;  %v487_v19 = vld [vmem:[#allocation5 + $0xa98] sm:$0xff] }
  0xb4   :  { %971 = vmatpush.msra.mxu2 %v437_v20  ;;  %990 = vmatpush.msra.mxu3 %v454_v21  ;;  %v502_v20 = vld [vmem:[#allocation5 + $0xb10] sm:$0xff]  ;;  %v519_v21 = vld [vmem:[#allocation5 + $0xb98] sm:$0xff] }
  0xb5   :  { %932 = vmatpush.msra.mxu0 %v404_v22  ;;  %951 = vmatpush.msra.mxu1 %v421_v23  ;;  %v469_v22 = vld [vmem:[#allocation5 + $0xa08] sm:$0xff]  ;;  %v486_v23 = vld [vmem:[#allocation5 + $0xa90] sm:$0xff] }
  0xb6   :  { %972 = vmatpush.msra.mxu2 %v436_v24  ;;  %991 = vmatpush.msra.mxu3 %v453_v25  ;;  %v501_v24 = vld [vmem:[#allocation5 + $0xb08] sm:$0xff]  ;;  %v518_v25 = vld [vmem:[#allocation5 + $0xb90] sm:$0xff] }
  0xb7   :  { %933 = vmatmul.f32.vlgmr.msra.gmra.mxu0 %v565_v26  ;;  %973 = vmatmul.f32.vlgmr.msra.gmra.mxu2 %v567_v27  ;;  %v468_v26 = vld [vmem:[#allocation5 + $0xa00] sm:$0xff]  ;;  %v485_v27 = vld [vmem:[#allocation5 + $0xa88] sm:$0xff] }
  0xb8   :  { %997 = vmatpush.msrb.mxu0 %v483_v28  ;;  %1037 = vmatpush.msrb.mxu2 %v515_v29  ;;  %v500_v28 = vld [vmem:[#allocation5 + $0xb00] sm:$0xff]  ;;  %v517_v29 = vld [vmem:[#allocation5 + $0xb88] sm:$0xff] }
  0xb9   :  { %952 = vmatpush.msra.mxu1 %v420_v34  ;;  %992 = vmatpush.msra.mxu3 %v452_v35  ;;  %v569_v34 = vld.sshfl [vmem:[#allocation1 + $0x20] sm:$0xff pattern:$0x73625140]  ;;  %v571_v35 = vld.sshfl [vmem:[#allocation1 + $0x30] sm:$0xff pattern:$0x73625140] }
  0xba   :  { %953 = vmatmul.f32.vlgmr.msra.gmra.mxu1 %v566_v36  ;;  %993 = vmatmul.f32.vlgmr.msra.gmra.mxu3 %v568_v37  ;;  %v484_v36 = vld [vmem:[#allocation5 + $0xa80] sm:$0xff] }
  0xbb   :  { %998 = vmatpush.msrb.mxu0 %v482_v40  ;;  %1017 = vmatpush.msrb.mxu1 %v499_v41  ;;  %v516_v37 = vld [vmem:[#allocation5 + $0xb80] sm:$0xff]  ;;  %v570_v40 = vld.sshfl [vmem:[#allocation1 + $0x28] sm:$0xff pattern:$0x73625140] }
  0xbc   :  { %1038 = vmatpush.msrb.mxu2 %v514_v32  ;;  %1057 = vmatpush.msrb.mxu3 %v531_v30  ;;  %v572_v41 = vld.sshfl [vmem:[#allocation1 + $0x38] sm:$0xff pattern:$0x73625140]  ;;  %v1102_v32 = vld [vmem:[#allocation7] ss:$0 sm:$0xff] }
  0xbd   :  { %999 = vmatpush.msrb.mxu0 %v481_v31  ;;  %1018 = vmatpush.msrb.mxu1 %v498_v42 }
  0xbe   :  { %1039 = vmatpush.msrb.mxu2 %v513_v33  ;;  %1058 = vmatpush.msrb.mxu3 %v530_v43 }
  0xbf   :  { %1000 = vmatpush.msrb.mxu0 %v480_v44  ;;  %1019 = vmatpush.msrb.mxu1 %v497_v38 }
  0xc0   :  { %1040 = vmatpush.msrb.mxu2 %v512_v39  ;;  %1059 = vmatpush.msrb.mxu3 %v529_v45 }
  0xc1   :  { %1001 = vmatpush.msrb.mxu0 %v479_v46  ;;  %1020 = vmatpush.msrb.mxu1 %v496_v47 }
  0xc2   :  { %1041 = vmatpush.msrb.mxu2 %v511_v48  ;;  %1060 = vmatpush.msrb.mxu3 %v528_v49 }
  0xc3   :  { %1002 = vmatpush.msrb.mxu0 %v478_v50  ;;  %1021 = vmatpush.msrb.mxu1 %v495_v51 }
  0xc4   :  { %1042 = vmatpush.msrb.mxu2 %v510_v52  ;;  %1061 = vmatpush.msrb.mxu3 %v527_v53 }
  0xc5   :  { %1003 = vmatpush.msrb.mxu0 %v477_v54  ;;  %1022 = vmatpush.msrb.mxu1 %v494_v55 }
  0xc6   :  { %1043 = vmatpush.msrb.mxu2 %v509_v56  ;;  %1062 = vmatpush.msrb.mxu3 %v526_v57 }
  0xc7   :  { %1004 = vmatpush.msrb.mxu0 %v476_v58  ;;  %1023 = vmatpush.msrb.mxu1 %v493_v59 }
  0xc8   :  { %1044 = vmatpush.msrb.mxu2 %v508_v60  ;;  %1063 = vmatpush.msrb.mxu3 %v525_v61 }
  0xc9   :  { %1005 = vmatpush.msrb.mxu0 %v475_v62  ;;  %1024 = vmatpush.msrb.mxu1 %v492_v0 }
  0xca   :  { %1045 = vmatpush.msrb.mxu2 %v507_v1  ;;  %1064 = vmatpush.msrb.mxu3 %v524_v2 }
  0xcb   :  { %1006 = vmatpush.msrb.mxu0 %v474_v3  ;;  %1025 = vmatpush.msrb.mxu1 %v491_v4 }
  0xcc   :  { %1046 = vmatpush.msrb.mxu2 %v506_v5  ;;  %1065 = vmatpush.msrb.mxu3 %v523_v6  ;;  %v614_v30 = vpop.f32.mrf.mxu0 }
  0xcd   :  { %1007 = vmatpush.msrb.mxu0 %v473_v7  ;;  %1026 = vmatpush.msrb.mxu1 %v490_v8  ;;  %v615_v31 = vadd.f32 %v1102_v32, %v614_v30 }
  0xce   :  { %1047 = vmatpush.msrb.mxu2 %v505_v9  ;;  %1066 = vmatpush.msrb.mxu3 %v522_v10 }
  0xcf   :  { %1008 = vmatpush.msrb.mxu0 %v472_v11  ;;  %1027 = vmatpush.msrb.mxu1 %v489_v12  ;;  %v634_v42 = vpop.f32.mrf.mxu1 }
  0xd0   :  { %1048 = vmatpush.msrb.mxu2 %v504_v13  ;;  %1067 = vmatpush.msrb.mxu3 %v521_v63  ;;  %v635_v33 = vadd.f32 %v634_v42, %v615_v31 }
  0xd1   :  { %1009 = vmatpush.msrb.mxu0 %v471_v14  ;;  %1028 = vmatpush.msrb.mxu1 %v488_v15 }
  0xd2   :  { %1049 = vmatpush.msrb.mxu2 %v503_v16  ;;  %1068 = vmatpush.msrb.mxu3 %v520_v17  ;;  %v654_v43 = vpop.f32.mrf.mxu2 }
  0xd3   :  { %1010 = vmatpush.msrb.mxu0 %v470_v18  ;;  %1029 = vmatpush.msrb.mxu1 %v487_v19  ;;  %v655_v44 = vadd.f32 %v654_v43, %v635_v33 }
  0xd4   :  { %1050 = vmatpush.msrb.mxu2 %v502_v20  ;;  %1069 = vmatpush.msrb.mxu3 %v519_v21 }
  0xd5   :  { %1011 = vmatpush.msrb.mxu0 %v469_v22  ;;  %1030 = vmatpush.msrb.mxu1 %v486_v23  ;;  %v674_v38 = vpop.f32.mrf.mxu3 }
  0xd6   :  { %1051 = vmatpush.msrb.mxu2 %v501_v24  ;;  %1070 = vmatpush.msrb.mxu3 %v518_v25  ;;  %v675_v39 = vadd.f32 %v674_v38, %v655_v44 }
  0xd7   :  { %1012 = vmatpush.msrb.mxu0 %v468_v26  ;;  %1031 = vmatpush.msrb.mxu1 %v485_v27 }
  0xd8   :  { %1052 = vmatpush.msrb.mxu2 %v500_v28  ;;  %1071 = vmatpush.msrb.mxu3 %v517_v29  ;;  %v694_v45 = vpop.f32.mrf.mxu0 }
  0xd9   :  { %1013 = vmatmul.f32.vlgmr.msrb.gmra.mxu0 %v569_v34  ;;  %1053 = vmatmul.f32.vlgmr.msrb.gmra.mxu2 %v571_v35  ;;  %v695_v46 = vadd.f32 %v694_v45, %v675_v39 }
  0xda   :  { %1032 = vmatpush.msrb.mxu1 %v484_v36  ;;  %1072 = vmatpush.msrb.mxu3 %v516_v37 }
  0xdb   :  { %1033 = vmatmul.f32.vlgmr.msrb.gmra.mxu1 %v570_v40  ;;  %1073 = vmatmul.f32.vlgmr.msrb.gmra.mxu3 %v572_v41  ;;  %v714_v47 = vpop.f32.mrf.mxu1 }
  0xdc   :  { %v715_v48 = vadd.f32 %v714_v47, %v695_v46  ;;  %v734_v49 = vpop.f32.mrf.mxu2 }
  0xde   :  { %v735_v50 = vadd.f32 %v734_v49, %v715_v48 }
  0xdf   :  { %v754_v51 = vpop.f32.mrf.mxu3 }
  0xe0   :  { %v755_v53 = vadd.f32 %v754_v51, %v735_v50 }
  0xf0   :  { %v774_v52 = vpop.f32.mrf.mxu0 }
  0xf1   :  { %v775_v54 = vadd.f32 %v774_v52, %v755_v53 }
  0xf3   :  { %v794_v55 = vpop.f32.mrf.mxu1 }
  0xf4   :  { %v795_v57 = vadd.f32 %v794_v55, %v775_v54 }
  0xf6   :  { %v814_v56 = vpop.f32.mrf.mxu2 }
  0xf7   :  { %v815_v58 = vadd.f32 %v814_v56, %v795_v57 }
  0xf9   :  { %v834_v59 = vpop.f32.mrf.mxu3 }
  0xfa   :  { %v835_v61 = vadd.f32 %v834_v59, %v815_v58 }
 0x112   :  { %v854_v60 = vpop.f32.mrf.mxu0 }
 0x113   :  { %v855_v62 = vadd.f32 %v854_v60, %v835_v61 }
 0x115   :  { %v874_v0 = vpop.f32.mrf.mxu1 }
 0x116   :  { %v875_v2 = vadd.f32 %v874_v0, %v855_v62 }
 0x118   :  { %v894_v1 = vpop.f32.mrf.mxu2 }
 0x119   :  { %v895_v3 = vadd.f32 %v894_v1, %v875_v2 }
 0x11b   :  { %v914_v4 = vpop.f32.mrf.mxu3 }
 0x11c   :  { %v915_v6 = vadd.f32 %v914_v4, %v895_v3 }
 0x134   :  { %v934_v5 = vpop.f32.mrf.mxu0 }
 0x135   :  { %v935_v7 = vadd.f32 %v934_v5, %v915_v6 }
 0x137   :  { %v954_v8 = vpop.f32.mrf.mxu1 }
 0x138   :  { %v955_v10 = vadd.f32 %v954_v8, %v935_v7 }
 0x13a   :  { %v974_v9 = vpop.f32.mrf.mxu2 }
 0x13b   :  { %v975_v11 = vadd.f32 %v974_v9, %v955_v10 }
 0x13d   :  { %v994_v12 = vpop.f32.mrf.mxu3 }
 0x13e   :  { %v995_v13 = vadd.f32 %v994_v12, %v975_v11 }
 0x156   :  { %v1014_v63 = vpop.f32.mrf.mxu0 }
 0x157   :  { %v1015_v14 = vadd.f32 %v1014_v63, %v995_v13 }
 0x158   :  { %v1034_v15 = vpop.f32.mrf.mxu1 }
 0x159   :  { %v1035_v16 = vadd.f32 %v1034_v15, %v1015_v14 }
 0x15c   :  { %v1054_v17 = vpop.f32.mrf.mxu2 }
 0x15d   :  { %v1055_v18 = vadd.f32 %v1054_v17, %v1035_v16 }
 0x15e   :  { %v1074_v19 = vpop.f32.mrf.mxu3 }
 0x15f   :  { %v1075_v20 = vadd.f32 %v1074_v19, %v1055_v18 }
 0x161   :  { %1077 = vst [vmem:[#allocation8] sm:$0x3] %v1075_v20 }
 0x162   :  { %1088 = dma.vmem_to_hbm [thread:$0]  %s1084_s15, 32, %s1086_s18, [#allocation4]  }
 0x163   :  { %1203 = dma.done.wait [#allocation4], 32  }
 0x164   :  { %1204 = vsyncadd [#allocation4], 4294967264 }
 0x165   :  { %1093 = vsyncpa [#allocation3], 1 }
 0x166   :  { %1094 = vsyncpa [#allocation6], 1 }
 0x167   :  { %1095 = vsyncpa [#allocation4], 1 }

// kernel: diagonal_circulant_model.3
= control target key start
LH: loop header
LB: loop body
LE: loop exit
PB: predicated region body
PF: predicated region fallthrough
CT: control target
= control target key end

     0   :  { %9 = vsyncpa [#allocation3], 0  ;;  %s6404_s0 = inlined_call_operand.vmem [shape: f32[2,3072], index: 0, kind: input, shape index: {}]   ;;  %s6405_s1 = inlined_call_operand.hbm [shape: f32[1,3072], index: 1, kind: input, shape index: {}]   ;;  %s6406_s2 = inlined_call_operand.hbm [shape: f32[6,512,512], index: 2, kind: input, shape index: {}]   ;;  %s6407_s3 = inlined_call_operand.hbm [shape: f32[1,3072], index: 3, kind: input, shape index: {}]   ;;  %s6408_s4 = inlined_call_operand.vmem [shape: f32[2,3072], index: 4, kind: output, shape index: {}]  }
   0x1   :  { %10 = vsyncpa [#allocation5], 0  ;;  %s4403_s15 = smov 0   ;;  %s4405_s16 = smov 0  }
   0x2   :  { %s4407_s17 = smov 0   ;;  %s4409_s18 = smov 0  }
   0x3 LB: > { %s4422_s19 = sadd.s32 4294967295, %s4372_s18   ;;  %p99_p0 = scmp.ne.s32.totalorder %s4364_s16, %s4360_s15  ;;  %s4372_s18 = sphi %s4409_s18, %s6415_s18   ;;  %s4368_s17 = sphi %s4407_s17, %s6414_s17   ;;  %s4364_s16 = sphi %s4405_s16, %s6413_s16   ;;  %s4360_s15 = sphi %s4403_s15, %s6412_s15  }
   0x4   : > { %p100_p1 = scmp.eq.s32.totalorder %s4422_s19, 0  ;;  %p4107_p2 = scmp.ge.s32.totalorder %s4372_s18, 1 }
   0x5   : > { %p136_p3 = scmp.lt.s32.totalorder %s4372_s18, 7  ;;  %s151_s23 = sshll.u32 %s6405_s1, 4  ;;  %s152_s23 = int_to_ptr.hbm [resolvable:$true] %s151_s23 }
   0x6   : > { %p4430_p4 = por %p100_p1, %p99_p0  ;;  %s4374_s25 = smov [#allocation2]  }
   0x7   : > { %p4437_p5 = pnand %p4107_p2, %p136_p3  ;;  %s153_s26 = sshll.u32 %s4374_s25, 4  ;;  %s154_s26 = int_to_ptr.vmem [resolvable:$true] %s153_s26 }
   0x8   : > { %s162_s29 = sshll.u32 %s6406_s2, 4  ;;  %s4375_s30 = smov [#allocation4]   ;;  %s163_s29 = int_to_ptr.hbm [resolvable:$true] %s162_s29 }
   0x9   : > { %p4167_p6 = pneg %p4437_p5  ;;  %s164_s5 = sshll.u32 %s4375_s30, 4  ;;  %s165_s5 = int_to_ptr.vmem [resolvable:$true] %s164_s5 }
   0xa   : > { %s4376_s6 = smov 512   ;;  %s4377_s7 = smov 32  }
   0xb   : > { %p4168_p7 = pnand %p4167_p6, %p100_p1  ;;  %s4449_s8 = sadd.s32 1, %s4372_s18  }
   0xc   : > { %s83_s9 = ssub.s32 %s4372_s18, %s4449_s8  ;;  %s86_s10 = sadd.s32 1, %s4368_s17 }
   0xd   : > { %4170 = dma.hbm_to_vmem [thread:$0]  (!%p4168_p7), %s152_s23, 384, %s154_s26, [#allocation3]  }
   0xe   : > { %4173 = dma.hbm_to_vmem [thread:$0]  (!%p4168_p7), %s163_s29, 196608, %s165_s5, [#allocation5], %s4376_s6, %s4376_s6, %s4377_s7  }
   0xf   : > { %p84_p8 = scmp.eq.s32.totalorder %s83_s9, 0  ;;  %p93_p9 = scmp.ne.s32.totalorder %s4368_s17, %s4364_s16 }
  0x10   : > { %p94_p10 = scmp.eq.s32.totalorder %s4372_s18, 0  ;;  %p4180_p12 = scmp.lt.s32.totalorder %s4372_s18, 6 }
  0x11   : > { %s4458_s11 = scalar_select %p84_p8, %s4368_s17, %s86_s10  }
  0x12   : > { %p95_p11 = por %p94_p10, %p93_p9  ;;  %s178_s12 = sand.u32 1, %s4372_s18  }
  0x13   : > { %s180_s13 = sand.u32 1, %s4368_s17   ;;  %s4112_s15 = sshll.u32 %s4372_s18, 2 }
  0x14   : > { %s4111_s14 = sshll.u32 %s180_s13, 2  ;;  %s186_s23 = scalar_lea.hbm %s6407_s3, %s4112_s15 }
  0x15   : > { %s182_s25 = scalar_lea.vmem [#allocation6], %s4111_s14  ;;  %s188_s27 = sshll.u32 %s186_s23, 4  ;;  %s189_s27 = int_to_ptr.hbm [resolvable:$true] %s188_s27 }
  0x16   : > { %s190_s26 = sshll.u32 %s182_s25, 4  ;;  %p4467_p13 = pnand %p4180_p12, %p95_p11  ;;  %s191_s26 = int_to_ptr.vmem [resolvable:$true] %s190_s26 }
  0x17   : > { %s179_s29 = scalar_lea.sflag [#allocation3], %s178_s12  ;;  %s4300_s30 = sshra.s32 %s189_s27, 4  ;;  %s4301_s30 = int_to_ptr.hbm [resolvable:$true] %s4300_s30 }
  0x18   : > { %s4302_s5 = scalar_lea.hbm %s4301_s30, 4  ;;  %p4304_p2 = pneg %p4467_p13 }
  0x19   : > { %p4303_p0 = scmp.ne.s32.totalorder %s4301_s30, %s4302_s5  ;;  %s4307_s7 = scalar_lea.hbm %s6407_s3, 24 }
  0x1a   : > { %p4308_p7 = scmp.lt.s32.totalorder %s4301_s30, %s6407_s3  ;;  %p4309_p8 = scmp.lt.s32.totalorder %s4307_s7, %s4302_s5 }
  0x1b   : > { %p4305_p3 = pnand %p4304_p2, %p4303_p0 }
  0x1c   : > { %p4310_p9 = por %p4309_p8, %p4308_p7 }
  0x1d   : > { %p4306_p6 = pneg %p4305_p3 }
  0x1f   : > { %p4311_p10 = pnand %p4310_p9, %p4306_p6 }
  0x21   : > { %4314 = shalt.err (!%p4311_p10)
}
  0x22   : > { %4177 = dma.hbm_to_vmem [thread:$0]  (!%p4467_p13), %s189_s27, 64, %s191_s26, %s179_s29  }
  0x23   : > { %199 = sbr.rel (%p4437_p5) target bundleno = 1087 (0x43f), region = 36 }
  0x28   : > { %4347 = dma.done.wait (%p100_p1), [#allocation3], 384  }
  0x29   : > { %4349 = vsyncadd (%p100_p1), [#allocation3], 4294966912 }
  0x2a   : > { %4351 = dma.done.wait (%p100_p1), [#allocation5], 196608  }
  0x2b   : > { %4353 = vsyncadd (%p100_p1), [#allocation5], 4294770688  ;;  %s211_s12 = sand.u32 1, %s4422_s19   ;;  %s213_s13 = sand.u32 1, %s4364_s16  }
  0x2c   : > { %s4493_s14 = sshll.u32 %s213_s13, 2  ;;  %s212_s24 = scalar_lea.sflag [#allocation3], %s211_s12 }
  0x2d   : > { %s215_s15 = scalar_lea.vmem [#allocation6], %s4493_s14 }
  0x2e   : > { %4355 = dma.done.wait (%p4430_p4), %s212_s24, 64  }
  0x2f   : > { %4357 = vsyncadd (%p4430_p4), %s212_s24, 4294967232  ;;  %s349_s21 = sadd.s32 6, %s4422_s19  ;;  %s4512_s20 = sadd.s32 5, %s4422_s19  ;;  %vm302_vm0 = vcmask 1041408   ;;  %vm304_vm1 = vcmask 1045508   ;;  %vm306_vm2 = vcmask 1043456  }
  0x30   : > { %s351_s22 = ssub.s32 0, %s349_s21  ;;  %p350_p1 = scmp.lt.s32.totalorder %s349_s21, 0 }
  0x31   : > { %s4119_s23 = smin.u32 %s351_s22, %s349_s21  ;;  %s958_s5 = ssub.s32 0, %s4512_s20 }
  0x32   : > { %4220 = sdivrem.u32 %s4119_s23, 6  ;;  %s4124_s18 = smin.u32 %s958_s5, %s4512_s20 }
  0x33   : > { %4223 = sdivrem.u32 %s4124_s18, 6  ;;  %p957_p4 = scmp.lt.s32.totalorder %s4512_s20, 0 }
  0x34   : > { %s5162_s12 = sadd.s32 3, %s4422_s19 }
  0x35   : > { %p2171_p0 = scmp.lt.s32.totalorder %s5162_s12, 0 }
  0x3b   : > { %s4221_s25 = spop.drf %4220 }
  0x3c   : > { %s4222_s26 = spop.drf %4220 }
  0x3d   : > { %s355_s27 = ssub.s32 0, %s4222_s26  ;;  %s4224_s6 = spop.drf %4223 }
  0x3e   : > { %s6417_s27 = smov (!%p350_p1, %s355_s27), %s4222_s26  ;;  %s4225_s13 = spop.drf %4223 }
  0x3f   : > { %p4121_p5 = scmp.lt.s32.totalorder %s6417_s27, 0  ;;  %s361_s28 = sadd.s32 6, %s6417_s27 }
  0x40   : > { %s962_s24 = ssub.s32 0, %s4225_s13 }
  0x41   : > { %s6419_s28 = smov (!%p4121_p5, %s361_s28), %s6417_s27  ;;  %s6421_s24 = smov (!%p957_p4, %s962_s24), %s4225_s13 }
  0x42   : > { %s4151_s29 = sshll.u32 %s6419_s28, 11  ;;  %p4126_p11 = scmp.lt.s32.totalorder %s6421_s24, 0 }
  0x43   : > { %s4501_s30 = scalar_lea.vmem [#allocation4], %s4151_s29  ;;  %s968_s21 = sadd.s32 6, %s6421_s24 }
  0x44   : > { %v554_v0 = vld [vmem:[%s4501_s30 + $0x5e0] sm:$0xff]  ;;  %v555_v62 = vld [vmem:[%s4501_s30 + $0x5e8] sm:$0xff]  ;;  %s6423_s21 = smov (!%p4126_p11, %s968_s21), %s6421_s24  ;;  %s4850_s27 = sadd.s32 4, %s4422_s19 }
  0x45   : > { %v618_v1 = vld [vmem:[%s4501_s30 + $0x7e0] sm:$0xff]  ;;  %672 = vmatpush.msra.mxu2 %v554_v0  ;;  %v619_v63 = vld [vmem:[%s4501_s30 + $0x7e8] sm:$0xff]  ;;  %s4152_s22 = sshll.u32 %s6423_s21, 11  ;;  %s1565_s28 = ssub.s32 0, %s4850_s27 }
  0x46   : > { %692 = vmatpush.msra.mxu3 %v618_v1  ;;  %v426_v2 = vld [vmem:[%s4501_s30 + $0x1e0] sm:$0xff]  ;;  %s4813_s23 = scalar_lea.vmem [#allocation4], %s4152_s22  ;;  %s4129_s29 = smin.u32 %s1565_s28, %s4850_s27 }
  0x47   : > { %v490_v3 = vld [vmem:[%s4501_s30 + $0x3e0] sm:$0xff]  ;;  %632 = vmatpush.msra.mxu0 %v426_v2  ;;  %v551_v2 = vld [vmem:[%s4501_s30 + $0x5c8] sm:$0xff]  ;;  %4226 = sdivrem.u32 %s4129_s29, 6  ;;  %p1564_p12 = scmp.lt.s32.totalorder %s4850_s27, 0 }
  0x48   : > { %v550_v4 = vld [vmem:[%s4501_s30 + $0x5c0] sm:$0xff]  ;;  %652 = vmatpush.msra.mxu1 %v490_v3  ;;  %v427_v3 = vld [vmem:[%s4501_s30 + $0x1e8] sm:$0xff]  ;;  %s2172_s13 = ssub.s32 0, %s5162_s12  ;;  %s5492_s28 = sadd.s32 2, %s4422_s19 }
  0x49   : > { %v614_v5 = vld [vmem:[%s4501_s30 + $0x7c0] sm:$0xff]  ;;  %673 = vmatpush.msra.mxu2 %v550_v4  ;;  %v491_v4 = vld [vmem:[%s4501_s30 + $0x3e8] sm:$0xff]  ;;  %s4134_s24 = smin.u32 %s2172_s13, %s5162_s12  ;;  %s2779_s29 = ssub.s32 0, %s5492_s28 }
  0x4a   : > { %693 = vmatpush.msra.mxu3 %v614_v5  ;;  %v422_v6 = vld [vmem:[%s4501_s30 + $0x1c0] sm:$0xff]  ;;  %v615_v5 = vld [vmem:[%s4501_s30 + $0x7c8] sm:$0xff]  ;;  %4229 = sdivrem.u32 %s4134_s24, 6  ;;  %p2778_p3 = scmp.lt.s32.totalorder %s5492_s28, 0 }
  0x4b   : > { %v486_v7 = vld [vmem:[%s4501_s30 + $0x3c0] sm:$0xff]  ;;  %633 = vmatpush.msra.mxu0 %v422_v6  ;;  %v547_v6 = vld [vmem:[%s4501_s30 + $0x5a8] sm:$0xff]  ;;  %s5810_s13 = sadd.s32 1, %s4422_s19  ;;  %s4117_s27 = sshll.u32 %s4422_s19, 2 }
  0x4c   : > { %v546_v8 = vld [vmem:[%s4501_s30 + $0x5a0] sm:$0xff]  ;;  %653 = vmatpush.msra.mxu1 %v486_v7  ;;  %v423_v7 = vld [vmem:[%s4501_s30 + $0x1c8] sm:$0xff]  ;;  %s3386_s24 = ssub.s32 0, %s5810_s13  ;;  %p3385_p7 = scmp.lt.s32.totalorder %s5810_s13, 0 }
  0x4d   : > { %v610_v9 = vld [vmem:[%s4501_s30 + $0x7a0] sm:$0xff]  ;;  %674 = vmatpush.msra.mxu2 %v546_v8  ;;  %v487_v8 = vld [vmem:[%s4501_s30 + $0x3c8] sm:$0xff]  ;;  %p243_p9 = scmp.lt.s32.totalorder %s4117_s27, 23 }
  0x4e   : > { %694 = vmatpush.msra.mxu3 %v610_v9  ;;  %v418_v10 = vld [vmem:[%s4501_s30 + $0x1a0] sm:$0xff]  ;;  %v611_v9 = vld [vmem:[%s4501_s30 + $0x7a8] sm:$0xff] }
  0x4f   : > { %v482_v11 = vld [vmem:[%s4501_s30 + $0x3a0] sm:$0xff]  ;;  %634 = vmatpush.msra.mxu0 %v418_v10  ;;  %v543_v10 = vld [vmem:[%s4501_s30 + $0x588] sm:$0xff]  ;;  %s6441_s27 = smov (!%p243_p9, %s4117_s27), 23 }
  0x50   : > { %v542_v12 = vld [vmem:[%s4501_s30 + $0x580] sm:$0xff]  ;;  %654 = vmatpush.msra.mxu1 %v482_v11  ;;  %v419_v11 = vld [vmem:[%s4501_s30 + $0x1a8] sm:$0xff]  ;;  %s4118_s19 = sshll.u32 %s6441_s27, 1 }
  0x51   : > { %v606_v13 = vld [vmem:[%s4501_s30 + $0x780] sm:$0xff]  ;;  %675 = vmatpush.msra.mxu2 %v542_v12  ;;  %v483_v12 = vld [vmem:[%s4501_s30 + $0x3a8] sm:$0xff] }
  0x52   : > { %695 = vmatpush.msra.mxu3 %v606_v13  ;;  %v414_v14 = vld [vmem:[%s4501_s30 + $0x180] sm:$0xff]  ;;  %v607_v13 = vld [vmem:[%s4501_s30 + $0x788] sm:$0xff] }
  0x53   : > { %v478_v15 = vld [vmem:[%s4501_s30 + $0x380] sm:$0xff]  ;;  %635 = vmatpush.msra.mxu0 %v414_v14  ;;  %v539_v14 = vld [vmem:[%s4501_s30 + $0x568] sm:$0xff] }
  0x54   : > { %v538_v16 = vld [vmem:[%s4501_s30 + $0x560] sm:$0xff]  ;;  %655 = vmatpush.msra.mxu1 %v478_v15  ;;  %v415_v15 = vld [vmem:[%s4501_s30 + $0x188] sm:$0xff] }
  0x55   : > { %v602_v17 = vld [vmem:[%s4501_s30 + $0x760] sm:$0xff]  ;;  %676 = vmatpush.msra.mxu2 %v538_v16  ;;  %v479_v16 = vld [vmem:[%s4501_s30 + $0x388] sm:$0xff] }
  0x56   : > { %696 = vmatpush.msra.mxu3 %v602_v17  ;;  %v410_v18 = vld [vmem:[%s4501_s30 + $0x160] sm:$0xff]  ;;  %v603_v17 = vld [vmem:[%s4501_s30 + $0x768] sm:$0xff] }
  0x57   : > { %v474_v19 = vld [vmem:[%s4501_s30 + $0x360] sm:$0xff]  ;;  %636 = vmatpush.msra.mxu0 %v410_v18  ;;  %v535_v18 = vld [vmem:[%s4501_s30 + $0x548] sm:$0xff] }
  0x58   : > { %v534_v20 = vld [vmem:[%s4501_s30 + $0x540] sm:$0xff]  ;;  %656 = vmatpush.msra.mxu1 %v474_v19  ;;  %v411_v19 = vld [vmem:[%s4501_s30 + $0x168] sm:$0xff] }
  0x59   : > { %v598_v21 = vld [vmem:[%s4501_s30 + $0x740] sm:$0xff]  ;;  %677 = vmatpush.msra.mxu2 %v534_v20  ;;  %v475_v20 = vld [vmem:[%s4501_s30 + $0x368] sm:$0xff] }
  0x5a   : > { %697 = vmatpush.msra.mxu3 %v598_v21  ;;  %v406_v22 = vld [vmem:[%s4501_s30 + $0x140] sm:$0xff]  ;;  %v599_v21 = vld [vmem:[%s4501_s30 + $0x748] sm:$0xff] }
  0x5b   : > { %v470_v23 = vld [vmem:[%s4501_s30 + $0x340] sm:$0xff]  ;;  %637 = vmatpush.msra.mxu0 %v406_v22  ;;  %v4594_v22 = vld [vmem:[#allocation2] sm:$0xff] }
  0x5c   : > { %v530_v24 = vld [vmem:[%s4501_s30 + $0x520] sm:$0xff]  ;;  %657 = vmatpush.msra.mxu1 %v470_v23  ;;  %v531_v23 = vld [vmem:[%s4501_s30 + $0x528] sm:$0xff] }
  0x5d   : > { %v594_v25 = vld [vmem:[%s4501_s30 + $0x720] sm:$0xff]  ;;  %678 = vmatpush.msra.mxu2 %v530_v24  ;;  %v407_v24 = vld [vmem:[%s4501_s30 + $0x148] sm:$0xff] }
  0x5e   : > { %698 = vmatpush.msra.mxu3 %v594_v25  ;;  %v402_v26 = vld [vmem:[%s4501_s30 + $0x120] sm:$0xff]  ;;  %v471_v25 = vld [vmem:[%s4501_s30 + $0x348] sm:$0xff] }
  0x5f   : > { %v466_v27 = vld [vmem:[%s4501_s30 + $0x320] sm:$0xff]  ;;  %638 = vmatpush.msra.mxu0 %v402_v26  ;;  %v595_v26 = vld [vmem:[%s4501_s30 + $0x728] sm:$0xff] }
  0x60   : > { %v526_v28 = vld [vmem:[%s4501_s30 + $0x500] sm:$0xff]  ;;  %658 = vmatpush.msra.mxu1 %v466_v27  ;;  %v261_v27 = vperm.slane %v4594_v22, 1 }
  0x61   : > { %v590_v29 = vld [vmem:[%s4501_s30 + $0x700] sm:$0xff]  ;;  %679 = vmatpush.msra.mxu2 %v526_v28  ;;  %v262_v28 = vperm.slane %v4594_v22, 2 }
  0x62   : > { %699 = vmatpush.msra.mxu3 %v590_v29  ;;  %v398_v30 = vld [vmem:[%s4501_s30 + $0x100] sm:$0xff]  ;;  %v263_v29 = vperm.slane %v4594_v22, 3 }
  0x63   : > { %v462_v31 = vld [vmem:[%s4501_s30 + $0x300] sm:$0xff]  ;;  %639 = vmatpush.msra.mxu0 %v398_v30  ;;  %v527_v30 = vld [vmem:[%s4501_s30 + $0x508] sm:$0xff] }
  0x64   : > { %v522_v32 = vld [vmem:[%s4501_s30 + $0x4e0] sm:$0xff]  ;;  %659 = vmatpush.msra.mxu1 %v462_v31  ;;  %v403_v31 = vld [vmem:[%s4501_s30 + $0x128] sm:$0xff] }
  0x65   : > { %v586_v33 = vld [vmem:[%s4501_s30 + $0x6e0] sm:$0xff]  ;;  %680 = vmatpush.msra.mxu2 %v522_v32  ;;  %v467_v32 = vld [vmem:[%s4501_s30 + $0x328] sm:$0xff] }
  0x66   : > { %700 = vmatpush.msra.mxu3 %v586_v33  ;;  %v394_v34 = vld [vmem:[%s4501_s30 + $0xe0] sm:$0xff]  ;;  %v591_v33 = vld [vmem:[%s4501_s30 + $0x708] sm:$0xff] }
  0x67   : > { %v458_v35 = vld [vmem:[%s4501_s30 + $0x2e0] sm:$0xff]  ;;  %640 = vmatpush.msra.mxu0 %v394_v34  ;;  %v523_v34 = vld [vmem:[%s4501_s30 + $0x4e8] sm:$0xff] }
  0x68   : > { %v518_v36 = vld [vmem:[%s4501_s30 + $0x4c0] sm:$0xff]  ;;  %660 = vmatpush.msra.mxu1 %v458_v35  ;;  %v399_v35 = vld [vmem:[%s4501_s30 + $0x108] sm:$0xff] }
  0x69   : > { %v582_v37 = vld [vmem:[%s4501_s30 + $0x6c0] sm:$0xff]  ;;  %681 = vmatpush.msra.mxu2 %v518_v36  ;;  %v260_v36 = vperm.slane %v4594_v22, 0 }
  0x6a   : > { %701 = vmatpush.msra.mxu3 %v582_v37  ;;  %v390_v38 = vld [vmem:[%s4501_s30 + $0xc0] sm:$0xff]  ;;  %v463_v37 = vld [vmem:[%s4501_s30 + $0x308] sm:$0xff] }
  0x6b   : > { %v454_v39 = vld [vmem:[%s4501_s30 + $0x2c0] sm:$0xff]  ;;  %641 = vmatpush.msra.mxu0 %v390_v38  ;;  %v587_v38 = vld [vmem:[%s4501_s30 + $0x6e8] sm:$0xff] }
  0x6c   : > { %v514_v40 = vld [vmem:[%s4501_s30 + $0x4a0] sm:$0xff]  ;;  %661 = vmatpush.msra.mxu1 %v454_v39  ;;  %v284_v39 = vrot.slane %v261_v27, 6 }
  0x6d   : > { %v578_v41 = vld [vmem:[%s4501_s30 + $0x6a0] sm:$0xff]  ;;  %682 = vmatpush.msra.mxu2 %v514_v40  ;;  %v285_v40 = vrot.slane %v262_v28, 4 }
  0x6e   : > { %702 = vmatpush.msra.mxu3 %v578_v41  ;;  %v386_v42 = vld [vmem:[%s4501_s30 + $0xa0] sm:$0xff]  ;;  %v286_v41 = vrot.slane %v263_v29, 2 }
  0x6f   : > { %v450_v43 = vld [vmem:[%s4501_s30 + $0x2a0] sm:$0xff]  ;;  %642 = vmatpush.msra.mxu0 %v386_v42  ;;  %v519_v42 = vld [vmem:[%s4501_s30 + $0x4c8] sm:$0xff] }
  0x70   : > { %v510_v44 = vld [vmem:[%s4501_s30 + $0x480] sm:$0xff]  ;;  %662 = vmatpush.msra.mxu1 %v450_v43  ;;  %v395_v43 = vld [vmem:[%s4501_s30 + $0xe8] sm:$0xff] }
  0x71   : > { %v574_v45 = vld [vmem:[%s4501_s30 + $0x680] sm:$0xff]  ;;  %683 = vmatpush.msra.mxu2 %v510_v44  ;;  %v459_v44 = vld [vmem:[%s4501_s30 + $0x2e8] sm:$0xff] }
  0x72   : > { %703 = vmatpush.msra.mxu3 %v574_v45  ;;  %v382_v46 = vld [vmem:[%s4501_s30 + $0x80] sm:$0xff]  ;;  %v583_v45 = vld [vmem:[%s4501_s30 + $0x6c8] sm:$0xff] }
  0x73   : > { %v446_v47 = vld [vmem:[%s4501_s30 + $0x280] sm:$0xff]  ;;  %643 = vmatpush.msra.mxu0 %v382_v46  ;;  %v515_v46 = vld [vmem:[%s4501_s30 + $0x4a8] sm:$0xff] }
  0x74   : > { %v506_v48 = vld [vmem:[%s4501_s30 + $0x460] sm:$0xff]  ;;  %663 = vmatpush.msra.mxu1 %v446_v47  ;;  %v391_v47 = vld [vmem:[%s4501_s30 + $0xc8] sm:$0xff] }
  0x75   : > { %v570_v49 = vld [vmem:[%s4501_s30 + $0x660] sm:$0xff]  ;;  %684 = vmatpush.msra.mxu2 %v506_v48  ;;  %v303_v48 = vsel %vm302_vm0, %v260_v36, %v284_v39  ;;  %v424_v36 = vld [vmem:[%s4501_s30 + $0x1d0] sm:$0xff] }
  0x76   : > { %704 = vmatpush.msra.mxu3 %v570_v49  ;;  %v378_v50 = vld [vmem:[%s4501_s30 + $0x60] sm:$0xff]  ;;  %v455_v49 = vld [vmem:[%s4501_s30 + $0x2c8] sm:$0xff]  ;;  %v544_v39 = vld [vmem:[%s4501_s30 + $0x590] sm:$0xff] }
  0x77   : > { %v442_v51 = vld [vmem:[%s4501_s30 + $0x260] sm:$0xff]  ;;  %644 = vmatpush.msra.mxu0 %v378_v50  ;;  %v579_v50 = vld [vmem:[%s4501_s30 + $0x6a8] sm:$0xff] }
  0x78   : > { %v502_v52 = vld [vmem:[%s4501_s30 + $0x440] sm:$0xff]  ;;  %664 = vmatpush.msra.mxu1 %v442_v51  ;;  %v305_v51 = vsel %vm304_vm1, %v285_v40, %v286_v41  ;;  %v420_v40 = vld [vmem:[%s4501_s30 + $0x1b0] sm:$0xff] }
  0x79   : > { %v566_v53 = vld [vmem:[%s4501_s30 + $0x640] sm:$0xff]  ;;  %685 = vmatpush.msra.mxu2 %v502_v52  ;;  %v511_v52 = vld [vmem:[%s4501_s30 + $0x488] sm:$0xff]  ;;  %v484_v41 = vld [vmem:[%s4501_s30 + $0x3b0] sm:$0xff] }
  0x7a   : > { %705 = vmatpush.msra.mxu3 %v566_v53  ;;  %v374_v54 = vld [vmem:[%s4501_s30 + $0x40] sm:$0xff]  ;;  %v387_v53 = vld [vmem:[%s4501_s30 + $0xa8] sm:$0xff] }
  0x7b   : > { %v438_v55 = vld [vmem:[%s4501_s30 + $0x240] sm:$0xff]  ;;  %645 = vmatpush.msra.mxu0 %v374_v54 }
  0x7c   : > { %v498_v56 = vld [vmem:[%s4501_s30 + $0x420] sm:$0xff]  ;;  %665 = vmatpush.msra.mxu1 %v438_v55  ;;  %v307_v55 = vsel %vm306_vm2, %v303_v48, %v305_v51  ;;  %v412_v48 = vld [vmem:[%s4501_s30 + $0x170] sm:$0xff] }
  0x7d   : > { %v562_v57 = vld [vmem:[%s4501_s30 + $0x620] sm:$0xff]  ;;  %686 = vmatpush.msra.mxu2 %v498_v56  ;;  %v265_v56 = vperm.slane %v4594_v22, 5  ;;  %v532_v51 = vld [vmem:[%s4501_s30 + $0x530] sm:$0xff] }
  0x7e   : > { %706 = vmatpush.msra.mxu3 %v562_v57  ;;  %v370_v58 = vld [vmem:[%s4501_s30 + $0x20] sm:$0xff]  ;;  %v451_v57 = vld [vmem:[%s4501_s30 + $0x2a8] sm:$0xff] }
  0x7f   : > { %v434_v59 = vld [vmem:[%s4501_s30 + $0x220] sm:$0xff]  ;;  %646 = vmatpush.msra.mxu0 %v370_v58  ;;  %v575_v58 = vld [vmem:[%s4501_s30 + $0x688] sm:$0xff] }
  0x80   : > { %v494_v60 = vld [vmem:[%s4501_s30 + $0x400] sm:$0xff]  ;;  %666 = vmatpush.msra.mxu1 %v434_v59  ;;  %v264_v59 = vperm.slane %v4594_v22, 4 }
  0x81   : > { %v558_v61 = vld [vmem:[%s4501_s30 + $0x600] sm:$0xff]  ;;  %687 = vmatpush.msra.mxu2 %v494_v60  ;;  %v266_v60 = vperm.slane %v4594_v22, 6 }
  0x82   : > { %707 = vmatpush.msra.mxu3 %v558_v61  ;;  %v366_v0 = vld [vmem:[%s4501_s30] sm:$0xff]  ;;  %v507_v61 = vld [vmem:[%s4501_s30 + $0x468] sm:$0xff] }
  0x83   : > { %752 = vmatpush.msrb.mxu2 %v555_v62  ;;  %v430_v1 = vld [vmem:[%s4501_s30 + $0x200] sm:$0xff]  ;;  %647 = vmatpush.msra.mxu0 %v366_v0  ;;  %v383_v62 = vld [vmem:[%s4501_s30 + $0x88] sm:$0xff] }
  0x84   : > { %772 = vmatpush.msrb.mxu3 %v619_v63  ;;  %667 = vmatpush.msra.mxu1 %v430_v1  ;;  %v248_v54 = vld [vmem:[%s6404_s0] sm:$0xff]  ;;  %v267_v63 = vperm.slane %v4594_v22, 7  ;;  %v447_v0 = vld [vmem:[%s4501_s30 + $0x288] sm:$0xff] }
  0x85   : > { %753 = vmatpush.msrb.mxu2 %v551_v2  ;;  %712 = vmatpush.msrb.mxu0 %v427_v3  ;;  %v571_v1 = vld [vmem:[%s4501_s30 + $0x668] sm:$0xff]  ;;  %v329_v2 = vmul.f32 %v307_v55, %v248_v54  ;;  %v287_v3 = vrot.slane %v265_v56, 6  ;;  %v596_v54 = vld [vmem:[%s4501_s30 + $0x730] sm:$0xff] }
  0x86   : > { %732 = vmatpush.msrb.mxu1 %v491_v4  ;;  %773 = vmatpush.msrb.mxu3 %v615_v5  ;;  %v503_v4 = vld [vmem:[%s4501_s30 + $0x448] sm:$0xff]  ;;  %v528_v55 = vld [vmem:[%s4501_s30 + $0x510] sm:$0xff] }
  0x87   : > { %754 = vmatpush.msrb.mxu2 %v547_v6  ;;  %713 = vmatpush.msrb.mxu0 %v423_v7  ;;  %v379_v5 = vld [vmem:[%s4501_s30 + $0x68] sm:$0xff]  ;;  %v288_v6 = vrot.slane %v266_v60, 4  ;;  %623 = vst [vmem:[#allocation1] ss:$4 sm:$0xff] %v329_v2  ;;  %v404_v56 = vld [vmem:[%s4501_s30 + $0x130] sm:$0xff] }
  0x88   : > { %733 = vmatpush.msrb.mxu1 %v487_v8  ;;  %774 = vmatpush.msrb.mxu3 %v611_v9  ;;  %v443_v7 = vld [vmem:[%s4501_s30 + $0x268] sm:$0xff]  ;;  %v289_v9 = vrot.slane %v267_v63, 2  ;;  %v400_v60 = vld [vmem:[%s4501_s30 + $0x110] sm:$0xff] }
  0x89   : > { %755 = vmatpush.msrb.mxu2 %v543_v10  ;;  %714 = vmatpush.msrb.mxu0 %v419_v11  ;;  %v567_v8 = vld [vmem:[%s4501_s30 + $0x648] sm:$0xff]  ;;  %v308_v10 = vsel %vm302_vm0, %v264_v59, %v287_v3  ;;  %v524_v59 = vld [vmem:[%s4501_s30 + $0x4f0] sm:$0xff] }
  0x8a   : > { %734 = vmatpush.msrb.mxu1 %v483_v12  ;;  %775 = vmatpush.msrb.mxu3 %v607_v13  ;;  %v499_v11 = vld [vmem:[%s4501_s30 + $0x428] sm:$0xff]  ;;  %v520_v63 = vld [vmem:[%s4501_s30 + $0x4d0] sm:$0xff] }
  0x8b   : > { %756 = vmatpush.msrb.mxu2 %v539_v14  ;;  %715 = vmatpush.msrb.mxu0 %v415_v15  ;;  %v375_v12 = vld [vmem:[%s4501_s30 + $0x48] sm:$0xff]  ;;  %v584_v2 = vld [vmem:[%s4501_s30 + $0x6d0] sm:$0xff] }
  0x8c   : > { %735 = vmatpush.msrb.mxu1 %v479_v16  ;;  %776 = vmatpush.msrb.mxu3 %v603_v17  ;;  %v439_v13 = vld [vmem:[%s4501_s30 + $0x248] sm:$0xff]  ;;  %v309_v16 = vsel %vm304_vm1, %v288_v6, %v289_v9  ;;  %v516_v3 = vld [vmem:[%s4501_s30 + $0x4b0] sm:$0xff] }
  0x8d   : > { %757 = vmatpush.msrb.mxu2 %v535_v18  ;;  %716 = vmatpush.msrb.mxu0 %v411_v19  ;;  %v563_v14 = vld [vmem:[%s4501_s30 + $0x628] sm:$0xff]  ;;  %v310_v19 = vsel %vm306_vm2, %v308_v10, %v309_v16  ;;  %v580_v6 = vld [vmem:[%s4501_s30 + $0x6b0] sm:$0xff] }
  0x8e   : > { %736 = vmatpush.msrb.mxu1 %v475_v20  ;;  %777 = vmatpush.msrb.mxu3 %v599_v21  ;;  %v249_v15 = vld [vmem:[%s6404_s0 + $0x8] sm:$0xff]  ;;  %v4660_v27 = vld.sshfl [vmem:[#allocation1 + $0x10] sm:$0xff pattern:$0x73625140] }
  0x8f   : > { %758 = vmatpush.msrb.mxu2 %v531_v23  ;;  %717 = vmatpush.msrb.mxu0 %v407_v24  ;;  %v495_v17 = vld [vmem:[%s4501_s30 + $0x408] sm:$0xff]  ;;  %v330_v23 = vmul.f32 %v310_v19, %v249_v15  ;;  %v556_v24 = vld [vmem:[%s4501_s30 + $0x5f0] sm:$0xff]  ;;  %v4662_v28 = vld.sshfl [vmem:[#allocation1 + $0x18] sm:$0xff pattern:$0x73625140] }
  0x90   : > { %737 = vmatpush.msrb.mxu1 %v471_v25  ;;  %778 = vmatpush.msrb.mxu3 %v595_v26  ;;  %v371_v18 = vld [vmem:[%s4501_s30 + $0x28] sm:$0xff]  ;;  %v620_v25 = vld [vmem:[%s4501_s30 + $0x7f0] sm:$0xff]  ;;  %v4666_v29 = vld.sshfl [vmem:[#allocation1] sm:$0xff pattern:$0x73625140] }
  0x91   : > { %759 = vmatpush.msrb.mxu2 %v527_v30  ;;  %718 = vmatpush.msrb.mxu0 %v403_v31  ;;  %v435_v20 = vld [vmem:[%s4501_s30 + $0x228] sm:$0xff]  ;;  %v552_v31 = vld [vmem:[%s4501_s30 + $0x5d0] sm:$0xff] }
  0x92   : > { %738 = vmatpush.msrb.mxu1 %v467_v32  ;;  %779 = vmatpush.msrb.mxu3 %v591_v33  ;;  %v559_v21 = vld [vmem:[%s4501_s30 + $0x608] sm:$0xff]  ;;  %v428_v32 = vld [vmem:[%s4501_s30 + $0x1f0] sm:$0xff] }
  0x93   : > { %760 = vmatpush.msrb.mxu2 %v523_v34  ;;  %719 = vmatpush.msrb.mxu0 %v399_v35  ;;  %v367_v22 = vld [vmem:[%s4501_s30 + $0x8] sm:$0xff]  ;;  %v492_v33 = vld [vmem:[%s4501_s30 + $0x3f0] sm:$0xff] }
  0x94   : > { %739 = vmatpush.msrb.mxu1 %v463_v37  ;;  %780 = vmatpush.msrb.mxu3 %v587_v38  ;;  %v431_v26 = vld [vmem:[%s4501_s30 + $0x208] sm:$0xff]  ;;  %v616_v34 = vld [vmem:[%s4501_s30 + $0x7d0] sm:$0xff] }
  0x95   : > { %761 = vmatpush.msrb.mxu2 %v519_v42  ;;  %720 = vmatpush.msrb.mxu0 %v395_v43  ;;  %v4668_v30 = vld.sshfl [vmem:[#allocation1 + $0x8] sm:$0xff pattern:$0x73625140]  ;;  %v548_v35 = vld [vmem:[%s4501_s30 + $0x5b0] sm:$0xff] }
  0x96   : > { %740 = vmatpush.msrb.mxu1 %v459_v44  ;;  %781 = vmatpush.msrb.mxu3 %v583_v45  ;;  %1230 = vst [vmem:[#allocation1] ss:$4 sm:$0xff] %v330_v23  ;;  %v488_v37 = vld [vmem:[%s4501_s30 + $0x3d0] sm:$0xff] }
  0x97   : > { %762 = vmatpush.msrb.mxu2 %v515_v46  ;;  %721 = vmatpush.msrb.mxu0 %v391_v47  ;;  %v612_v38 = vld [vmem:[%s4501_s30 + $0x7b0] sm:$0xff] }
  0x98   : > { %741 = vmatpush.msrb.mxu1 %v455_v49  ;;  %782 = vmatpush.msrb.mxu3 %v579_v50  ;;  %v608_v42 = vld [vmem:[%s4501_s30 + $0x790] sm:$0xff] }
  0x99   : > { %763 = vmatpush.msrb.mxu2 %v511_v52  ;;  %722 = vmatpush.msrb.mxu0 %v387_v53  ;;  %v540_v43 = vld [vmem:[%s4501_s30 + $0x570] sm:$0xff] }
  0x9a   : > { %742 = vmatpush.msrb.mxu1 %v451_v57  ;;  %783 = vmatpush.msrb.mxu3 %v575_v58  ;;  %v416_v44 = vld [vmem:[%s4501_s30 + $0x190] sm:$0xff] }
  0x9b   : > { %764 = vmatpush.msrb.mxu2 %v507_v61  ;;  %723 = vmatpush.msrb.mxu0 %v383_v62  ;;  %v480_v45 = vld [vmem:[%s4501_s30 + $0x390] sm:$0xff] }
  0x9c   : > { %743 = vmatpush.msrb.mxu1 %v447_v0  ;;  %784 = vmatpush.msrb.mxu3 %v571_v1  ;;  %v604_v46 = vld [vmem:[%s4501_s30 + $0x770] sm:$0xff] }
  0x9d   : > { %765 = vmatpush.msrb.mxu2 %v503_v4  ;;  %724 = vmatpush.msrb.mxu0 %v379_v5  ;;  %v536_v47 = vld [vmem:[%s4501_s30 + $0x550] sm:$0xff] }
  0x9e   : > { %744 = vmatpush.msrb.mxu1 %v443_v7  ;;  %785 = vmatpush.msrb.mxu3 %v567_v8  ;;  %v476_v49 = vld [vmem:[%s4501_s30 + $0x370] sm:$0xff] }
  0x9f   : > { %766 = vmatpush.msrb.mxu2 %v499_v11  ;;  %725 = vmatpush.msrb.mxu0 %v375_v12  ;;  %v600_v50 = vld [vmem:[%s4501_s30 + $0x750] sm:$0xff] }
  0xa0   : > { %745 = vmatpush.msrb.mxu1 %v439_v13  ;;  %786 = vmatpush.msrb.mxu3 %v563_v14  ;;  %v408_v52 = vld [vmem:[%s4501_s30 + $0x150] sm:$0xff] }
  0xa1   : > { %767 = vmatpush.msrb.mxu2 %v495_v17  ;;  %726 = vmatpush.msrb.mxu0 %v371_v18  ;;  %v472_v53 = vld [vmem:[%s4501_s30 + $0x350] sm:$0xff] }
  0xa2   : > { %746 = vmatpush.msrb.mxu1 %v435_v20  ;;  %787 = vmatpush.msrb.mxu3 %v559_v21  ;;  %v468_v57 = vld [vmem:[%s4501_s30 + $0x330] sm:$0xff] }
  0xa3   : > { %727 = vmatpush.msrb.mxu0 %v367_v22  ;;  %688 = vmatmul.f32.vlgmr.msra.gmra.mxu2 %v4660_v27  ;;  %v592_v58 = vld [vmem:[%s4501_s30 + $0x710] sm:$0xff] }
  0xa4   : > { %747 = vmatpush.msrb.mxu1 %v431_v26  ;;  %708 = vmatmul.f32.vlgmr.msra.gmra.mxu3 %v4662_v28  ;;  %v464_v61 = vld [vmem:[%s4501_s30 + $0x310] sm:$0xff]  ;;  %v557_v26 = vld [vmem:[%s4501_s30 + $0x5f8] sm:$0xff] }
  0xa5   : > { %832 = vmatpush.msra.mxu2 %v556_v24  ;;  %852 = vmatpush.msra.mxu3 %v620_v25  ;;  %v588_v62 = vld [vmem:[%s4501_s30 + $0x6f0] sm:$0xff] }
  0xa6   : > { %648 = vmatmul.f32.vlgmr.msra.gmra.mxu0 %v4666_v29  ;;  %668 = vmatmul.f32.vlgmr.msra.gmra.mxu1 %v4668_v30  ;;  %v396_v0 = vld [vmem:[%s4501_s30 + $0xf0] sm:$0xff] }
  0xa7   : > { %833 = vmatpush.msra.mxu2 %v552_v31  ;;  %792 = vmatpush.msra.mxu0 %v428_v32  ;;  %v460_v1 = vld [vmem:[%s4501_s30 + $0x2f0] sm:$0xff] }
  0xa8   : > { %812 = vmatpush.msra.mxu1 %v492_v33  ;;  %853 = vmatpush.msra.mxu3 %v616_v34  ;;  %v392_v4 = vld [vmem:[%s4501_s30 + $0xd0] sm:$0xff]  ;;  %v553_v33 = vld [vmem:[%s4501_s30 + $0x5d8] sm:$0xff] }
  0xa9   : > { %834 = vmatpush.msra.mxu2 %v548_v35  ;;  %793 = vmatpush.msra.mxu0 %v424_v36  ;;  %v456_v5 = vld [vmem:[%s4501_s30 + $0x2d0] sm:$0xff]  ;;  %v621_v34 = vld [vmem:[%s4501_s30 + $0x7f8] sm:$0xff] }
  0xaa   : > { %813 = vmatpush.msra.mxu1 %v488_v37  ;;  %854 = vmatpush.msra.mxu3 %v612_v38  ;;  %v512_v7 = vld [vmem:[%s4501_s30 + $0x490] sm:$0xff]  ;;  %v429_v36 = vld [vmem:[%s4501_s30 + $0x1f8] sm:$0xff] }
  0xab   : > { %835 = vmatpush.msra.mxu2 %v544_v39  ;;  %794 = vmatpush.msra.mxu0 %v420_v40  ;;  %v388_v8 = vld [vmem:[%s4501_s30 + $0xb0] sm:$0xff]  ;;  %v493_v37 = vld [vmem:[%s4501_s30 + $0x3f8] sm:$0xff] }
  0xac   : > { %814 = vmatpush.msra.mxu1 %v484_v41  ;;  %855 = vmatpush.msra.mxu3 %v608_v42  ;;  %v452_v9 = vld [vmem:[%s4501_s30 + $0x2b0] sm:$0xff]  ;;  %v549_v38 = vld [vmem:[%s4501_s30 + $0x5b8] sm:$0xff] }
  0xad   : > { %836 = vmatpush.msra.mxu2 %v540_v43  ;;  %795 = vmatpush.msra.mxu0 %v416_v44  ;;  %v576_v10 = vld [vmem:[%s4501_s30 + $0x690] sm:$0xff]  ;;  %v617_v39 = vld [vmem:[%s4501_s30 + $0x7d8] sm:$0xff] }
  0xae   : > { %815 = vmatpush.msra.mxu1 %v480_v45  ;;  %856 = vmatpush.msra.mxu3 %v604_v46  ;;  %v508_v11 = vld [vmem:[%s4501_s30 + $0x470] sm:$0xff]  ;;  %v425_v40 = vld [vmem:[%s4501_s30 + $0x1d8] sm:$0xff] }
  0xaf   : > { %837 = vmatpush.msra.mxu2 %v536_v47  ;;  %796 = vmatpush.msra.mxu0 %v412_v48  ;;  %v384_v12 = vld [vmem:[%s4501_s30 + $0x90] sm:$0xff]  ;;  %v489_v41 = vld [vmem:[%s4501_s30 + $0x3d8] sm:$0xff] }
  0xb0   : > { %816 = vmatpush.msra.mxu1 %v476_v49  ;;  %857 = vmatpush.msra.mxu3 %v600_v50  ;;  %v448_v13 = vld [vmem:[%s4501_s30 + $0x290] sm:$0xff]  ;;  %v545_v42 = vld [vmem:[%s4501_s30 + $0x598] sm:$0xff] }
  0xb1   : > { %838 = vmatpush.msra.mxu2 %v532_v51  ;;  %797 = vmatpush.msra.mxu0 %v408_v52  ;;  %v572_v14 = vld [vmem:[%s4501_s30 + $0x670] sm:$0xff]  ;;  %v613_v43 = vld [vmem:[%s4501_s30 + $0x7b8] sm:$0xff] }
  0xb2   : > { %817 = vmatpush.msra.mxu1 %v472_v53  ;;  %858 = vmatpush.msra.mxu3 %v596_v54  ;;  %v504_v15 = vld [vmem:[%s4501_s30 + $0x450] sm:$0xff]  ;;  %v421_v44 = vld [vmem:[%s4501_s30 + $0x1b8] sm:$0xff] }
  0xb3   : > { %839 = vmatpush.msra.mxu2 %v528_v55  ;;  %798 = vmatpush.msra.mxu0 %v404_v56  ;;  %v380_v16 = vld [vmem:[%s4501_s30 + $0x70] sm:$0xff]  ;;  %v485_v45 = vld [vmem:[%s4501_s30 + $0x3b8] sm:$0xff] }
  0xb4   : > { %818 = vmatpush.msra.mxu1 %v468_v57  ;;  %859 = vmatpush.msra.mxu3 %v592_v58  ;;  %v444_v17 = vld [vmem:[%s4501_s30 + $0x270] sm:$0xff]  ;;  %v541_v46 = vld [vmem:[%s4501_s30 + $0x578] sm:$0xff] }
  0xb5   : > { %840 = vmatpush.msra.mxu2 %v524_v59  ;;  %799 = vmatpush.msra.mxu0 %v400_v60  ;;  %v568_v18 = vld [vmem:[%s4501_s30 + $0x650] sm:$0xff]  ;;  %v609_v47 = vld [vmem:[%s4501_s30 + $0x798] sm:$0xff] }
  0xb6   : > { %819 = vmatpush.msra.mxu1 %v464_v61  ;;  %860 = vmatpush.msra.mxu3 %v588_v62  ;;  %v500_v19 = vld [vmem:[%s4501_s30 + $0x430] sm:$0xff]  ;;  %v417_v48 = vld [vmem:[%s4501_s30 + $0x198] sm:$0xff] }
  0xb7   : > { %841 = vmatpush.msra.mxu2 %v520_v63  ;;  %800 = vmatpush.msra.mxu0 %v396_v0  ;;  %v376_v20 = vld [vmem:[%s4501_s30 + $0x50] sm:$0xff]  ;;  %v481_v49 = vld [vmem:[%s4501_s30 + $0x398] sm:$0xff] }
  0xb8   : > { %820 = vmatpush.msra.mxu1 %v460_v1  ;;  %861 = vmatpush.msra.mxu3 %v584_v2  ;;  %v440_v21 = vld [vmem:[%s4501_s30 + $0x250] sm:$0xff]  ;;  %v537_v50 = vld [vmem:[%s4501_s30 + $0x558] sm:$0xff] }
  0xb9   : > { %842 = vmatpush.msra.mxu2 %v516_v3  ;;  %801 = vmatpush.msra.mxu0 %v392_v4  ;;  %v564_v22 = vld [vmem:[%s4501_s30 + $0x630] sm:$0xff]  ;;  %v605_v51 = vld [vmem:[%s4501_s30 + $0x778] sm:$0xff] }
  0xba   : > { %821 = vmatpush.msra.mxu1 %v456_v5  ;;  %862 = vmatpush.msra.mxu3 %v580_v6  ;;  %v496_v23 = vld [vmem:[%s4501_s30 + $0x410] sm:$0xff]  ;;  %v413_v52 = vld [vmem:[%s4501_s30 + $0x178] sm:$0xff] }
  0xbb   : > { %843 = vmatpush.msra.mxu2 %v512_v7  ;;  %802 = vmatpush.msra.mxu0 %v388_v8  ;;  %v372_v24 = vld [vmem:[%s4501_s30 + $0x30] sm:$0xff]  ;;  %v477_v53 = vld [vmem:[%s4501_s30 + $0x378] sm:$0xff] }
  0xbc   : > { %822 = vmatpush.msra.mxu1 %v452_v9  ;;  %863 = vmatpush.msra.mxu3 %v576_v10  ;;  %v436_v25 = vld [vmem:[%s4501_s30 + $0x230] sm:$0xff]  ;;  %v533_v54 = vld [vmem:[%s4501_s30 + $0x538] sm:$0xff] }
  0xbd   : > { %844 = vmatpush.msra.mxu2 %v508_v11  ;;  %803 = vmatpush.msra.mxu0 %v384_v12  ;;  %v560_v31 = vld [vmem:[%s4501_s30 + $0x610] sm:$0xff]  ;;  %v601_v55 = vld [vmem:[%s4501_s30 + $0x758] sm:$0xff] }
  0xbe   : > { %823 = vmatpush.msra.mxu1 %v448_v13  ;;  %864 = vmatpush.msra.mxu3 %v572_v14  ;;  %v368_v32 = vld [vmem:[%s4501_s30 + $0x10] sm:$0xff]  ;;  %v409_v56 = vld [vmem:[%s4501_s30 + $0x158] sm:$0xff] }
  0xbf   : > { %845 = vmatpush.msra.mxu2 %v504_v15  ;;  %804 = vmatpush.msra.mxu0 %v380_v16  ;;  %v432_v35 = vld [vmem:[%s4501_s30 + $0x210] sm:$0xff]  ;;  %v473_v57 = vld [vmem:[%s4501_s30 + $0x358] sm:$0xff] }
  0xc0   : > { %824 = vmatpush.msra.mxu1 %v444_v17  ;;  %865 = vmatpush.msra.mxu3 %v568_v18  ;;  %v529_v58 = vld [vmem:[%s4501_s30 + $0x518] sm:$0xff]  ;;  %v255_v7 = vld [vmem:[#allocation2 + $0x8] sm:$0xff] }
  0xc1   : > { %846 = vmatpush.msra.mxu2 %v500_v19  ;;  %805 = vmatpush.msra.mxu0 %v376_v20  ;;  %v597_v59 = vld [vmem:[%s4501_s30 + $0x738] sm:$0xff]  ;;  %v269_v14 = vperm.slane %v255_v7, 1  ;;  %v270_v15 = vperm.slane %v255_v7, 2  ;;  %v271_v16 = vperm.slane %v255_v7, 3 }
  0xc2   : > { %825 = vmatpush.msra.mxu1 %v440_v21  ;;  %866 = vmatpush.msra.mxu3 %v564_v22  ;;  %v405_v60 = vld [vmem:[%s4501_s30 + $0x138] sm:$0xff] }
  0xc3   : > { %847 = vmatpush.msra.mxu2 %v496_v23  ;;  %806 = vmatpush.msra.mxu0 %v372_v24  ;;  %v469_v61 = vld [vmem:[%s4501_s30 + $0x338] sm:$0xff] }
  0xc4   : > { %768 = vmatmul.f32.vlgmr.msrb.gmra.mxu2 %v4660_v27  ;;  %826 = vmatpush.msra.mxu1 %v436_v25  ;;  %v525_v62 = vld [vmem:[%s4501_s30 + $0x4f8] sm:$0xff]  ;;  %v268_v25 = vperm.slane %v255_v7, 0  ;;  %v1141_v7 = vld [vmem:[%s4813_s23 + $0x540] sm:$0xff] }
  0xc5   : > { %912 = vmatpush.msrb.mxu2 %v557_v26  ;;  %867 = vmatpush.msra.mxu3 %v560_v31  ;;  %v593_v63 = vld [vmem:[%s4501_s30 + $0x718] sm:$0xff]  ;;  %v290_v26 = vrot.slane %v269_v14, 6  ;;  %v291_v31 = vrot.slane %v270_v15, 4  ;;  %v1077_v14 = vld [vmem:[%s4813_s23 + $0x340] sm:$0xff] }
  0xc6   : > { %788 = vmatmul.f32.vlgmr.msrb.gmra.mxu3 %v4662_v28  ;;  %807 = vmatpush.msra.mxu0 %v368_v32  ;;  %v401_v0 = vld [vmem:[%s4501_s30 + $0x118] sm:$0xff]  ;;  %v292_v32 = vrot.slane %v271_v16, 2  ;;  %v1133_v15 = vld [vmem:[%s4813_s23 + $0x500] sm:$0xff] }
  0xc7   : > { %913 = vmatpush.msrb.mxu2 %v553_v33  ;;  %932 = vmatpush.msrb.mxu3 %v621_v34  ;;  %v465_v1 = vld [vmem:[%s4501_s30 + $0x318] sm:$0xff]  ;;  %v1201_v16 = vld [vmem:[%s4813_s23 + $0x720] sm:$0xff] }
  0xc8   : > { %827 = vmatpush.msra.mxu1 %v432_v35  ;;  %728 = vmatmul.f32.vlgmr.msrb.gmra.mxu0 %v4666_v29  ;;  %v521_v2 = vld [vmem:[%s4501_s30 + $0x4d8] sm:$0xff] }
  0xc9   : > { %748 = vmatmul.f32.vlgmr.msrb.gmra.mxu1 %v4668_v30  ;;  %872 = vmatpush.msrb.mxu0 %v429_v36  ;;  %v589_v3 = vld [vmem:[%s4501_s30 + $0x6f8] sm:$0xff] }
  0xca   : > { %892 = vmatpush.msrb.mxu1 %v493_v37  ;;  %914 = vmatpush.msrb.mxu2 %v549_v38  ;;  %v397_v4 = vld [vmem:[%s4501_s30 + $0xf8] sm:$0xff] }
  0xcb   : > { %933 = vmatpush.msrb.mxu3 %v617_v39  ;;  %873 = vmatpush.msrb.mxu0 %v425_v40  ;;  %v461_v5 = vld [vmem:[%s4501_s30 + $0x2f8] sm:$0xff]  ;;  %v311_v40 = vsel %vm302_vm0, %v268_v25, %v290_v26  ;;  %v1001_v25 = vld [vmem:[%s4813_s23 + $0xe0] sm:$0xff] }
  0xcc   : > { %893 = vmatpush.msrb.mxu1 %v489_v41  ;;  %915 = vmatpush.msrb.mxu2 %v545_v42  ;;  %v517_v6 = vld [vmem:[%s4501_s30 + $0x4b8] sm:$0xff]  ;;  %v312_v41 = vsel %vm304_vm1, %v291_v31, %v292_v32  ;;  %v1161_v42 = vld [vmem:[%s4813_s23 + $0x5e0] sm:$0xff] }
  0xcd   : > { %934 = vmatpush.msrb.mxu3 %v613_v43  ;;  %874 = vmatpush.msrb.mxu0 %v421_v44  ;;  %v585_v8 = vld [vmem:[%s4501_s30 + $0x6d8] sm:$0xff]  ;;  %v1065_v26 = vld [vmem:[%s4813_s23 + $0x2e0] sm:$0xff] }
  0xce   : > { %894 = vmatpush.msrb.mxu1 %v485_v45  ;;  %916 = vmatpush.msrb.mxu2 %v541_v46  ;;  %v393_v9 = vld [vmem:[%s4501_s30 + $0xd8] sm:$0xff]  ;;  %v1157_v46 = vld [vmem:[%s4813_s23 + $0x5c0] sm:$0xff] }
  0xcf   : > { %935 = vmatpush.msrb.mxu3 %v609_v47  ;;  %875 = vmatpush.msrb.mxu0 %v417_v48  ;;  %v457_v10 = vld [vmem:[%s4501_s30 + $0x2d8] sm:$0xff]  ;;  %v250_v47 = vld [vmem:[%s6404_s0 + $0x10] sm:$0xff]  ;;  %v313_v48 = vsel %vm306_vm2, %v311_v40, %v312_v41  ;;  %v1121_v31 = vld [vmem:[%s4813_s23 + $0x4a0] sm:$0xff] }
  0xd0   : > { %895 = vmatpush.msrb.mxu1 %v481_v49  ;;  %917 = vmatpush.msrb.mxu2 %v537_v50  ;;  %v513_v11 = vld [vmem:[%s4501_s30 + $0x498] sm:$0xff]  ;;  %v1225_v49 = vld [vmem:[%s4813_s23 + $0x7e0] sm:$0xff] }
  0xd1   : > { %936 = vmatpush.msrb.mxu3 %v605_v51  ;;  %876 = vmatpush.msrb.mxu0 %v413_v52  ;;  %v581_v12 = vld [vmem:[%s4501_s30 + $0x6b8] sm:$0xff]  ;;  %v1033_v52 = vld [vmem:[%s4813_s23 + $0x1e0] sm:$0xff] }
  0xd2   : > { %896 = vmatpush.msrb.mxu1 %v477_v53  ;;  %918 = vmatpush.msrb.mxu2 %v533_v54  ;;  %v389_v13 = vld [vmem:[%s4501_s30 + $0xb8] sm:$0xff]  ;;  %v1097_v53 = vld [vmem:[%s4813_s23 + $0x3e0] sm:$0xff] }
  0xd3   : > { %937 = vmatpush.msrb.mxu3 %v601_v55  ;;  %877 = vmatpush.msrb.mxu0 %v409_v56  ;;  %v453_v17 = vld [vmem:[%s4501_s30 + $0x2b8] sm:$0xff]  ;;  %v1153_v54 = vld [vmem:[%s4813_s23 + $0x5a0] sm:$0xff]  ;;  %v331_v55 = vmul.f32 %v313_v48, %v250_v47 }
  0xd4   : > { %897 = vmatpush.msrb.mxu1 %v473_v57  ;;  %919 = vmatpush.msrb.mxu2 %v529_v58  ;;  %v509_v18 = vld [vmem:[%s4501_s30 + $0x478] sm:$0xff]  ;;  %v1221_v56 = vld [vmem:[%s4813_s23 + $0x7c0] sm:$0xff] }
  0xd5   : > { %938 = vmatpush.msrb.mxu3 %v597_v59  ;;  %878 = vmatpush.msrb.mxu0 %v405_v60  ;;  %v577_v19 = vld [vmem:[%s4501_s30 + $0x698] sm:$0xff]  ;;  %v1029_v57 = vld [vmem:[%s4813_s23 + $0x1c0] sm:$0xff] }
  0xd6   : > { %898 = vmatpush.msrb.mxu1 %v469_v61  ;;  %920 = vmatpush.msrb.mxu2 %v525_v62  ;;  %v385_v20 = vld [vmem:[%s4501_s30 + $0x98] sm:$0xff]  ;;  %v1093_v58 = vld [vmem:[%s4813_s23 + $0x3c0] sm:$0xff]  ;;  %v4839_v62 = vld.sshfl [vmem:[#allocation1 + $0x10] sm:$0xff pattern:$0x73625140] }
  0xd7   : > { %939 = vmatpush.msrb.mxu3 %v593_v63  ;;  %879 = vmatpush.msrb.mxu0 %v401_v0  ;;  %v449_v21 = vld [vmem:[%s4501_s30 + $0x298] sm:$0xff]  ;;  %v1149_v59 = vld [vmem:[%s4813_s23 + $0x580] sm:$0xff] }
  0xd8   : > { %899 = vmatpush.msrb.mxu1 %v465_v1  ;;  %921 = vmatpush.msrb.mxu2 %v521_v2  ;;  %v505_v22 = vld [vmem:[%s4501_s30 + $0x458] sm:$0xff]  ;;  %v1217_v60 = vld [vmem:[%s4813_s23 + $0x7a0] sm:$0xff]  ;;  %v4845_v1 = vld.sshfl [vmem:[#allocation1 + $0x8] sm:$0xff pattern:$0x73625140] }
  0xd9   : > { %940 = vmatpush.msrb.mxu3 %v589_v3  ;;  %880 = vmatpush.msrb.mxu0 %v397_v4  ;;  %v573_v23 = vld [vmem:[%s4501_s30 + $0x678] sm:$0xff]  ;;  %v1025_v61 = vld [vmem:[%s4813_s23 + $0x1a0] sm:$0xff] }
  0xda   : > { %900 = vmatpush.msrb.mxu1 %v461_v5  ;;  %922 = vmatpush.msrb.mxu2 %v517_v6  ;;  %v381_v24 = vld [vmem:[%s4501_s30 + $0x78] sm:$0xff]  ;;  %v4843_v0 = vld.sshfl [vmem:[#allocation1] sm:$0xff pattern:$0x73625140] }
  0xdb   : > { %941 = vmatpush.msrb.mxu3 %v585_v8  ;;  %881 = vmatpush.msrb.mxu0 %v393_v9  ;;  %v445_v33 = vld [vmem:[%s4501_s30 + $0x278] sm:$0xff]  ;;  %v1089_v2 = vld [vmem:[%s4813_s23 + $0x3a0] sm:$0xff] }
  0xdc   : > { %901 = vmatpush.msrb.mxu1 %v457_v10  ;;  %923 = vmatpush.msrb.mxu2 %v513_v11  ;;  %v501_v34 = vld [vmem:[%s4501_s30 + $0x438] sm:$0xff]  ;;  %v1145_v3 = vld [vmem:[%s4813_s23 + $0x560] sm:$0xff] }
  0xdd   : > { %942 = vmatpush.msrb.mxu3 %v581_v12  ;;  %882 = vmatpush.msrb.mxu0 %v389_v13  ;;  %v569_v35 = vld [vmem:[%s4501_s30 + $0x658] sm:$0xff]  ;;  %v1213_v4 = vld [vmem:[%s4813_s23 + $0x780] sm:$0xff] }
  0xde   : > { %902 = vmatpush.msrb.mxu1 %v453_v17  ;;  %924 = vmatpush.msrb.mxu2 %v509_v18  ;;  %v377_v36 = vld [vmem:[%s4501_s30 + $0x58] sm:$0xff]  ;;  %v1021_v5 = vld [vmem:[%s4813_s23 + $0x180] sm:$0xff] }
  0xdf   : > { %943 = vmatpush.msrb.mxu3 %v577_v19  ;;  %883 = vmatpush.msrb.mxu0 %v385_v20  ;;  %v441_v37 = vld [vmem:[%s4501_s30 + $0x258] sm:$0xff]  ;;  %v1085_v6 = vld [vmem:[%s4813_s23 + $0x380] sm:$0xff] }
  0xe0   : > { %903 = vmatpush.msrb.mxu1 %v449_v21  ;;  %925 = vmatpush.msrb.mxu2 %v505_v22  ;;  %v497_v38 = vld [vmem:[%s4501_s30 + $0x418] sm:$0xff]  ;;  %v1209_v8 = vld [vmem:[%s4813_s23 + $0x760] sm:$0xff] }
  0xe1   : > { %944 = vmatpush.msrb.mxu3 %v573_v23  ;;  %884 = vmatpush.msrb.mxu0 %v381_v24  ;;  %v565_v39 = vld [vmem:[%s4501_s30 + $0x638] sm:$0xff]  ;;  %v1017_v9 = vld [vmem:[%s4813_s23 + $0x160] sm:$0xff] }
  0xe2   : > { %904 = vmatpush.msrb.mxu1 %v445_v33  ;;  %926 = vmatpush.msrb.mxu2 %v501_v34  ;;  %v373_v43 = vld [vmem:[%s4501_s30 + $0x38] sm:$0xff]  ;;  %v1081_v10 = vld [vmem:[%s4813_s23 + $0x360] sm:$0xff] }
  0xe3   : > { %945 = vmatpush.msrb.mxu3 %v569_v35  ;;  %885 = vmatpush.msrb.mxu0 %v377_v36  ;;  %v437_v44 = vld [vmem:[%s4501_s30 + $0x238] sm:$0xff]  ;;  %v1137_v11 = vld [vmem:[%s4813_s23 + $0x520] sm:$0xff] }
  0xe4   : > { %905 = vmatpush.msrb.mxu1 %v441_v37  ;;  %927 = vmatpush.msrb.mxu2 %v497_v38  ;;  %v561_v45 = vld [vmem:[%s4501_s30 + $0x618] sm:$0xff]  ;;  %v1205_v12 = vld [vmem:[%s4813_s23 + $0x740] sm:$0xff] }
  0xe5   : > { %946 = vmatpush.msrb.mxu3 %v565_v39  ;;  %848 = vmatmul.f32.vlgmr.msra.gmra.mxu2 %v4660_v27  ;;  %v369_v50 = vld [vmem:[%s4501_s30 + $0x18] sm:$0xff]  ;;  %v1013_v13 = vld [vmem:[%s4813_s23 + $0x140] sm:$0xff] }
  0xe6   : > { %1279 = vmatpush.msra.mxu2 %v1161_v42  ;;  %886 = vmatpush.msrb.mxu0 %v373_v43  ;;  %v433_v51 = vld [vmem:[%s4501_s30 + $0x218] sm:$0xff]  ;;  %v1009_v17 = vld [vmem:[%s4813_s23 + $0x120] sm:$0xff]  ;;  %s4227_s30 = spop.drf %4226 }
  0xe7   : > { %906 = vmatpush.msrb.mxu1 %v437_v44  ;;  %947 = vmatpush.msrb.mxu3 %v561_v45  ;;  %v4841_v63 = vld.sshfl [vmem:[#allocation1 + $0x18] sm:$0xff pattern:$0x73625140]  ;;  %v1073_v18 = vld [vmem:[%s4813_s23 + $0x320] sm:$0xff]  ;;  %s4228_s20 = spop.drf %4226  ;;  %s4139_s30 = smin.u32 %s2779_s29, %s5492_s28 }
  0xe8   : > { %868 = vmatmul.f32.vlgmr.msra.gmra.mxu3 %v4662_v28  ;;  %1280 = vmatpush.msra.mxu2 %v1157_v46  ;;  %1837 = vst [vmem:[#allocation1] ss:$4 sm:$0xff] %v331_v55  ;;  %v1129_v19 = vld [vmem:[%s4813_s23 + $0x4e0] sm:$0xff]  ;;  %s1569_s5 = ssub.s32 0, %s4228_s20  ;;  %s4230_s21 = spop.drf %4229 }
  0xe9   : > { %1299 = vmatpush.msra.mxu3 %v1225_v49  ;;  %887 = vmatpush.msrb.mxu0 %v369_v50  ;;  %v1197_v20 = vld [vmem:[%s4813_s23 + $0x700] sm:$0xff]  ;;  %v1162_v49 = vld [vmem:[%s4813_s23 + $0x5e8] sm:$0xff]  ;;  %s6425_s5 = smov (!%p1564_p12, %s1569_s5), %s4228_s20  ;;  %s4231_s14 = spop.drf %4229 }
  0xea   : > { %907 = vmatpush.msrb.mxu1 %v433_v51  ;;  %808 = vmatmul.f32.vlgmr.msra.gmra.mxu0 %v4666_v29  ;;  %v1005_v21 = vld [vmem:[%s4813_s23 + $0x100] sm:$0xff]  ;;  %p4131_p13 = scmp.lt.s32.totalorder %s6425_s5, 0  ;;  %s1575_s18 = sadd.s32 6, %s6425_s5 }
  0xeb   : > { %828 = vmatmul.f32.vlgmr.msra.gmra.mxu1 %v4668_v30  ;;  %1239 = vmatpush.msra.mxu0 %v1033_v52  ;;  %v1069_v22 = vld [vmem:[%s4813_s23 + $0x300] sm:$0xff]  ;;  %4232 = sdivrem.u32 %s4139_s30, 6  ;;  %s4144_s21 = smin.u32 %s3386_s24, %s5810_s13 }
  0xec   : > { %1259 = vmatpush.msra.mxu1 %v1097_v53  ;;  %1281 = vmatpush.msra.mxu2 %v1153_v54  ;;  %v1125_v23 = vld [vmem:[%s4813_s23 + $0x4c0] sm:$0xff]  ;;  %v1158_v53 = vld [vmem:[%s4813_s23 + $0x5c8] sm:$0xff]  ;;  %s6427_s18 = smov (!%p4131_p13, %s1575_s18), %s6425_s5  ;;  %4235 = sdivrem.u32 %s4144_s21, 6 }
  0xed   : > { %1300 = vmatpush.msra.mxu3 %v1221_v56  ;;  %1240 = vmatpush.msra.mxu0 %v1029_v57  ;;  %v1193_v24 = vld [vmem:[%s4813_s23 + $0x6e0] sm:$0xff]  ;;  %v1226_v54 = vld [vmem:[%s4813_s23 + $0x7e8] sm:$0xff]  ;;  %s4153_s6 = sshll.u32 %s6427_s18, 11  ;;  %s246_s30 = scalar_lea.vmem %s6408_s4, %s4118_s19 }
  0xee   : > { %1260 = vmatpush.msra.mxu1 %v1093_v58  ;;  %1282 = vmatpush.msra.mxu2 %v1149_v59  ;;  %v1189_v32 = vld [vmem:[%s4813_s23 + $0x6c0] sm:$0xff]  ;;  %v1034_v57 = vld [vmem:[%s4813_s23 + $0x1e8] sm:$0xff]  ;;  %s5129_s7 = scalar_lea.vmem [#allocation4], %s4153_s6 }
  0xef   : > { %1301 = vmatpush.msra.mxu3 %v1217_v60  ;;  %1241 = vmatpush.msra.mxu0 %v1025_v61  ;;  %v997_v33 = vld [vmem:[%s4813_s23 + $0xc0] sm:$0xff]  ;;  %v1098_v58 = vld [vmem:[%s4813_s23 + $0x3e8] sm:$0xff] }
  0xf0   : > { %1261 = vmatpush.msra.mxu1 %v1089_v2  ;;  %1283 = vmatpush.msra.mxu2 %v1145_v3  ;;  %v1061_v34 = vld [vmem:[%s4813_s23 + $0x2c0] sm:$0xff]  ;;  %v1154_v59 = vld [vmem:[%s4813_s23 + $0x5a8] sm:$0xff] }
  0xf1   : > { %1302 = vmatpush.msra.mxu3 %v1213_v4  ;;  %1242 = vmatpush.msra.mxu0 %v1021_v5  ;;  %v1117_v35 = vld [vmem:[%s4813_s23 + $0x480] sm:$0xff]  ;;  %v1222_v60 = vld [vmem:[%s4813_s23 + $0x7c8] sm:$0xff] }
  0xf2   : > { %1262 = vmatpush.msra.mxu1 %v1085_v6  ;;  %1284 = vmatpush.msra.mxu2 %v1141_v7  ;;  %v1185_v36 = vld [vmem:[%s4813_s23 + $0x6a0] sm:$0xff]  ;;  %v1030_v61 = vld [vmem:[%s4813_s23 + $0x1c8] sm:$0xff] }
  0xf3   : > { %1303 = vmatpush.msra.mxu3 %v1209_v8  ;;  %1243 = vmatpush.msra.mxu0 %v1017_v9  ;;  %v993_v37 = vld [vmem:[%s4813_s23 + $0xa0] sm:$0xff]  ;;  %v1094_v2 = vld [vmem:[%s4813_s23 + $0x3c8] sm:$0xff] }
  0xf4   : > { %1263 = vmatpush.msra.mxu1 %v1081_v10  ;;  %1285 = vmatpush.msra.mxu2 %v1137_v11  ;;  %v1057_v38 = vld [vmem:[%s4813_s23 + $0x2a0] sm:$0xff]  ;;  %v1150_v3 = vld [vmem:[%s4813_s23 + $0x588] sm:$0xff]  ;;  %s4233_s20 = spop.drf %4232 }
  0xf5   : > { %1304 = vmatpush.msra.mxu3 %v1205_v12  ;;  %1244 = vmatpush.msra.mxu0 %v1013_v13  ;;  %v1113_v39 = vld [vmem:[%s4813_s23 + $0x460] sm:$0xff]  ;;  %v1218_v4 = vld [vmem:[%s4813_s23 + $0x7a8] sm:$0xff]  ;;  %s4234_s5 = spop.drf %4232 }
  0xf6   : > { %1264 = vmatpush.msra.mxu1 %v1077_v14  ;;  %1286 = vmatpush.msra.mxu2 %v1133_v15  ;;  %v1181_v40 = vld [vmem:[%s4813_s23 + $0x680] sm:$0xff]  ;;  %v1026_v5 = vld [vmem:[%s4813_s23 + $0x1a8] sm:$0xff]  ;;  %s2783_s18 = ssub.s32 0, %s4234_s5 }
  0xf7   : > { %1305 = vmatpush.msra.mxu3 %v1201_v16  ;;  %1245 = vmatpush.msra.mxu0 %v1009_v17  ;;  %v989_v41 = vld [vmem:[%s4813_s23 + $0x80] sm:$0xff]  ;;  %v1090_v6 = vld [vmem:[%s4813_s23 + $0x3a8] sm:$0xff]  ;;  %s6433_s18 = smov (!%p2778_p3, %s2783_s18), %s4234_s5 }
  0xf8   : > { %1265 = vmatpush.msra.mxu1 %v1073_v18  ;;  %1287 = vmatpush.msra.mxu2 %v1129_v19  ;;  %v1053_v42 = vld [vmem:[%s4813_s23 + $0x280] sm:$0xff]  ;;  %v1146_v7 = vld [vmem:[%s4813_s23 + $0x568] sm:$0xff]  ;;  %p4141_p6 = scmp.lt.s32.totalorder %s6433_s18, 0  ;;  %s2789_s6 = sadd.s32 6, %s6433_s18 }
  0xf9   : > { %1306 = vmatpush.msra.mxu3 %v1197_v20  ;;  %1246 = vmatpush.msra.mxu0 %v1005_v21  ;;  %v1177_v43 = vld [vmem:[%s4813_s23 + $0x660] sm:$0xff]  ;;  %v1214_v8 = vld [vmem:[%s4813_s23 + $0x788] sm:$0xff] }
  0xfa   : > { %1266 = vmatpush.msra.mxu1 %v1069_v22  ;;  %1288 = vmatpush.msra.mxu2 %v1125_v23  ;;  %v985_v44 = vld [vmem:[%s4813_s23 + $0x60] sm:$0xff]  ;;  %v1022_v9 = vld [vmem:[%s4813_s23 + $0x188] sm:$0xff]  ;;  %s6435_s6 = smov (!%p4141_p6, %s2789_s6), %s6433_s18 }
  0xfb   : > { %1307 = vmatpush.msra.mxu3 %v1193_v24  ;;  %1247 = vmatpush.msra.mxu0 %v1001_v25  ;;  %v1105_v45 = vld [vmem:[%s4813_s23 + $0x420] sm:$0xff]  ;;  %v1086_v10 = vld [vmem:[%s4813_s23 + $0x388] sm:$0xff] }
  0xfc   : > { %1267 = vmatpush.msra.mxu1 %v1065_v26  ;;  %1289 = vmatpush.msra.mxu2 %v1121_v31  ;;  %v1173_v46 = vld [vmem:[%s4813_s23 + $0x640] sm:$0xff]  ;;  %v1142_v11 = vld [vmem:[%s4813_s23 + $0x548] sm:$0xff] }
  0xfd   : > { %1308 = vmatpush.msra.mxu3 %v1189_v32  ;;  %1248 = vmatpush.msra.mxu0 %v997_v33  ;;  %v981_v47 = vld [vmem:[%s4813_s23 + $0x40] sm:$0xff]  ;;  %v1210_v12 = vld [vmem:[%s4813_s23 + $0x768] sm:$0xff] }
  0xfe   : > { %1268 = vmatpush.msra.mxu1 %v1061_v34  ;;  %1290 = vmatpush.msra.mxu2 %v1117_v35  ;;  %v1045_v48 = vld [vmem:[%s4813_s23 + $0x240] sm:$0xff]  ;;  %v1018_v13 = vld [vmem:[%s4813_s23 + $0x168] sm:$0xff] }
  0xff   : > { %1309 = vmatpush.msra.mxu3 %v1185_v36  ;;  %928 = vmatmul.f32.vlgmr.msrb.gmra.mxu2 %v4660_v27  ;;  %v1109_v27 = vld [vmem:[%s4813_s23 + $0x440] sm:$0xff]  ;;  %v1082_v14 = vld [vmem:[%s4813_s23 + $0x368] sm:$0xff] }
 0x100   : > { %1249 = vmatpush.msra.mxu0 %v993_v37  ;;  %1269 = vmatpush.msra.mxu1 %v1057_v38  ;;  %v977_v50 = vld [vmem:[%s4813_s23 + $0x20] sm:$0xff]  ;;  %v1138_v15 = vld [vmem:[%s4813_s23 + $0x528] sm:$0xff] }
 0x101   : > { %1291 = vmatpush.msra.mxu2 %v1113_v39  ;;  %1310 = vmatpush.msra.mxu3 %v1181_v40  ;;  %v1041_v51 = vld [vmem:[%s4813_s23 + $0x220] sm:$0xff]  ;;  %v1206_v16 = vld [vmem:[%s4813_s23 + $0x748] sm:$0xff] }
 0x102   : > { %948 = vmatmul.f32.vlgmr.msrb.gmra.mxu3 %v4662_v28  ;;  %1250 = vmatpush.msra.mxu0 %v989_v41  ;;  %v1049_v28 = vld [vmem:[%s4813_s23 + $0x260] sm:$0xff]  ;;  %v1014_v17 = vld [vmem:[%s4813_s23 + $0x148] sm:$0xff] }
 0x103   : > { %1270 = vmatpush.msra.mxu1 %v1053_v42  ;;  %1292 = vmatpush.msra.mxu2 %v1109_v27  ;;  %v1165_v52 = vld [vmem:[%s4813_s23 + $0x600] sm:$0xff]  ;;  %v1078_v18 = vld [vmem:[%s4813_s23 + $0x348] sm:$0xff] }
 0x104   : > { %1311 = vmatpush.msra.mxu3 %v1177_v43  ;;  %888 = vmatmul.f32.vlgmr.msrb.gmra.mxu0 %v4666_v29  ;;  %v1101_v29 = vld [vmem:[%s4813_s23 + $0x400] sm:$0xff]  ;;  %v1134_v19 = vld [vmem:[%s4813_s23 + $0x508] sm:$0xff] }
 0x105   : > { %908 = vmatmul.f32.vlgmr.msrb.gmra.mxu1 %v4668_v30  ;;  %1251 = vmatpush.msra.mxu0 %v985_v44  ;;  %v1169_v30 = vld [vmem:[%s4813_s23 + $0x620] sm:$0xff]  ;;  %v1202_v20 = vld [vmem:[%s4813_s23 + $0x728] sm:$0xff] }
 0x106   : > { %1271 = vmatpush.msra.mxu1 %v1049_v28  ;;  %1293 = vmatpush.msra.mxu2 %v1105_v45  ;;  %v973_v55 = vld [vmem:[%s4813_s23] sm:$0xff]  ;;  %v1010_v21 = vld [vmem:[%s4813_s23 + $0x128] sm:$0xff] }
 0x107   : > { %1312 = vmatpush.msra.mxu3 %v1173_v46  ;;  %1252 = vmatpush.msra.mxu0 %v981_v47  ;;  %v1037_v56 = vld [vmem:[%s4813_s23 + $0x200] sm:$0xff]  ;;  %v1074_v22 = vld [vmem:[%s4813_s23 + $0x328] sm:$0xff] }
 0x108   : > { %1272 = vmatpush.msra.mxu1 %v1045_v48  ;;  %1294 = vmatpush.msra.mxu2 %v1101_v29  ;;  %v1130_v23 = vld [vmem:[%s4813_s23 + $0x4e8] sm:$0xff] }
 0x109   : > { %1313 = vmatpush.msra.mxu3 %v1169_v30  ;;  %1295 = vmatmul.f32.vlgmr.msra.gmra.mxu2 %v4839_v62  ;;  %v1198_v24 = vld [vmem:[%s4813_s23 + $0x708] sm:$0xff] }
 0x10a   : > { %1359 = vmatpush.msrb.mxu2 %v1162_v49  ;;  %1253 = vmatpush.msra.mxu0 %v977_v50  ;;  %v1006_v25 = vld [vmem:[%s4813_s23 + $0x108] sm:$0xff] }
 0x10b   : > { %1273 = vmatpush.msra.mxu1 %v1041_v51  ;;  %1314 = vmatpush.msra.mxu3 %v1165_v52  ;;  %v1070_v26 = vld [vmem:[%s4813_s23 + $0x308] sm:$0xff] }
 0x10c   : > { %1315 = vmatmul.f32.vlgmr.msra.gmra.mxu3 %v4841_v63  ;;  %1360 = vmatpush.msrb.mxu2 %v1158_v53  ;;  %v1126_v31 = vld [vmem:[%s4813_s23 + $0x4c8] sm:$0xff] }
 0x10d   : > { %1379 = vmatpush.msrb.mxu3 %v1226_v54  ;;  %1254 = vmatpush.msra.mxu0 %v973_v55  ;;  %v1194_v32 = vld [vmem:[%s4813_s23 + $0x6e8] sm:$0xff] }
 0x10e   : > { %1274 = vmatpush.msra.mxu1 %v1037_v56  ;;  %1255 = vmatmul.f32.vlgmr.msra.gmra.mxu0 %v4843_v0  ;;  %v1002_v33 = vld [vmem:[%s4813_s23 + $0xe8] sm:$0xff] }
 0x10f   : > { %1275 = vmatmul.f32.vlgmr.msra.gmra.mxu1 %v4845_v1  ;;  %1319 = vmatpush.msrb.mxu0 %v1034_v57  ;;  %v1066_v34 = vld [vmem:[%s4813_s23 + $0x2e8] sm:$0xff] }
 0x110   : > { %1339 = vmatpush.msrb.mxu1 %v1098_v58  ;;  %1361 = vmatpush.msrb.mxu2 %v1154_v59  ;;  %v1122_v35 = vld [vmem:[%s4813_s23 + $0x4a8] sm:$0xff] }
 0x111   : > { %1380 = vmatpush.msrb.mxu3 %v1222_v60  ;;  %1320 = vmatpush.msrb.mxu0 %v1030_v61  ;;  %v1190_v36 = vld [vmem:[%s4813_s23 + $0x6c8] sm:$0xff]  ;;  %v1163_v60 = vld [vmem:[%s4813_s23 + $0x5f0] sm:$0xff] }
 0x112   : > { %1340 = vmatpush.msrb.mxu1 %v1094_v2  ;;  %1362 = vmatpush.msrb.mxu2 %v1150_v3  ;;  %v998_v37 = vld [vmem:[%s4813_s23 + $0xc8] sm:$0xff] }
 0x113   : > { %1381 = vmatpush.msrb.mxu3 %v1218_v4  ;;  %1321 = vmatpush.msrb.mxu0 %v1026_v5  ;;  %v1062_v38 = vld [vmem:[%s4813_s23 + $0x2c8] sm:$0xff]  ;;  %v1159_v4 = vld [vmem:[%s4813_s23 + $0x5d0] sm:$0xff] }
 0x114   : > { %1341 = vmatpush.msrb.mxu1 %v1090_v6  ;;  %1363 = vmatpush.msrb.mxu2 %v1146_v7  ;;  %v1118_v39 = vld [vmem:[%s4813_s23 + $0x488] sm:$0xff]  ;;  %v1227_v5 = vld [vmem:[%s4813_s23 + $0x7f0] sm:$0xff] }
 0x115   : > { %1382 = vmatpush.msrb.mxu3 %v1214_v8  ;;  %1322 = vmatpush.msrb.mxu0 %v1022_v9  ;;  %v1186_v40 = vld [vmem:[%s4813_s23 + $0x6a8] sm:$0xff]  ;;  %v1035_v8 = vld [vmem:[%s4813_s23 + $0x1f0] sm:$0xff] }
 0x116   : > { %1342 = vmatpush.msrb.mxu1 %v1086_v10  ;;  %1364 = vmatpush.msrb.mxu2 %v1142_v11  ;;  %v994_v41 = vld [vmem:[%s4813_s23 + $0xa8] sm:$0xff]  ;;  %v1099_v9 = vld [vmem:[%s4813_s23 + $0x3f0] sm:$0xff] }
 0x117   : > { %1383 = vmatpush.msrb.mxu3 %v1210_v12  ;;  %1323 = vmatpush.msrb.mxu0 %v1018_v13  ;;  %v1058_v42 = vld [vmem:[%s4813_s23 + $0x2a8] sm:$0xff]  ;;  %v1155_v10 = vld [vmem:[%s4813_s23 + $0x5b0] sm:$0xff] }
 0x118   : > { %1343 = vmatpush.msrb.mxu1 %v1082_v14  ;;  %1365 = vmatpush.msrb.mxu2 %v1138_v15  ;;  %v1114_v27 = vld [vmem:[%s4813_s23 + $0x468] sm:$0xff]  ;;  %v1223_v11 = vld [vmem:[%s4813_s23 + $0x7d0] sm:$0xff] }
 0x119   : > { %1384 = vmatpush.msrb.mxu3 %v1206_v16  ;;  %1324 = vmatpush.msrb.mxu0 %v1014_v17  ;;  %v1182_v28 = vld [vmem:[%s4813_s23 + $0x688] sm:$0xff]  ;;  %v1031_v12 = vld [vmem:[%s4813_s23 + $0x1d0] sm:$0xff] }
 0x11a   : > { %1344 = vmatpush.msrb.mxu1 %v1078_v18  ;;  %1366 = vmatpush.msrb.mxu2 %v1134_v19  ;;  %v990_v45 = vld [vmem:[%s4813_s23 + $0x88] sm:$0xff]  ;;  %v1095_v13 = vld [vmem:[%s4813_s23 + $0x3d0] sm:$0xff] }
 0x11b   : > { %1385 = vmatpush.msrb.mxu3 %v1202_v20  ;;  %1325 = vmatpush.msrb.mxu0 %v1010_v21  ;;  %v1054_v47 = vld [vmem:[%s4813_s23 + $0x288] sm:$0xff]  ;;  %v1151_v14 = vld [vmem:[%s4813_s23 + $0x590] sm:$0xff] }
 0x11c   : > { %1345 = vmatpush.msrb.mxu1 %v1074_v22  ;;  %1367 = vmatpush.msrb.mxu2 %v1130_v23  ;;  %v1110_v48 = vld [vmem:[%s4813_s23 + $0x448] sm:$0xff]  ;;  %v1219_v15 = vld [vmem:[%s4813_s23 + $0x7b0] sm:$0xff] }
 0x11d   : > { %1386 = vmatpush.msrb.mxu3 %v1198_v24  ;;  %1326 = vmatpush.msrb.mxu0 %v1006_v25  ;;  %v1178_v29 = vld [vmem:[%s4813_s23 + $0x668] sm:$0xff]  ;;  %v1027_v16 = vld [vmem:[%s4813_s23 + $0x1b0] sm:$0xff] }
 0x11e   : > { %1346 = vmatpush.msrb.mxu1 %v1070_v26  ;;  %1368 = vmatpush.msrb.mxu2 %v1126_v31  ;;  %v986_v30 = vld [vmem:[%s4813_s23 + $0x68] sm:$0xff]  ;;  %v1091_v17 = vld [vmem:[%s4813_s23 + $0x3b0] sm:$0xff] }
 0x11f   : > { %1387 = vmatpush.msrb.mxu3 %v1194_v32  ;;  %1327 = vmatpush.msrb.mxu0 %v1002_v33  ;;  %v1050_v49 = vld [vmem:[%s4813_s23 + $0x268] sm:$0xff]  ;;  %v1147_v18 = vld [vmem:[%s4813_s23 + $0x570] sm:$0xff] }
 0x120   : > { %1347 = vmatpush.msrb.mxu1 %v1066_v34  ;;  %1369 = vmatpush.msrb.mxu2 %v1122_v35  ;;  %v1106_v50 = vld [vmem:[%s4813_s23 + $0x428] sm:$0xff]  ;;  %v1215_v19 = vld [vmem:[%s4813_s23 + $0x790] sm:$0xff] }
 0x121   : > { %1388 = vmatpush.msrb.mxu3 %v1190_v36  ;;  %1328 = vmatpush.msrb.mxu0 %v998_v37  ;;  %v1174_v53 = vld [vmem:[%s4813_s23 + $0x648] sm:$0xff]  ;;  %v1023_v20 = vld [vmem:[%s4813_s23 + $0x190] sm:$0xff] }
 0x122   : > { %1348 = vmatpush.msrb.mxu1 %v1062_v38  ;;  %1370 = vmatpush.msrb.mxu2 %v1118_v39  ;;  %v982_v54 = vld [vmem:[%s4813_s23 + $0x48] sm:$0xff]  ;;  %v1087_v21 = vld [vmem:[%s4813_s23 + $0x390] sm:$0xff] }
 0x123   : > { %1389 = vmatpush.msrb.mxu3 %v1186_v40  ;;  %1329 = vmatpush.msrb.mxu0 %v994_v41  ;;  %v649_v43 = vpop.f32.mrf.mxu0  ;;  %v669_v44 = vpop.f32.mrf.mxu1  ;;  %v1046_v56 = vld [vmem:[%s4813_s23 + $0x248] sm:$0xff]  ;;  %v1143_v22 = vld [vmem:[%s4813_s23 + $0x550] sm:$0xff] }
 0x124   : > { %1349 = vmatpush.msrb.mxu1 %v1058_v42  ;;  %1371 = vmatpush.msrb.mxu2 %v1114_v27  ;;  %v670_v46 = vadd.f32 %v669_v44, %v649_v43  ;;  %v1102_v57 = vld [vmem:[%s4813_s23 + $0x408] sm:$0xff]  ;;  %v1211_v23 = vld [vmem:[%s4813_s23 + $0x770] sm:$0xff] }
 0x125   : > { %1390 = vmatpush.msrb.mxu3 %v1182_v28  ;;  %1330 = vmatpush.msrb.mxu0 %v990_v45  ;;  %v1170_v58 = vld [vmem:[%s4813_s23 + $0x628] sm:$0xff]  ;;  %v1019_v24 = vld [vmem:[%s4813_s23 + $0x170] sm:$0xff] }
 0x126   : > { %1350 = vmatpush.msrb.mxu1 %v1054_v47  ;;  %1372 = vmatpush.msrb.mxu2 %v1110_v48  ;;  %v689_v51 = vpop.f32.mrf.mxu2  ;;  %v978_v61 = vld [vmem:[%s4813_s23 + $0x28] sm:$0xff]  ;;  %v1083_v25 = vld [vmem:[%s4813_s23 + $0x370] sm:$0xff] }
 0x127   : > { %1391 = vmatpush.msrb.mxu3 %v1178_v29  ;;  %1331 = vmatpush.msrb.mxu0 %v986_v30  ;;  %v709_v52 = vpop.f32.mrf.mxu3  ;;  %v690_v55 = vadd.f32 %v689_v51, %v670_v46  ;;  %v1042_v2 = vld [vmem:[%s4813_s23 + $0x228] sm:$0xff]  ;;  %v1139_v26 = vld [vmem:[%s4813_s23 + $0x530] sm:$0xff] }
 0x128   : > { %1351 = vmatpush.msrb.mxu1 %v1050_v49  ;;  %1373 = vmatpush.msrb.mxu2 %v1106_v50  ;;  %v1166_v3 = vld [vmem:[%s4813_s23 + $0x608] sm:$0xff]  ;;  %v1207_v31 = vld [vmem:[%s4813_s23 + $0x750] sm:$0xff] }
 0x129   : > { %1392 = vmatpush.msrb.mxu3 %v1174_v53  ;;  %1332 = vmatpush.msrb.mxu0 %v982_v54  ;;  %v4971_v59 = vadd.f32 %v709_v52, %v690_v55  ;;  %v974_v6 = vld [vmem:[%s4813_s23 + $0x8] sm:$0xff]  ;;  %v1015_v32 = vld [vmem:[%s4813_s23 + $0x150] sm:$0xff] }
 0x12a   : > { %1352 = vmatpush.msrb.mxu1 %v1046_v56  ;;  %1374 = vmatpush.msrb.mxu2 %v1102_v57  ;;  %v1038_v7 = vld [vmem:[%s4813_s23 + $0x208] sm:$0xff]  ;;  %v1079_v33 = vld [vmem:[%s4813_s23 + $0x350] sm:$0xff] }
 0x12b   : > { %1393 = vmatpush.msrb.mxu3 %v1170_v58  ;;  %1375 = vmatmul.f32.vlgmr.msrb.gmra.mxu2 %v4839_v62  ;;  %v1135_v34 = vld [vmem:[%s4813_s23 + $0x510] sm:$0xff] }
 0x12c   : > { %1439 = vmatpush.msra.mxu2 %v1163_v60  ;;  %1333 = vmatpush.msrb.mxu0 %v978_v61  ;;  %v1203_v35 = vld [vmem:[%s4813_s23 + $0x730] sm:$0xff] }
 0x12d   : > { %1353 = vmatpush.msrb.mxu1 %v1042_v2  ;;  %1394 = vmatpush.msrb.mxu3 %v1166_v3  ;;  %v1011_v36 = vld [vmem:[%s4813_s23 + $0x130] sm:$0xff] }
 0x12e   : > { %1395 = vmatmul.f32.vlgmr.msrb.gmra.mxu3 %v4841_v63  ;;  %1440 = vmatpush.msra.mxu2 %v1159_v4  ;;  %v1075_v37 = vld [vmem:[%s4813_s23 + $0x330] sm:$0xff] }
 0x12f   : > { %1459 = vmatpush.msra.mxu3 %v1227_v5  ;;  %1334 = vmatpush.msrb.mxu0 %v974_v6  ;;  %v1131_v38 = vld [vmem:[%s4813_s23 + $0x4f0] sm:$0xff] }
 0x130   : > { %1354 = vmatpush.msrb.mxu1 %v1038_v7  ;;  %1335 = vmatmul.f32.vlgmr.msrb.gmra.mxu0 %v4843_v0  ;;  %v1199_v39 = vld [vmem:[%s4813_s23 + $0x710] sm:$0xff] }
 0x131   : > { %1355 = vmatmul.f32.vlgmr.msrb.gmra.mxu1 %v4845_v1  ;;  %1399 = vmatpush.msra.mxu0 %v1035_v8  ;;  %v1007_v40 = vld [vmem:[%s4813_s23 + $0x110] sm:$0xff] }
 0x132   : > { %1419 = vmatpush.msra.mxu1 %v1099_v9  ;;  %1441 = vmatpush.msra.mxu2 %v1155_v10  ;;  %v1071_v41 = vld [vmem:[%s4813_s23 + $0x310] sm:$0xff] }
 0x133   : > { %1460 = vmatpush.msra.mxu3 %v1223_v11  ;;  %1400 = vmatpush.msra.mxu0 %v1031_v12  ;;  %v1127_v42 = vld [vmem:[%s4813_s23 + $0x4d0] sm:$0xff]  ;;  %v1164_v12 = vld [vmem:[%s4813_s23 + $0x5f8] sm:$0xff] }
 0x134   : > { %1420 = vmatpush.msra.mxu1 %v1095_v13  ;;  %1442 = vmatpush.msra.mxu2 %v1151_v14  ;;  %v1195_v27 = vld [vmem:[%s4813_s23 + $0x6f0] sm:$0xff] }
 0x135   : > { %1461 = vmatpush.msra.mxu3 %v1219_v15  ;;  %1401 = vmatpush.msra.mxu0 %v1027_v16  ;;  %v1003_v43 = vld [vmem:[%s4813_s23 + $0xf0] sm:$0xff]  ;;  %v1160_v16 = vld [vmem:[%s4813_s23 + $0x5d8] sm:$0xff] }
 0x136   : > { %1421 = vmatpush.msra.mxu1 %v1091_v17  ;;  %1443 = vmatpush.msra.mxu2 %v1147_v18  ;;  %v1067_v44 = vld [vmem:[%s4813_s23 + $0x2f0] sm:$0xff]  ;;  %v1228_v17 = vld [vmem:[%s4813_s23 + $0x7f8] sm:$0xff] }
 0x137   : > { %1462 = vmatpush.msra.mxu3 %v1215_v19  ;;  %1402 = vmatpush.msra.mxu0 %v1023_v20  ;;  %v1123_v28 = vld [vmem:[%s4813_s23 + $0x4b0] sm:$0xff]  ;;  %v1036_v20 = vld [vmem:[%s4813_s23 + $0x1f8] sm:$0xff] }
 0x138   : > { %1422 = vmatpush.msra.mxu1 %v1087_v21  ;;  %1444 = vmatpush.msra.mxu2 %v1143_v22  ;;  %v1191_v45 = vld [vmem:[%s4813_s23 + $0x6d0] sm:$0xff]  ;;  %v1100_v21 = vld [vmem:[%s4813_s23 + $0x3f8] sm:$0xff] }
 0x139   : > { %1463 = vmatpush.msra.mxu3 %v1211_v23  ;;  %1403 = vmatpush.msra.mxu0 %v1019_v24  ;;  %v999_v46 = vld [vmem:[%s4813_s23 + $0xd0] sm:$0xff]  ;;  %v1156_v22 = vld [vmem:[%s4813_s23 + $0x5b8] sm:$0xff] }
 0x13a   : > { %1423 = vmatpush.msra.mxu1 %v1083_v25  ;;  %1445 = vmatpush.msra.mxu2 %v1139_v26  ;;  %v1063_v47 = vld [vmem:[%s4813_s23 + $0x2d0] sm:$0xff]  ;;  %v1224_v23 = vld [vmem:[%s4813_s23 + $0x7d8] sm:$0xff] }
 0x13b   : > { %1464 = vmatpush.msra.mxu3 %v1207_v31  ;;  %1404 = vmatpush.msra.mxu0 %v1015_v32  ;;  %v1119_v48 = vld [vmem:[%s4813_s23 + $0x490] sm:$0xff]  ;;  %v1032_v24 = vld [vmem:[%s4813_s23 + $0x1d8] sm:$0xff] }
 0x13c   : > { %1424 = vmatpush.msra.mxu1 %v1079_v33  ;;  %1446 = vmatpush.msra.mxu2 %v1135_v34  ;;  %v1187_v29 = vld [vmem:[%s4813_s23 + $0x6b0] sm:$0xff]  ;;  %v1096_v25 = vld [vmem:[%s4813_s23 + $0x3d8] sm:$0xff] }
 0x13d   : > { %1465 = vmatpush.msra.mxu3 %v1203_v35  ;;  %1405 = vmatpush.msra.mxu0 %v1011_v36  ;;  %v995_v30 = vld [vmem:[%s4813_s23 + $0xb0] sm:$0xff]  ;;  %v1152_v26 = vld [vmem:[%s4813_s23 + $0x598] sm:$0xff] }
 0x13e   : > { %1425 = vmatpush.msra.mxu1 %v1075_v37  ;;  %1447 = vmatpush.msra.mxu2 %v1131_v38  ;;  %v1059_v49 = vld [vmem:[%s4813_s23 + $0x2b0] sm:$0xff]  ;;  %v1220_v31 = vld [vmem:[%s4813_s23 + $0x7b8] sm:$0xff] }
 0x13f   : > { %1466 = vmatpush.msra.mxu3 %v1199_v39  ;;  %1406 = vmatpush.msra.mxu0 %v1007_v40  ;;  %v1115_v50 = vld [vmem:[%s4813_s23 + $0x470] sm:$0xff]  ;;  %v1028_v32 = vld [vmem:[%s4813_s23 + $0x1b8] sm:$0xff] }
 0x140   : > { %1426 = vmatpush.msra.mxu1 %v1071_v41  ;;  %1448 = vmatpush.msra.mxu2 %v1127_v42  ;;  %v1183_v52 = vld [vmem:[%s4813_s23 + $0x690] sm:$0xff]  ;;  %v1092_v33 = vld [vmem:[%s4813_s23 + $0x3b8] sm:$0xff] }
 0x141   : > { %1467 = vmatpush.msra.mxu3 %v1195_v27  ;;  %1407 = vmatpush.msra.mxu0 %v1003_v43  ;;  %v991_v53 = vld [vmem:[%s4813_s23 + $0x90] sm:$0xff]  ;;  %v1148_v34 = vld [vmem:[%s4813_s23 + $0x578] sm:$0xff] }
 0x142   : > { %1427 = vmatpush.msra.mxu1 %v1067_v44  ;;  %1449 = vmatpush.msra.mxu2 %v1123_v28  ;;  %v1055_v55 = vld [vmem:[%s4813_s23 + $0x290] sm:$0xff]  ;;  %v1216_v35 = vld [vmem:[%s4813_s23 + $0x798] sm:$0xff] }
 0x143   : > { %1468 = vmatpush.msra.mxu3 %v1191_v45  ;;  %1408 = vmatpush.msra.mxu0 %v999_v46  ;;  %v1111_v56 = vld [vmem:[%s4813_s23 + $0x450] sm:$0xff]  ;;  %v1024_v36 = vld [vmem:[%s4813_s23 + $0x198] sm:$0xff] }
 0x144   : > { %1428 = vmatpush.msra.mxu1 %v1063_v47  ;;  %1450 = vmatpush.msra.mxu2 %v1119_v48  ;;  %v1179_v60 = vld [vmem:[%s4813_s23 + $0x670] sm:$0xff]  ;;  %v1088_v37 = vld [vmem:[%s4813_s23 + $0x398] sm:$0xff] }
 0x145   : > { %1469 = vmatpush.msra.mxu3 %v1187_v29  ;;  %1409 = vmatpush.msra.mxu0 %v995_v30  ;;  %v729_v51 = vpop.f32.mrf.mxu0  ;;  %v987_v61 = vld [vmem:[%s4813_s23 + $0x70] sm:$0xff]  ;;  %v1144_v38 = vld [vmem:[%s4813_s23 + $0x558] sm:$0xff] }
 0x146   : > { %1429 = vmatpush.msra.mxu1 %v1059_v49  ;;  %1451 = vmatpush.msra.mxu2 %v1115_v50  ;;  %v749_v54 = vpop.f32.mrf.mxu1  ;;  %v1051_v2 = vld [vmem:[%s4813_s23 + $0x270] sm:$0xff]  ;;  %v1212_v39 = vld [vmem:[%s4813_s23 + $0x778] sm:$0xff] }
 0x147   : > { %1470 = vmatpush.msra.mxu3 %v1183_v52  ;;  %1410 = vmatpush.msra.mxu0 %v991_v53  ;;  %v750_v57 = vadd.f32 %v749_v54, %v729_v51  ;;  %v769_v58 = vpop.f32.mrf.mxu2  ;;  %v1107_v3 = vld [vmem:[%s4813_s23 + $0x430] sm:$0xff]  ;;  %v1020_v40 = vld [vmem:[%s4813_s23 + $0x178] sm:$0xff] }
 0x148   : > { %1430 = vmatpush.msra.mxu1 %v1055_v55  ;;  %1452 = vmatpush.msra.mxu2 %v1111_v56  ;;  %v1175_v6 = vld [vmem:[%s4813_s23 + $0x650] sm:$0xff]  ;;  %v1084_v41 = vld [vmem:[%s4813_s23 + $0x378] sm:$0xff] }
 0x149   : > { %1471 = vmatpush.msra.mxu3 %v1179_v60  ;;  %1411 = vmatpush.msra.mxu0 %v987_v61  ;;  %v770_v4 = vadd.f32 %v769_v58, %v750_v57  ;;  %v789_v5 = vpop.f32.mrf.mxu3  ;;  %v983_v7 = vld [vmem:[%s4813_s23 + $0x50] sm:$0xff]  ;;  %v1140_v42 = vld [vmem:[%s4813_s23 + $0x538] sm:$0xff] }
 0x14a   : > { %1431 = vmatpush.msra.mxu1 %v1051_v2  ;;  %1453 = vmatpush.msra.mxu2 %v1107_v3  ;;  %v1047_v8 = vld [vmem:[%s4813_s23 + $0x250] sm:$0xff]  ;;  %v1208_v27 = vld [vmem:[%s4813_s23 + $0x758] sm:$0xff] }
 0x14b   : > { %1472 = vmatpush.msra.mxu3 %v1175_v6  ;;  %1412 = vmatpush.msra.mxu0 %v983_v7  ;;  %v1103_v9 = vld [vmem:[%s4813_s23 + $0x410] sm:$0xff]  ;;  %v5040_v10 = vadd.f32 %v789_v5, %v770_v4  ;;  %v1016_v43 = vld [vmem:[%s4813_s23 + $0x158] sm:$0xff] }
 0x14c   : > { %1432 = vmatpush.msra.mxu1 %v1047_v8  ;;  %1454 = vmatpush.msra.mxu2 %v1103_v9  ;;  %v1171_v11 = vld [vmem:[%s4813_s23 + $0x630] sm:$0xff]  ;;  %v1080_v44 = vld [vmem:[%s4813_s23 + $0x358] sm:$0xff] }
 0x14d   : > { %1473 = vmatpush.msra.mxu3 %v1171_v11  ;;  %1455 = vmatmul.f32.vlgmr.msra.gmra.mxu2 %v4839_v62  ;;  %v979_v13 = vld [vmem:[%s4813_s23 + $0x30] sm:$0xff]  ;;  %v1136_v28 = vld [vmem:[%s4813_s23 + $0x518] sm:$0xff] }
 0x14e   : > { %1519 = vmatpush.msrb.mxu2 %v1164_v12  ;;  %1413 = vmatpush.msra.mxu0 %v979_v13  ;;  %v1043_v14 = vld [vmem:[%s4813_s23 + $0x230] sm:$0xff]  ;;  %v1204_v45 = vld [vmem:[%s4813_s23 + $0x738] sm:$0xff] }
 0x14f   : > { %v1167_v15 = vld [vmem:[%s4813_s23 + $0x610] sm:$0xff]  ;;  %1433 = vmatpush.msra.mxu1 %v1043_v14  ;;  %v1012_v46 = vld [vmem:[%s4813_s23 + $0x138] sm:$0xff] }
 0x150   : > { %1474 = vmatpush.msra.mxu3 %v1167_v15  ;;  %1520 = vmatpush.msrb.mxu2 %v1160_v16  ;;  %v975_v18 = vld [vmem:[%s4813_s23 + $0x10] sm:$0xff]  ;;  %v1076_v47 = vld [vmem:[%s4813_s23 + $0x338] sm:$0xff] }
 0x151   : > { %1475 = vmatmul.f32.vlgmr.msra.gmra.mxu3 %v4841_v63  ;;  %1414 = vmatpush.msra.mxu0 %v975_v18  ;;  %v1039_v19 = vld [vmem:[%s4813_s23 + $0x210] sm:$0xff]  ;;  %v1132_v48 = vld [vmem:[%s4813_s23 + $0x4f8] sm:$0xff] }
 0x152   : > { %1539 = vmatpush.msrb.mxu3 %v1228_v17  ;;  %1434 = vmatpush.msra.mxu1 %v1039_v19  ;;  %v1200_v29 = vld [vmem:[%s4813_s23 + $0x718] sm:$0xff]  ;;  %v4238_v57 = vld [vmem:[#allocation2 + $0x8] sm:$0xff] }
 0x153   : > { %1415 = vmatmul.f32.vlgmr.msra.gmra.mxu0 %v4843_v0  ;;  %1435 = vmatmul.f32.vlgmr.msra.gmra.mxu1 %v4845_v1  ;;  %v1008_v30 = vld [vmem:[%s4813_s23 + $0x118] sm:$0xff]  ;;  %v273_v58 = vperm.slane %v4238_v57, 5  ;;  %v274_v60 = vperm.slane %v4238_v57, 6  ;;  %v275_v61 = vperm.slane %v4238_v57, 7  ;;  %v272_v9 = vperm.slane %v4238_v57, 4  ;;  %v1820_v57 = vld [vmem:[%s5129_s7 + $0x780] sm:$0xff] }
 0x154   : > { %1479 = vmatpush.msrb.mxu0 %v1036_v20  ;;  %1499 = vmatpush.msrb.mxu1 %v1100_v21  ;;  %v1072_v49 = vld [vmem:[%s4813_s23 + $0x318] sm:$0xff] }
 0x155   : > { %1521 = vmatpush.msrb.mxu2 %v1156_v22  ;;  %1540 = vmatpush.msrb.mxu3 %v1224_v23  ;;  %v1128_v50 = vld [vmem:[%s4813_s23 + $0x4d8] sm:$0xff]  ;;  %v293_v15 = vrot.slane %v273_v58, 6  ;;  %v294_v16 = vrot.slane %v274_v60, 4  ;;  %v295_v17 = vrot.slane %v275_v61, 2  ;;  %v1628_v58 = vld [vmem:[%s5129_s7 + $0x180] sm:$0xff] }
 0x156   : > { %1480 = vmatpush.msrb.mxu0 %v1032_v24  ;;  %1500 = vmatpush.msrb.mxu1 %v1096_v25  ;;  %v1196_v51 = vld [vmem:[%s4813_s23 + $0x6f8] sm:$0xff]  ;;  %v1692_v60 = vld [vmem:[%s5129_s7 + $0x380] sm:$0xff] }
 0x157   : > { %1522 = vmatpush.msrb.mxu2 %v1152_v26  ;;  %1541 = vmatpush.msrb.mxu3 %v1220_v31  ;;  %v1004_v52 = vld [vmem:[%s4813_s23 + $0xf8] sm:$0xff]  ;;  %v1748_v61 = vld [vmem:[%s5129_s7 + $0x540] sm:$0xff] }
 0x158   : > { %1481 = vmatpush.msrb.mxu0 %v1028_v32  ;;  %1501 = vmatpush.msrb.mxu1 %v1092_v33  ;;  %v1068_v53 = vld [vmem:[%s4813_s23 + $0x2f8] sm:$0xff]  ;;  %v314_v33 = vsel %vm302_vm0, %v272_v9, %v293_v15  ;;  %v1740_v9 = vld [vmem:[%s5129_s7 + $0x500] sm:$0xff] }
 0x159   : > { %1523 = vmatpush.msrb.mxu2 %v1148_v34  ;;  %1542 = vmatpush.msrb.mxu3 %v1216_v35  ;;  %v1124_v54 = vld [vmem:[%s4813_s23 + $0x4b8] sm:$0xff]  ;;  %v315_v34 = vsel %vm304_vm1, %v294_v16, %v295_v17  ;;  %v1804_v16 = vld [vmem:[%s5129_s7 + $0x700] sm:$0xff] }
 0x15a   : > { %1482 = vmatpush.msrb.mxu0 %v1024_v36  ;;  %1502 = vmatpush.msrb.mxu1 %v1088_v37  ;;  %v1192_v55 = vld [vmem:[%s4813_s23 + $0x6d8] sm:$0xff]  ;;  %v1612_v17 = vld [vmem:[%s5129_s7 + $0x100] sm:$0xff] }
 0x15b   : > { %1524 = vmatpush.msrb.mxu2 %v1144_v38  ;;  %1543 = vmatpush.msrb.mxu3 %v1212_v39  ;;  %v1000_v56 = vld [vmem:[%s4813_s23 + $0xd8] sm:$0xff]  ;;  %v1768_v39 = vld [vmem:[%s5129_s7 + $0x5e0] sm:$0xff] }
 0x15c   : > { %1483 = vmatpush.msrb.mxu0 %v1020_v40  ;;  %1503 = vmatpush.msrb.mxu1 %v1084_v41  ;;  %v1064_v2 = vld [vmem:[%s4813_s23 + $0x2d8] sm:$0xff] }
 0x15d   : > { %1525 = vmatpush.msrb.mxu2 %v1140_v42  ;;  %1544 = vmatpush.msrb.mxu3 %v1208_v27  ;;  %v1120_v3 = vld [vmem:[%s4813_s23 + $0x498] sm:$0xff]  ;;  %v316_v42 = vsel %vm306_vm2, %v314_v33, %v315_v34  ;;  %v1796_v33 = vld [vmem:[%s5129_s7 + $0x6c0] sm:$0xff] }
 0x15e   : > { %1484 = vmatpush.msrb.mxu0 %v1016_v43  ;;  %1504 = vmatpush.msrb.mxu1 %v1080_v44  ;;  %v1188_v4 = vld [vmem:[%s4813_s23 + $0x6b8] sm:$0xff]  ;;  %v1764_v43 = vld [vmem:[%s5129_s7 + $0x5c0] sm:$0xff] }
 0x15f   : > { %1526 = vmatpush.msrb.mxu2 %v1136_v28  ;;  %1545 = vmatpush.msrb.mxu3 %v1204_v45  ;;  %v996_v5 = vld [vmem:[%s4813_s23 + $0xb8] sm:$0xff]  ;;  %v1832_v44 = vld [vmem:[%s5129_s7 + $0x7e0] sm:$0xff] }
 0x160   : > { %1485 = vmatpush.msrb.mxu0 %v1012_v46  ;;  %1505 = vmatpush.msrb.mxu1 %v1076_v47  ;;  %v1060_v6 = vld [vmem:[%s4813_s23 + $0x2b8] sm:$0xff]  ;;  %v1640_v47 = vld [vmem:[%s5129_s7 + $0x1e0] sm:$0xff] }
 0x161   : > { %1527 = vmatpush.msrb.mxu2 %v1132_v48  ;;  %1546 = vmatpush.msrb.mxu3 %v1200_v29  ;;  %v1116_v7 = vld [vmem:[%s4813_s23 + $0x478] sm:$0xff]  ;;  %v1704_v48 = vld [vmem:[%s5129_s7 + $0x3e0] sm:$0xff] }
 0x162   : > { %1486 = vmatpush.msrb.mxu0 %v1008_v30  ;;  %1506 = vmatpush.msrb.mxu1 %v1072_v49  ;;  %v1184_v11 = vld [vmem:[%s4813_s23 + $0x698] sm:$0xff]  ;;  %v1760_v29 = vld [vmem:[%s5129_s7 + $0x5a0] sm:$0xff] }
 0x163   : > { %1528 = vmatpush.msrb.mxu2 %v1128_v50  ;;  %1547 = vmatpush.msrb.mxu3 %v1196_v51  ;;  %v992_v12 = vld [vmem:[%s4813_s23 + $0x98] sm:$0xff]  ;;  %v1828_v30 = vld [vmem:[%s5129_s7 + $0x7c0] sm:$0xff] }
 0x164   : > { %1487 = vmatpush.msrb.mxu0 %v1004_v52  ;;  %1507 = vmatpush.msrb.mxu1 %v1068_v53  ;;  %v1056_v18 = vld [vmem:[%s4813_s23 + $0x298] sm:$0xff]  ;;  %v1636_v49 = vld [vmem:[%s5129_s7 + $0x1c0] sm:$0xff] }
 0x165   : > { %1529 = vmatpush.msrb.mxu2 %v1124_v54  ;;  %1548 = vmatpush.msrb.mxu3 %v1192_v55  ;;  %v1112_v19 = vld [vmem:[%s4813_s23 + $0x458] sm:$0xff]  ;;  %v5155_v51 = vld.sshfl [vmem:[#allocation1] sm:$0xff pattern:$0x73625140] }
 0x166   : > { %1488 = vmatpush.msrb.mxu0 %v1000_v56  ;;  %1508 = vmatpush.msrb.mxu1 %v1064_v2  ;;  %v1180_v21 = vld [vmem:[%s4813_s23 + $0x678] sm:$0xff]  ;;  %v1700_v52 = vld [vmem:[%s5129_s7 + $0x3c0] sm:$0xff] }
 0x167   : > { %1530 = vmatpush.msrb.mxu2 %v1120_v3  ;;  %1549 = vmatpush.msrb.mxu3 %v1188_v4  ;;  %v809_v8 = vpop.f32.mrf.mxu0  ;;  %v988_v22 = vld [vmem:[%s4813_s23 + $0x78] sm:$0xff]  ;;  %v1824_v53 = vld [vmem:[%s5129_s7 + $0x7a0] sm:$0xff] }
 0x168   : > { %1489 = vmatpush.msrb.mxu0 %v996_v5  ;;  %1509 = vmatpush.msrb.mxu1 %v1060_v6  ;;  %v829_v13 = vpop.f32.mrf.mxu1  ;;  %v849_v14 = vpop.f32.mrf.mxu2  ;;  %v1052_v23 = vld [vmem:[%s4813_s23 + $0x278] sm:$0xff]  ;;  %v1632_v54 = vld [vmem:[%s5129_s7 + $0x1a0] sm:$0xff] }
 0x169   : > { %1531 = vmatpush.msrb.mxu2 %v1116_v7  ;;  %1550 = vmatpush.msrb.mxu3 %v1184_v11  ;;  %v830_v20 = vadd.f32 %v829_v13, %v809_v8  ;;  %v1108_v24 = vld [vmem:[%s4813_s23 + $0x438] sm:$0xff]  ;;  %v1696_v55 = vld [vmem:[%s5129_s7 + $0x3a0] sm:$0xff] }
 0x16a   : > { %1490 = vmatpush.msrb.mxu0 %v992_v12  ;;  %1510 = vmatpush.msrb.mxu1 %v1056_v18  ;;  %v1176_v31 = vld [vmem:[%s4813_s23 + $0x658] sm:$0xff]  ;;  %v1752_v56 = vld [vmem:[%s5129_s7 + $0x560] sm:$0xff] }
 0x16b   : > { %1532 = vmatpush.msrb.mxu2 %v1112_v19  ;;  %1551 = vmatpush.msrb.mxu3 %v1180_v21  ;;  %v850_v25 = vadd.f32 %v849_v14, %v830_v20  ;;  %v869_v26 = vpop.f32.mrf.mxu3  ;;  %v984_v32 = vld [vmem:[%s4813_s23 + $0x58] sm:$0xff]  ;;  %v1816_v2 = vld [vmem:[%s5129_s7 + $0x760] sm:$0xff] }
 0x16c   : > { %1491 = vmatpush.msrb.mxu0 %v988_v22  ;;  %1511 = vmatpush.msrb.mxu1 %v1052_v23  ;;  %v1048_v35 = vld [vmem:[%s4813_s23 + $0x258] sm:$0xff]  ;;  %v1624_v3 = vld [vmem:[%s5129_s7 + $0x160] sm:$0xff] }
 0x16d   : > { %1533 = vmatpush.msrb.mxu2 %v1108_v24  ;;  %1552 = vmatpush.msrb.mxu3 %v1176_v31  ;;  %v1104_v36 = vld [vmem:[%s4813_s23 + $0x418] sm:$0xff]  ;;  %v5125_v37 = vadd.f32 %v869_v26, %v850_v25  ;;  %v1688_v4 = vld [vmem:[%s5129_s7 + $0x360] sm:$0xff] }
 0x16e   : > { %1492 = vmatpush.msrb.mxu0 %v984_v32  ;;  %1512 = vmatpush.msrb.mxu1 %v1048_v35  ;;  %v1172_v38 = vld [vmem:[%s4813_s23 + $0x638] sm:$0xff]  ;;  %v1744_v5 = vld [vmem:[%s5129_s7 + $0x520] sm:$0xff] }
 0x16f   : > { %1534 = vmatpush.msrb.mxu2 %v1104_v36  ;;  %1553 = vmatpush.msrb.mxu3 %v1172_v38  ;;  %v980_v40 = vld [vmem:[%s4813_s23 + $0x38] sm:$0xff]  ;;  %v1812_v6 = vld [vmem:[%s5129_s7 + $0x740] sm:$0xff] }
 0x170   : > { %1535 = vmatmul.f32.vlgmr.msrb.gmra.mxu2 %v4839_v62  ;;  %v251_v41 = vld [vmem:[%s6404_s0 + $0x18] sm:$0xff]  ;;  %1493 = vmatpush.msrb.mxu0 %v980_v40  ;;  %v1620_v7 = vld [vmem:[%s5129_s7 + $0x140] sm:$0xff] }
 0x171   : > { %1886 = vmatpush.msra.mxu2 %v1768_v39  ;;  %v1044_v62 = vld [vmem:[%s4813_s23 + $0x238] sm:$0xff]  ;;  %v332_v45 = vmul.f32 %v316_v42, %v251_v41  ;;  %v1684_v8 = vld [vmem:[%s5129_s7 + $0x340] sm:$0xff] }
 0x172   : > { %v1168_v27 = vld [vmem:[%s4813_s23 + $0x618] sm:$0xff]  ;;  %1513 = vmatpush.msrb.mxu1 %v1044_v62  ;;  %v1808_v11 = vld [vmem:[%s5129_s7 + $0x720] sm:$0xff] }
 0x173   : > { %1554 = vmatpush.msrb.mxu3 %v1168_v27  ;;  %1887 = vmatpush.msra.mxu2 %v1764_v43  ;;  %v976_v28 = vld [vmem:[%s4813_s23 + $0x18] sm:$0xff]  ;;  %v1616_v12 = vld [vmem:[%s5129_s7 + $0x120] sm:$0xff] }
 0x174   : > { %1555 = vmatmul.f32.vlgmr.msrb.gmra.mxu3 %v4841_v63  ;;  %1494 = vmatpush.msrb.mxu0 %v976_v28  ;;  %v1040_v46 = vld [vmem:[%s4813_s23 + $0x218] sm:$0xff]  ;;  %v5151_v63 = vld.sshfl [vmem:[#allocation1 + $0x10] sm:$0xff pattern:$0x73625140]  ;;  %v1680_v13 = vld [vmem:[%s5129_s7 + $0x320] sm:$0xff] }
 0x175   : > { %1906 = vmatpush.msra.mxu3 %v1832_v44  ;;  %1514 = vmatpush.msrb.mxu1 %v1040_v46  ;;  %v5153_v50 = vld.sshfl [vmem:[#allocation1 + $0x18] sm:$0xff pattern:$0x73625140]  ;;  %v1736_v14 = vld [vmem:[%s5129_s7 + $0x4e0] sm:$0xff] }
 0x176   : > { %1495 = vmatmul.f32.vlgmr.msrb.gmra.mxu0 %v4843_v0  ;;  %1515 = vmatmul.f32.vlgmr.msrb.gmra.mxu1 %v4845_v1  ;;  %v5157_v0 = vld.sshfl [vmem:[#allocation1 + $0x8] sm:$0xff pattern:$0x73625140]  ;;  %v1756_v1 = vld [vmem:[%s5129_s7 + $0x580] sm:$0xff] }
 0x177   : > { %1846 = vmatpush.msra.mxu0 %v1640_v47  ;;  %1866 = vmatpush.msra.mxu1 %v1704_v48  ;;  %2444 = vst [vmem:[#allocation1] ss:$4 sm:$0xff] %v332_v45  ;;  %v1676_v20 = vld [vmem:[%s5129_s7 + $0x300] sm:$0xff] }
 0x178   : > { %1888 = vmatpush.msra.mxu2 %v1760_v29  ;;  %1907 = vmatpush.msra.mxu3 %v1828_v30  ;;  %v1732_v21 = vld [vmem:[%s5129_s7 + $0x4c0] sm:$0xff] }
 0x179   : > { %1847 = vmatpush.msra.mxu0 %v1636_v49  ;;  %1867 = vmatpush.msra.mxu1 %v1700_v52  ;;  %v1800_v23 = vld [vmem:[%s5129_s7 + $0x6e0] sm:$0xff] }
 0x17a   : > { %1889 = vmatpush.msra.mxu2 %v1756_v1  ;;  %1908 = vmatpush.msra.mxu3 %v1824_v53  ;;  %v1608_v24 = vld [vmem:[%s5129_s7 + $0xe0] sm:$0xff] }
 0x17b   : > { %1848 = vmatpush.msra.mxu0 %v1632_v54  ;;  %1868 = vmatpush.msra.mxu1 %v1696_v55  ;;  %v1672_v25 = vld [vmem:[%s5129_s7 + $0x2e0] sm:$0xff] }
 0x17c   : > { %1890 = vmatpush.msra.mxu2 %v1752_v56  ;;  %1909 = vmatpush.msra.mxu3 %v1820_v57  ;;  %v1728_v26 = vld [vmem:[%s5129_s7 + $0x4a0] sm:$0xff] }
 0x17d   : > { %1849 = vmatpush.msra.mxu0 %v1628_v58  ;;  %1869 = vmatpush.msra.mxu1 %v1692_v60  ;;  %v1604_v34 = vld [vmem:[%s5129_s7 + $0xc0] sm:$0xff] }
 0x17e   : > { %1891 = vmatpush.msra.mxu2 %v1748_v61  ;;  %1910 = vmatpush.msra.mxu3 %v1816_v2  ;;  %v1668_v35 = vld [vmem:[%s5129_s7 + $0x2c0] sm:$0xff]  ;;  %v1769_v2 = vld [vmem:[%s5129_s7 + $0x5e8] sm:$0xff] }
 0x17f   : > { %1850 = vmatpush.msra.mxu0 %v1624_v3  ;;  %1870 = vmatpush.msra.mxu1 %v1688_v4  ;;  %v1724_v36 = vld [vmem:[%s5129_s7 + $0x480] sm:$0xff] }
 0x180   : > { %1892 = vmatpush.msra.mxu2 %v1744_v5  ;;  %1911 = vmatpush.msra.mxu3 %v1812_v6  ;;  %v1792_v39 = vld [vmem:[%s5129_s7 + $0x6a0] sm:$0xff] }
 0x181   : > { %1851 = vmatpush.msra.mxu0 %v1620_v7  ;;  %1871 = vmatpush.msra.mxu1 %v1684_v8  ;;  %v889_v15 = vpop.f32.mrf.mxu0  ;;  %v1600_v40 = vld [vmem:[%s5129_s7 + $0xa0] sm:$0xff]  ;;  %v1765_v7 = vld [vmem:[%s5129_s7 + $0x5c8] sm:$0xff] }
 0x182   : > { %1893 = vmatpush.msra.mxu2 %v1740_v9  ;;  %1912 = vmatpush.msra.mxu3 %v1808_v11  ;;  %v909_v18 = vpop.f32.mrf.mxu1  ;;  %v929_v19 = vpop.f32.mrf.mxu2  ;;  %v1664_v41 = vld [vmem:[%s5129_s7 + $0x2a0] sm:$0xff]  ;;  %v1833_v8 = vld [vmem:[%s5129_s7 + $0x7e8] sm:$0xff] }
 0x183   : > { %1852 = vmatpush.msra.mxu0 %v1616_v12  ;;  %1872 = vmatpush.msra.mxu1 %v1680_v13  ;;  %v910_v22 = vadd.f32 %v909_v18, %v889_v15  ;;  %v1720_v42 = vld [vmem:[%s5129_s7 + $0x460] sm:$0xff]  ;;  %v1641_v12 = vld [vmem:[%s5129_s7 + $0x1e8] sm:$0xff] }
 0x184   : > { %1894 = vmatpush.msra.mxu2 %v1736_v14  ;;  %1913 = vmatpush.msra.mxu3 %v1804_v16  ;;  %v5206_v62 = vld [vmem:[%s215_s15] sm:$0xf]  ;;  %v1705_v13 = vld [vmem:[%s5129_s7 + $0x3e8] sm:$0xff]  ;;  %s2176_s15 = ssub.s32 0, %s4231_s14 }
 0x185   : > { %1853 = vmatpush.msra.mxu0 %v1612_v17  ;;  %1873 = vmatpush.msra.mxu1 %v1676_v20  ;;  %v930_v31 = vadd.f32 %v929_v19, %v910_v22  ;;  %v949_v32 = vpop.f32.mrf.mxu3  ;;  %v1788_v27 = vld [vmem:[%s5129_s7 + $0x680] sm:$0xff]  ;;  %v337_v30 = vperm.slane %v5206_v62, 0  ;;  %v1761_v14 = vld [vmem:[%s5129_s7 + $0x5a8] sm:$0xff]  ;;  %s6429_s15 = smov (!%p2171_p0, %s2176_s15), %s4231_s14  ;;  %s4236_s14 = spop.drf %4235 }
 0x186   : > { %1895 = vmatpush.msra.mxu2 %v1732_v21  ;;  %1914 = vmatpush.msra.mxu3 %v1800_v23  ;;  %v1596_v43 = vld [vmem:[%s5129_s7 + $0x80] sm:$0xff]  ;;  %v1829_v15 = vld [vmem:[%s5129_s7 + $0x7c8] sm:$0xff]  ;;  %p4136_p2 = scmp.lt.s32.totalorder %s6429_s15, 0  ;;  %s2182_s22 = sadd.s32 6, %s6429_s15 }
 0x187   : > { %1854 = vmatpush.msra.mxu0 %v1608_v24  ;;  %1874 = vmatpush.msra.mxu1 %v1672_v25  ;;  %v5198_v38 = vadd.f32 %v949_v32, %v930_v31  ;;  %v1660_v44 = vld [vmem:[%s5129_s7 + $0x280] sm:$0xff]  ;;  %v952_v61 = vadd.f32 %v4971_v59, %v337_v30  ;;  %v1637_v16 = vld [vmem:[%s5129_s7 + $0x1c8] sm:$0xff] }
 0x188   : > { %1896 = vmatpush.msra.mxu2 %v1728_v26  ;;  %1915 = vmatpush.msra.mxu3 %v1796_v33  ;;  %v1716_v28 = vld [vmem:[%s5129_s7 + $0x440] sm:$0xff]  ;;  %v1701_v17 = vld [vmem:[%s5129_s7 + $0x3c8] sm:$0xff]  ;;  %s6431_s22 = smov (!%p4136_p2, %s2182_s22), %s6429_s15  ;;  %s4237_s15 = spop.drf %4235 }
 0x189   : > { %1855 = vmatpush.msra.mxu0 %v1604_v34  ;;  %1875 = vmatpush.msra.mxu1 %v1668_v35  ;;  %v1784_v46 = vld [vmem:[%s5129_s7 + $0x660] sm:$0xff]  ;;  %v1757_v18 = vld [vmem:[%s5129_s7 + $0x588] sm:$0xff]  ;;  %s4154_s23 = sshll.u32 %s6431_s22, 11  ;;  %s3390_s22 = ssub.s32 0, %s4237_s15 }
 0x18a   : > { %1897 = vmatpush.msra.mxu2 %v1724_v36  ;;  %1916 = vmatpush.msra.mxu3 %v1792_v39  ;;  %v1592_v47 = vld [vmem:[%s5129_s7 + $0x60] sm:$0xff]  ;;  %v1825_v19 = vld [vmem:[%s5129_s7 + $0x7a8] sm:$0xff]  ;;  %s5457_s25 = scalar_lea.vmem [#allocation4], %s4154_s23  ;;  %s6437_s22 = smov (!%p3385_p7, %s3390_s22), %s4237_s15 }
 0x18b   : > { %1856 = vmatpush.msra.mxu0 %v1600_v40  ;;  %1876 = vmatpush.msra.mxu1 %v1664_v41  ;;  %v1256_v45 = vpop.f32.mrf.mxu0  ;;  %v1656_v49 = vld [vmem:[%s5129_s7 + $0x260] sm:$0xff]  ;;  %v1633_v20 = vld [vmem:[%s5129_s7 + $0x1a8] sm:$0xff]  ;;  %p4146_p8 = scmp.lt.s32.totalorder %s6437_s22, 0  ;;  %s3396_s23 = sadd.s32 6, %s6437_s22 }
 0x18c   : > { %1898 = vmatpush.msra.mxu2 %v1720_v42  ;;  %1917 = vmatpush.msra.mxu3 %v1788_v27  ;;  %v1276_v48 = vpop.f32.mrf.mxu1  ;;  %v1296_v29 = vpop.f32.mrf.mxu2  ;;  %v1712_v52 = vld [vmem:[%s5129_s7 + $0x420] sm:$0xff]  ;;  %v1697_v21 = vld [vmem:[%s5129_s7 + $0x3a8] sm:$0xff] }
 0x18d   : > { %1857 = vmatpush.msra.mxu0 %v1596_v43  ;;  %1877 = vmatpush.msra.mxu1 %v1660_v44  ;;  %v1277_v1 = vadd.f32 %v1276_v48, %v1256_v45  ;;  %v1780_v53 = vld [vmem:[%s5129_s7 + $0x640] sm:$0xff]  ;;  %v1753_v22 = vld [vmem:[%s5129_s7 + $0x568] sm:$0xff]  ;;  %s6439_s23 = smov (!%p4146_p8, %s3396_s23), %s6437_s22 }
 0x18e   : > { %1899 = vmatpush.msra.mxu2 %v1716_v28  ;;  %1918 = vmatpush.msra.mxu3 %v1784_v46  ;;  %v1588_v54 = vld [vmem:[%s5129_s7 + $0x40] sm:$0xff]  ;;  %v1821_v23 = vld [vmem:[%s5129_s7 + $0x788] sm:$0xff] }
 0x18f   : > { %1858 = vmatpush.msra.mxu0 %v1592_v47  ;;  %1878 = vmatpush.msra.mxu1 %v1656_v49  ;;  %v1652_v55 = vld [vmem:[%s5129_s7 + $0x240] sm:$0xff]  ;;  %v1297_v57 = vadd.f32 %v1296_v29, %v1277_v1  ;;  %v1316_v58 = vpop.f32.mrf.mxu3  ;;  %v1629_v24 = vld [vmem:[%s5129_s7 + $0x188] sm:$0xff] }
 0x190   : > { %1900 = vmatpush.msra.mxu2 %v1712_v52  ;;  %1919 = vmatpush.msra.mxu3 %v1780_v53  ;;  %v1708_v56 = vld [vmem:[%s5129_s7 + $0x400] sm:$0xff]  ;;  %v1693_v25 = vld [vmem:[%s5129_s7 + $0x388] sm:$0xff] }
 0x191   : > { %1859 = vmatpush.msra.mxu0 %v1588_v54  ;;  %1879 = vmatpush.msra.mxu1 %v1652_v55  ;;  %v1776_v60 = vld [vmem:[%s5129_s7 + $0x620] sm:$0xff]  ;;  %v1317_v4 = vadd.f32 %v1316_v58, %v1297_v57  ;;  %v1749_v26 = vld [vmem:[%s5129_s7 + $0x548] sm:$0xff] }
 0x192   : > { %1901 = vmatpush.msra.mxu2 %v1708_v56  ;;  %1920 = vmatpush.msra.mxu3 %v1776_v60  ;;  %v1584_v3 = vld [vmem:[%s5129_s7 + $0x20] sm:$0xff]  ;;  %v1817_v31 = vld [vmem:[%s5129_s7 + $0x768] sm:$0xff] }
 0x193   : > { %1902 = vmatmul.f32.vlgmr.msra.gmra.mxu2 %v5151_v63  ;;  %1860 = vmatpush.msra.mxu0 %v1584_v3  ;;  %v1648_v5 = vld [vmem:[%s5129_s7 + $0x220] sm:$0xff]  ;;  %v5229_v59 = vadd.f32 %v1317_v4, %v952_v61  ;;  %v1625_v32 = vld [vmem:[%s5129_s7 + $0x168] sm:$0xff] }
 0x194   : > { %1966 = vmatpush.msrb.mxu2 %v1769_v2  ;;  %v1772_v6 = vld [vmem:[%s5129_s7 + $0x600] sm:$0xff]  ;;  %1880 = vmatpush.msra.mxu1 %v1648_v5  ;;  %v1689_v33 = vld [vmem:[%s5129_s7 + $0x368] sm:$0xff] }
 0x195   : > { %1921 = vmatpush.msra.mxu3 %v1772_v6  ;;  %v1580_v9 = vld [vmem:[%s5129_s7] sm:$0xff]  ;;  %v1745_v34 = vld [vmem:[%s5129_s7 + $0x528] sm:$0xff] }
 0x196   : > { %1922 = vmatmul.f32.vlgmr.msra.gmra.mxu3 %v5153_v50  ;;  %1967 = vmatpush.msrb.mxu2 %v1765_v7  ;;  %v1644_v11 = vld [vmem:[%s5129_s7 + $0x200] sm:$0xff]  ;;  %v1813_v35 = vld [vmem:[%s5129_s7 + $0x748] sm:$0xff] }
 0x197   : > { %1986 = vmatpush.msrb.mxu3 %v1833_v8  ;;  %1861 = vmatpush.msra.mxu0 %v1580_v9  ;;  %v1621_v36 = vld [vmem:[%s5129_s7 + $0x148] sm:$0xff]  ;;  %v338_v8 = vperm.slane %v5206_v62, 1 }
 0x198   : > { %1881 = vmatpush.msra.mxu1 %v1644_v11  ;;  %1862 = vmatmul.f32.vlgmr.msra.gmra.mxu0 %v5155_v51  ;;  %v1685_v39 = vld [vmem:[%s5129_s7 + $0x348] sm:$0xff] }
 0x199   : > { %1882 = vmatmul.f32.vlgmr.msra.gmra.mxu1 %v5157_v0  ;;  %1926 = vmatpush.msrb.mxu0 %v1641_v12  ;;  %v1741_v40 = vld [vmem:[%s5129_s7 + $0x508] sm:$0xff] }
 0x19a   : > { %1946 = vmatpush.msrb.mxu1 %v1705_v13  ;;  %1968 = vmatpush.msrb.mxu2 %v1761_v14  ;;  %v1809_v41 = vld [vmem:[%s5129_s7 + $0x728] sm:$0xff] }
 0x19b   : > { %1987 = vmatpush.msrb.mxu3 %v1829_v15  ;;  %1927 = vmatpush.msrb.mxu0 %v1637_v16  ;;  %v1617_v42 = vld [vmem:[%s5129_s7 + $0x128] sm:$0xff] }
 0x19c   : > { %1947 = vmatpush.msrb.mxu1 %v1701_v17  ;;  %1969 = vmatpush.msrb.mxu2 %v1757_v18  ;;  %v1681_v27 = vld [vmem:[%s5129_s7 + $0x328] sm:$0xff] }
 0x19d   : > { %1988 = vmatpush.msrb.mxu3 %v1825_v19  ;;  %1928 = vmatpush.msrb.mxu0 %v1633_v20  ;;  %v1737_v43 = vld [vmem:[%s5129_s7 + $0x4e8] sm:$0xff]  ;;  %v953_v20 = vadd.f32 %v5040_v10, %v338_v8  ;;  %v1730_v8 = vld [vmem:[%s5129_s7 + $0x4b0] sm:$0xff] }
 0x19e   : > { %1948 = vmatpush.msrb.mxu1 %v1697_v21  ;;  %1970 = vmatpush.msrb.mxu2 %v1753_v22  ;;  %v1805_v44 = vld [vmem:[%s5129_s7 + $0x708] sm:$0xff]  ;;  %v1770_v21 = vld [vmem:[%s5129_s7 + $0x5f0] sm:$0xff] }
 0x19f   : > { %1989 = vmatpush.msrb.mxu3 %v1821_v23  ;;  %1929 = vmatpush.msrb.mxu0 %v1629_v24  ;;  %v1613_v28 = vld [vmem:[%s5129_s7 + $0x108] sm:$0xff] }
 0x1a0   : > { %1949 = vmatpush.msrb.mxu1 %v1693_v25  ;;  %1971 = vmatpush.msrb.mxu2 %v1749_v26  ;;  %v1677_v45 = vld [vmem:[%s5129_s7 + $0x308] sm:$0xff]  ;;  %v1766_v26 = vld [vmem:[%s5129_s7 + $0x5d0] sm:$0xff] }
 0x1a1   : > { %1990 = vmatpush.msrb.mxu3 %v1817_v31  ;;  %1930 = vmatpush.msrb.mxu0 %v1625_v32  ;;  %v1733_v46 = vld [vmem:[%s5129_s7 + $0x4c8] sm:$0xff]  ;;  %v1834_v31 = vld [vmem:[%s5129_s7 + $0x7f0] sm:$0xff] }
 0x1a2   : > { %1950 = vmatpush.msrb.mxu1 %v1689_v33  ;;  %1972 = vmatpush.msrb.mxu2 %v1745_v34  ;;  %v1801_v47 = vld [vmem:[%s5129_s7 + $0x6e8] sm:$0xff]  ;;  %v1642_v34 = vld [vmem:[%s5129_s7 + $0x1f0] sm:$0xff] }
 0x1a3   : > { %1991 = vmatpush.msrb.mxu3 %v1813_v35  ;;  %1931 = vmatpush.msrb.mxu0 %v1621_v36  ;;  %v1609_v48 = vld [vmem:[%s5129_s7 + $0xe8] sm:$0xff]  ;;  %v1706_v35 = vld [vmem:[%s5129_s7 + $0x3f0] sm:$0xff] }
 0x1a4   : > { %1951 = vmatpush.msrb.mxu1 %v1685_v39  ;;  %1973 = vmatpush.msrb.mxu2 %v1741_v40  ;;  %v1673_v29 = vld [vmem:[%s5129_s7 + $0x2e8] sm:$0xff]  ;;  %v1762_v36 = vld [vmem:[%s5129_s7 + $0x5b0] sm:$0xff] }
 0x1a5   : > { %1992 = vmatpush.msrb.mxu3 %v1809_v41  ;;  %1932 = vmatpush.msrb.mxu0 %v1617_v42  ;;  %v1729_v30 = vld [vmem:[%s5129_s7 + $0x4a8] sm:$0xff]  ;;  %v1830_v39 = vld [vmem:[%s5129_s7 + $0x7d0] sm:$0xff] }
 0x1a6   : > { %1952 = vmatpush.msrb.mxu1 %v1681_v27  ;;  %1974 = vmatpush.msrb.mxu2 %v1737_v43  ;;  %v1797_v49 = vld [vmem:[%s5129_s7 + $0x6c8] sm:$0xff]  ;;  %v1638_v40 = vld [vmem:[%s5129_s7 + $0x1d0] sm:$0xff] }
 0x1a7   : > { %1993 = vmatpush.msrb.mxu3 %v1805_v44  ;;  %1933 = vmatpush.msrb.mxu0 %v1613_v28  ;;  %v1605_v52 = vld [vmem:[%s5129_s7 + $0xc8] sm:$0xff]  ;;  %v1702_v41 = vld [vmem:[%s5129_s7 + $0x3d0] sm:$0xff] }
 0x1a8   : > { %1953 = vmatpush.msrb.mxu1 %v1677_v45  ;;  %1975 = vmatpush.msrb.mxu2 %v1733_v46  ;;  %v1669_v1 = vld [vmem:[%s5129_s7 + $0x2c8] sm:$0xff]  ;;  %v1758_v42 = vld [vmem:[%s5129_s7 + $0x590] sm:$0xff] }
 0x1a9   : > { %1994 = vmatpush.msrb.mxu3 %v1801_v47  ;;  %1934 = vmatpush.msrb.mxu0 %v1609_v48  ;;  %v1725_v53 = vld [vmem:[%s5129_s7 + $0x488] sm:$0xff]  ;;  %v1826_v27 = vld [vmem:[%s5129_s7 + $0x7b0] sm:$0xff] }
 0x1aa   : > { %1954 = vmatpush.msrb.mxu1 %v1673_v29  ;;  %1976 = vmatpush.msrb.mxu2 %v1729_v30  ;;  %v1793_v54 = vld [vmem:[%s5129_s7 + $0x6a8] sm:$0xff]  ;;  %v1634_v43 = vld [vmem:[%s5129_s7 + $0x1b0] sm:$0xff] }
 0x1ab   : > { %1995 = vmatpush.msrb.mxu3 %v1797_v49  ;;  %1935 = vmatpush.msrb.mxu0 %v1605_v52  ;;  %v1601_v55 = vld [vmem:[%s5129_s7 + $0xa8] sm:$0xff]  ;;  %v1698_v44 = vld [vmem:[%s5129_s7 + $0x3b0] sm:$0xff] }
 0x1ac   : > { %1955 = vmatpush.msrb.mxu1 %v1669_v1  ;;  %1977 = vmatpush.msrb.mxu2 %v1725_v53  ;;  %v1665_v56 = vld [vmem:[%s5129_s7 + $0x2a8] sm:$0xff]  ;;  %v1754_v28 = vld [vmem:[%s5129_s7 + $0x570] sm:$0xff] }
 0x1ad   : > { %1996 = vmatpush.msrb.mxu3 %v1793_v54  ;;  %1936 = vmatpush.msrb.mxu0 %v1601_v55  ;;  %v1721_v57 = vld [vmem:[%s5129_s7 + $0x468] sm:$0xff]  ;;  %v1336_v3 = vpop.f32.mrf.mxu0  ;;  %v1822_v45 = vld [vmem:[%s5129_s7 + $0x790] sm:$0xff] }
 0x1ae   : > { %1956 = vmatpush.msrb.mxu1 %v1665_v56  ;;  %1978 = vmatpush.msrb.mxu2 %v1721_v57  ;;  %v1789_v58 = vld [vmem:[%s5129_s7 + $0x688] sm:$0xff]  ;;  %v1356_v6 = vpop.f32.mrf.mxu1  ;;  %v1376_v7 = vpop.f32.mrf.mxu2  ;;  %v1630_v46 = vld [vmem:[%s5129_s7 + $0x190] sm:$0xff] }
 0x1af   : > { %v1597_v60 = vld [vmem:[%s5129_s7 + $0x88] sm:$0xff]  ;;  %1997 = vmatpush.msrb.mxu3 %v1789_v58  ;;  %v1357_v12 = vadd.f32 %v1356_v6, %v1336_v3  ;;  %v1694_v47 = vld [vmem:[%s5129_s7 + $0x390] sm:$0xff] }
 0x1b0   : > { %1937 = vmatpush.msrb.mxu0 %v1597_v60  ;;  %v1661_v61 = vld [vmem:[%s5129_s7 + $0x288] sm:$0xff]  ;;  %v1750_v48 = vld [vmem:[%s5129_s7 + $0x550] sm:$0xff] }
 0x1b1   : > { %v1717_v2 = vld [vmem:[%s5129_s7 + $0x448] sm:$0xff]  ;;  %1957 = vmatpush.msrb.mxu1 %v1661_v61  ;;  %v1377_v17 = vadd.f32 %v1376_v7, %v1357_v12  ;;  %v1396_v18 = vpop.f32.mrf.mxu3  ;;  %v1818_v29 = vld [vmem:[%s5129_s7 + $0x770] sm:$0xff] }
 0x1b2   : > { %1979 = vmatpush.msrb.mxu2 %v1717_v2  ;;  %v1785_v4 = vld [vmem:[%s5129_s7 + $0x668] sm:$0xff]  ;;  %v1626_v30 = vld [vmem:[%s5129_s7 + $0x170] sm:$0xff] }
 0x1b3   : > { %v1593_v5 = vld [vmem:[%s5129_s7 + $0x68] sm:$0xff]  ;;  %1998 = vmatpush.msrb.mxu3 %v1785_v4  ;;  %v1397_v23 = vadd.f32 %v1396_v18, %v1377_v17  ;;  %v1690_v49 = vld [vmem:[%s5129_s7 + $0x370] sm:$0xff] }
 0x1b4   : > { %1938 = vmatpush.msrb.mxu0 %v1593_v5  ;;  %v1657_v9 = vld [vmem:[%s5129_s7 + $0x268] sm:$0xff]  ;;  %v1746_v52 = vld [vmem:[%s5129_s7 + $0x530] sm:$0xff] }
 0x1b5   : > { %v1713_v11 = vld [vmem:[%s5129_s7 + $0x428] sm:$0xff]  ;;  %1958 = vmatpush.msrb.mxu1 %v1657_v9  ;;  %v5301_v10 = vadd.f32 %v1397_v23, %v953_v20  ;;  %v1814_v1 = vld [vmem:[%s5129_s7 + $0x750] sm:$0xff] }
 0x1b6   : > { %1980 = vmatpush.msrb.mxu2 %v1713_v11  ;;  %v1781_v13 = vld [vmem:[%s5129_s7 + $0x648] sm:$0xff]  ;;  %v1622_v53 = vld [vmem:[%s5129_s7 + $0x150] sm:$0xff] }
 0x1b7   : > { %v1589_v14 = vld [vmem:[%s5129_s7 + $0x48] sm:$0xff]  ;;  %1999 = vmatpush.msrb.mxu3 %v1781_v13  ;;  %v1686_v54 = vld [vmem:[%s5129_s7 + $0x350] sm:$0xff] }
 0x1b8   : > { %1939 = vmatpush.msrb.mxu0 %v1589_v14  ;;  %v1653_v15 = vld [vmem:[%s5129_s7 + $0x248] sm:$0xff]  ;;  %v1742_v55 = vld [vmem:[%s5129_s7 + $0x510] sm:$0xff] }
 0x1b9   : > { %v1709_v16 = vld [vmem:[%s5129_s7 + $0x408] sm:$0xff]  ;;  %1959 = vmatpush.msrb.mxu1 %v1653_v15  ;;  %v1810_v56 = vld [vmem:[%s5129_s7 + $0x730] sm:$0xff] }
 0x1ba   : > { %1981 = vmatpush.msrb.mxu2 %v1709_v16  ;;  %v1777_v19 = vld [vmem:[%s5129_s7 + $0x628] sm:$0xff]  ;;  %v1618_v57 = vld [vmem:[%s5129_s7 + $0x130] sm:$0xff] }
 0x1bb   : > { %2000 = vmatpush.msrb.mxu3 %v1777_v19  ;;  %1982 = vmatmul.f32.vlgmr.msrb.gmra.mxu2 %v5151_v63  ;;  %v1585_v22 = vld [vmem:[%s5129_s7 + $0x28] sm:$0xff]  ;;  %v1682_v58 = vld [vmem:[%s5129_s7 + $0x330] sm:$0xff] }
 0x1bc   : > { %2046 = vmatpush.msra.mxu2 %v1770_v21  ;;  %1940 = vmatpush.msrb.mxu0 %v1585_v22  ;;  %v1649_v24 = vld [vmem:[%s5129_s7 + $0x228] sm:$0xff]  ;;  %v1738_v60 = vld [vmem:[%s5129_s7 + $0x4f0] sm:$0xff] }
 0x1bd   : > { %v1773_v25 = vld [vmem:[%s5129_s7 + $0x608] sm:$0xff]  ;;  %1960 = vmatpush.msrb.mxu1 %v1649_v24  ;;  %v1806_v61 = vld [vmem:[%s5129_s7 + $0x710] sm:$0xff] }
 0x1be   : > { %2001 = vmatpush.msrb.mxu3 %v1773_v25  ;;  %2047 = vmatpush.msra.mxu2 %v1766_v26  ;;  %v1581_v32 = vld [vmem:[%s5129_s7 + $0x8] sm:$0xff]  ;;  %v1614_v2 = vld [vmem:[%s5129_s7 + $0x110] sm:$0xff] }
 0x1bf   : > { %2002 = vmatmul.f32.vlgmr.msrb.gmra.mxu3 %v5153_v50  ;;  %1941 = vmatpush.msrb.mxu0 %v1581_v32  ;;  %v1645_v33 = vld [vmem:[%s5129_s7 + $0x208] sm:$0xff]  ;;  %v1678_v3 = vld [vmem:[%s5129_s7 + $0x310] sm:$0xff] }
 0x1c0   : > { %2066 = vmatpush.msra.mxu3 %v1834_v31  ;;  %1961 = vmatpush.msrb.mxu1 %v1645_v33  ;;  %v1734_v4 = vld [vmem:[%s5129_s7 + $0x4d0] sm:$0xff]  ;;  %v339_v31 = vperm.slane %v5206_v62, 2 }
 0x1c1   : > { %1942 = vmatmul.f32.vlgmr.msrb.gmra.mxu0 %v5155_v51  ;;  %1962 = vmatmul.f32.vlgmr.msrb.gmra.mxu1 %v5157_v0  ;;  %v1802_v5 = vld [vmem:[%s5129_s7 + $0x6f0] sm:$0xff] }
 0x1c2   : > { %2006 = vmatpush.msra.mxu0 %v1642_v34  ;;  %2026 = vmatpush.msra.mxu1 %v1706_v35  ;;  %v1610_v6 = vld [vmem:[%s5129_s7 + $0xf0] sm:$0xff] }
 0x1c3   : > { %2048 = vmatpush.msra.mxu2 %v1762_v36  ;;  %2067 = vmatpush.msra.mxu3 %v1830_v39  ;;  %v1674_v7 = vld [vmem:[%s5129_s7 + $0x2f0] sm:$0xff] }
 0x1c4   : > { %2007 = vmatpush.msra.mxu0 %v1638_v40  ;;  %2027 = vmatpush.msra.mxu1 %v1702_v41  ;;  %v1798_v9 = vld [vmem:[%s5129_s7 + $0x6d0] sm:$0xff] }
 0x1c5   : > { %2049 = vmatpush.msra.mxu2 %v1758_v42  ;;  %2068 = vmatpush.msra.mxu3 %v1826_v27  ;;  %v1606_v11 = vld [vmem:[%s5129_s7 + $0xd0] sm:$0xff] }
 0x1c6   : > { %2008 = vmatpush.msra.mxu0 %v1634_v43  ;;  %2028 = vmatpush.msra.mxu1 %v1698_v44  ;;  %v1670_v12 = vld [vmem:[%s5129_s7 + $0x2d0] sm:$0xff]  ;;  %v954_v43 = vadd.f32 %v5125_v37, %v339_v31  ;;  %v1771_v44 = vld [vmem:[%s5129_s7 + $0x5f8] sm:$0xff] }
 0x1c7   : > { %2050 = vmatpush.msra.mxu2 %v1754_v28  ;;  %2069 = vmatpush.msra.mxu3 %v1822_v45  ;;  %v1726_v13 = vld [vmem:[%s5129_s7 + $0x490] sm:$0xff]  ;;  %v1675_v31 = vld [vmem:[%s5129_s7 + $0x2f8] sm:$0xff] }
 0x1c8   : > { %2009 = vmatpush.msra.mxu0 %v1630_v46  ;;  %2029 = vmatpush.msra.mxu1 %v1694_v47  ;;  %v1794_v14 = vld [vmem:[%s5129_s7 + $0x6b0] sm:$0xff] }
 0x1c9   : > { %2051 = vmatpush.msra.mxu2 %v1750_v48  ;;  %2070 = vmatpush.msra.mxu3 %v1818_v29  ;;  %v1602_v15 = vld [vmem:[%s5129_s7 + $0xb0] sm:$0xff]  ;;  %v1767_v48 = vld [vmem:[%s5129_s7 + $0x5d8] sm:$0xff] }
 0x1ca   : > { %2010 = vmatpush.msra.mxu0 %v1626_v30  ;;  %2030 = vmatpush.msra.mxu1 %v1690_v49  ;;  %v1666_v16 = vld [vmem:[%s5129_s7 + $0x2b0] sm:$0xff]  ;;  %v1835_v29 = vld [vmem:[%s5129_s7 + $0x7f8] sm:$0xff] }
 0x1cb   : > { %2052 = vmatpush.msra.mxu2 %v1746_v52  ;;  %2071 = vmatpush.msra.mxu3 %v1814_v1  ;;  %v1722_v17 = vld [vmem:[%s5129_s7 + $0x470] sm:$0xff]  ;;  %v1643_v52 = vld [vmem:[%s5129_s7 + $0x1f8] sm:$0xff] }
 0x1cc   : > { %2011 = vmatpush.msra.mxu0 %v1622_v53  ;;  %2031 = vmatpush.msra.mxu1 %v1686_v54  ;;  %v1790_v18 = vld [vmem:[%s5129_s7 + $0x690] sm:$0xff]  ;;  %v1707_v1 = vld [vmem:[%s5129_s7 + $0x3f8] sm:$0xff] }
 0x1cd   : > { %2053 = vmatpush.msra.mxu2 %v1742_v55  ;;  %2072 = vmatpush.msra.mxu3 %v1810_v56  ;;  %v1598_v19 = vld [vmem:[%s5129_s7 + $0x90] sm:$0xff]  ;;  %v1763_v53 = vld [vmem:[%s5129_s7 + $0x5b8] sm:$0xff] }
 0x1ce   : > { %2012 = vmatpush.msra.mxu0 %v1618_v57  ;;  %2032 = vmatpush.msra.mxu1 %v1682_v58  ;;  %v1662_v20 = vld [vmem:[%s5129_s7 + $0x290] sm:$0xff]  ;;  %v1831_v54 = vld [vmem:[%s5129_s7 + $0x7d8] sm:$0xff] }
 0x1cf   : > { %2054 = vmatpush.msra.mxu2 %v1738_v60  ;;  %2073 = vmatpush.msra.mxu3 %v1806_v61  ;;  %v1718_v21 = vld [vmem:[%s5129_s7 + $0x450] sm:$0xff]  ;;  %v1639_v55 = vld [vmem:[%s5129_s7 + $0x1d8] sm:$0xff] }
 0x1d0   : > { %2013 = vmatpush.msra.mxu0 %v1614_v2  ;;  %2033 = vmatpush.msra.mxu1 %v1678_v3  ;;  %v1416_v22 = vpop.f32.mrf.mxu0  ;;  %v1786_v23 = vld [vmem:[%s5129_s7 + $0x670] sm:$0xff]  ;;  %v1436_v25 = vpop.f32.mrf.mxu1  ;;  %v1703_v56 = vld [vmem:[%s5129_s7 + $0x3d8] sm:$0xff] }
 0x1d1   : > { %2055 = vmatpush.msra.mxu2 %v1734_v4  ;;  %2074 = vmatpush.msra.mxu3 %v1802_v5  ;;  %v1594_v24 = vld [vmem:[%s5129_s7 + $0x70] sm:$0xff]  ;;  %v1456_v26 = vpop.f32.mrf.mxu2  ;;  %v1437_v34 = vadd.f32 %v1436_v25, %v1416_v22  ;;  %v1759_v57 = vld [vmem:[%s5129_s7 + $0x598] sm:$0xff] }
 0x1d2   : > { %2014 = vmatpush.msra.mxu0 %v1610_v6  ;;  %2034 = vmatpush.msra.mxu1 %v1674_v7  ;;  %v1658_v32 = vld [vmem:[%s5129_s7 + $0x270] sm:$0xff]  ;;  %v1827_v58 = vld [vmem:[%s5129_s7 + $0x7b8] sm:$0xff] }
 0x1d3   : > { %2056 = vmatpush.msra.mxu2 %v1730_v8  ;;  %2075 = vmatpush.msra.mxu3 %v1798_v9  ;;  %v1714_v33 = vld [vmem:[%s5129_s7 + $0x430] sm:$0xff]  ;;  %v1457_v41 = vadd.f32 %v1456_v26, %v1437_v34  ;;  %v1635_v60 = vld [vmem:[%s5129_s7 + $0x1b8] sm:$0xff] }
 0x1d4   : > { %2015 = vmatpush.msra.mxu0 %v1606_v11  ;;  %2035 = vmatpush.msra.mxu1 %v1670_v12  ;;  %v1782_v35 = vld [vmem:[%s5129_s7 + $0x650] sm:$0xff]  ;;  %v1476_v42 = vpop.f32.mrf.mxu3  ;;  %v1699_v61 = vld [vmem:[%s5129_s7 + $0x3b8] sm:$0xff] }
 0x1d5   : > { %2057 = vmatpush.msra.mxu2 %v1726_v13  ;;  %2076 = vmatpush.msra.mxu3 %v1794_v14  ;;  %v1590_v36 = vld [vmem:[%s5129_s7 + $0x50] sm:$0xff]  ;;  %v1477_v45 = vadd.f32 %v1476_v42, %v1457_v41  ;;  %v1755_v2 = vld [vmem:[%s5129_s7 + $0x578] sm:$0xff] }
 0x1d6   : > { %2016 = vmatpush.msra.mxu0 %v1602_v15  ;;  %2036 = vmatpush.msra.mxu1 %v1666_v16  ;;  %v1654_v39 = vld [vmem:[%s5129_s7 + $0x250] sm:$0xff]  ;;  %v1823_v3 = vld [vmem:[%s5129_s7 + $0x798] sm:$0xff] }
 0x1d7   : > { %2058 = vmatpush.msra.mxu2 %v1722_v17  ;;  %2077 = vmatpush.msra.mxu3 %v1790_v18  ;;  %v1710_v40 = vld [vmem:[%s5129_s7 + $0x410] sm:$0xff]  ;;  %v5373_v37 = vadd.f32 %v1477_v45, %v954_v43  ;;  %v1631_v4 = vld [vmem:[%s5129_s7 + $0x198] sm:$0xff] }
 0x1d8   : > { %2017 = vmatpush.msra.mxu0 %v1598_v19  ;;  %2037 = vmatpush.msra.mxu1 %v1662_v20  ;;  %v1778_v27 = vld [vmem:[%s5129_s7 + $0x630] sm:$0xff]  ;;  %v1695_v5 = vld [vmem:[%s5129_s7 + $0x398] sm:$0xff] }
 0x1d9   : > { %2059 = vmatpush.msra.mxu2 %v1718_v21  ;;  %2078 = vmatpush.msra.mxu3 %v1786_v23  ;;  %v1586_v28 = vld [vmem:[%s5129_s7 + $0x30] sm:$0xff]  ;;  %v1751_v6 = vld [vmem:[%s5129_s7 + $0x558] sm:$0xff] }
 0x1da   : > { %2018 = vmatpush.msra.mxu0 %v1594_v24  ;;  %2038 = vmatpush.msra.mxu1 %v1658_v32  ;;  %v1650_v46 = vld [vmem:[%s5129_s7 + $0x230] sm:$0xff]  ;;  %v1819_v7 = vld [vmem:[%s5129_s7 + $0x778] sm:$0xff] }
 0x1db   : > { %2060 = vmatpush.msra.mxu2 %v1714_v33  ;;  %2079 = vmatpush.msra.mxu3 %v1782_v35  ;;  %v1774_v47 = vld [vmem:[%s5129_s7 + $0x610] sm:$0xff]  ;;  %v1627_v8 = vld [vmem:[%s5129_s7 + $0x178] sm:$0xff] }
 0x1dc   : > { %2019 = vmatpush.msra.mxu0 %v1590_v36  ;;  %2039 = vmatpush.msra.mxu1 %v1654_v39  ;;  %v1582_v30 = vld [vmem:[%s5129_s7 + $0x10] sm:$0xff]  ;;  %v1691_v9 = vld [vmem:[%s5129_s7 + $0x378] sm:$0xff] }
 0x1dd   : > { %2061 = vmatpush.msra.mxu2 %v1710_v40  ;;  %2080 = vmatpush.msra.mxu3 %v1778_v27  ;;  %v1646_v49 = vld [vmem:[%s5129_s7 + $0x210] sm:$0xff]  ;;  %v1747_v11 = vld [vmem:[%s5129_s7 + $0x538] sm:$0xff] }
 0x1de   : > { %2062 = vmatmul.f32.vlgmr.msra.gmra.mxu2 %v5151_v63  ;;  %2020 = vmatpush.msra.mxu0 %v1586_v28  ;;  %v1815_v12 = vld [vmem:[%s5129_s7 + $0x758] sm:$0xff] }
 0x1df   : > { %2126 = vmatpush.msrb.mxu2 %v1771_v44  ;;  %2040 = vmatpush.msra.mxu1 %v1650_v46  ;;  %v1623_v13 = vld [vmem:[%s5129_s7 + $0x158] sm:$0xff] }
 0x1e0   : > { %2081 = vmatpush.msra.mxu3 %v1774_v47  ;;  %2021 = vmatpush.msra.mxu0 %v1582_v30  ;;  %v1687_v14 = vld [vmem:[%s5129_s7 + $0x358] sm:$0xff] }
 0x1e1   : > { %2082 = vmatmul.f32.vlgmr.msra.gmra.mxu3 %v5153_v50  ;;  %2127 = vmatpush.msrb.mxu2 %v1767_v48  ;;  %v1743_v15 = vld [vmem:[%s5129_s7 + $0x518] sm:$0xff] }
 0x1e2   : > { %2146 = vmatpush.msrb.mxu3 %v1835_v29  ;;  %2041 = vmatpush.msra.mxu1 %v1646_v49  ;;  %v1811_v16 = vld [vmem:[%s5129_s7 + $0x738] sm:$0xff] }
 0x1e3   : > { %2022 = vmatmul.f32.vlgmr.msra.gmra.mxu0 %v5155_v51  ;;  %2042 = vmatmul.f32.vlgmr.msra.gmra.mxu1 %v5157_v0  ;;  %v1619_v17 = vld [vmem:[%s5129_s7 + $0x138] sm:$0xff] }
 0x1e4   : > { %2086 = vmatpush.msrb.mxu0 %v1643_v52  ;;  %2106 = vmatpush.msrb.mxu1 %v1707_v1  ;;  %v1683_v18 = vld [vmem:[%s5129_s7 + $0x338] sm:$0xff] }
 0x1e5   : > { %2128 = vmatpush.msrb.mxu2 %v1763_v53  ;;  %2147 = vmatpush.msrb.mxu3 %v1831_v54  ;;  %v1739_v19 = vld [vmem:[%s5129_s7 + $0x4f8] sm:$0xff] }
 0x1e6   : > { %2087 = vmatpush.msrb.mxu0 %v1639_v55  ;;  %2107 = vmatpush.msrb.mxu1 %v1703_v56  ;;  %v1807_v20 = vld [vmem:[%s5129_s7 + $0x718] sm:$0xff]  ;;  %v340_v56 = vperm.slane %v5206_v62, 3 }
 0x1e7   : > { %2129 = vmatpush.msrb.mxu2 %v1759_v57  ;;  %2148 = vmatpush.msrb.mxu3 %v1827_v58  ;;  %v1615_v21 = vld [vmem:[%s5129_s7 + $0x118] sm:$0xff] }
 0x1e8   : > { %2088 = vmatpush.msrb.mxu0 %v1635_v60  ;;  %2108 = vmatpush.msrb.mxu1 %v1699_v61  ;;  %v1679_v22 = vld [vmem:[%s5129_s7 + $0x318] sm:$0xff] }
 0x1e9   : > { %2130 = vmatpush.msrb.mxu2 %v1755_v2  ;;  %2149 = vmatpush.msrb.mxu3 %v1823_v3  ;;  %v1735_v23 = vld [vmem:[%s5129_s7 + $0x4d8] sm:$0xff] }
 0x1ea   : > { %2089 = vmatpush.msrb.mxu0 %v1631_v4  ;;  %2109 = vmatpush.msrb.mxu1 %v1695_v5  ;;  %v256_v24 = vld [vmem:[#allocation2 + $0x10] sm:$0xff] }
 0x1eb   : > { %2131 = vmatpush.msrb.mxu2 %v1751_v6  ;;  %2150 = vmatpush.msrb.mxu3 %v1819_v7  ;;  %v1803_v25 = vld [vmem:[%s5129_s7 + $0x6f8] sm:$0xff]  ;;  %v277_v35 = vperm.slane %v256_v24, 1  ;;  %v278_v36 = vperm.slane %v256_v24, 2  ;;  %v279_v39 = vperm.slane %v256_v24, 3  ;;  %v276_v28 = vperm.slane %v256_v24, 0  ;;  %v2367_v24 = vld [vmem:[%s5457_s25 + $0x5a0] sm:$0xff] }
 0x1ec   : > { %2090 = vmatpush.msrb.mxu0 %v1627_v8  ;;  %2110 = vmatpush.msrb.mxu1 %v1691_v9  ;;  %v1611_v26 = vld [vmem:[%s5129_s7 + $0xf8] sm:$0xff]  ;;  %v955_v9 = vadd.f32 %v5198_v38, %v340_v56  ;;  %v2339_v56 = vld [vmem:[%s5457_s25 + $0x4c0] sm:$0xff] }
 0x1ed   : > { %2132 = vmatpush.msrb.mxu2 %v1747_v11  ;;  %2151 = vmatpush.msrb.mxu3 %v1815_v12  ;;  %v1731_v32 = vld [vmem:[%s5129_s7 + $0x4b8] sm:$0xff]  ;;  %v296_v47 = vrot.slane %v277_v35, 6  ;;  %v297_v48 = vrot.slane %v278_v36, 4  ;;  %v298_v29 = vrot.slane %v279_v39, 2  ;;  %v2375_v11 = vld [vmem:[%s5457_s25 + $0x5e0] sm:$0xff] }
 0x1ee   : > { %2091 = vmatpush.msrb.mxu0 %v1623_v13  ;;  %2111 = vmatpush.msrb.mxu1 %v1687_v14  ;;  %v1799_v33 = vld [vmem:[%s5129_s7 + $0x6d8] sm:$0xff]  ;;  %v252_v14 = vld [vmem:[%s6404_s0 + $0x20] sm:$0xff] }
 0x1ef   : > { %2133 = vmatpush.msrb.mxu2 %v1743_v15  ;;  %2152 = vmatpush.msrb.mxu3 %v1811_v16  ;;  %v1607_v34 = vld [vmem:[%s5129_s7 + $0xd8] sm:$0xff]  ;;  %v317_v3 = vsel %vm302_vm0, %v276_v28, %v296_v47  ;;  %v318_v4 = vsel %vm304_vm1, %v297_v48, %v298_v29  ;;  %v2371_v16 = vld [vmem:[%s5457_s25 + $0x5c0] sm:$0xff] }
 0x1f0   : > { %2092 = vmatpush.msrb.mxu0 %v1619_v17  ;;  %2112 = vmatpush.msrb.mxu1 %v1683_v18  ;;  %v1671_v40 = vld [vmem:[%s5129_s7 + $0x2d8] sm:$0xff]  ;;  %v319_v15 = vsel %vm306_vm2, %v317_v3, %v318_v4  ;;  %v2439_v18 = vld [vmem:[%s5457_s25 + $0x7e0] sm:$0xff] }
 0x1f1   : > { %2134 = vmatpush.msrb.mxu2 %v1739_v19  ;;  %2153 = vmatpush.msrb.mxu3 %v1807_v20  ;;  %v1727_v41 = vld [vmem:[%s5129_s7 + $0x498] sm:$0xff]  ;;  %v333_v20 = vmul.f32 %v319_v15, %v252_v14  ;;  %v2239_v35 = vld [vmem:[%s5457_s25 + $0x1a0] sm:$0xff] }
 0x1f2   : > { %2093 = vmatpush.msrb.mxu0 %v1615_v21  ;;  %2113 = vmatpush.msrb.mxu1 %v1679_v22  ;;  %v1795_v42 = vld [vmem:[%s5129_s7 + $0x6b8] sm:$0xff]  ;;  %v2247_v22 = vld [vmem:[%s5457_s25 + $0x1e0] sm:$0xff] }
 0x1f3   : > { %2135 = vmatpush.msrb.mxu2 %v1735_v23  ;;  %2154 = vmatpush.msrb.mxu3 %v1803_v25  ;;  %v1603_v27 = vld [vmem:[%s5129_s7 + $0xb8] sm:$0xff]  ;;  %v1496_v52 = vpop.f32.mrf.mxu0  ;;  %v1516_v54 = vpop.f32.mrf.mxu1  ;;  %v2311_v23 = vld [vmem:[%s5457_s25 + $0x3e0] sm:$0xff] }
 0x1f4   : > { %2094 = vmatpush.msrb.mxu0 %v1611_v26  ;;  %2114 = vmatpush.msrb.mxu1 %v1675_v31  ;;  %v1667_v43 = vld [vmem:[%s5129_s7 + $0x2b8] sm:$0xff]  ;;  %v1536_v55 = vpop.f32.mrf.mxu2  ;;  %v1517_v60 = vadd.f32 %v1516_v54, %v1496_v52  ;;  %v2435_v25 = vld [vmem:[%s5457_s25 + $0x7c0] sm:$0xff] }
 0x1f5   : > { %2136 = vmatpush.msrb.mxu2 %v1731_v32  ;;  %2155 = vmatpush.msrb.mxu3 %v1799_v33  ;;  %v1723_v44 = vld [vmem:[%s5129_s7 + $0x478] sm:$0xff]  ;;  %v2243_v26 = vld [vmem:[%s5457_s25 + $0x1c0] sm:$0xff] }
 0x1f6   : > { %2095 = vmatpush.msrb.mxu0 %v1607_v34  ;;  %2115 = vmatpush.msrb.mxu1 %v1671_v40  ;;  %v1791_v45 = vld [vmem:[%s5129_s7 + $0x698] sm:$0xff]  ;;  %v1537_v6 = vadd.f32 %v1536_v55, %v1517_v60  ;;  %v5485_v32 = vld.sshfl [vmem:[#allocation1] sm:$0xff pattern:$0x73625140] }
 0x1f7   : > { %2137 = vmatpush.msrb.mxu2 %v1727_v41  ;;  %2156 = vmatpush.msrb.mxu3 %v1795_v42  ;;  %v1599_v46 = vld [vmem:[%s5129_s7 + $0x98] sm:$0xff]  ;;  %v1556_v7 = vpop.f32.mrf.mxu3  ;;  %v2307_v33 = vld [vmem:[%s5457_s25 + $0x3c0] sm:$0xff] }
 0x1f8   : > { %2096 = vmatpush.msrb.mxu0 %v1603_v27  ;;  %2116 = vmatpush.msrb.mxu1 %v1667_v43  ;;  %v1663_v30 = vld [vmem:[%s5129_s7 + $0x298] sm:$0xff]  ;;  %v1557_v13 = vadd.f32 %v1556_v7, %v1537_v6  ;;  %v2431_v34 = vld [vmem:[%s5457_s25 + $0x7a0] sm:$0xff] }
 0x1f9   : > { %2138 = vmatpush.msrb.mxu2 %v1723_v44  ;;  %2157 = vmatpush.msrb.mxu3 %v1791_v45  ;;  %v1719_v49 = vld [vmem:[%s5129_s7 + $0x458] sm:$0xff]  ;;  %v2303_v36 = vld [vmem:[%s5457_s25 + $0x3a0] sm:$0xff] }
 0x1fa   : > { %2097 = vmatpush.msrb.mxu0 %v1599_v46  ;;  %2117 = vmatpush.msrb.mxu1 %v1663_v30  ;;  %v1787_v1 = vld [vmem:[%s5129_s7 + $0x678] sm:$0xff]  ;;  %v5468_v17 = vadd.f32 %v1557_v13, %v955_v9  ;;  %v2359_v39 = vld [vmem:[%s5457_s25 + $0x560] sm:$0xff] }
 0x1fb   : > { %2139 = vmatpush.msrb.mxu2 %v1719_v49  ;;  %v1595_v53 = vld [vmem:[%s5129_s7 + $0x78] sm:$0xff]  ;;  %2158 = vmatpush.msrb.mxu3 %v1787_v1  ;;  %v2427_v40 = vld [vmem:[%s5457_s25 + $0x780] sm:$0xff] }
 0x1fc   : > { %2098 = vmatpush.msrb.mxu0 %v1595_v53  ;;  %v1659_v57 = vld [vmem:[%s5129_s7 + $0x278] sm:$0xff]  ;;  %v2235_v41 = vld [vmem:[%s5457_s25 + $0x180] sm:$0xff] }
 0x1fd   : > { %v1715_v58 = vld [vmem:[%s5129_s7 + $0x438] sm:$0xff]  ;;  %2118 = vmatpush.msrb.mxu1 %v1659_v57  ;;  %v2299_v42 = vld [vmem:[%s5457_s25 + $0x380] sm:$0xff] }
 0x1fe   : > { %2140 = vmatpush.msrb.mxu2 %v1715_v58  ;;  %v1783_v61 = vld [vmem:[%s5129_s7 + $0x658] sm:$0xff]  ;;  %v2355_v27 = vld [vmem:[%s5457_s25 + $0x540] sm:$0xff] }
 0x1ff   : > { %v1591_v2 = vld [vmem:[%s5129_s7 + $0x58] sm:$0xff]  ;;  %2159 = vmatpush.msrb.mxu3 %v1783_v61  ;;  %v2423_v43 = vld [vmem:[%s5457_s25 + $0x760] sm:$0xff] }
 0x200   : > { %2099 = vmatpush.msrb.mxu0 %v1591_v2  ;;  %v1655_v5 = vld [vmem:[%s5129_s7 + $0x258] sm:$0xff]  ;;  %v2231_v44 = vld [vmem:[%s5457_s25 + $0x160] sm:$0xff] }
 0x201   : > { %v1711_v62 = vld [vmem:[%s5129_s7 + $0x418] sm:$0xff]  ;;  %2119 = vmatpush.msrb.mxu1 %v1655_v5  ;;  %v2295_v28 = vld [vmem:[%s5457_s25 + $0x360] sm:$0xff] }
 0x202   : > { %2141 = vmatpush.msrb.mxu2 %v1711_v62  ;;  %v1779_v8 = vld [vmem:[%s5129_s7 + $0x638] sm:$0xff]  ;;  %v2351_v45 = vld [vmem:[%s5457_s25 + $0x520] sm:$0xff] }
 0x203   : > { %2160 = vmatpush.msrb.mxu3 %v1779_v8  ;;  %2142 = vmatmul.f32.vlgmr.msrb.gmra.mxu2 %v5151_v63  ;;  %v1587_v12 = vld [vmem:[%s5129_s7 + $0x38] sm:$0xff]  ;;  %v2419_v46 = vld [vmem:[%s5457_s25 + $0x740] sm:$0xff] }
 0x204   : > { %2493 = vmatpush.msra.mxu2 %v2375_v11  ;;  %2100 = vmatpush.msrb.mxu0 %v1587_v12  ;;  %v1651_v63 = vld [vmem:[%s5129_s7 + $0x238] sm:$0xff]  ;;  %v2227_v47 = vld [vmem:[%s5457_s25 + $0x140] sm:$0xff] }
 0x205   : > { %v1775_v38 = vld [vmem:[%s5129_s7 + $0x618] sm:$0xff]  ;;  %2120 = vmatpush.msrb.mxu1 %v1651_v63  ;;  %v2291_v48 = vld [vmem:[%s5457_s25 + $0x340] sm:$0xff] }
 0x206   : > { %2161 = vmatpush.msrb.mxu3 %v1775_v38  ;;  %2494 = vmatpush.msra.mxu2 %v2371_v16  ;;  %v1583_v19 = vld [vmem:[%s5129_s7 + $0x18] sm:$0xff]  ;;  %v2347_v29 = vld [vmem:[%s5457_s25 + $0x500] sm:$0xff] }
 0x207   : > { %2162 = vmatmul.f32.vlgmr.msrb.gmra.mxu3 %v5153_v50  ;;  %2101 = vmatpush.msrb.mxu0 %v1583_v19  ;;  %v1647_v21 = vld [vmem:[%s5129_s7 + $0x218] sm:$0xff]  ;;  %v5481_v50 = vld.sshfl [vmem:[#allocation1 + $0x10] sm:$0xff pattern:$0x73625140]  ;;  %v2415_v30 = vld [vmem:[%s5457_s25 + $0x720] sm:$0xff]  ;;  %s4155_s7 = sshll.u32 %s6435_s6, 11 }
 0x208   : > { %2513 = vmatpush.msra.mxu3 %v2439_v18  ;;  %2121 = vmatpush.msrb.mxu1 %v1647_v21  ;;  %v5483_v31 = vld.sshfl [vmem:[#allocation1 + $0x18] sm:$0xff pattern:$0x73625140]  ;;  %v2223_v49 = vld [vmem:[%s5457_s25 + $0x120] sm:$0xff]  ;;  %s5774_s9 = scalar_lea.vmem [#allocation4], %s4155_s7 }
 0x209   : > { %2102 = vmatmul.f32.vlgmr.msrb.gmra.mxu0 %v5155_v51  ;;  %2122 = vmatmul.f32.vlgmr.msrb.gmra.mxu1 %v5157_v0  ;;  %v5487_v51 = vld.sshfl [vmem:[#allocation1 + $0x8] sm:$0xff pattern:$0x73625140]  ;;  %v2363_v0 = vld [vmem:[%s5457_s25 + $0x580] sm:$0xff] }
 0x20a   : > { %2453 = vmatpush.msra.mxu0 %v2247_v22  ;;  %2473 = vmatpush.msra.mxu1 %v2311_v23  ;;  %3051 = vst [vmem:[#allocation1] ss:$4 sm:$0xff] %v333_v20  ;;  %v2287_v52 = vld [vmem:[%s5457_s25 + $0x320] sm:$0xff] }
 0x20b   : > { %2495 = vmatpush.msra.mxu2 %v2367_v24  ;;  %2514 = vmatpush.msra.mxu3 %v2435_v25  ;;  %v2343_v1 = vld [vmem:[%s5457_s25 + $0x4e0] sm:$0xff] }
 0x20c   : > { %2454 = vmatpush.msra.mxu0 %v2243_v26  ;;  %2474 = vmatpush.msra.mxu1 %v2307_v33  ;;  %v2411_v53 = vld [vmem:[%s5457_s25 + $0x700] sm:$0xff] }
 0x20d   : > { %2496 = vmatpush.msra.mxu2 %v2363_v0  ;;  %2515 = vmatpush.msra.mxu3 %v2431_v34  ;;  %v2219_v54 = vld [vmem:[%s5457_s25 + $0x100] sm:$0xff]  ;;  %v2376_v0 = vld [vmem:[%s5457_s25 + $0x5e8] sm:$0xff] }
 0x20e   : > { %2455 = vmatpush.msra.mxu0 %v2239_v35  ;;  %2475 = vmatpush.msra.mxu1 %v2303_v36  ;;  %v2283_v55 = vld [vmem:[%s5457_s25 + $0x300] sm:$0xff] }
 0x20f   : > { %2497 = vmatpush.msra.mxu2 %v2359_v39  ;;  %2516 = vmatpush.msra.mxu3 %v2427_v40  ;;  %v2407_v57 = vld [vmem:[%s5457_s25 + $0x6e0] sm:$0xff]  ;;  %v2372_v40 = vld [vmem:[%s5457_s25 + $0x5c8] sm:$0xff] }
 0x210   : > { %2456 = vmatpush.msra.mxu0 %v2235_v41  ;;  %2476 = vmatpush.msra.mxu1 %v2299_v42  ;;  %v2215_v58 = vld [vmem:[%s5457_s25 + $0xe0] sm:$0xff]  ;;  %v2440_v42 = vld [vmem:[%s5457_s25 + $0x7e8] sm:$0xff] }
 0x211   : > { %2498 = vmatpush.msra.mxu2 %v2355_v27  ;;  %2517 = vmatpush.msra.mxu3 %v2423_v43  ;;  %v2279_v60 = vld [vmem:[%s5457_s25 + $0x2e0] sm:$0xff] }
 0x212   : > { %2457 = vmatpush.msra.mxu0 %v2231_v44  ;;  %2477 = vmatpush.msra.mxu1 %v2295_v28  ;;  %v2335_v61 = vld [vmem:[%s5457_s25 + $0x4a0] sm:$0xff]  ;;  %v2248_v44 = vld [vmem:[%s5457_s25 + $0x1e8] sm:$0xff] }
 0x213   : > { %2499 = vmatpush.msra.mxu2 %v2351_v45  ;;  %2518 = vmatpush.msra.mxu3 %v2419_v46  ;;  %v2403_v2 = vld [vmem:[%s5457_s25 + $0x6c0] sm:$0xff]  ;;  %v2368_v28 = vld [vmem:[%s5457_s25 + $0x5a8] sm:$0xff] }
 0x214   : > { %2458 = vmatpush.msra.mxu0 %v2227_v47  ;;  %2478 = vmatpush.msra.mxu1 %v2291_v48  ;;  %v2211_v3 = vld [vmem:[%s5457_s25 + $0xc0] sm:$0xff]  ;;  %v2436_v45 = vld [vmem:[%s5457_s25 + $0x7c8] sm:$0xff] }
 0x215   : > { %2500 = vmatpush.msra.mxu2 %v2347_v29  ;;  %2519 = vmatpush.msra.mxu3 %v2415_v30  ;;  %v2275_v4 = vld [vmem:[%s5457_s25 + $0x2c0] sm:$0xff]  ;;  %v1863_v14 = vpop.f32.mrf.mxu0  ;;  %v2244_v46 = vld [vmem:[%s5457_s25 + $0x1c8] sm:$0xff] }
 0x216   : > { %2459 = vmatpush.msra.mxu0 %v2223_v49  ;;  %2479 = vmatpush.msra.mxu1 %v2287_v52  ;;  %v2331_v5 = vld [vmem:[%s5457_s25 + $0x480] sm:$0xff]  ;;  %v1883_v38 = vpop.f32.mrf.mxu1  ;;  %v1903_v16 = vpop.f32.mrf.mxu2  ;;  %v2308_v47 = vld [vmem:[%s5457_s25 + $0x3c8] sm:$0xff] }
 0x217   : > { %2501 = vmatpush.msra.mxu2 %v2343_v1  ;;  %2520 = vmatpush.msra.mxu3 %v2411_v53  ;;  %v2399_v62 = vld [vmem:[%s5457_s25 + $0x6a0] sm:$0xff]  ;;  %v1884_v20 = vadd.f32 %v1883_v38, %v1863_v14  ;;  %v2364_v48 = vld [vmem:[%s5457_s25 + $0x588] sm:$0xff] }
 0x218   : > { %2460 = vmatpush.msra.mxu0 %v2219_v54  ;;  %2480 = vmatpush.msra.mxu1 %v2283_v55  ;;  %v2207_v6 = vld [vmem:[%s5457_s25 + $0xa0] sm:$0xff]  ;;  %v2432_v29 = vld [vmem:[%s5457_s25 + $0x7a8] sm:$0xff] }
 0x219   : > { %2502 = vmatpush.msra.mxu2 %v2339_v56  ;;  %2521 = vmatpush.msra.mxu3 %v2407_v57  ;;  %v2271_v7 = vld [vmem:[%s5457_s25 + $0x2a0] sm:$0xff]  ;;  %v1904_v25 = vadd.f32 %v1903_v16, %v1884_v20  ;;  %v1923_v26 = vpop.f32.mrf.mxu3  ;;  %v2240_v30 = vld [vmem:[%s5457_s25 + $0x1a8] sm:$0xff] }
 0x21a   : > { %2461 = vmatpush.msra.mxu0 %v2215_v58  ;;  %2481 = vmatpush.msra.mxu1 %v2279_v60  ;;  %v2327_v8 = vld [vmem:[%s5457_s25 + $0x460] sm:$0xff]  ;;  %v2304_v49 = vld [vmem:[%s5457_s25 + $0x3a8] sm:$0xff] }
 0x21b   : > { %2503 = vmatpush.msra.mxu2 %v2335_v61  ;;  %2522 = vmatpush.msra.mxu3 %v2403_v2  ;;  %v2395_v9 = vld [vmem:[%s5457_s25 + $0x680] sm:$0xff]  ;;  %v1924_v35 = vadd.f32 %v1923_v26, %v1904_v25  ;;  %v2360_v52 = vld [vmem:[%s5457_s25 + $0x568] sm:$0xff] }
 0x21c   : > { %2462 = vmatpush.msra.mxu0 %v2211_v3  ;;  %2482 = vmatpush.msra.mxu1 %v2275_v4  ;;  %v2203_v11 = vld [vmem:[%s5457_s25 + $0x80] sm:$0xff]  ;;  %v2428_v1 = vld [vmem:[%s5457_s25 + $0x788] sm:$0xff] }
 0x21d   : > { %2504 = vmatpush.msra.mxu2 %v2331_v5  ;;  %2523 = vmatpush.msra.mxu3 %v2399_v62  ;;  %v2267_v12 = vld [vmem:[%s5457_s25 + $0x280] sm:$0xff]  ;;  %v5552_v41 = vadd.f32 %v1924_v35, %v5229_v59  ;;  %v2312_v59 = vld [vmem:[%s5457_s25 + $0x3e8] sm:$0xff] }
 0x21e   : > { %2463 = vmatpush.msra.mxu0 %v2207_v6  ;;  %2483 = vmatpush.msra.mxu1 %v2271_v7  ;;  %v2323_v13 = vld [vmem:[%s5457_s25 + $0x440] sm:$0xff]  ;;  %v2236_v53 = vld [vmem:[%s5457_s25 + $0x188] sm:$0xff] }
 0x21f   : > { %2505 = vmatpush.msra.mxu2 %v2327_v8  ;;  %2524 = vmatpush.msra.mxu3 %v2395_v9  ;;  %v2391_v15 = vld [vmem:[%s5457_s25 + $0x660] sm:$0xff]  ;;  %v2300_v54 = vld [vmem:[%s5457_s25 + $0x388] sm:$0xff] }
 0x220   : > { %2464 = vmatpush.msra.mxu0 %v2203_v11  ;;  %2484 = vmatpush.msra.mxu1 %v2267_v12  ;;  %v2199_v63 = vld [vmem:[%s5457_s25 + $0x60] sm:$0xff]  ;;  %v2356_v55 = vld [vmem:[%s5457_s25 + $0x548] sm:$0xff] }
 0x221   : > { %2506 = vmatpush.msra.mxu2 %v2323_v13  ;;  %2525 = vmatpush.msra.mxu3 %v2391_v15  ;;  %v2263_v18 = vld [vmem:[%s5457_s25 + $0x260] sm:$0xff]  ;;  %v2424_v56 = vld [vmem:[%s5457_s25 + $0x768] sm:$0xff] }
 0x222   : > { %2465 = vmatpush.msra.mxu0 %v2199_v63  ;;  %v2319_v19 = vld [vmem:[%s5457_s25 + $0x420] sm:$0xff]  ;;  %2485 = vmatpush.msra.mxu1 %v2263_v18  ;;  %v2232_v57 = vld [vmem:[%s5457_s25 + $0x168] sm:$0xff] }
 0x223   : > { %2507 = vmatpush.msra.mxu2 %v2319_v19  ;;  %v2387_v21 = vld [vmem:[%s5457_s25 + $0x640] sm:$0xff]  ;;  %v2296_v58 = vld [vmem:[%s5457_s25 + $0x368] sm:$0xff] }
 0x224   : > { %v2195_v22 = vld [vmem:[%s5457_s25 + $0x40] sm:$0xff]  ;;  %2526 = vmatpush.msra.mxu3 %v2387_v21  ;;  %v2352_v60 = vld [vmem:[%s5457_s25 + $0x528] sm:$0xff] }
 0x225   : > { %2466 = vmatpush.msra.mxu0 %v2195_v22  ;;  %v2259_v23 = vld [vmem:[%s5457_s25 + $0x240] sm:$0xff]  ;;  %v2420_v61 = vld [vmem:[%s5457_s25 + $0x748] sm:$0xff] }
 0x226   : > { %v2315_v24 = vld [vmem:[%s5457_s25 + $0x400] sm:$0xff]  ;;  %2486 = vmatpush.msra.mxu1 %v2259_v23  ;;  %v2228_v2 = vld [vmem:[%s5457_s25 + $0x148] sm:$0xff] }
 0x227   : > { %2508 = vmatpush.msra.mxu2 %v2315_v24  ;;  %v2383_v33 = vld [vmem:[%s5457_s25 + $0x620] sm:$0xff]  ;;  %v2292_v3 = vld [vmem:[%s5457_s25 + $0x348] sm:$0xff] }
 0x228   : > { %2527 = vmatpush.msra.mxu3 %v2383_v33  ;;  %2509 = vmatmul.f32.vlgmr.msra.gmra.mxu2 %v5481_v50  ;;  %v2191_v34 = vld [vmem:[%s5457_s25 + $0x20] sm:$0xff]  ;;  %v2348_v4 = vld [vmem:[%s5457_s25 + $0x508] sm:$0xff] }
 0x229   : > { %2573 = vmatpush.msrb.mxu2 %v2376_v0  ;;  %2467 = vmatpush.msra.mxu0 %v2191_v34  ;;  %v2255_v36 = vld [vmem:[%s5457_s25 + $0x220] sm:$0xff]  ;;  %v2416_v5 = vld [vmem:[%s5457_s25 + $0x728] sm:$0xff] }
 0x22a   : > { %v2379_v39 = vld [vmem:[%s5457_s25 + $0x600] sm:$0xff]  ;;  %2487 = vmatpush.msra.mxu1 %v2255_v36  ;;  %v2224_v62 = vld [vmem:[%s5457_s25 + $0x128] sm:$0xff] }
 0x22b   : > { %2528 = vmatpush.msra.mxu3 %v2379_v39  ;;  %2574 = vmatpush.msrb.mxu2 %v2372_v40  ;;  %v2187_v27 = vld [vmem:[%s5457_s25] sm:$0xff]  ;;  %v2288_v6 = vld [vmem:[%s5457_s25 + $0x328] sm:$0xff] }
 0x22c   : > { %2529 = vmatmul.f32.vlgmr.msra.gmra.mxu3 %v5483_v31  ;;  %2468 = vmatpush.msra.mxu0 %v2187_v27  ;;  %v2251_v43 = vld [vmem:[%s5457_s25 + $0x200] sm:$0xff]  ;;  %v2344_v7 = vld [vmem:[%s5457_s25 + $0x4e8] sm:$0xff] }
 0x22d   : > { %2593 = vmatpush.msrb.mxu3 %v2440_v42  ;;  %2488 = vmatpush.msra.mxu1 %v2251_v43  ;;  %v2412_v8 = vld [vmem:[%s5457_s25 + $0x708] sm:$0xff] }
 0x22e   : > { %2469 = vmatmul.f32.vlgmr.msra.gmra.mxu0 %v5485_v32  ;;  %2489 = vmatmul.f32.vlgmr.msra.gmra.mxu1 %v5487_v51  ;;  %v2220_v9 = vld [vmem:[%s5457_s25 + $0x108] sm:$0xff] }
 0x22f   : > { %2533 = vmatpush.msrb.mxu0 %v2248_v44  ;;  %2553 = vmatpush.msrb.mxu1 %v2312_v59  ;;  %v2284_v11 = vld [vmem:[%s5457_s25 + $0x308] sm:$0xff] }
 0x230   : > { %2575 = vmatpush.msrb.mxu2 %v2368_v28  ;;  %2594 = vmatpush.msrb.mxu3 %v2436_v45  ;;  %v2340_v12 = vld [vmem:[%s5457_s25 + $0x4c8] sm:$0xff] }
 0x231   : > { %2534 = vmatpush.msrb.mxu0 %v2244_v46  ;;  %2554 = vmatpush.msrb.mxu1 %v2308_v47  ;;  %v2408_v13 = vld [vmem:[%s5457_s25 + $0x6e8] sm:$0xff] }
 0x232   : > { %2576 = vmatpush.msrb.mxu2 %v2364_v48  ;;  %2595 = vmatpush.msrb.mxu3 %v2432_v29  ;;  %v2216_v14 = vld [vmem:[%s5457_s25 + $0xe8] sm:$0xff]  ;;  %v2377_v48 = vld [vmem:[%s5457_s25 + $0x5f0] sm:$0xff] }
 0x233   : > { %2535 = vmatpush.msrb.mxu0 %v2240_v30  ;;  %2555 = vmatpush.msrb.mxu1 %v2304_v49  ;;  %v2280_v15 = vld [vmem:[%s5457_s25 + $0x2e8] sm:$0xff] }
 0x234   : > { %2577 = vmatpush.msrb.mxu2 %v2360_v52  ;;  %2596 = vmatpush.msrb.mxu3 %v2428_v1  ;;  %v2336_v63 = vld [vmem:[%s5457_s25 + $0x4a8] sm:$0xff]  ;;  %v2373_v1 = vld [vmem:[%s5457_s25 + $0x5d0] sm:$0xff] }
 0x235   : > { %2536 = vmatpush.msrb.mxu0 %v2236_v53  ;;  %2556 = vmatpush.msrb.mxu1 %v2300_v54  ;;  %v2404_v38 = vld [vmem:[%s5457_s25 + $0x6c8] sm:$0xff]  ;;  %v2441_v54 = vld [vmem:[%s5457_s25 + $0x7f0] sm:$0xff] }
 0x236   : > { %2578 = vmatpush.msrb.mxu2 %v2356_v55  ;;  %2597 = vmatpush.msrb.mxu3 %v2424_v56  ;;  %v2212_v16 = vld [vmem:[%s5457_s25 + $0xc8] sm:$0xff] }
 0x237   : > { %2537 = vmatpush.msrb.mxu0 %v2232_v57  ;;  %2557 = vmatpush.msrb.mxu1 %v2296_v58  ;;  %v2276_v18 = vld [vmem:[%s5457_s25 + $0x2c8] sm:$0xff]  ;;  %v2249_v57 = vld [vmem:[%s5457_s25 + $0x1f0] sm:$0xff] }
 0x238   : > { %2579 = vmatpush.msrb.mxu2 %v2352_v60  ;;  %2598 = vmatpush.msrb.mxu3 %v2420_v61  ;;  %v2332_v19 = vld [vmem:[%s5457_s25 + $0x488] sm:$0xff]  ;;  %v2369_v58 = vld [vmem:[%s5457_s25 + $0x5b0] sm:$0xff] }
 0x239   : > { %2538 = vmatpush.msrb.mxu0 %v2228_v2  ;;  %2558 = vmatpush.msrb.mxu1 %v2292_v3  ;;  %v2400_v20 = vld [vmem:[%s5457_s25 + $0x6a8] sm:$0xff]  ;;  %v2437_v60 = vld [vmem:[%s5457_s25 + $0x7d0] sm:$0xff] }
 0x23a   : > { %2580 = vmatpush.msrb.mxu2 %v2348_v4  ;;  %2599 = vmatpush.msrb.mxu3 %v2416_v5  ;;  %v2208_v21 = vld [vmem:[%s5457_s25 + $0xa8] sm:$0xff]  ;;  %v2245_v61 = vld [vmem:[%s5457_s25 + $0x1d0] sm:$0xff] }
 0x23b   : > { %2539 = vmatpush.msrb.mxu0 %v2224_v62  ;;  %2559 = vmatpush.msrb.mxu1 %v2288_v6  ;;  %v2272_v22 = vld [vmem:[%s5457_s25 + $0x2a8] sm:$0xff]  ;;  %v2309_v2 = vld [vmem:[%s5457_s25 + $0x3d0] sm:$0xff] }
 0x23c   : > { %2581 = vmatpush.msrb.mxu2 %v2344_v7  ;;  %2600 = vmatpush.msrb.mxu3 %v2412_v8  ;;  %v2328_v23 = vld [vmem:[%s5457_s25 + $0x468] sm:$0xff]  ;;  %v2365_v3 = vld [vmem:[%s5457_s25 + $0x590] sm:$0xff] }
 0x23d   : > { %2540 = vmatpush.msrb.mxu0 %v2220_v9  ;;  %2560 = vmatpush.msrb.mxu1 %v2284_v11  ;;  %v2396_v24 = vld [vmem:[%s5457_s25 + $0x688] sm:$0xff]  ;;  %v2433_v4 = vld [vmem:[%s5457_s25 + $0x7b0] sm:$0xff] }
 0x23e   : > { %2582 = vmatpush.msrb.mxu2 %v2340_v12  ;;  %2601 = vmatpush.msrb.mxu3 %v2408_v13  ;;  %v2204_v25 = vld [vmem:[%s5457_s25 + $0x88] sm:$0xff]  ;;  %v1943_v0 = vpop.f32.mrf.mxu0  ;;  %v1963_v36 = vpop.f32.mrf.mxu1  ;;  %v2241_v5 = vld [vmem:[%s5457_s25 + $0x1b0] sm:$0xff] }
 0x23f   : > { %2541 = vmatpush.msrb.mxu0 %v2216_v14  ;;  %2561 = vmatpush.msrb.mxu1 %v2280_v15  ;;  %v2268_v26 = vld [vmem:[%s5457_s25 + $0x288] sm:$0xff]  ;;  %v1983_v39 = vpop.f32.mrf.mxu2  ;;  %v1964_v27 = vadd.f32 %v1963_v36, %v1943_v0  ;;  %v2305_v62 = vld [vmem:[%s5457_s25 + $0x3b0] sm:$0xff] }
 0x240   : > { %2583 = vmatpush.msrb.mxu2 %v2336_v63  ;;  %2602 = vmatpush.msrb.mxu3 %v2404_v38  ;;  %v2324_v33 = vld [vmem:[%s5457_s25 + $0x448] sm:$0xff]  ;;  %v2361_v6 = vld [vmem:[%s5457_s25 + $0x570] sm:$0xff] }
 0x241   : > { %2542 = vmatpush.msrb.mxu0 %v2212_v16  ;;  %2562 = vmatpush.msrb.mxu1 %v2276_v18  ;;  %v2392_v34 = vld [vmem:[%s5457_s25 + $0x668] sm:$0xff]  ;;  %v1984_v45 = vadd.f32 %v1983_v39, %v1964_v27  ;;  %v2429_v7 = vld [vmem:[%s5457_s25 + $0x790] sm:$0xff] }
 0x242   : > { %2584 = vmatpush.msrb.mxu2 %v2332_v19  ;;  %2603 = vmatpush.msrb.mxu3 %v2400_v20  ;;  %v2200_v35 = vld [vmem:[%s5457_s25 + $0x68] sm:$0xff]  ;;  %v2003_v46 = vpop.f32.mrf.mxu3  ;;  %v2237_v8 = vld [vmem:[%s5457_s25 + $0x190] sm:$0xff] }
 0x243   : > { %2543 = vmatpush.msrb.mxu0 %v2208_v21  ;;  %2563 = vmatpush.msrb.mxu1 %v2272_v22  ;;  %v2264_v40 = vld [vmem:[%s5457_s25 + $0x268] sm:$0xff]  ;;  %v2004_v30 = vadd.f32 %v2003_v46, %v1984_v45  ;;  %v2301_v9 = vld [vmem:[%s5457_s25 + $0x390] sm:$0xff] }
 0x244   : > { %2585 = vmatpush.msrb.mxu2 %v2328_v23  ;;  %2604 = vmatpush.msrb.mxu3 %v2396_v24  ;;  %v2320_v42 = vld [vmem:[%s5457_s25 + $0x428] sm:$0xff]  ;;  %v2357_v11 = vld [vmem:[%s5457_s25 + $0x550] sm:$0xff] }
 0x245   : > { %2544 = vmatpush.msrb.mxu0 %v2204_v25  ;;  %2564 = vmatpush.msrb.mxu1 %v2268_v26  ;;  %v2388_v43 = vld [vmem:[%s5457_s25 + $0x648] sm:$0xff]  ;;  %v5623_v53 = vadd.f32 %v2004_v30, %v5301_v10  ;;  %v2313_v10 = vld [vmem:[%s5457_s25 + $0x3f0] sm:$0xff] }
 0x246   : > { %2586 = vmatpush.msrb.mxu2 %v2324_v33  ;;  %2605 = vmatpush.msrb.mxu3 %v2392_v34  ;;  %v2196_v44 = vld [vmem:[%s5457_s25 + $0x48] sm:$0xff]  ;;  %v2425_v12 = vld [vmem:[%s5457_s25 + $0x770] sm:$0xff] }
 0x247   : > { %2545 = vmatpush.msrb.mxu0 %v2200_v35  ;;  %2565 = vmatpush.msrb.mxu1 %v2264_v40  ;;  %v2260_v59 = vld [vmem:[%s5457_s25 + $0x248] sm:$0xff]  ;;  %v2233_v13 = vld [vmem:[%s5457_s25 + $0x170] sm:$0xff] }
 0x248   : > { %2587 = vmatpush.msrb.mxu2 %v2320_v42  ;;  %2606 = vmatpush.msrb.mxu3 %v2388_v43  ;;  %v2316_v28 = vld [vmem:[%s5457_s25 + $0x408] sm:$0xff]  ;;  %v2297_v14 = vld [vmem:[%s5457_s25 + $0x370] sm:$0xff] }
 0x249   : > { %2546 = vmatpush.msrb.mxu0 %v2196_v44  ;;  %2566 = vmatpush.msrb.mxu1 %v2260_v59  ;;  %v2384_v47 = vld [vmem:[%s5457_s25 + $0x628] sm:$0xff]  ;;  %v2353_v15 = vld [vmem:[%s5457_s25 + $0x530] sm:$0xff] }
 0x24a   : > { %2588 = vmatpush.msrb.mxu2 %v2316_v28  ;;  %2607 = vmatpush.msrb.mxu3 %v2384_v47  ;;  %v2192_v29 = vld [vmem:[%s5457_s25 + $0x28] sm:$0xff]  ;;  %v2421_v63 = vld [vmem:[%s5457_s25 + $0x750] sm:$0xff] }
 0x24b   : > { %2589 = vmatmul.f32.vlgmr.msrb.gmra.mxu2 %v5481_v50  ;;  %2547 = vmatpush.msrb.mxu0 %v2192_v29  ;;  %v2256_v49 = vld [vmem:[%s5457_s25 + $0x228] sm:$0xff]  ;;  %v2229_v38 = vld [vmem:[%s5457_s25 + $0x150] sm:$0xff] }
 0x24c   : > { %2653 = vmatpush.msra.mxu2 %v2377_v48  ;;  %v2380_v52 = vld [vmem:[%s5457_s25 + $0x608] sm:$0xff]  ;;  %2567 = vmatpush.msrb.mxu1 %v2256_v49  ;;  %v2293_v16 = vld [vmem:[%s5457_s25 + $0x350] sm:$0xff] }
 0x24d   : > { %2608 = vmatpush.msrb.mxu3 %v2380_v52  ;;  %v2188_v55 = vld [vmem:[%s5457_s25 + $0x8] sm:$0xff]  ;;  %v2349_v18 = vld [vmem:[%s5457_s25 + $0x510] sm:$0xff] }
 0x24e   : > { %2609 = vmatmul.f32.vlgmr.msrb.gmra.mxu3 %v5483_v31  ;;  %2654 = vmatpush.msra.mxu2 %v2373_v1  ;;  %v2252_v56 = vld [vmem:[%s5457_s25 + $0x208] sm:$0xff]  ;;  %v2417_v19 = vld [vmem:[%s5457_s25 + $0x730] sm:$0xff] }
 0x24f   : > { %2673 = vmatpush.msra.mxu3 %v2441_v54  ;;  %2548 = vmatpush.msrb.mxu0 %v2188_v55  ;;  %v2225_v20 = vld [vmem:[%s5457_s25 + $0x130] sm:$0xff] }
 0x250   : > { %2568 = vmatpush.msrb.mxu1 %v2252_v56  ;;  %2549 = vmatmul.f32.vlgmr.msrb.gmra.mxu0 %v5485_v32  ;;  %v2289_v21 = vld [vmem:[%s5457_s25 + $0x330] sm:$0xff] }
 0x251   : > { %2569 = vmatmul.f32.vlgmr.msrb.gmra.mxu1 %v5487_v51  ;;  %2613 = vmatpush.msra.mxu0 %v2249_v57  ;;  %v2345_v22 = vld [vmem:[%s5457_s25 + $0x4f0] sm:$0xff] }
 0x252   : > { %2633 = vmatpush.msra.mxu1 %v2313_v10  ;;  %2655 = vmatpush.msra.mxu2 %v2369_v58  ;;  %v2413_v23 = vld [vmem:[%s5457_s25 + $0x710] sm:$0xff] }
 0x253   : > { %2674 = vmatpush.msra.mxu3 %v2437_v60  ;;  %2614 = vmatpush.msra.mxu0 %v2245_v61  ;;  %v2221_v24 = vld [vmem:[%s5457_s25 + $0x110] sm:$0xff] }
 0x254   : > { %2634 = vmatpush.msra.mxu1 %v2309_v2  ;;  %2656 = vmatpush.msra.mxu2 %v2365_v3  ;;  %v2285_v25 = vld [vmem:[%s5457_s25 + $0x310] sm:$0xff]  ;;  %v2378_v3 = vld [vmem:[%s5457_s25 + $0x5f8] sm:$0xff] }
 0x255   : > { %2675 = vmatpush.msra.mxu3 %v2433_v4  ;;  %2615 = vmatpush.msra.mxu0 %v2241_v5  ;;  %v2341_v26 = vld [vmem:[%s5457_s25 + $0x4d0] sm:$0xff] }
 0x256   : > { %2635 = vmatpush.msra.mxu1 %v2305_v62  ;;  %2657 = vmatpush.msra.mxu2 %v2361_v6  ;;  %v2409_v33 = vld [vmem:[%s5457_s25 + $0x6f0] sm:$0xff] }
 0x257   : > { %2676 = vmatpush.msra.mxu3 %v2429_v7  ;;  %2616 = vmatpush.msra.mxu0 %v2237_v8  ;;  %v2217_v0 = vld [vmem:[%s5457_s25 + $0xf0] sm:$0xff]  ;;  %v2374_v7 = vld [vmem:[%s5457_s25 + $0x5d8] sm:$0xff] }
 0x258   : > { %2636 = vmatpush.msra.mxu1 %v2301_v9  ;;  %2658 = vmatpush.msra.mxu2 %v2357_v11  ;;  %v2281_v34 = vld [vmem:[%s5457_s25 + $0x2f0] sm:$0xff]  ;;  %v2442_v9 = vld [vmem:[%s5457_s25 + $0x7f8] sm:$0xff] }
 0x259   : > { %2677 = vmatpush.msra.mxu3 %v2425_v12  ;;  %2617 = vmatpush.msra.mxu0 %v2233_v13  ;;  %v2337_v35 = vld [vmem:[%s5457_s25 + $0x4b0] sm:$0xff]  ;;  %v2250_v13 = vld [vmem:[%s5457_s25 + $0x1f8] sm:$0xff] }
 0x25a   : > { %2637 = vmatpush.msra.mxu1 %v2297_v14  ;;  %2659 = vmatpush.msra.mxu2 %v2353_v15  ;;  %v2405_v36 = vld [vmem:[%s5457_s25 + $0x6d0] sm:$0xff]  ;;  %v2370_v14 = vld [vmem:[%s5457_s25 + $0x5b8] sm:$0xff] }
 0x25b   : > { %2678 = vmatpush.msra.mxu3 %v2421_v63  ;;  %2618 = vmatpush.msra.mxu0 %v2229_v38  ;;  %v2213_v39 = vld [vmem:[%s5457_s25 + $0xd0] sm:$0xff]  ;;  %v2438_v15 = vld [vmem:[%s5457_s25 + $0x7d8] sm:$0xff] }
 0x25c   : > { %2638 = vmatpush.msra.mxu1 %v2293_v16  ;;  %2660 = vmatpush.msra.mxu2 %v2349_v18  ;;  %v2277_v40 = vld [vmem:[%s5457_s25 + $0x2d0] sm:$0xff]  ;;  %v2246_v63 = vld [vmem:[%s5457_s25 + $0x1d8] sm:$0xff] }
 0x25d   : > { %2679 = vmatpush.msra.mxu3 %v2417_v19  ;;  %2619 = vmatpush.msra.mxu0 %v2225_v20  ;;  %v2333_v42 = vld [vmem:[%s5457_s25 + $0x490] sm:$0xff]  ;;  %v2310_v38 = vld [vmem:[%s5457_s25 + $0x3d8] sm:$0xff] }
 0x25e   : > { %2639 = vmatpush.msra.mxu1 %v2289_v21  ;;  %2661 = vmatpush.msra.mxu2 %v2345_v22  ;;  %v2401_v27 = vld [vmem:[%s5457_s25 + $0x6b0] sm:$0xff]  ;;  %v2366_v16 = vld [vmem:[%s5457_s25 + $0x598] sm:$0xff] }
 0x25f   : > { %2680 = vmatpush.msra.mxu3 %v2413_v23  ;;  %2620 = vmatpush.msra.mxu0 %v2221_v24  ;;  %v2209_v43 = vld [vmem:[%s5457_s25 + $0xb0] sm:$0xff]  ;;  %v2434_v18 = vld [vmem:[%s5457_s25 + $0x7b8] sm:$0xff] }
 0x260   : > { %2640 = vmatpush.msra.mxu1 %v2285_v25  ;;  %2662 = vmatpush.msra.mxu2 %v2341_v26  ;;  %v2273_v44 = vld [vmem:[%s5457_s25 + $0x2b0] sm:$0xff]  ;;  %v2023_v48 = vpop.f32.mrf.mxu0  ;;  %v2043_v49 = vpop.f32.mrf.mxu1  ;;  %v2242_v19 = vld [vmem:[%s5457_s25 + $0x1b8] sm:$0xff] }
 0x261   : > { %2681 = vmatpush.msra.mxu3 %v2409_v33  ;;  %2621 = vmatpush.msra.mxu0 %v2217_v0  ;;  %v2329_v59 = vld [vmem:[%s5457_s25 + $0x470] sm:$0xff]  ;;  %v2063_v52 = vpop.f32.mrf.mxu2  ;;  %v2044_v55 = vadd.f32 %v2043_v49, %v2023_v48  ;;  %v2306_v20 = vld [vmem:[%s5457_s25 + $0x3b8] sm:$0xff] }
 0x262   : > { %2641 = vmatpush.msra.mxu1 %v2281_v34  ;;  %2663 = vmatpush.msra.mxu2 %v2337_v35  ;;  %v2397_v28 = vld [vmem:[%s5457_s25 + $0x690] sm:$0xff]  ;;  %v2362_v21 = vld [vmem:[%s5457_s25 + $0x578] sm:$0xff] }
 0x263   : > { %2682 = vmatpush.msra.mxu3 %v2405_v36  ;;  %2622 = vmatpush.msra.mxu0 %v2213_v39  ;;  %v2205_v45 = vld [vmem:[%s5457_s25 + $0x90] sm:$0xff]  ;;  %v2064_v60 = vadd.f32 %v2063_v52, %v2044_v55  ;;  %v2430_v22 = vld [vmem:[%s5457_s25 + $0x798] sm:$0xff] }
 0x264   : > { %2642 = vmatpush.msra.mxu1 %v2277_v40  ;;  %2664 = vmatpush.msra.mxu2 %v2333_v42  ;;  %v2269_v46 = vld [vmem:[%s5457_s25 + $0x290] sm:$0xff]  ;;  %v2083_v61 = vpop.f32.mrf.mxu3  ;;  %v2238_v23 = vld [vmem:[%s5457_s25 + $0x198] sm:$0xff] }
 0x265   : > { %2683 = vmatpush.msra.mxu3 %v2401_v27  ;;  %2623 = vmatpush.msra.mxu0 %v2209_v43  ;;  %v2325_v47 = vld [vmem:[%s5457_s25 + $0x450] sm:$0xff]  ;;  %v2084_v5 = vadd.f32 %v2083_v61, %v2064_v60  ;;  %v2302_v24 = vld [vmem:[%s5457_s25 + $0x398] sm:$0xff] }
 0x266   : > { %2643 = vmatpush.msra.mxu1 %v2273_v44  ;;  %2665 = vmatpush.msra.mxu2 %v2329_v59  ;;  %v2393_v29 = vld [vmem:[%s5457_s25 + $0x670] sm:$0xff]  ;;  %v2358_v25 = vld [vmem:[%s5457_s25 + $0x558] sm:$0xff] }
 0x267   : > { %2684 = vmatpush.msra.mxu3 %v2397_v28  ;;  %2624 = vmatpush.msra.mxu0 %v2205_v45  ;;  %v2201_v30 = vld [vmem:[%s5457_s25 + $0x70] sm:$0xff]  ;;  %v5694_v8 = vadd.f32 %v2084_v5, %v5373_v37  ;;  %v2314_v37 = vld [vmem:[%s5457_s25 + $0x3f8] sm:$0xff] }
 0x268   : > { %2644 = vmatpush.msra.mxu1 %v2269_v46  ;;  %2666 = vmatpush.msra.mxu2 %v2325_v47  ;;  %v2265_v1 = vld [vmem:[%s5457_s25 + $0x270] sm:$0xff]  ;;  %v2426_v26 = vld [vmem:[%s5457_s25 + $0x778] sm:$0xff] }
 0x269   : > { %2685 = vmatpush.msra.mxu3 %v2393_v29  ;;  %2625 = vmatpush.msra.mxu0 %v2201_v30  ;;  %v2321_v54 = vld [vmem:[%s5457_s25 + $0x430] sm:$0xff]  ;;  %v2234_v33 = vld [vmem:[%s5457_s25 + $0x178] sm:$0xff] }
 0x26a   : > { %2645 = vmatpush.msra.mxu1 %v2265_v1  ;;  %2667 = vmatpush.msra.mxu2 %v2321_v54  ;;  %v2389_v56 = vld [vmem:[%s5457_s25 + $0x650] sm:$0xff]  ;;  %v2298_v0 = vld [vmem:[%s5457_s25 + $0x378] sm:$0xff] }
 0x26b   : > { %v2197_v57 = vld [vmem:[%s5457_s25 + $0x50] sm:$0xff]  ;;  %2686 = vmatpush.msra.mxu3 %v2389_v56  ;;  %v2354_v34 = vld [vmem:[%s5457_s25 + $0x538] sm:$0xff] }
 0x26c   : > { %2626 = vmatpush.msra.mxu0 %v2197_v57  ;;  %v2261_v10 = vld [vmem:[%s5457_s25 + $0x250] sm:$0xff]  ;;  %v2422_v35 = vld [vmem:[%s5457_s25 + $0x758] sm:$0xff] }
 0x26d   : > { %v2317_v58 = vld [vmem:[%s5457_s25 + $0x410] sm:$0xff]  ;;  %2646 = vmatpush.msra.mxu1 %v2261_v10  ;;  %v2230_v36 = vld [vmem:[%s5457_s25 + $0x158] sm:$0xff] }
 0x26e   : > { %2668 = vmatpush.msra.mxu2 %v2317_v58  ;;  %v2385_v2 = vld [vmem:[%s5457_s25 + $0x630] sm:$0xff]  ;;  %v2294_v39 = vld [vmem:[%s5457_s25 + $0x358] sm:$0xff] }
 0x26f   : > { %2687 = vmatpush.msra.mxu3 %v2385_v2  ;;  %2669 = vmatmul.f32.vlgmr.msra.gmra.mxu2 %v5481_v50  ;;  %v2193_v4 = vld [vmem:[%s5457_s25 + $0x30] sm:$0xff]  ;;  %v2350_v40 = vld [vmem:[%s5457_s25 + $0x518] sm:$0xff] }
 0x270   : > { %2733 = vmatpush.msrb.mxu2 %v2378_v3  ;;  %2627 = vmatpush.msra.mxu0 %v2193_v4  ;;  %v2257_v62 = vld [vmem:[%s5457_s25 + $0x230] sm:$0xff]  ;;  %v2418_v42 = vld [vmem:[%s5457_s25 + $0x738] sm:$0xff] }
 0x271   : > { %v2381_v6 = vld [vmem:[%s5457_s25 + $0x610] sm:$0xff]  ;;  %2647 = vmatpush.msra.mxu1 %v2257_v62  ;;  %v2226_v27 = vld [vmem:[%s5457_s25 + $0x138] sm:$0xff] }
 0x272   : > { %2688 = vmatpush.msra.mxu3 %v2381_v6  ;;  %2734 = vmatpush.msrb.mxu2 %v2374_v7  ;;  %v2189_v11 = vld [vmem:[%s5457_s25 + $0x10] sm:$0xff]  ;;  %v2290_v43 = vld [vmem:[%s5457_s25 + $0x338] sm:$0xff] }
 0x273   : > { %2689 = vmatmul.f32.vlgmr.msra.gmra.mxu3 %v5483_v31  ;;  %2628 = vmatpush.msra.mxu0 %v2189_v11  ;;  %v2253_v12 = vld [vmem:[%s5457_s25 + $0x210] sm:$0xff]  ;;  %v2346_v44 = vld [vmem:[%s5457_s25 + $0x4f8] sm:$0xff] }
 0x274   : > { %2753 = vmatpush.msrb.mxu3 %v2442_v9  ;;  %2648 = vmatpush.msra.mxu1 %v2253_v12  ;;  %v2414_v59 = vld [vmem:[%s5457_s25 + $0x718] sm:$0xff] }
 0x275   : > { %2629 = vmatmul.f32.vlgmr.msra.gmra.mxu0 %v5485_v32  ;;  %2649 = vmatmul.f32.vlgmr.msra.gmra.mxu1 %v5487_v51  ;;  %v2222_v28 = vld [vmem:[%s5457_s25 + $0x118] sm:$0xff] }
 0x276   : > { %2693 = vmatpush.msrb.mxu0 %v2250_v13  ;;  %2713 = vmatpush.msrb.mxu1 %v2314_v37  ;;  %v2286_v45 = vld [vmem:[%s5457_s25 + $0x318] sm:$0xff] }
 0x277   : > { %2735 = vmatpush.msrb.mxu2 %v2370_v14  ;;  %2754 = vmatpush.msrb.mxu3 %v2438_v15  ;;  %v2342_v46 = vld [vmem:[%s5457_s25 + $0x4d8] sm:$0xff] }
 0x278   : > { %2694 = vmatpush.msrb.mxu0 %v2246_v63  ;;  %2714 = vmatpush.msrb.mxu1 %v2310_v38  ;;  %v2410_v47 = vld [vmem:[%s5457_s25 + $0x6f8] sm:$0xff] }
 0x279   : > { %2736 = vmatpush.msrb.mxu2 %v2366_v16  ;;  %2755 = vmatpush.msrb.mxu3 %v2434_v18  ;;  %v2218_v48 = vld [vmem:[%s5457_s25 + $0xf8] sm:$0xff] }
 0x27a   : > { %2695 = vmatpush.msrb.mxu0 %v2242_v19  ;;  %2715 = vmatpush.msrb.mxu1 %v2306_v20  ;;  %v2282_v29 = vld [vmem:[%s5457_s25 + $0x2f8] sm:$0xff] }
 0x27b   : > { %2737 = vmatpush.msrb.mxu2 %v2362_v21  ;;  %2756 = vmatpush.msrb.mxu3 %v2430_v22  ;;  %v2338_v30 = vld [vmem:[%s5457_s25 + $0x4b8] sm:$0xff] }
 0x27c   : > { %2696 = vmatpush.msrb.mxu0 %v2238_v23  ;;  %2716 = vmatpush.msrb.mxu1 %v2302_v24  ;;  %v2406_v49 = vld [vmem:[%s5457_s25 + $0x6d8] sm:$0xff] }
 0x27d   : > { %2738 = vmatpush.msrb.mxu2 %v2358_v25  ;;  %2757 = vmatpush.msrb.mxu3 %v2426_v26  ;;  %v2214_v52 = vld [vmem:[%s5457_s25 + $0xd8] sm:$0xff] }
 0x27e   : > { %2697 = vmatpush.msrb.mxu0 %v2234_v33  ;;  %2717 = vmatpush.msrb.mxu1 %v2298_v0  ;;  %v4239_v1 = vld [vmem:[#allocation2 + $0x10] sm:$0xff]  ;;  %v2982_v33 = vld [vmem:[%s5774_s9 + $0x5e0] sm:$0xff] }
 0x27f   : > { %2739 = vmatpush.msrb.mxu2 %v2354_v34  ;;  %2758 = vmatpush.msrb.mxu3 %v2422_v35  ;;  %v281_v54 = vperm.slane %v4239_v1, 5  ;;  %v282_v55 = vperm.slane %v4239_v1, 6  ;;  %v283_v56 = vperm.slane %v4239_v1, 7  ;;  %v2278_v57 = vld [vmem:[%s5457_s25 + $0x2d8] sm:$0xff]  ;;  %v280_v3 = vperm.slane %v4239_v1, 4  ;;  %v253_v35 = vld [vmem:[%s6404_s0 + $0x28] sm:$0xff] }
 0x280   : > { %2698 = vmatpush.msrb.mxu0 %v2230_v36  ;;  %2718 = vmatpush.msrb.mxu1 %v2294_v39  ;;  %v2334_v10 = vld [vmem:[%s5457_s25 + $0x498] sm:$0xff]  ;;  %v2910_v1 = vld [vmem:[%s5774_s9 + $0x3a0] sm:$0xff] }
 0x281   : > { %2740 = vmatpush.msrb.mxu2 %v2350_v40  ;;  %2759 = vmatpush.msrb.mxu3 %v2418_v42  ;;  %v2402_v58 = vld [vmem:[%s5457_s25 + $0x6b8] sm:$0xff]  ;;  %v299_v62 = vrot.slane %v281_v54, 6  ;;  %v300_v6 = vrot.slane %v282_v55, 4  ;;  %v301_v7 = vrot.slane %v283_v56, 2  ;;  %v2978_v40 = vld [vmem:[%s5774_s9 + $0x5c0] sm:$0xff] }
 0x282   : > { %2699 = vmatpush.msrb.mxu0 %v2226_v27  ;;  %2719 = vmatpush.msrb.mxu1 %v2290_v43  ;;  %v2210_v60 = vld [vmem:[%s5457_s25 + $0xb8] sm:$0xff]  ;;  %v3046_v27 = vld [vmem:[%s5774_s9 + $0x7e0] sm:$0xff] }
 0x283   : > { %2741 = vmatpush.msrb.mxu2 %v2346_v44  ;;  %2760 = vmatpush.msrb.mxu3 %v2414_v59  ;;  %v2274_v61 = vld [vmem:[%s5457_s25 + $0x2b8] sm:$0xff]  ;;  %v320_v20 = vsel %vm302_vm0, %v280_v3, %v299_v62  ;;  %v321_v21 = vsel %vm304_vm1, %v300_v6, %v301_v7  ;;  %v2966_v54 = vld [vmem:[%s5774_s9 + $0x560] sm:$0xff] }
 0x284   : > { %2700 = vmatpush.msrb.mxu0 %v2222_v28  ;;  %2720 = vmatpush.msrb.mxu1 %v2286_v45  ;;  %v2330_v2 = vld [vmem:[%s5457_s25 + $0x478] sm:$0xff]  ;;  %v322_v36 = vsel %vm306_vm2, %v320_v20, %v321_v21  ;;  %v2854_v28 = vld [vmem:[%s5774_s9 + $0x1e0] sm:$0xff] }
 0x285   : > { %2742 = vmatpush.msrb.mxu2 %v2342_v46  ;;  %2761 = vmatpush.msrb.mxu3 %v2410_v47  ;;  %v2398_v4 = vld [vmem:[%s5457_s25 + $0x698] sm:$0xff]  ;;  %v334_v44 = vmul.f32 %v322_v36, %v253_v35  ;;  %v2918_v45 = vld [vmem:[%s5774_s9 + $0x3e0] sm:$0xff] }
 0x286   : > { %2701 = vmatpush.msrb.mxu0 %v2218_v48  ;;  %2721 = vmatpush.msrb.mxu1 %v2282_v29  ;;  %v2206_v5 = vld [vmem:[%s5457_s25 + $0x98] sm:$0xff]  ;;  %v2103_v12 = vpop.f32.mrf.mxu0  ;;  %v2123_v14 = vpop.f32.mrf.mxu1  ;;  %v2974_v46 = vld [vmem:[%s5774_s9 + $0x5a0] sm:$0xff] }
 0x287   : > { %2743 = vmatpush.msrb.mxu2 %v2338_v30  ;;  %2762 = vmatpush.msrb.mxu3 %v2406_v49  ;;  %v2270_v9 = vld [vmem:[%s5457_s25 + $0x298] sm:$0xff]  ;;  %v2143_v15 = vpop.f32.mrf.mxu2  ;;  %v2124_v16 = vadd.f32 %v2123_v14, %v2103_v12  ;;  %v2850_v47 = vld [vmem:[%s5774_s9 + $0x1c0] sm:$0xff] }
 0x288   : > { %2702 = vmatpush.msrb.mxu0 %v2214_v52  ;;  %2722 = vmatpush.msrb.mxu1 %v2278_v57  ;;  %v2326_v11 = vld [vmem:[%s5457_s25 + $0x458] sm:$0xff]  ;;  %v5803_v29 = vld.sshfl [vmem:[#allocation1] sm:$0xff pattern:$0x73625140] }
 0x289   : > { %2744 = vmatpush.msrb.mxu2 %v2334_v10  ;;  %2763 = vmatpush.msrb.mxu3 %v2402_v58  ;;  %v2394_v13 = vld [vmem:[%s5457_s25 + $0x678] sm:$0xff]  ;;  %v2144_v24 = vadd.f32 %v2143_v15, %v2124_v16  ;;  %v2914_v30 = vld [vmem:[%s5774_s9 + $0x3c0] sm:$0xff] }
 0x28a   : > { %2703 = vmatpush.msrb.mxu0 %v2210_v60  ;;  %2723 = vmatpush.msrb.mxu1 %v2274_v61  ;;  %v2202_v37 = vld [vmem:[%s5457_s25 + $0x78] sm:$0xff]  ;;  %v2163_v25 = vpop.f32.mrf.mxu3  ;;  %v3038_v49 = vld [vmem:[%s5774_s9 + $0x7a0] sm:$0xff] }
 0x28b   : > { %2745 = vmatpush.msrb.mxu2 %v2330_v2  ;;  %2764 = vmatpush.msrb.mxu3 %v2398_v4  ;;  %v2266_v63 = vld [vmem:[%s5457_s25 + $0x278] sm:$0xff]  ;;  %v2164_v34 = vadd.f32 %v2163_v25, %v2144_v24  ;;  %v2846_v52 = vld [vmem:[%s5774_s9 + $0x1a0] sm:$0xff] }
 0x28c   : > { %2704 = vmatpush.msrb.mxu0 %v2206_v5  ;;  %2724 = vmatpush.msrb.mxu1 %v2270_v9  ;;  %v2322_v38 = vld [vmem:[%s5457_s25 + $0x438] sm:$0xff]  ;;  %v3034_v55 = vld [vmem:[%s5774_s9 + $0x780] sm:$0xff] }
 0x28d   : > { %2746 = vmatpush.msrb.mxu2 %v2326_v11  ;;  %2765 = vmatpush.msrb.mxu3 %v2394_v13  ;;  %v2390_v18 = vld [vmem:[%s5457_s25 + $0x658] sm:$0xff]  ;;  %v5786_v42 = vadd.f32 %v2164_v34, %v5468_v17  ;;  %v3042_v17 = vld [vmem:[%s5774_s9 + $0x7c0] sm:$0xff] }
 0x28e   : > { %2705 = vmatpush.msrb.mxu0 %v2202_v37  ;;  %2725 = vmatpush.msrb.mxu1 %v2266_v63  ;;  %v2198_v19 = vld [vmem:[%s5457_s25 + $0x58] sm:$0xff]  ;;  %v2842_v56 = vld [vmem:[%s5774_s9 + $0x180] sm:$0xff] }
 0x28f   : > { %2747 = vmatpush.msrb.mxu2 %v2322_v38  ;;  %2766 = vmatpush.msrb.mxu3 %v2390_v18  ;;  %v2262_v22 = vld [vmem:[%s5457_s25 + $0x258] sm:$0xff]  ;;  %v2906_v57 = vld [vmem:[%s5774_s9 + $0x380] sm:$0xff] }
 0x290   : > { %2706 = vmatpush.msrb.mxu0 %v2198_v19  ;;  %v2318_v23 = vld [vmem:[%s5457_s25 + $0x418] sm:$0xff]  ;;  %2726 = vmatpush.msrb.mxu1 %v2262_v22  ;;  %v2962_v10 = vld [vmem:[%s5774_s9 + $0x540] sm:$0xff] }
 0x291   : > { %2748 = vmatpush.msrb.mxu2 %v2318_v23  ;;  %v2386_v26 = vld [vmem:[%s5457_s25 + $0x638] sm:$0xff]  ;;  %v3030_v58 = vld [vmem:[%s5774_s9 + $0x760] sm:$0xff] }
 0x292   : > { %2767 = vmatpush.msrb.mxu3 %v2386_v26  ;;  %2749 = vmatmul.f32.vlgmr.msrb.gmra.mxu2 %v5481_v50  ;;  %v2194_v0 = vld [vmem:[%s5457_s25 + $0x38] sm:$0xff]  ;;  %v2838_v60 = vld [vmem:[%s5774_s9 + $0x160] sm:$0xff] }
 0x293   : > { %3100 = vmatpush.msra.mxu2 %v2982_v33  ;;  %2707 = vmatpush.msrb.mxu0 %v2194_v0  ;;  %v2258_v50 = vld [vmem:[%s5457_s25 + $0x238] sm:$0xff]  ;;  %v2902_v61 = vld [vmem:[%s5774_s9 + $0x360] sm:$0xff] }
 0x294   : > { %v2382_v39 = vld [vmem:[%s5457_s25 + $0x618] sm:$0xff]  ;;  %2727 = vmatpush.msrb.mxu1 %v2258_v50  ;;  %v2958_v2 = vld [vmem:[%s5774_s9 + $0x520] sm:$0xff] }
 0x295   : > { %2768 = vmatpush.msrb.mxu3 %v2382_v39  ;;  %3101 = vmatpush.msra.mxu2 %v2978_v40  ;;  %v2190_v43 = vld [vmem:[%s5457_s25 + $0x18] sm:$0xff]  ;;  %v3026_v3 = vld [vmem:[%s5774_s9 + $0x740] sm:$0xff] }
 0x296   : > { %2769 = vmatmul.f32.vlgmr.msrb.gmra.mxu3 %v5483_v31  ;;  %2708 = vmatpush.msrb.mxu0 %v2190_v43  ;;  %v2254_v59 = vld [vmem:[%s5457_s25 + $0x218] sm:$0xff]  ;;  %v5799_v31 = vld.sshfl [vmem:[#allocation1 + $0x10] sm:$0xff pattern:$0x73625140]  ;;  %v2834_v4 = vld [vmem:[%s5774_s9 + $0x140] sm:$0xff]  ;;  %s4156_s25 = sshll.u32 %s6439_s23, 11 }
 0x297   : > { %3120 = vmatpush.msra.mxu3 %v3046_v27  ;;  %2728 = vmatpush.msrb.mxu1 %v2254_v59  ;;  %v5801_v48 = vld.sshfl [vmem:[#allocation1 + $0x18] sm:$0xff pattern:$0x73625140]  ;;  %v2898_v5 = vld [vmem:[%s5774_s9 + $0x340] sm:$0xff]  ;;  %s6090_s26 = scalar_lea.vmem [#allocation4], %s4156_s25 }
 0x298   : > { %2709 = vmatmul.f32.vlgmr.msrb.gmra.mxu0 %v5485_v32  ;;  %2729 = vmatmul.f32.vlgmr.msrb.gmra.mxu1 %v5487_v51  ;;  %v5805_v32 = vld.sshfl [vmem:[#allocation1 + $0x8] sm:$0xff pattern:$0x73625140]  ;;  %v2970_v51 = vld [vmem:[%s5774_s9 + $0x580] sm:$0xff] }
 0x299   : > { %3060 = vmatpush.msra.mxu0 %v2854_v28  ;;  %3080 = vmatpush.msra.mxu1 %v2918_v45  ;;  %3658 = vst [vmem:[#allocation1] ss:$4 sm:$0xff] %v334_v44  ;;  %v2954_v62 = vld [vmem:[%s5774_s9 + $0x500] sm:$0xff] }
 0x29a   : > { %3102 = vmatpush.msra.mxu2 %v2974_v46  ;;  %3121 = vmatpush.msra.mxu3 %v3042_v17  ;;  %v3022_v6 = vld [vmem:[%s5774_s9 + $0x720] sm:$0xff] }
 0x29b   : > { %3061 = vmatpush.msra.mxu0 %v2850_v47  ;;  %3081 = vmatpush.msra.mxu1 %v2914_v30  ;;  %v2830_v7 = vld [vmem:[%s5774_s9 + $0x120] sm:$0xff] }
 0x29c   : > { %3103 = vmatpush.msra.mxu2 %v2970_v51  ;;  %3122 = vmatpush.msra.mxu3 %v3038_v49  ;;  %v2894_v9 = vld [vmem:[%s5774_s9 + $0x320] sm:$0xff]  ;;  %v2983_v51 = vld [vmem:[%s5774_s9 + $0x5e8] sm:$0xff] }
 0x29d   : > { %3062 = vmatpush.msra.mxu0 %v2846_v52  ;;  %3082 = vmatpush.msra.mxu1 %v2910_v1  ;;  %v2950_v11 = vld [vmem:[%s5774_s9 + $0x4e0] sm:$0xff] }
 0x29e   : > { %3104 = vmatpush.msra.mxu2 %v2966_v54  ;;  %3123 = vmatpush.msra.mxu3 %v3034_v55  ;;  %v3018_v12 = vld [vmem:[%s5774_s9 + $0x700] sm:$0xff]  ;;  %v2979_v55 = vld [vmem:[%s5774_s9 + $0x5c8] sm:$0xff] }
 0x29f   : > { %3063 = vmatpush.msra.mxu0 %v2842_v56  ;;  %3083 = vmatpush.msra.mxu1 %v2906_v57  ;;  %v2826_v13 = vld [vmem:[%s5774_s9 + $0x100] sm:$0xff]  ;;  %v3047_v57 = vld [vmem:[%s5774_s9 + $0x7e8] sm:$0xff] }
 0x2a0   : > { %3105 = vmatpush.msra.mxu2 %v2962_v10  ;;  %3124 = vmatpush.msra.mxu3 %v3030_v58  ;;  %v2890_v37 = vld [vmem:[%s5774_s9 + $0x300] sm:$0xff] }
 0x2a1   : > { %3064 = vmatpush.msra.mxu0 %v2838_v60  ;;  %3084 = vmatpush.msra.mxu1 %v2902_v61  ;;  %v2946_v14 = vld [vmem:[%s5774_s9 + $0x4c0] sm:$0xff]  ;;  %v2855_v60 = vld [vmem:[%s5774_s9 + $0x1e8] sm:$0xff] }
 0x2a2   : > { %3106 = vmatpush.msra.mxu2 %v2958_v2  ;;  %3125 = vmatpush.msra.mxu3 %v3026_v3  ;;  %v3014_v15 = vld [vmem:[%s5774_s9 + $0x6e0] sm:$0xff]  ;;  %v2975_v61 = vld [vmem:[%s5774_s9 + $0x5a8] sm:$0xff] }
 0x2a3   : > { %3065 = vmatpush.msra.mxu0 %v2834_v4  ;;  %3085 = vmatpush.msra.mxu1 %v2898_v5  ;;  %v2822_v63 = vld [vmem:[%s5774_s9 + $0xe0] sm:$0xff]  ;;  %v3043_v2 = vld [vmem:[%s5774_s9 + $0x7c8] sm:$0xff] }
 0x2a4   : > { %3107 = vmatpush.msra.mxu2 %v2954_v62  ;;  %3126 = vmatpush.msra.mxu3 %v3022_v6  ;;  %v2886_v38 = vld [vmem:[%s5774_s9 + $0x2e0] sm:$0xff]  ;;  %v2851_v3 = vld [vmem:[%s5774_s9 + $0x1c8] sm:$0xff] }
 0x2a5   : > { %3066 = vmatpush.msra.mxu0 %v2830_v7  ;;  %3086 = vmatpush.msra.mxu1 %v2894_v9  ;;  %v2942_v16 = vld [vmem:[%s5774_s9 + $0x4a0] sm:$0xff]  ;;  %v2915_v4 = vld [vmem:[%s5774_s9 + $0x3c8] sm:$0xff] }
 0x2a6   : > { %3108 = vmatpush.msra.mxu2 %v2950_v11  ;;  %3127 = vmatpush.msra.mxu3 %v3018_v12  ;;  %v3010_v18 = vld [vmem:[%s5774_s9 + $0x6c0] sm:$0xff]  ;;  %v2971_v5 = vld [vmem:[%s5774_s9 + $0x588] sm:$0xff] }
 0x2a7   : > { %3067 = vmatpush.msra.mxu0 %v2826_v13  ;;  %3087 = vmatpush.msra.mxu1 %v2890_v37  ;;  %v2818_v19 = vld [vmem:[%s5774_s9 + $0xc0] sm:$0xff]  ;;  %v3039_v62 = vld [vmem:[%s5774_s9 + $0x7a8] sm:$0xff] }
 0x2a8   : > { %3109 = vmatpush.msra.mxu2 %v2946_v14  ;;  %3128 = vmatpush.msra.mxu3 %v3014_v15  ;;  %v2882_v20 = vld [vmem:[%s5774_s9 + $0x2c0] sm:$0xff]  ;;  %v2847_v6 = vld [vmem:[%s5774_s9 + $0x1a8] sm:$0xff] }
 0x2a9   : > { %3068 = vmatpush.msra.mxu0 %v2822_v63  ;;  %3088 = vmatpush.msra.mxu1 %v2886_v38  ;;  %v2938_v21 = vld [vmem:[%s5774_s9 + $0x480] sm:$0xff]  ;;  %v2911_v7 = vld [vmem:[%s5774_s9 + $0x3a8] sm:$0xff] }
 0x2aa   : > { %3110 = vmatpush.msra.mxu2 %v2942_v16  ;;  %3129 = vmatpush.msra.mxu3 %v3010_v18  ;;  %v3006_v22 = vld [vmem:[%s5774_s9 + $0x6a0] sm:$0xff]  ;;  %v2967_v9 = vld [vmem:[%s5774_s9 + $0x568] sm:$0xff] }
 0x2ab   : > { %3069 = vmatpush.msra.mxu0 %v2818_v19  ;;  %3089 = vmatpush.msra.mxu1 %v2882_v20  ;;  %v2814_v23 = vld [vmem:[%s5774_s9 + $0xa0] sm:$0xff]  ;;  %v2470_v35 = vpop.f32.mrf.mxu0  ;;  %v2490_v39 = vpop.f32.mrf.mxu1  ;;  %v3035_v11 = vld [vmem:[%s5774_s9 + $0x788] sm:$0xff] }
 0x2ac   : > { %3111 = vmatpush.msra.mxu2 %v2938_v21  ;;  %3130 = vmatpush.msra.mxu3 %v3006_v22  ;;  %v2878_v24 = vld [vmem:[%s5774_s9 + $0x2a0] sm:$0xff]  ;;  %v2510_v40 = vpop.f32.mrf.mxu2  ;;  %v2491_v44 = vadd.f32 %v2490_v39, %v2470_v35  ;;  %v2843_v12 = vld [vmem:[%s5774_s9 + $0x188] sm:$0xff] }
 0x2ad   : > { %3070 = vmatpush.msra.mxu0 %v2814_v23  ;;  %v2934_v25 = vld [vmem:[%s5774_s9 + $0x460] sm:$0xff]  ;;  %3090 = vmatpush.msra.mxu1 %v2878_v24  ;;  %v2907_v13 = vld [vmem:[%s5774_s9 + $0x388] sm:$0xff] }
 0x2ae   : > { %3112 = vmatpush.msra.mxu2 %v2934_v25  ;;  %v3002_v26 = vld [vmem:[%s5774_s9 + $0x680] sm:$0xff]  ;;  %v2511_v17 = vadd.f32 %v2510_v40, %v2491_v44  ;;  %v2963_v37 = vld [vmem:[%s5774_s9 + $0x548] sm:$0xff] }
 0x2af   : > { %v2810_v33 = vld [vmem:[%s5774_s9 + $0x80] sm:$0xff]  ;;  %3131 = vmatpush.msra.mxu3 %v3002_v26  ;;  %v2530_v47 = vpop.f32.mrf.mxu3  ;;  %v3031_v14 = vld [vmem:[%s5774_s9 + $0x768] sm:$0xff] }
 0x2b0   : > { %3071 = vmatpush.msra.mxu0 %v2810_v33  ;;  %v2874_v0 = vld [vmem:[%s5774_s9 + $0x280] sm:$0xff]  ;;  %v2531_v52 = vadd.f32 %v2530_v47, %v2511_v17  ;;  %v2839_v15 = vld [vmem:[%s5774_s9 + $0x168] sm:$0xff] }
 0x2b1   : > { %v2930_v34 = vld [vmem:[%s5774_s9 + $0x440] sm:$0xff]  ;;  %3091 = vmatpush.msra.mxu1 %v2874_v0  ;;  %v2903_v63 = vld [vmem:[%s5774_s9 + $0x368] sm:$0xff] }
 0x2b2   : > { %3113 = vmatpush.msra.mxu2 %v2930_v34  ;;  %v2998_v36 = vld [vmem:[%s5774_s9 + $0x660] sm:$0xff]  ;;  %v5870_v56 = vadd.f32 %v2531_v52, %v5552_v41  ;;  %v2919_v41 = vld [vmem:[%s5774_s9 + $0x3e8] sm:$0xff] }
 0x2b3   : > { %v2806_v50 = vld [vmem:[%s5774_s9 + $0x60] sm:$0xff]  ;;  %3132 = vmatpush.msra.mxu3 %v2998_v36  ;;  %v2959_v38 = vld [vmem:[%s5774_s9 + $0x528] sm:$0xff] }
 0x2b4   : > { %3072 = vmatpush.msra.mxu0 %v2806_v50  ;;  %v2870_v27 = vld [vmem:[%s5774_s9 + $0x260] sm:$0xff]  ;;  %v3027_v16 = vld [vmem:[%s5774_s9 + $0x748] sm:$0xff] }
 0x2b5   : > { %v2926_v43 = vld [vmem:[%s5774_s9 + $0x420] sm:$0xff]  ;;  %3092 = vmatpush.msra.mxu1 %v2870_v27  ;;  %v2835_v18 = vld [vmem:[%s5774_s9 + $0x148] sm:$0xff] }
 0x2b6   : > { %3114 = vmatpush.msra.mxu2 %v2926_v43  ;;  %v2994_v59 = vld [vmem:[%s5774_s9 + $0x640] sm:$0xff]  ;;  %v2899_v19 = vld [vmem:[%s5774_s9 + $0x348] sm:$0xff] }
 0x2b7   : > { %v2802_v28 = vld [vmem:[%s5774_s9 + $0x40] sm:$0xff]  ;;  %3133 = vmatpush.msra.mxu3 %v2994_v59  ;;  %v2955_v20 = vld [vmem:[%s5774_s9 + $0x508] sm:$0xff] }
 0x2b8   : > { %3073 = vmatpush.msra.mxu0 %v2802_v28  ;;  %v2866_v45 = vld [vmem:[%s5774_s9 + $0x240] sm:$0xff]  ;;  %v3023_v21 = vld [vmem:[%s5774_s9 + $0x728] sm:$0xff] }
 0x2b9   : > { %v2922_v46 = vld [vmem:[%s5774_s9 + $0x400] sm:$0xff]  ;;  %3093 = vmatpush.msra.mxu1 %v2866_v45  ;;  %v2831_v22 = vld [vmem:[%s5774_s9 + $0x128] sm:$0xff] }
 0x2ba   : > { %3115 = vmatpush.msra.mxu2 %v2922_v46  ;;  %v2990_v30 = vld [vmem:[%s5774_s9 + $0x620] sm:$0xff]  ;;  %v2895_v23 = vld [vmem:[%s5774_s9 + $0x328] sm:$0xff] }
 0x2bb   : > { %3134 = vmatpush.msra.mxu3 %v2990_v30  ;;  %3116 = vmatmul.f32.vlgmr.msra.gmra.mxu2 %v5799_v31  ;;  %v2798_v49 = vld [vmem:[%s5774_s9 + $0x20] sm:$0xff]  ;;  %v2951_v24 = vld [vmem:[%s5774_s9 + $0x4e8] sm:$0xff] }
 0x2bc   : > { %3180 = vmatpush.msrb.mxu2 %v2983_v51  ;;  %3074 = vmatpush.msra.mxu0 %v2798_v49  ;;  %v2862_v1 = vld [vmem:[%s5774_s9 + $0x220] sm:$0xff]  ;;  %v3019_v25 = vld [vmem:[%s5774_s9 + $0x708] sm:$0xff] }
 0x2bd   : > { %v2986_v54 = vld [vmem:[%s5774_s9 + $0x600] sm:$0xff]  ;;  %3094 = vmatpush.msra.mxu1 %v2862_v1  ;;  %v2827_v26 = vld [vmem:[%s5774_s9 + $0x108] sm:$0xff] }
 0x2be   : > { %3135 = vmatpush.msra.mxu3 %v2986_v54  ;;  %3181 = vmatpush.msrb.mxu2 %v2979_v55  ;;  %v2794_v10 = vld [vmem:[%s5774_s9] sm:$0xff]  ;;  %v2891_v33 = vld [vmem:[%s5774_s9 + $0x308] sm:$0xff] }
 0x2bf   : > { %3136 = vmatmul.f32.vlgmr.msra.gmra.mxu3 %v5801_v48  ;;  %3075 = vmatpush.msra.mxu0 %v2794_v10  ;;  %v2858_v58 = vld [vmem:[%s5774_s9 + $0x200] sm:$0xff]  ;;  %v2947_v0 = vld [vmem:[%s5774_s9 + $0x4c8] sm:$0xff] }
 0x2c0   : > { %3200 = vmatpush.msrb.mxu3 %v3047_v57  ;;  %3095 = vmatpush.msra.mxu1 %v2858_v58  ;;  %v3015_v34 = vld [vmem:[%s5774_s9 + $0x6e8] sm:$0xff] }
 0x2c1   : > { %3076 = vmatmul.f32.vlgmr.msra.gmra.mxu0 %v5803_v29  ;;  %3096 = vmatmul.f32.vlgmr.msra.gmra.mxu1 %v5805_v32  ;;  %v2823_v35 = vld [vmem:[%s5774_s9 + $0xe8] sm:$0xff] }
 0x2c2   : > { %3140 = vmatpush.msrb.mxu0 %v2855_v60  ;;  %3160 = vmatpush.msrb.mxu1 %v2919_v41  ;;  %v2887_v36 = vld [vmem:[%s5774_s9 + $0x2e8] sm:$0xff] }
 0x2c3   : > { %3182 = vmatpush.msrb.mxu2 %v2975_v61  ;;  %3201 = vmatpush.msrb.mxu3 %v3043_v2  ;;  %v2943_v50 = vld [vmem:[%s5774_s9 + $0x4a8] sm:$0xff] }
 0x2c4   : > { %3141 = vmatpush.msrb.mxu0 %v2851_v3  ;;  %3161 = vmatpush.msrb.mxu1 %v2915_v4  ;;  %v3011_v39 = vld [vmem:[%s5774_s9 + $0x6c8] sm:$0xff] }
 0x2c5   : > { %3183 = vmatpush.msrb.mxu2 %v2971_v5  ;;  %3202 = vmatpush.msrb.mxu3 %v3039_v62  ;;  %v2819_v40 = vld [vmem:[%s5774_s9 + $0xc8] sm:$0xff]  ;;  %v2984_v5 = vld [vmem:[%s5774_s9 + $0x5f0] sm:$0xff] }
 0x2c6   : > { %3142 = vmatpush.msrb.mxu0 %v2847_v6  ;;  %3162 = vmatpush.msrb.mxu1 %v2911_v7  ;;  %v2883_v27 = vld [vmem:[%s5774_s9 + $0x2c8] sm:$0xff] }
 0x2c7   : > { %3184 = vmatpush.msrb.mxu2 %v2967_v9  ;;  %3203 = vmatpush.msrb.mxu3 %v3035_v11  ;;  %v2939_v43 = vld [vmem:[%s5774_s9 + $0x488] sm:$0xff]  ;;  %v2980_v11 = vld [vmem:[%s5774_s9 + $0x5d0] sm:$0xff] }
 0x2c8   : > { %3143 = vmatpush.msrb.mxu0 %v2843_v12  ;;  %3163 = vmatpush.msrb.mxu1 %v2907_v13  ;;  %v3007_v44 = vld [vmem:[%s5774_s9 + $0x6a8] sm:$0xff]  ;;  %v3048_v13 = vld [vmem:[%s5774_s9 + $0x7f0] sm:$0xff] }
 0x2c9   : > { %3185 = vmatpush.msrb.mxu2 %v2963_v37  ;;  %3204 = vmatpush.msrb.mxu3 %v3031_v14  ;;  %v2815_v59 = vld [vmem:[%s5774_s9 + $0xa8] sm:$0xff] }
 0x2ca   : > { %3144 = vmatpush.msrb.mxu0 %v2839_v15  ;;  %3164 = vmatpush.msrb.mxu1 %v2903_v63  ;;  %v2879_v28 = vld [vmem:[%s5774_s9 + $0x2a8] sm:$0xff]  ;;  %v2856_v15 = vld [vmem:[%s5774_s9 + $0x1f0] sm:$0xff] }
 0x2cb   : > { %3186 = vmatpush.msrb.mxu2 %v2959_v38  ;;  %3205 = vmatpush.msrb.mxu3 %v3027_v16  ;;  %v2935_v45 = vld [vmem:[%s5774_s9 + $0x468] sm:$0xff]  ;;  %v2976_v63 = vld [vmem:[%s5774_s9 + $0x5b0] sm:$0xff] }
 0x2cc   : > { %3145 = vmatpush.msrb.mxu0 %v2835_v18  ;;  %3165 = vmatpush.msrb.mxu1 %v2899_v19  ;;  %v3003_v46 = vld [vmem:[%s5774_s9 + $0x688] sm:$0xff]  ;;  %v3044_v38 = vld [vmem:[%s5774_s9 + $0x7d0] sm:$0xff] }
 0x2cd   : > { %3187 = vmatpush.msrb.mxu2 %v2955_v20  ;;  %3206 = vmatpush.msrb.mxu3 %v3023_v21  ;;  %v2811_v17 = vld [vmem:[%s5774_s9 + $0x88] sm:$0xff]  ;;  %v2550_v51 = vpop.f32.mrf.mxu0  ;;  %v2852_v16 = vld [vmem:[%s5774_s9 + $0x1d0] sm:$0xff] }
 0x2ce   : > { %3146 = vmatpush.msrb.mxu0 %v2831_v22  ;;  %3166 = vmatpush.msrb.mxu1 %v2895_v23  ;;  %v2875_v47 = vld [vmem:[%s5774_s9 + $0x288] sm:$0xff]  ;;  %v2570_v1 = vpop.f32.mrf.mxu1  ;;  %v2590_v54 = vpop.f32.mrf.mxu2  ;;  %v2916_v18 = vld [vmem:[%s5774_s9 + $0x3d0] sm:$0xff] }
 0x2cf   : > { %3188 = vmatpush.msrb.mxu2 %v2951_v24  ;;  %3207 = vmatpush.msrb.mxu3 %v3019_v25  ;;  %v2931_v30 = vld [vmem:[%s5774_s9 + $0x448] sm:$0xff]  ;;  %v2571_v10 = vadd.f32 %v2570_v1, %v2550_v51  ;;  %v2972_v19 = vld [vmem:[%s5774_s9 + $0x590] sm:$0xff] }
 0x2d0   : > { %3147 = vmatpush.msrb.mxu0 %v2827_v26  ;;  %3167 = vmatpush.msrb.mxu1 %v2891_v33  ;;  %v2999_v49 = vld [vmem:[%s5774_s9 + $0x668] sm:$0xff]  ;;  %v3040_v20 = vld [vmem:[%s5774_s9 + $0x7b0] sm:$0xff] }
 0x2d1   : > { %3189 = vmatpush.msrb.mxu2 %v2947_v0  ;;  %3208 = vmatpush.msrb.mxu3 %v3015_v34  ;;  %v2807_v52 = vld [vmem:[%s5774_s9 + $0x68] sm:$0xff]  ;;  %v2591_v2 = vadd.f32 %v2590_v54, %v2571_v10  ;;  %v2610_v3 = vpop.f32.mrf.mxu3  ;;  %v2848_v21 = vld [vmem:[%s5774_s9 + $0x1b0] sm:$0xff] }
 0x2d2   : > { %3148 = vmatpush.msrb.mxu0 %v2823_v35  ;;  %3168 = vmatpush.msrb.mxu1 %v2887_v36  ;;  %v2871_v55 = vld [vmem:[%s5774_s9 + $0x268] sm:$0xff]  ;;  %v2912_v22 = vld [vmem:[%s5774_s9 + $0x3b0] sm:$0xff] }
 0x2d3   : > { %3190 = vmatpush.msrb.mxu2 %v2943_v50  ;;  %3209 = vmatpush.msrb.mxu3 %v3011_v39  ;;  %v2927_v57 = vld [vmem:[%s5774_s9 + $0x428] sm:$0xff]  ;;  %v2611_v6 = vadd.f32 %v2610_v3, %v2591_v2  ;;  %v2968_v23 = vld [vmem:[%s5774_s9 + $0x570] sm:$0xff] }
 0x2d4   : > { %3149 = vmatpush.msrb.mxu0 %v2819_v40  ;;  %3169 = vmatpush.msrb.mxu1 %v2883_v27  ;;  %v2995_v58 = vld [vmem:[%s5774_s9 + $0x648] sm:$0xff]  ;;  %v3036_v24 = vld [vmem:[%s5774_s9 + $0x790] sm:$0xff] }
 0x2d5   : > { %3191 = vmatpush.msrb.mxu2 %v2939_v43  ;;  %3210 = vmatpush.msrb.mxu3 %v3007_v44  ;;  %v2803_v60 = vld [vmem:[%s5774_s9 + $0x48] sm:$0xff]  ;;  %v5941_v12 = vadd.f32 %v2611_v6, %v5623_v53  ;;  %v2920_v53 = vld [vmem:[%s5774_s9 + $0x3f0] sm:$0xff] }
 0x2d6   : > { %3150 = vmatpush.msrb.mxu0 %v2815_v59  ;;  %3170 = vmatpush.msrb.mxu1 %v2879_v28  ;;  %v2867_v41 = vld [vmem:[%s5774_s9 + $0x248] sm:$0xff]  ;;  %v2844_v25 = vld [vmem:[%s5774_s9 + $0x190] sm:$0xff] }
 0x2d7   : > { %3192 = vmatpush.msrb.mxu2 %v2935_v45  ;;  %3211 = vmatpush.msrb.mxu3 %v3003_v46  ;;  %v2923_v61 = vld [vmem:[%s5774_s9 + $0x408] sm:$0xff]  ;;  %v2908_v26 = vld [vmem:[%s5774_s9 + $0x390] sm:$0xff] }
 0x2d8   : > { %3151 = vmatpush.msrb.mxu0 %v2811_v17  ;;  %3171 = vmatpush.msrb.mxu1 %v2875_v47  ;;  %v2991_v4 = vld [vmem:[%s5774_s9 + $0x628] sm:$0xff]  ;;  %v2964_v33 = vld [vmem:[%s5774_s9 + $0x550] sm:$0xff] }
 0x2d9   : > { %3193 = vmatpush.msrb.mxu2 %v2931_v30  ;;  %3212 = vmatpush.msrb.mxu3 %v2999_v49  ;;  %v2799_v62 = vld [vmem:[%s5774_s9 + $0x28] sm:$0xff]  ;;  %v3032_v0 = vld [vmem:[%s5774_s9 + $0x770] sm:$0xff] }
 0x2da   : > { %3152 = vmatpush.msrb.mxu0 %v2807_v52  ;;  %3172 = vmatpush.msrb.mxu1 %v2871_v55  ;;  %v2863_v7 = vld [vmem:[%s5774_s9 + $0x228] sm:$0xff]  ;;  %v2840_v34 = vld [vmem:[%s5774_s9 + $0x170] sm:$0xff] }
 0x2db   : > { %3194 = vmatpush.msrb.mxu2 %v2927_v57  ;;  %3213 = vmatpush.msrb.mxu3 %v2995_v58  ;;  %v2987_v9 = vld [vmem:[%s5774_s9 + $0x608] sm:$0xff]  ;;  %v2904_v35 = vld [vmem:[%s5774_s9 + $0x370] sm:$0xff] }
 0x2dc   : > { %3153 = vmatpush.msrb.mxu0 %v2803_v60  ;;  %3173 = vmatpush.msrb.mxu1 %v2867_v41  ;;  %v2795_v37 = vld [vmem:[%s5774_s9 + $0x8] sm:$0xff]  ;;  %v2960_v36 = vld [vmem:[%s5774_s9 + $0x530] sm:$0xff] }
 0x2dd   : > { %3195 = vmatpush.msrb.mxu2 %v2923_v61  ;;  %3214 = vmatpush.msrb.mxu3 %v2991_v4  ;;  %v2859_v14 = vld [vmem:[%s5774_s9 + $0x208] sm:$0xff]  ;;  %v3028_v50 = vld [vmem:[%s5774_s9 + $0x750] sm:$0xff] }
 0x2de   : > { %3196 = vmatmul.f32.vlgmr.msrb.gmra.mxu2 %v5799_v31  ;;  %3154 = vmatpush.msrb.mxu0 %v2799_v62  ;;  %v2836_v39 = vld [vmem:[%s5774_s9 + $0x150] sm:$0xff] }
 0x2df   : > { %3260 = vmatpush.msra.mxu2 %v2984_v5  ;;  %3174 = vmatpush.msrb.mxu1 %v2863_v7  ;;  %v2900_v40 = vld [vmem:[%s5774_s9 + $0x350] sm:$0xff] }
 0x2e0   : > { %3215 = vmatpush.msrb.mxu3 %v2987_v9  ;;  %3155 = vmatpush.msrb.mxu0 %v2795_v37  ;;  %v2956_v27 = vld [vmem:[%s5774_s9 + $0x510] sm:$0xff] }
 0x2e1   : > { %3216 = vmatmul.f32.vlgmr.msrb.gmra.mxu3 %v5801_v48  ;;  %3261 = vmatpush.msra.mxu2 %v2980_v11  ;;  %v3024_v43 = vld [vmem:[%s5774_s9 + $0x730] sm:$0xff] }
 0x2e2   : > { %3280 = vmatpush.msra.mxu3 %v3048_v13  ;;  %3175 = vmatpush.msrb.mxu1 %v2859_v14  ;;  %v2832_v44 = vld [vmem:[%s5774_s9 + $0x130] sm:$0xff] }
 0x2e3   : > { %3156 = vmatmul.f32.vlgmr.msrb.gmra.mxu0 %v5803_v29  ;;  %3176 = vmatmul.f32.vlgmr.msrb.gmra.mxu1 %v5805_v32  ;;  %v2896_v59 = vld [vmem:[%s5774_s9 + $0x330] sm:$0xff] }
 0x2e4   : > { %3220 = vmatpush.msra.mxu0 %v2856_v15  ;;  %3240 = vmatpush.msra.mxu1 %v2920_v53  ;;  %v2952_v28 = vld [vmem:[%s5774_s9 + $0x4f0] sm:$0xff] }
 0x2e5   : > { %3262 = vmatpush.msra.mxu2 %v2976_v63  ;;  %3281 = vmatpush.msra.mxu3 %v3044_v38  ;;  %v3020_v45 = vld [vmem:[%s5774_s9 + $0x710] sm:$0xff] }
 0x2e6   : > { %3221 = vmatpush.msra.mxu0 %v2852_v16  ;;  %3241 = vmatpush.msra.mxu1 %v2916_v18  ;;  %v2828_v46 = vld [vmem:[%s5774_s9 + $0x110] sm:$0xff] }
 0x2e7   : > { %3263 = vmatpush.msra.mxu2 %v2972_v19  ;;  %3282 = vmatpush.msra.mxu3 %v3040_v20  ;;  %v2892_v17 = vld [vmem:[%s5774_s9 + $0x310] sm:$0xff]  ;;  %v2985_v19 = vld [vmem:[%s5774_s9 + $0x5f8] sm:$0xff] }
 0x2e8   : > { %3222 = vmatpush.msra.mxu0 %v2848_v21  ;;  %3242 = vmatpush.msra.mxu1 %v2912_v22  ;;  %v2948_v47 = vld [vmem:[%s5774_s9 + $0x4d0] sm:$0xff] }
 0x2e9   : > { %3264 = vmatpush.msra.mxu2 %v2968_v23  ;;  %3283 = vmatpush.msra.mxu3 %v3036_v24  ;;  %v3016_v30 = vld [vmem:[%s5774_s9 + $0x6f0] sm:$0xff]  ;;  %v2981_v24 = vld [vmem:[%s5774_s9 + $0x5d8] sm:$0xff] }
 0x2ea   : > { %3223 = vmatpush.msra.mxu0 %v2844_v25  ;;  %3243 = vmatpush.msra.mxu1 %v2908_v26  ;;  %v2824_v51 = vld [vmem:[%s5774_s9 + $0xf0] sm:$0xff]  ;;  %v3049_v26 = vld [vmem:[%s5774_s9 + $0x7f8] sm:$0xff] }
 0x2eb   : > { %3265 = vmatpush.msra.mxu2 %v2964_v33  ;;  %3284 = vmatpush.msra.mxu3 %v3032_v0  ;;  %v2888_v49 = vld [vmem:[%s5774_s9 + $0x2f0] sm:$0xff] }
 0x2ec   : > { %3224 = vmatpush.msra.mxu0 %v2840_v34  ;;  %3244 = vmatpush.msra.mxu1 %v2904_v35  ;;  %v2944_v52 = vld [vmem:[%s5774_s9 + $0x4b0] sm:$0xff]  ;;  %v2857_v34 = vld [vmem:[%s5774_s9 + $0x1f8] sm:$0xff] }
 0x2ed   : > { %3266 = vmatpush.msra.mxu2 %v2960_v36  ;;  %3285 = vmatpush.msra.mxu3 %v3028_v50  ;;  %v3012_v1 = vld [vmem:[%s5774_s9 + $0x6d0] sm:$0xff]  ;;  %v2977_v35 = vld [vmem:[%s5774_s9 + $0x5b8] sm:$0xff] }
 0x2ee   : > { %3225 = vmatpush.msra.mxu0 %v2836_v39  ;;  %3245 = vmatpush.msra.mxu1 %v2900_v40  ;;  %v2820_v54 = vld [vmem:[%s5774_s9 + $0xd0] sm:$0xff]  ;;  %v3045_v36 = vld [vmem:[%s5774_s9 + $0x7d8] sm:$0xff] }
 0x2ef   : > { %3267 = vmatpush.msra.mxu2 %v2956_v27  ;;  %3286 = vmatpush.msra.mxu3 %v3024_v43  ;;  %v2884_v55 = vld [vmem:[%s5774_s9 + $0x2d0] sm:$0xff]  ;;  %v2853_v50 = vld [vmem:[%s5774_s9 + $0x1d8] sm:$0xff] }
 0x2f0   : > { %3226 = vmatpush.msra.mxu0 %v2832_v44  ;;  %3246 = vmatpush.msra.mxu1 %v2896_v59  ;;  %v2940_v57 = vld [vmem:[%s5774_s9 + $0x490] sm:$0xff]  ;;  %v2917_v39 = vld [vmem:[%s5774_s9 + $0x3d8] sm:$0xff] }
 0x2f1   : > { %3268 = vmatpush.msra.mxu2 %v2952_v28  ;;  %3287 = vmatpush.msra.mxu3 %v3020_v45  ;;  %v3008_v10 = vld [vmem:[%s5774_s9 + $0x6b0] sm:$0xff]  ;;  %v2973_v40 = vld [vmem:[%s5774_s9 + $0x598] sm:$0xff] }
 0x2f2   : > { %3227 = vmatpush.msra.mxu0 %v2828_v46  ;;  %3247 = vmatpush.msra.mxu1 %v2892_v17  ;;  %v2816_v58 = vld [vmem:[%s5774_s9 + $0xb0] sm:$0xff]  ;;  %v2630_v5 = vpop.f32.mrf.mxu0  ;;  %v2650_v7 = vpop.f32.mrf.mxu1  ;;  %v3041_v27 = vld [vmem:[%s5774_s9 + $0x7b8] sm:$0xff] }
 0x2f3   : > { %3269 = vmatpush.msra.mxu2 %v2948_v47  ;;  %3288 = vmatpush.msra.mxu3 %v3016_v30  ;;  %v2880_v60 = vld [vmem:[%s5774_s9 + $0x2b0] sm:$0xff]  ;;  %v2670_v9 = vpop.f32.mrf.mxu2  ;;  %v2651_v37 = vadd.f32 %v2650_v7, %v2630_v5  ;;  %v2849_v43 = vld [vmem:[%s5774_s9 + $0x1b8] sm:$0xff] }
 0x2f4   : > { %3228 = vmatpush.msra.mxu0 %v2824_v51  ;;  %3248 = vmatpush.msra.mxu1 %v2888_v49  ;;  %v2936_v41 = vld [vmem:[%s5774_s9 + $0x470] sm:$0xff]  ;;  %v2913_v44 = vld [vmem:[%s5774_s9 + $0x3b8] sm:$0xff] }
 0x2f5   : > { %3270 = vmatpush.msra.mxu2 %v2944_v52  ;;  %3289 = vmatpush.msra.mxu3 %v3012_v1  ;;  %v3004_v61 = vld [vmem:[%s5774_s9 + $0x690] sm:$0xff]  ;;  %v2671_v38 = vadd.f32 %v2670_v9, %v2651_v37  ;;  %v2969_v59 = vld [vmem:[%s5774_s9 + $0x578] sm:$0xff] }
 0x2f6   : > { %3229 = vmatpush.msra.mxu0 %v2820_v54  ;;  %3249 = vmatpush.msra.mxu1 %v2884_v55  ;;  %v2812_v2 = vld [vmem:[%s5774_s9 + $0x90] sm:$0xff]  ;;  %v2690_v16 = vpop.f32.mrf.mxu3  ;;  %v3037_v28 = vld [vmem:[%s5774_s9 + $0x798] sm:$0xff] }
 0x2f7   : > { %3271 = vmatpush.msra.mxu2 %v2940_v57  ;;  %3290 = vmatpush.msra.mxu3 %v3008_v10  ;;  %v2876_v3 = vld [vmem:[%s5774_s9 + $0x290] sm:$0xff]  ;;  %v2691_v21 = vadd.f32 %v2690_v16, %v2671_v38  ;;  %v2845_v45 = vld [vmem:[%s5774_s9 + $0x198] sm:$0xff] }
 0x2f8   : > { %3230 = vmatpush.msra.mxu0 %v2816_v58  ;;  %3250 = vmatpush.msra.mxu1 %v2880_v60  ;;  %v2932_v4 = vld [vmem:[%s5774_s9 + $0x450] sm:$0xff]  ;;  %v2909_v46 = vld [vmem:[%s5774_s9 + $0x398] sm:$0xff] }
 0x2f9   : > { %3272 = vmatpush.msra.mxu2 %v2936_v41  ;;  %3291 = vmatpush.msra.mxu3 %v3004_v61  ;;  %v3000_v62 = vld [vmem:[%s5774_s9 + $0x670] sm:$0xff]  ;;  %v6012_v25 = vadd.f32 %v2691_v21, %v5694_v8  ;;  %v2921_v8 = vld [vmem:[%s5774_s9 + $0x3f8] sm:$0xff] }
 0x2fa   : > { %3231 = vmatpush.msra.mxu0 %v2812_v2  ;;  %3251 = vmatpush.msra.mxu1 %v2876_v3  ;;  %v2808_v6 = vld [vmem:[%s5774_s9 + $0x70] sm:$0xff]  ;;  %v2965_v17 = vld [vmem:[%s5774_s9 + $0x558] sm:$0xff] }
 0x2fb   : > { %3273 = vmatpush.msra.mxu2 %v2932_v4  ;;  %3292 = vmatpush.msra.mxu3 %v3000_v62  ;;  %v2872_v11 = vld [vmem:[%s5774_s9 + $0x270] sm:$0xff]  ;;  %v3033_v47 = vld [vmem:[%s5774_s9 + $0x778] sm:$0xff] }
 0x2fc   : > { %3232 = vmatpush.msra.mxu0 %v2808_v6  ;;  %v2928_v13 = vld [vmem:[%s5774_s9 + $0x430] sm:$0xff]  ;;  %3252 = vmatpush.msra.mxu1 %v2872_v11  ;;  %v2841_v30 = vld [vmem:[%s5774_s9 + $0x178] sm:$0xff] }
 0x2fd   : > { %3274 = vmatpush.msra.mxu2 %v2928_v13  ;;  %v2996_v14 = vld [vmem:[%s5774_s9 + $0x650] sm:$0xff]  ;;  %v2905_v51 = vld [vmem:[%s5774_s9 + $0x378] sm:$0xff] }
 0x2fe   : > { %v2804_v15 = vld [vmem:[%s5774_s9 + $0x50] sm:$0xff]  ;;  %3293 = vmatpush.msra.mxu3 %v2996_v14  ;;  %v2961_v49 = vld [vmem:[%s5774_s9 + $0x538] sm:$0xff] }
 0x2ff   : > { %3233 = vmatpush.msra.mxu0 %v2804_v15  ;;  %v2868_v53 = vld [vmem:[%s5774_s9 + $0x250] sm:$0xff]  ;;  %v3029_v52 = vld [vmem:[%s5774_s9 + $0x758] sm:$0xff] }
 0x300   : > { %v2924_v63 = vld [vmem:[%s5774_s9 + $0x410] sm:$0xff]  ;;  %3253 = vmatpush.msra.mxu1 %v2868_v53  ;;  %v2837_v1 = vld [vmem:[%s5774_s9 + $0x158] sm:$0xff] }
 0x301   : > { %3275 = vmatpush.msra.mxu2 %v2924_v63  ;;  %v2992_v18 = vld [vmem:[%s5774_s9 + $0x630] sm:$0xff]  ;;  %v2901_v54 = vld [vmem:[%s5774_s9 + $0x358] sm:$0xff] }
 0x302   : > { %3294 = vmatpush.msra.mxu3 %v2992_v18  ;;  %3276 = vmatmul.f32.vlgmr.msra.gmra.mxu2 %v5799_v31  ;;  %v2800_v20 = vld [vmem:[%s5774_s9 + $0x30] sm:$0xff]  ;;  %v2957_v55 = vld [vmem:[%s5774_s9 + $0x518] sm:$0xff] }
 0x303   : > { %3340 = vmatpush.msrb.mxu2 %v2985_v19  ;;  %3234 = vmatpush.msra.mxu0 %v2800_v20  ;;  %v2864_v22 = vld [vmem:[%s5774_s9 + $0x230] sm:$0xff]  ;;  %v3025_v57 = vld [vmem:[%s5774_s9 + $0x738] sm:$0xff] }
 0x304   : > { %v2988_v23 = vld [vmem:[%s5774_s9 + $0x610] sm:$0xff]  ;;  %3254 = vmatpush.msra.mxu1 %v2864_v22  ;;  %v2833_v10 = vld [vmem:[%s5774_s9 + $0x138] sm:$0xff] }
 0x305   : > { %3295 = vmatpush.msra.mxu3 %v2988_v23  ;;  %3341 = vmatpush.msrb.mxu2 %v2981_v24  ;;  %v2796_v33 = vld [vmem:[%s5774_s9 + $0x10] sm:$0xff]  ;;  %v2897_v58 = vld [vmem:[%s5774_s9 + $0x338] sm:$0xff] }
 0x306   : > { %3296 = vmatmul.f32.vlgmr.msra.gmra.mxu3 %v5801_v48  ;;  %3235 = vmatpush.msra.mxu0 %v2796_v33  ;;  %v2860_v0 = vld [vmem:[%s5774_s9 + $0x210] sm:$0xff]  ;;  %v2953_v60 = vld [vmem:[%s5774_s9 + $0x4f8] sm:$0xff] }
 0x307   : > { %3360 = vmatpush.msrb.mxu3 %v3049_v26  ;;  %3255 = vmatpush.msra.mxu1 %v2860_v0  ;;  %v3021_v41 = vld [vmem:[%s5774_s9 + $0x718] sm:$0xff] }
 0x308   : > { %3236 = vmatmul.f32.vlgmr.msra.gmra.mxu0 %v5803_v29  ;;  %3256 = vmatmul.f32.vlgmr.msra.gmra.mxu1 %v5805_v32  ;;  %v2829_v61 = vld [vmem:[%s5774_s9 + $0x118] sm:$0xff] }
 0x309   : > { %3300 = vmatpush.msrb.mxu0 %v2857_v34  ;;  %3320 = vmatpush.msrb.mxu1 %v2921_v8  ;;  %v2893_v2 = vld [vmem:[%s5774_s9 + $0x318] sm:$0xff]  ;;  %v3589_v34 = vld [vmem:[%s6090_s26 + $0x5e0] sm:$0xff] }
 0x30a   : > { %3342 = vmatpush.msrb.mxu2 %v2977_v35  ;;  %3361 = vmatpush.msrb.mxu3 %v3045_v36  ;;  %v2949_v3 = vld [vmem:[%s5774_s9 + $0x4d8] sm:$0xff] }
 0x30b   : > { %3301 = vmatpush.msrb.mxu0 %v2853_v50  ;;  %3321 = vmatpush.msrb.mxu1 %v2917_v39  ;;  %v3017_v4 = vld [vmem:[%s5774_s9 + $0x6f8] sm:$0xff]  ;;  %v3585_v50 = vld [vmem:[%s6090_s26 + $0x5c0] sm:$0xff] }
 0x30c   : > { %3343 = vmatpush.msrb.mxu2 %v2973_v40  ;;  %3362 = vmatpush.msrb.mxu3 %v3041_v27  ;;  %v2825_v5 = vld [vmem:[%s5774_s9 + $0xf8] sm:$0xff]  ;;  %v3461_v27 = vld [vmem:[%s6090_s26 + $0x1e0] sm:$0xff] }
 0x30d   : > { %3302 = vmatpush.msrb.mxu0 %v2849_v43  ;;  %3322 = vmatpush.msrb.mxu1 %v2913_v44  ;;  %v2889_v62 = vld [vmem:[%s5774_s9 + $0x2f8] sm:$0xff]  ;;  %v3581_v43 = vld [vmem:[%s6090_s26 + $0x5a0] sm:$0xff] }
 0x30e   : > { %3344 = vmatpush.msrb.mxu2 %v2969_v59  ;;  %3363 = vmatpush.msrb.mxu3 %v3037_v28  ;;  %v2945_v6 = vld [vmem:[%s5774_s9 + $0x4b8] sm:$0xff]  ;;  %v3649_v44 = vld [vmem:[%s6090_s26 + $0x7c0] sm:$0xff] }
 0x30f   : > { %3303 = vmatpush.msrb.mxu0 %v2845_v45  ;;  %3323 = vmatpush.msrb.mxu1 %v2909_v46  ;;  %v3013_v7 = vld [vmem:[%s5774_s9 + $0x6d8] sm:$0xff]  ;;  %v3457_v59 = vld [vmem:[%s6090_s26 + $0x1c0] sm:$0xff] }
 0x310   : > { %3345 = vmatpush.msrb.mxu2 %v2965_v17  ;;  %3364 = vmatpush.msrb.mxu3 %v3033_v47  ;;  %v2821_v9 = vld [vmem:[%s5774_s9 + $0xd8] sm:$0xff]  ;;  %v3521_v28 = vld [vmem:[%s6090_s26 + $0x3c0] sm:$0xff] }
 0x311   : > { %3304 = vmatpush.msrb.mxu0 %v2841_v30  ;;  %3324 = vmatpush.msrb.mxu1 %v2905_v51  ;;  %v2885_v11 = vld [vmem:[%s5774_s9 + $0x2d8] sm:$0xff]  ;;  %v3453_v45 = vld [vmem:[%s6090_s26 + $0x1a0] sm:$0xff] }
 0x312   : > { %3346 = vmatpush.msrb.mxu2 %v2961_v49  ;;  %3365 = vmatpush.msrb.mxu3 %v3029_v52  ;;  %v2941_v13 = vld [vmem:[%s5774_s9 + $0x498] sm:$0xff]  ;;  %v3517_v46 = vld [vmem:[%s6090_s26 + $0x3a0] sm:$0xff] }
 0x313   : > { %3305 = vmatpush.msrb.mxu0 %v2837_v1  ;;  %3325 = vmatpush.msrb.mxu1 %v2901_v54  ;;  %v3009_v37 = vld [vmem:[%s5774_s9 + $0x6b8] sm:$0xff]  ;;  %v3573_v17 = vld [vmem:[%s6090_s26 + $0x560] sm:$0xff] }
 0x314   : > { %3347 = vmatpush.msrb.mxu2 %v2957_v55  ;;  %3366 = vmatpush.msrb.mxu3 %v3025_v57  ;;  %v2817_v14 = vld [vmem:[%s5774_s9 + $0xb8] sm:$0xff]  ;;  %v3641_v47 = vld [vmem:[%s6090_s26 + $0x780] sm:$0xff] }
 0x315   : > { %3306 = vmatpush.msrb.mxu0 %v2833_v10  ;;  %3326 = vmatpush.msrb.mxu1 %v2897_v58  ;;  %v2881_v15 = vld [vmem:[%s5774_s9 + $0x2b8] sm:$0xff]  ;;  %v3449_v30 = vld [vmem:[%s6090_s26 + $0x180] sm:$0xff] }
 0x316   : > { %3348 = vmatpush.msrb.mxu2 %v2953_v60  ;;  %3367 = vmatpush.msrb.mxu3 %v3021_v41  ;;  %v2937_v53 = vld [vmem:[%s5774_s9 + $0x478] sm:$0xff]  ;;  %v3513_v51 = vld [vmem:[%s6090_s26 + $0x380] sm:$0xff] }
 0x317   : > { %3307 = vmatpush.msrb.mxu0 %v2829_v61  ;;  %3327 = vmatpush.msrb.mxu1 %v2893_v2  ;;  %v3005_v63 = vld [vmem:[%s5774_s9 + $0x698] sm:$0xff]  ;;  %v3569_v49 = vld [vmem:[%s6090_s26 + $0x540] sm:$0xff] }
 0x318   : > { %3349 = vmatpush.msrb.mxu2 %v2949_v3  ;;  %3368 = vmatpush.msrb.mxu3 %v3017_v4  ;;  %v2813_v38 = vld [vmem:[%s5774_s9 + $0x98] sm:$0xff]  ;;  %v3637_v52 = vld [vmem:[%s6090_s26 + $0x760] sm:$0xff] }
 0x319   : > { %3308 = vmatpush.msrb.mxu0 %v2825_v5  ;;  %3328 = vmatpush.msrb.mxu1 %v2889_v62  ;;  %v2877_v16 = vld [vmem:[%s5774_s9 + $0x298] sm:$0xff]  ;;  %v3445_v1 = vld [vmem:[%s6090_s26 + $0x160] sm:$0xff] }
 0x31a   : > { %3350 = vmatpush.msrb.mxu2 %v2945_v6  ;;  %3369 = vmatpush.msrb.mxu3 %v3013_v7  ;;  %v2933_v18 = vld [vmem:[%s5774_s9 + $0x458] sm:$0xff]  ;;  %v3509_v54 = vld [vmem:[%s6090_s26 + $0x360] sm:$0xff] }
 0x31b   : > { %3309 = vmatpush.msrb.mxu0 %v2821_v9  ;;  %3329 = vmatpush.msrb.mxu1 %v2885_v11  ;;  %v3001_v19 = vld [vmem:[%s5774_s9 + $0x678] sm:$0xff]  ;;  %v3565_v55 = vld [vmem:[%s6090_s26 + $0x520] sm:$0xff] }
 0x31c   : > { %3351 = vmatpush.msrb.mxu2 %v2941_v13  ;;  %3370 = vmatpush.msrb.mxu3 %v3009_v37  ;;  %v2809_v20 = vld [vmem:[%s5774_s9 + $0x78] sm:$0xff]  ;;  %v3633_v57 = vld [vmem:[%s6090_s26 + $0x740] sm:$0xff] }
 0x31d   : > { %3310 = vmatpush.msrb.mxu0 %v2817_v14  ;;  %3330 = vmatpush.msrb.mxu1 %v2881_v15  ;;  %v2873_v21 = vld [vmem:[%s5774_s9 + $0x278] sm:$0xff]  ;;  %v3441_v10 = vld [vmem:[%s6090_s26 + $0x140] sm:$0xff] }
 0x31e   : > { %3352 = vmatpush.msrb.mxu2 %v2937_v53  ;;  %3371 = vmatpush.msrb.mxu3 %v3005_v63  ;;  %v2929_v22 = vld [vmem:[%s5774_s9 + $0x438] sm:$0xff]  ;;  %v3505_v58 = vld [vmem:[%s6090_s26 + $0x340] sm:$0xff] }
 0x31f   : > { %3311 = vmatpush.msrb.mxu0 %v2813_v38  ;;  %3331 = vmatpush.msrb.mxu1 %v2877_v16  ;;  %v2997_v23 = vld [vmem:[%s5774_s9 + $0x658] sm:$0xff]  ;;  %v3561_v60 = vld [vmem:[%s6090_s26 + $0x500] sm:$0xff] }
 0x320   : > { %3353 = vmatpush.msrb.mxu2 %v2933_v18  ;;  %3372 = vmatpush.msrb.mxu3 %v3001_v19  ;;  %v2805_v24 = vld [vmem:[%s5774_s9 + $0x58] sm:$0xff]  ;;  %v3629_v41 = vld [vmem:[%s6090_s26 + $0x720] sm:$0xff] }
 0x321   : > { %3312 = vmatpush.msrb.mxu0 %v2809_v20  ;;  %3332 = vmatpush.msrb.mxu1 %v2873_v21  ;;  %v2869_v26 = vld [vmem:[%s5774_s9 + $0x258] sm:$0xff]  ;;  %v3437_v61 = vld [vmem:[%s6090_s26 + $0x120] sm:$0xff] }
 0x322   : > { %3354 = vmatpush.msrb.mxu2 %v2929_v22  ;;  %3373 = vmatpush.msrb.mxu3 %v2997_v23  ;;  %v2925_v33 = vld [vmem:[%s5774_s9 + $0x418] sm:$0xff]  ;;  %v3501_v2 = vld [vmem:[%s6090_s26 + $0x320] sm:$0xff] }
 0x323   : > { %3313 = vmatpush.msrb.mxu0 %v2805_v24  ;;  %3333 = vmatpush.msrb.mxu1 %v2869_v26  ;;  %v2993_v0 = vld [vmem:[%s5774_s9 + $0x638] sm:$0xff]  ;;  %v3557_v3 = vld [vmem:[%s6090_s26 + $0x4e0] sm:$0xff] }
 0x324   : > { %3355 = vmatpush.msrb.mxu2 %v2925_v33  ;;  %3374 = vmatpush.msrb.mxu3 %v2993_v0  ;;  %v2801_v8 = vld [vmem:[%s5774_s9 + $0x38] sm:$0xff]  ;;  %v3625_v4 = vld [vmem:[%s6090_s26 + $0x700] sm:$0xff] }
 0x325   : > { %3356 = vmatmul.f32.vlgmr.msrb.gmra.mxu2 %v5799_v31  ;;  %3314 = vmatpush.msrb.mxu0 %v2801_v8  ;;  %v2865_v35 = vld [vmem:[%s5774_s9 + $0x238] sm:$0xff]  ;;  %v3653_v31 = vld [vmem:[%s6090_s26 + $0x7e0] sm:$0xff]  ;;  %v6156_v8 = vld.sshfl [vmem:[#allocation1 + $0x10] sm:$0xff pattern:$0x73625140] }
 0x326   : > { %3707 = vmatpush.msra.mxu2 %v3589_v34  ;;  %v2989_v36 = vld [vmem:[%s5774_s9 + $0x618] sm:$0xff]  ;;  %3334 = vmatpush.msrb.mxu1 %v2865_v35  ;;  %v3433_v5 = vld [vmem:[%s6090_s26 + $0x100] sm:$0xff] }
 0x327   : > { %3375 = vmatpush.msrb.mxu3 %v2989_v36  ;;  %v2797_v39 = vld [vmem:[%s5774_s9 + $0x18] sm:$0xff]  ;;  %v3497_v62 = vld [vmem:[%s6090_s26 + $0x300] sm:$0xff] }
 0x328   : > { %3376 = vmatmul.f32.vlgmr.msrb.gmra.mxu3 %v5801_v48  ;;  %3708 = vmatpush.msra.mxu2 %v3585_v50  ;;  %v2861_v40 = vld [vmem:[%s5774_s9 + $0x218] sm:$0xff]  ;;  %v3525_v48 = vld [vmem:[%s6090_s26 + $0x3e0] sm:$0xff] }
 0x329   : > { %3727 = vmatpush.msra.mxu3 %v3653_v31  ;;  %3315 = vmatpush.msrb.mxu0 %v2797_v39  ;;  %v3553_v6 = vld [vmem:[%s6090_s26 + $0x4c0] sm:$0xff]  ;;  %v3590_v31 = vld [vmem:[%s6090_s26 + $0x5e8] sm:$0xff] }
 0x32a   : > { %3335 = vmatpush.msrb.mxu1 %v2861_v40  ;;  %3316 = vmatmul.f32.vlgmr.msrb.gmra.mxu0 %v5803_v29  ;;  %v3577_v29 = vld [vmem:[%s6090_s26 + $0x580] sm:$0xff]  ;;  %v6164_v40 = vld.sshfl [vmem:[#allocation1 + $0x18] sm:$0xff pattern:$0x73625140] }
 0x32b   : > { %3336 = vmatmul.f32.vlgmr.msrb.gmra.mxu1 %v5805_v32  ;;  %3667 = vmatpush.msra.mxu0 %v3461_v27  ;;  %v3645_v32 = vld [vmem:[%s6090_s26 + $0x7a0] sm:$0xff] }
 0x32c   : > { %3687 = vmatpush.msra.mxu1 %v3525_v48  ;;  %3709 = vmatpush.msra.mxu2 %v3581_v43  ;;  %v3621_v7 = vld [vmem:[%s6090_s26 + $0x6e0] sm:$0xff]  ;;  %v3586_v43 = vld [vmem:[%s6090_s26 + $0x5c8] sm:$0xff] }
 0x32d   : > { %3728 = vmatpush.msra.mxu3 %v3649_v44  ;;  %3668 = vmatpush.msra.mxu0 %v3457_v59  ;;  %v3429_v9 = vld [vmem:[%s6090_s26 + $0xe0] sm:$0xff]  ;;  %v3654_v59 = vld [vmem:[%s6090_s26 + $0x7e8] sm:$0xff] }
 0x32e   : > { %3688 = vmatpush.msra.mxu1 %v3521_v28  ;;  %3710 = vmatpush.msra.mxu2 %v3577_v29  ;;  %v3493_v11 = vld [vmem:[%s6090_s26 + $0x2e0] sm:$0xff]  ;;  %v6174_v29 = vld.sshfl [vmem:[#allocation1 + $0x8] sm:$0xff pattern:$0x73625140] }
 0x32f   : > { %3729 = vmatpush.msra.mxu3 %v3645_v32  ;;  %3669 = vmatpush.msra.mxu0 %v3453_v45  ;;  %v3549_v13 = vld [vmem:[%s6090_s26 + $0x4a0] sm:$0xff]  ;;  %v3462_v45 = vld [vmem:[%s6090_s26 + $0x1e8] sm:$0xff] }
 0x330   : > { %3689 = vmatpush.msra.mxu1 %v3517_v46  ;;  %3711 = vmatpush.msra.mxu2 %v3573_v17  ;;  %v3617_v37 = vld [vmem:[%s6090_s26 + $0x6c0] sm:$0xff]  ;;  %v3526_v46 = vld [vmem:[%s6090_s26 + $0x3e8] sm:$0xff] }
 0x331   : > { %3730 = vmatpush.msra.mxu3 %v3641_v47  ;;  %3670 = vmatpush.msra.mxu0 %v3449_v30  ;;  %v3425_v14 = vld [vmem:[%s6090_s26 + $0xc0] sm:$0xff]  ;;  %v3582_v17 = vld [vmem:[%s6090_s26 + $0x5a8] sm:$0xff] }
 0x332   : > { %3690 = vmatpush.msra.mxu1 %v3513_v51  ;;  %3712 = vmatpush.msra.mxu2 %v3569_v49  ;;  %v3489_v15 = vld [vmem:[%s6090_s26 + $0x2c0] sm:$0xff]  ;;  %v3650_v47 = vld [vmem:[%s6090_s26 + $0x7c8] sm:$0xff] }
 0x333   : > { %3731 = vmatpush.msra.mxu3 %v3637_v52  ;;  %3671 = vmatpush.msra.mxu0 %v3445_v1  ;;  %v3545_v53 = vld [vmem:[%s6090_s26 + $0x480] sm:$0xff]  ;;  %v3458_v30 = vld [vmem:[%s6090_s26 + $0x1c8] sm:$0xff] }
 0x334   : > { %3691 = vmatpush.msra.mxu1 %v3509_v54  ;;  %3713 = vmatpush.msra.mxu2 %v3565_v55  ;;  %v3613_v63 = vld [vmem:[%s6090_s26 + $0x6a0] sm:$0xff]  ;;  %v3522_v51 = vld [vmem:[%s6090_s26 + $0x3c8] sm:$0xff] }
 0x335   : > { %3732 = vmatpush.msra.mxu3 %v3633_v57  ;;  %3672 = vmatpush.msra.mxu0 %v3441_v10  ;;  %v3421_v38 = vld [vmem:[%s6090_s26 + $0xa0] sm:$0xff]  ;;  %v3578_v49 = vld [vmem:[%s6090_s26 + $0x588] sm:$0xff] }
 0x336   : > { %3692 = vmatpush.msra.mxu1 %v3505_v58  ;;  %3714 = vmatpush.msra.mxu2 %v3561_v60  ;;  %v3485_v16 = vld [vmem:[%s6090_s26 + $0x2a0] sm:$0xff]  ;;  %v3646_v52 = vld [vmem:[%s6090_s26 + $0x7a8] sm:$0xff] }
 0x337   : > { %3733 = vmatpush.msra.mxu3 %v3629_v41  ;;  %3673 = vmatpush.msra.mxu0 %v3437_v61  ;;  %v3541_v18 = vld [vmem:[%s6090_s26 + $0x460] sm:$0xff]  ;;  %v3454_v1 = vld [vmem:[%s6090_s26 + $0x1a8] sm:$0xff] }
 0x338   : > { %3693 = vmatpush.msra.mxu1 %v3501_v2  ;;  %3715 = vmatpush.msra.mxu2 %v3557_v3  ;;  %v3609_v19 = vld [vmem:[%s6090_s26 + $0x680] sm:$0xff]  ;;  %v3518_v54 = vld [vmem:[%s6090_s26 + $0x3a8] sm:$0xff] }
 0x339   : > { %3734 = vmatpush.msra.mxu3 %v3625_v4  ;;  %3674 = vmatpush.msra.mxu0 %v3433_v5  ;;  %v3417_v20 = vld [vmem:[%s6090_s26 + $0x80] sm:$0xff]  ;;  %v3574_v55 = vld [vmem:[%s6090_s26 + $0x568] sm:$0xff] }
 0x33a   : > { %3694 = vmatpush.msra.mxu1 %v3497_v62  ;;  %3716 = vmatpush.msra.mxu2 %v3553_v6  ;;  %v3481_v21 = vld [vmem:[%s6090_s26 + $0x280] sm:$0xff]  ;;  %v3642_v57 = vld [vmem:[%s6090_s26 + $0x788] sm:$0xff] }
 0x33b   : > { %3735 = vmatpush.msra.mxu3 %v3621_v7  ;;  %3675 = vmatpush.msra.mxu0 %v3429_v9  ;;  %v3537_v22 = vld [vmem:[%s6090_s26 + $0x440] sm:$0xff]  ;;  %v3450_v10 = vld [vmem:[%s6090_s26 + $0x188] sm:$0xff] }
 0x33c   : > { %3695 = vmatpush.msra.mxu1 %v3493_v11  ;;  %3717 = vmatpush.msra.mxu2 %v3549_v13  ;;  %v3605_v23 = vld [vmem:[%s6090_s26 + $0x660] sm:$0xff]  ;;  %v3514_v58 = vld [vmem:[%s6090_s26 + $0x388] sm:$0xff] }
 0x33d   : > { %3736 = vmatpush.msra.mxu3 %v3617_v37  ;;  %3676 = vmatpush.msra.mxu0 %v3425_v14  ;;  %v3413_v24 = vld [vmem:[%s6090_s26 + $0x60] sm:$0xff]  ;;  %v3570_v60 = vld [vmem:[%s6090_s26 + $0x548] sm:$0xff] }
 0x33e   : > { %3696 = vmatpush.msra.mxu1 %v3489_v15  ;;  %3718 = vmatpush.msra.mxu2 %v3545_v53  ;;  %v3477_v26 = vld [vmem:[%s6090_s26 + $0x260] sm:$0xff]  ;;  %v3638_v41 = vld [vmem:[%s6090_s26 + $0x768] sm:$0xff] }
 0x33f   : > { %3737 = vmatpush.msra.mxu3 %v3613_v63  ;;  %3677 = vmatpush.msra.mxu0 %v3421_v38  ;;  %v3533_v33 = vld [vmem:[%s6090_s26 + $0x420] sm:$0xff]  ;;  %v3446_v61 = vld [vmem:[%s6090_s26 + $0x168] sm:$0xff] }
 0x340   : > { %3697 = vmatpush.msra.mxu1 %v3485_v16  ;;  %3719 = vmatpush.msra.mxu2 %v3541_v18  ;;  %v3601_v0 = vld [vmem:[%s6090_s26 + $0x640] sm:$0xff]  ;;  %v3510_v2 = vld [vmem:[%s6090_s26 + $0x368] sm:$0xff] }
 0x341   : > { %3738 = vmatpush.msra.mxu3 %v3609_v19  ;;  %3678 = vmatpush.msra.mxu0 %v3417_v20  ;;  %v3409_v34 = vld [vmem:[%s6090_s26 + $0x40] sm:$0xff]  ;;  %v3566_v3 = vld [vmem:[%s6090_s26 + $0x528] sm:$0xff] }
 0x342   : > { %3698 = vmatpush.msra.mxu1 %v3481_v21  ;;  %3720 = vmatpush.msra.mxu2 %v3537_v22  ;;  %v3473_v35 = vld [vmem:[%s6090_s26 + $0x240] sm:$0xff]  ;;  %v3634_v4 = vld [vmem:[%s6090_s26 + $0x748] sm:$0xff] }
 0x343   : > { %3739 = vmatpush.msra.mxu3 %v3605_v23  ;;  %3679 = vmatpush.msra.mxu0 %v3413_v24  ;;  %v3529_v36 = vld [vmem:[%s6090_s26 + $0x400] sm:$0xff]  ;;  %v3442_v5 = vld [vmem:[%s6090_s26 + $0x148] sm:$0xff] }
 0x344   : > { %3699 = vmatpush.msra.mxu1 %v3477_v26  ;;  %3721 = vmatpush.msra.mxu2 %v3533_v33  ;;  %v3597_v50 = vld [vmem:[%s6090_s26 + $0x620] sm:$0xff]  ;;  %v3506_v62 = vld [vmem:[%s6090_s26 + $0x348] sm:$0xff] }
 0x345   : > { %3740 = vmatpush.msra.mxu3 %v3601_v0  ;;  %3680 = vmatpush.msra.mxu0 %v3409_v34  ;;  %v3405_v39 = vld [vmem:[%s6090_s26 + $0x20] sm:$0xff]  ;;  %v3562_v6 = vld [vmem:[%s6090_s26 + $0x508] sm:$0xff] }
 0x346   : > { %3700 = vmatpush.msra.mxu1 %v3473_v35  ;;  %3722 = vmatpush.msra.mxu2 %v3529_v36  ;;  %v3469_v27 = vld [vmem:[%s6090_s26 + $0x220] sm:$0xff]  ;;  %v3630_v7 = vld [vmem:[%s6090_s26 + $0x728] sm:$0xff] }
 0x347   : > { %3741 = vmatpush.msra.mxu3 %v3597_v50  ;;  %3723 = vmatmul.f32.vlgmr.msra.gmra.mxu2 %v6156_v8  ;;  %v3593_v48 = vld [vmem:[%s6090_s26 + $0x600] sm:$0xff]  ;;  %v3438_v9 = vld [vmem:[%s6090_s26 + $0x128] sm:$0xff] }
 0x348   : > { %3787 = vmatpush.msrb.mxu2 %v3590_v31  ;;  %3681 = vmatpush.msra.mxu0 %v3405_v39  ;;  %v6169_v44 = vld.sshfl [vmem:[#allocation1] sm:$0xff pattern:$0x73625140]  ;;  %v3502_v11 = vld [vmem:[%s6090_s26 + $0x328] sm:$0xff] }
 0x349   : > { %3701 = vmatpush.msra.mxu1 %v3469_v27  ;;  %3742 = vmatpush.msra.mxu3 %v3593_v48  ;;  %v3401_v28 = vld [vmem:[%s6090_s26] sm:$0xff]  ;;  %v3558_v13 = vld [vmem:[%s6090_s26 + $0x4e8] sm:$0xff] }
 0x34a   : > { %3743 = vmatmul.f32.vlgmr.msra.gmra.mxu3 %v6164_v40  ;;  %3788 = vmatpush.msrb.mxu2 %v3586_v43  ;;  %v3465_v32 = vld [vmem:[%s6090_s26 + $0x200] sm:$0xff]  ;;  %v3626_v37 = vld [vmem:[%s6090_s26 + $0x708] sm:$0xff] }
 0x34b   : > { %3807 = vmatpush.msrb.mxu3 %v3654_v59  ;;  %3682 = vmatpush.msra.mxu0 %v3401_v28  ;;  %v3434_v14 = vld [vmem:[%s6090_s26 + $0x108] sm:$0xff] }
 0x34c   : > { %3702 = vmatpush.msra.mxu1 %v3465_v32  ;;  %3683 = vmatmul.f32.vlgmr.msra.gmra.mxu0 %v6169_v44  ;;  %v3498_v15 = vld [vmem:[%s6090_s26 + $0x308] sm:$0xff] }
 0x34d   : > { %3703 = vmatmul.f32.vlgmr.msra.gmra.mxu1 %v6174_v29  ;;  %3747 = vmatpush.msrb.mxu0 %v3462_v45  ;;  %v3554_v53 = vld [vmem:[%s6090_s26 + $0x4c8] sm:$0xff]  ;;  %v3591_v45 = vld [vmem:[%s6090_s26 + $0x5f0] sm:$0xff] }
 0x34e   : > { %3767 = vmatpush.msrb.mxu1 %v3526_v46  ;;  %3789 = vmatpush.msrb.mxu2 %v3582_v17  ;;  %v3622_v63 = vld [vmem:[%s6090_s26 + $0x6e8] sm:$0xff] }
 0x34f   : > { %3808 = vmatpush.msrb.mxu3 %v3650_v47  ;;  %3748 = vmatpush.msrb.mxu0 %v3458_v30  ;;  %v3430_v38 = vld [vmem:[%s6090_s26 + $0xe8] sm:$0xff]  ;;  %v3587_v30 = vld [vmem:[%s6090_s26 + $0x5d0] sm:$0xff] }
 0x350   : > { %3768 = vmatpush.msrb.mxu1 %v3522_v51  ;;  %3790 = vmatpush.msrb.mxu2 %v3578_v49  ;;  %v3494_v16 = vld [vmem:[%s6090_s26 + $0x2e8] sm:$0xff]  ;;  %v3655_v51 = vld [vmem:[%s6090_s26 + $0x7f0] sm:$0xff] }
 0x351   : > { %3809 = vmatpush.msrb.mxu3 %v3646_v52  ;;  %3749 = vmatpush.msrb.mxu0 %v3454_v1  ;;  %v3550_v18 = vld [vmem:[%s6090_s26 + $0x4a8] sm:$0xff]  ;;  %v3463_v1 = vld [vmem:[%s6090_s26 + $0x1f0] sm:$0xff] }
 0x352   : > { %3769 = vmatpush.msrb.mxu1 %v3518_v54  ;;  %3791 = vmatpush.msrb.mxu2 %v3574_v55  ;;  %v3618_v19 = vld [vmem:[%s6090_s26 + $0x6c8] sm:$0xff]  ;;  %v3527_v54 = vld [vmem:[%s6090_s26 + $0x3f0] sm:$0xff] }
 0x353   : > { %3810 = vmatpush.msrb.mxu3 %v3642_v57  ;;  %3750 = vmatpush.msrb.mxu0 %v3450_v10  ;;  %v3426_v20 = vld [vmem:[%s6090_s26 + $0xc8] sm:$0xff]  ;;  %v3583_v55 = vld [vmem:[%s6090_s26 + $0x5b0] sm:$0xff] }
 0x354   : > { %3770 = vmatpush.msrb.mxu1 %v3514_v58  ;;  %3792 = vmatpush.msrb.mxu2 %v3570_v60  ;;  %v3490_v21 = vld [vmem:[%s6090_s26 + $0x2c8] sm:$0xff]  ;;  %v3651_v57 = vld [vmem:[%s6090_s26 + $0x7d0] sm:$0xff] }
 0x355   : > { %3811 = vmatpush.msrb.mxu3 %v3638_v41  ;;  %3751 = vmatpush.msrb.mxu0 %v3446_v61  ;;  %v3546_v22 = vld [vmem:[%s6090_s26 + $0x488] sm:$0xff]  ;;  %v3459_v10 = vld [vmem:[%s6090_s26 + $0x1d0] sm:$0xff] }
 0x356   : > { %3771 = vmatpush.msrb.mxu1 %v3510_v2  ;;  %3793 = vmatpush.msrb.mxu2 %v3566_v3  ;;  %v3614_v23 = vld [vmem:[%s6090_s26 + $0x6a8] sm:$0xff]  ;;  %v3523_v58 = vld [vmem:[%s6090_s26 + $0x3d0] sm:$0xff] }
 0x357   : > { %3812 = vmatpush.msrb.mxu3 %v3634_v4  ;;  %3752 = vmatpush.msrb.mxu0 %v3442_v5  ;;  %v3422_v24 = vld [vmem:[%s6090_s26 + $0xa8] sm:$0xff]  ;;  %v3579_v60 = vld [vmem:[%s6090_s26 + $0x590] sm:$0xff] }
 0x358   : > { %3772 = vmatpush.msrb.mxu1 %v3506_v62  ;;  %3794 = vmatpush.msrb.mxu2 %v3562_v6  ;;  %v3486_v26 = vld [vmem:[%s6090_s26 + $0x2a8] sm:$0xff]  ;;  %v3647_v41 = vld [vmem:[%s6090_s26 + $0x7b0] sm:$0xff] }
 0x359   : > { %3813 = vmatpush.msrb.mxu3 %v3630_v7  ;;  %3753 = vmatpush.msrb.mxu0 %v3438_v9  ;;  %v3542_v33 = vld [vmem:[%s6090_s26 + $0x468] sm:$0xff]  ;;  %v3455_v61 = vld [vmem:[%s6090_s26 + $0x1b0] sm:$0xff] }
 0x35a   : > { %3773 = vmatpush.msrb.mxu1 %v3502_v11  ;;  %3795 = vmatpush.msrb.mxu2 %v3558_v13  ;;  %v3610_v0 = vld [vmem:[%s6090_s26 + $0x688] sm:$0xff]  ;;  %v3519_v2 = vld [vmem:[%s6090_s26 + $0x3b0] sm:$0xff] }
 0x35b   : > { %3814 = vmatpush.msrb.mxu3 %v3626_v37  ;;  %3754 = vmatpush.msrb.mxu0 %v3434_v14  ;;  %v3418_v34 = vld [vmem:[%s6090_s26 + $0x88] sm:$0xff]  ;;  %v3575_v3 = vld [vmem:[%s6090_s26 + $0x570] sm:$0xff] }
 0x35c   : > { %3774 = vmatpush.msrb.mxu1 %v3498_v15  ;;  %3796 = vmatpush.msrb.mxu2 %v3554_v53  ;;  %v3482_v35 = vld [vmem:[%s6090_s26 + $0x288] sm:$0xff]  ;;  %v3643_v4 = vld [vmem:[%s6090_s26 + $0x790] sm:$0xff] }
 0x35d   : > { %3815 = vmatpush.msrb.mxu3 %v3622_v63  ;;  %3755 = vmatpush.msrb.mxu0 %v3430_v38  ;;  %v3538_v36 = vld [vmem:[%s6090_s26 + $0x448] sm:$0xff]  ;;  %v3451_v5 = vld [vmem:[%s6090_s26 + $0x190] sm:$0xff] }
 0x35e   : > { %3775 = vmatpush.msrb.mxu1 %v3494_v16  ;;  %3797 = vmatpush.msrb.mxu2 %v3550_v18  ;;  %v3606_v50 = vld [vmem:[%s6090_s26 + $0x668] sm:$0xff]  ;;  %v3515_v62 = vld [vmem:[%s6090_s26 + $0x390] sm:$0xff] }
 0x35f   : > { %3816 = vmatpush.msrb.mxu3 %v3618_v19  ;;  %3756 = vmatpush.msrb.mxu0 %v3426_v20  ;;  %v3414_v31 = vld [vmem:[%s6090_s26 + $0x68] sm:$0xff]  ;;  %v3571_v6 = vld [vmem:[%s6090_s26 + $0x550] sm:$0xff] }
 0x360   : > { %3776 = vmatpush.msrb.mxu1 %v3490_v21  ;;  %3798 = vmatpush.msrb.mxu2 %v3546_v22  ;;  %v3478_v39 = vld [vmem:[%s6090_s26 + $0x268] sm:$0xff]  ;;  %v3639_v7 = vld [vmem:[%s6090_s26 + $0x770] sm:$0xff] }
 0x361   : > { %3817 = vmatpush.msrb.mxu3 %v3614_v23  ;;  %3757 = vmatpush.msrb.mxu0 %v3422_v24  ;;  %v3534_v27 = vld [vmem:[%s6090_s26 + $0x428] sm:$0xff]  ;;  %v3447_v9 = vld [vmem:[%s6090_s26 + $0x170] sm:$0xff] }
 0x362   : > { %3777 = vmatpush.msrb.mxu1 %v3486_v26  ;;  %3799 = vmatpush.msrb.mxu2 %v3542_v33  ;;  %v3602_v48 = vld [vmem:[%s6090_s26 + $0x648] sm:$0xff]  ;;  %v3511_v11 = vld [vmem:[%s6090_s26 + $0x370] sm:$0xff] }
 0x363   : > { %3818 = vmatpush.msrb.mxu3 %v3610_v0  ;;  %3758 = vmatpush.msrb.mxu0 %v3418_v34  ;;  %v3410_v43 = vld [vmem:[%s6090_s26 + $0x48] sm:$0xff]  ;;  %v3567_v13 = vld [vmem:[%s6090_s26 + $0x530] sm:$0xff] }
 0x364   : > { %3778 = vmatpush.msrb.mxu1 %v3482_v35  ;;  %3800 = vmatpush.msrb.mxu2 %v3538_v36  ;;  %v3474_v59 = vld [vmem:[%s6090_s26 + $0x248] sm:$0xff]  ;;  %v3635_v37 = vld [vmem:[%s6090_s26 + $0x750] sm:$0xff] }
 0x365   : > { %3819 = vmatpush.msrb.mxu3 %v3606_v50  ;;  %3759 = vmatpush.msrb.mxu0 %v3414_v31  ;;  %v3530_v28 = vld [vmem:[%s6090_s26 + $0x408] sm:$0xff]  ;;  %v3443_v14 = vld [vmem:[%s6090_s26 + $0x150] sm:$0xff] }
 0x366   : > { %3779 = vmatpush.msrb.mxu1 %v3478_v39  ;;  %3801 = vmatpush.msrb.mxu2 %v3534_v27  ;;  %v3598_v32 = vld [vmem:[%s6090_s26 + $0x628] sm:$0xff]  ;;  %v3507_v15 = vld [vmem:[%s6090_s26 + $0x350] sm:$0xff] }
 0x367   : > { %3820 = vmatpush.msrb.mxu3 %v3602_v48  ;;  %3760 = vmatpush.msrb.mxu0 %v3410_v43  ;;  %v3406_v46 = vld [vmem:[%s6090_s26 + $0x28] sm:$0xff]  ;;  %v3563_v53 = vld [vmem:[%s6090_s26 + $0x510] sm:$0xff] }
 0x368   : > { %3780 = vmatpush.msrb.mxu1 %v3474_v59  ;;  %3802 = vmatpush.msrb.mxu2 %v3530_v28  ;;  %v3470_v17 = vld [vmem:[%s6090_s26 + $0x228] sm:$0xff]  ;;  %v3631_v63 = vld [vmem:[%s6090_s26 + $0x730] sm:$0xff] }
 0x369   : > { %3821 = vmatpush.msrb.mxu3 %v3598_v32  ;;  %3803 = vmatmul.f32.vlgmr.msrb.gmra.mxu2 %v6156_v8  ;;  %v3594_v47 = vld [vmem:[%s6090_s26 + $0x608] sm:$0xff]  ;;  %v3439_v38 = vld [vmem:[%s6090_s26 + $0x130] sm:$0xff] }
 0x36a   : > { %3867 = vmatpush.msra.mxu2 %v3591_v45  ;;  %3761 = vmatpush.msrb.mxu0 %v3406_v46  ;;  %v3402_v49 = vld [vmem:[%s6090_s26 + $0x8] sm:$0xff]  ;;  %v3503_v16 = vld [vmem:[%s6090_s26 + $0x330] sm:$0xff] }
 0x36b   : > { %3781 = vmatpush.msrb.mxu1 %v3470_v17  ;;  %3822 = vmatpush.msrb.mxu3 %v3594_v47  ;;  %v3466_v52 = vld [vmem:[%s6090_s26 + $0x208] sm:$0xff]  ;;  %v3559_v18 = vld [vmem:[%s6090_s26 + $0x4f0] sm:$0xff] }
 0x36c   : > { %3823 = vmatmul.f32.vlgmr.msrb.gmra.mxu3 %v6164_v40  ;;  %3868 = vmatpush.msra.mxu2 %v3587_v30  ;;  %v3627_v19 = vld [vmem:[%s6090_s26 + $0x710] sm:$0xff] }
 0x36d   : > { %3887 = vmatpush.msra.mxu3 %v3655_v51  ;;  %3762 = vmatpush.msrb.mxu0 %v3402_v49  ;;  %v3435_v20 = vld [vmem:[%s6090_s26 + $0x110] sm:$0xff] }
 0x36e   : > { %3782 = vmatpush.msrb.mxu1 %v3466_v52  ;;  %3763 = vmatmul.f32.vlgmr.msrb.gmra.mxu0 %v6169_v44  ;;  %v3499_v21 = vld [vmem:[%s6090_s26 + $0x310] sm:$0xff] }
 0x36f   : > { %3783 = vmatmul.f32.vlgmr.msrb.gmra.mxu1 %v6174_v29  ;;  %3827 = vmatpush.msra.mxu0 %v3463_v1  ;;  %v3555_v22 = vld [vmem:[%s6090_s26 + $0x4d0] sm:$0xff]  ;;  %v3592_v1 = vld [vmem:[%s6090_s26 + $0x5f8] sm:$0xff] }
 0x370   : > { %3847 = vmatpush.msra.mxu1 %v3527_v54  ;;  %3869 = vmatpush.msra.mxu2 %v3583_v55  ;;  %v3623_v23 = vld [vmem:[%s6090_s26 + $0x6f0] sm:$0xff] }
 0x371   : > { %3888 = vmatpush.msra.mxu3 %v3651_v57  ;;  %3828 = vmatpush.msra.mxu0 %v3459_v10  ;;  %v3431_v24 = vld [vmem:[%s6090_s26 + $0xf0] sm:$0xff]  ;;  %v3588_v10 = vld [vmem:[%s6090_s26 + $0x5d8] sm:$0xff] }
 0x372   : > { %3848 = vmatpush.msra.mxu1 %v3523_v58  ;;  %3870 = vmatpush.msra.mxu2 %v3579_v60  ;;  %v3495_v26 = vld [vmem:[%s6090_s26 + $0x2f0] sm:$0xff]  ;;  %v3656_v58 = vld [vmem:[%s6090_s26 + $0x7f8] sm:$0xff] }
 0x373   : > { %3889 = vmatpush.msra.mxu3 %v3647_v41  ;;  %3829 = vmatpush.msra.mxu0 %v3455_v61  ;;  %v3551_v33 = vld [vmem:[%s6090_s26 + $0x4b0] sm:$0xff]  ;;  %v3464_v61 = vld [vmem:[%s6090_s26 + $0x1f8] sm:$0xff] }
 0x374   : > { %3849 = vmatpush.msra.mxu1 %v3519_v2  ;;  %3871 = vmatpush.msra.mxu2 %v3575_v3  ;;  %v3619_v0 = vld [vmem:[%s6090_s26 + $0x6d0] sm:$0xff]  ;;  %v3528_v2 = vld [vmem:[%s6090_s26 + $0x3f8] sm:$0xff] }
 0x375   : > { %3890 = vmatpush.msra.mxu3 %v3643_v4  ;;  %3830 = vmatpush.msra.mxu0 %v3451_v5  ;;  %v3427_v34 = vld [vmem:[%s6090_s26 + $0xd0] sm:$0xff]  ;;  %v3584_v3 = vld [vmem:[%s6090_s26 + $0x5b8] sm:$0xff] }
 0x376   : > { %3850 = vmatpush.msra.mxu1 %v3515_v62  ;;  %3872 = vmatpush.msra.mxu2 %v3571_v6  ;;  %v3491_v35 = vld [vmem:[%s6090_s26 + $0x2d0] sm:$0xff]  ;;  %v3652_v4 = vld [vmem:[%s6090_s26 + $0x7d8] sm:$0xff] }
 0x377   : > { %3891 = vmatpush.msra.mxu3 %v3639_v7  ;;  %3831 = vmatpush.msra.mxu0 %v3447_v9  ;;  %v3547_v36 = vld [vmem:[%s6090_s26 + $0x490] sm:$0xff]  ;;  %v3460_v5 = vld [vmem:[%s6090_s26 + $0x1d8] sm:$0xff] }
 0x378   : > { %3851 = vmatpush.msra.mxu1 %v3511_v11  ;;  %3873 = vmatpush.msra.mxu2 %v3567_v13  ;;  %v3615_v50 = vld [vmem:[%s6090_s26 + $0x6b0] sm:$0xff]  ;;  %v3524_v62 = vld [vmem:[%s6090_s26 + $0x3d8] sm:$0xff] }
 0x379   : > { %3892 = vmatpush.msra.mxu3 %v3635_v37  ;;  %3832 = vmatpush.msra.mxu0 %v3443_v14  ;;  %v3423_v31 = vld [vmem:[%s6090_s26 + $0xb0] sm:$0xff]  ;;  %v3580_v6 = vld [vmem:[%s6090_s26 + $0x598] sm:$0xff] }
 0x37a   : > { %3852 = vmatpush.msra.mxu1 %v3507_v15  ;;  %3874 = vmatpush.msra.mxu2 %v3563_v53  ;;  %v3487_v39 = vld [vmem:[%s6090_s26 + $0x2b0] sm:$0xff]  ;;  %v3648_v7 = vld [vmem:[%s6090_s26 + $0x7b8] sm:$0xff] }
 0x37b   : > { %3893 = vmatpush.msra.mxu3 %v3631_v63  ;;  %3833 = vmatpush.msra.mxu0 %v3439_v38  ;;  %v3543_v27 = vld [vmem:[%s6090_s26 + $0x470] sm:$0xff]  ;;  %v3456_v9 = vld [vmem:[%s6090_s26 + $0x1b8] sm:$0xff] }
 0x37c   : > { %3853 = vmatpush.msra.mxu1 %v3503_v16  ;;  %3875 = vmatpush.msra.mxu2 %v3559_v18  ;;  %v3611_v48 = vld [vmem:[%s6090_s26 + $0x690] sm:$0xff]  ;;  %v3520_v11 = vld [vmem:[%s6090_s26 + $0x3b8] sm:$0xff] }
 0x37d   : > { %3894 = vmatpush.msra.mxu3 %v3627_v19  ;;  %3834 = vmatpush.msra.mxu0 %v3435_v20  ;;  %v3419_v43 = vld [vmem:[%s6090_s26 + $0x90] sm:$0xff]  ;;  %v3576_v13 = vld [vmem:[%s6090_s26 + $0x578] sm:$0xff] }
 0x37e   : > { %3854 = vmatpush.msra.mxu1 %v3499_v21  ;;  %3876 = vmatpush.msra.mxu2 %v3555_v22  ;;  %v3483_v59 = vld [vmem:[%s6090_s26 + $0x290] sm:$0xff]  ;;  %v3644_v37 = vld [vmem:[%s6090_s26 + $0x798] sm:$0xff] }
 0x37f   : > { %3895 = vmatpush.msra.mxu3 %v3623_v23  ;;  %3835 = vmatpush.msra.mxu0 %v3431_v24  ;;  %v3539_v28 = vld [vmem:[%s6090_s26 + $0x450] sm:$0xff]  ;;  %v3452_v14 = vld [vmem:[%s6090_s26 + $0x198] sm:$0xff] }
 0x380   : > { %3855 = vmatpush.msra.mxu1 %v3495_v26  ;;  %3877 = vmatpush.msra.mxu2 %v3551_v33  ;;  %v3607_v32 = vld [vmem:[%s6090_s26 + $0x670] sm:$0xff]  ;;  %v3516_v15 = vld [vmem:[%s6090_s26 + $0x398] sm:$0xff] }
 0x381   : > { %3896 = vmatpush.msra.mxu3 %v3619_v0  ;;  %3836 = vmatpush.msra.mxu0 %v3427_v34  ;;  %v3415_v45 = vld [vmem:[%s6090_s26 + $0x70] sm:$0xff]  ;;  %v3572_v53 = vld [vmem:[%s6090_s26 + $0x558] sm:$0xff] }
 0x382   : > { %3856 = vmatpush.msra.mxu1 %v3491_v35  ;;  %3878 = vmatpush.msra.mxu2 %v3547_v36  ;;  %v3479_v46 = vld [vmem:[%s6090_s26 + $0x270] sm:$0xff]  ;;  %v3640_v63 = vld [vmem:[%s6090_s26 + $0x778] sm:$0xff] }
 0x383   : > { %3897 = vmatpush.msra.mxu3 %v3615_v50  ;;  %3837 = vmatpush.msra.mxu0 %v3423_v31  ;;  %v3535_v17 = vld [vmem:[%s6090_s26 + $0x430] sm:$0xff]  ;;  %v3448_v38 = vld [vmem:[%s6090_s26 + $0x178] sm:$0xff] }
 0x384   : > { %3857 = vmatpush.msra.mxu1 %v3487_v39  ;;  %3879 = vmatpush.msra.mxu2 %v3543_v27  ;;  %v3603_v47 = vld [vmem:[%s6090_s26 + $0x650] sm:$0xff]  ;;  %v3512_v16 = vld [vmem:[%s6090_s26 + $0x378] sm:$0xff] }
 0x385   : > { %3898 = vmatpush.msra.mxu3 %v3611_v48  ;;  %3838 = vmatpush.msra.mxu0 %v3419_v43  ;;  %v3411_v30 = vld [vmem:[%s6090_s26 + $0x50] sm:$0xff]  ;;  %v3568_v18 = vld [vmem:[%s6090_s26 + $0x538] sm:$0xff] }
 0x386   : > { %3858 = vmatpush.msra.mxu1 %v3483_v59  ;;  %3880 = vmatpush.msra.mxu2 %v3539_v28  ;;  %v3475_v51 = vld [vmem:[%s6090_s26 + $0x250] sm:$0xff]  ;;  %v3636_v19 = vld [vmem:[%s6090_s26 + $0x758] sm:$0xff] }
 0x387   : > { %3899 = vmatpush.msra.mxu3 %v3607_v32  ;;  %3839 = vmatpush.msra.mxu0 %v3415_v45  ;;  %v3531_v49 = vld [vmem:[%s6090_s26 + $0x410] sm:$0xff]  ;;  %v3444_v20 = vld [vmem:[%s6090_s26 + $0x158] sm:$0xff] }
 0x388   : > { %3859 = vmatpush.msra.mxu1 %v3479_v46  ;;  %3881 = vmatpush.msra.mxu2 %v3535_v17  ;;  %v3599_v52 = vld [vmem:[%s6090_s26 + $0x630] sm:$0xff]  ;;  %v3508_v21 = vld [vmem:[%s6090_s26 + $0x358] sm:$0xff] }
 0x389   : > { %3900 = vmatpush.msra.mxu3 %v3603_v47  ;;  %3840 = vmatpush.msra.mxu0 %v3411_v30  ;;  %v3407_v54 = vld [vmem:[%s6090_s26 + $0x30] sm:$0xff]  ;;  %v3564_v22 = vld [vmem:[%s6090_s26 + $0x518] sm:$0xff] }
 0x38a   : > { %3860 = vmatpush.msra.mxu1 %v3475_v51  ;;  %3882 = vmatpush.msra.mxu2 %v3531_v49  ;;  %v3471_v55 = vld [vmem:[%s6090_s26 + $0x230] sm:$0xff]  ;;  %v3632_v23 = vld [vmem:[%s6090_s26 + $0x738] sm:$0xff] }
 0x38b   : > { %3901 = vmatpush.msra.mxu3 %v3599_v52  ;;  %3883 = vmatmul.f32.vlgmr.msra.gmra.mxu2 %v6156_v8  ;;  %v3595_v57 = vld [vmem:[%s6090_s26 + $0x610] sm:$0xff]  ;;  %v3440_v24 = vld [vmem:[%s6090_s26 + $0x138] sm:$0xff] }
 0x38c   : > { %3947 = vmatpush.msrb.mxu2 %v3592_v1  ;;  %3841 = vmatpush.msra.mxu0 %v3407_v54  ;;  %v3403_v60 = vld [vmem:[%s6090_s26 + $0x10] sm:$0xff]  ;;  %v3504_v26 = vld [vmem:[%s6090_s26 + $0x338] sm:$0xff] }
 0x38d   : > { %3861 = vmatpush.msra.mxu1 %v3471_v55  ;;  %3902 = vmatpush.msra.mxu3 %v3595_v57  ;;  %v3467_v41 = vld [vmem:[%s6090_s26 + $0x210] sm:$0xff]  ;;  %v3560_v33 = vld [vmem:[%s6090_s26 + $0x4f8] sm:$0xff] }
 0x38e   : > { %3903 = vmatmul.f32.vlgmr.msra.gmra.mxu3 %v6164_v40  ;;  %3948 = vmatpush.msrb.mxu2 %v3588_v10  ;;  %v3628_v0 = vld [vmem:[%s6090_s26 + $0x718] sm:$0xff] }
 0x38f   : > { %3967 = vmatpush.msrb.mxu3 %v3656_v58  ;;  %3842 = vmatpush.msra.mxu0 %v3403_v60  ;;  %v3436_v34 = vld [vmem:[%s6090_s26 + $0x118] sm:$0xff] }
 0x390   : > { %3862 = vmatpush.msra.mxu1 %v3467_v41  ;;  %3843 = vmatmul.f32.vlgmr.msra.gmra.mxu0 %v6169_v44  ;;  %v3500_v35 = vld [vmem:[%s6090_s26 + $0x318] sm:$0xff] }
 0x391   : > { %3863 = vmatmul.f32.vlgmr.msra.gmra.mxu1 %v6174_v29  ;;  %3907 = vmatpush.msrb.mxu0 %v3464_v61  ;;  %v3556_v36 = vld [vmem:[%s6090_s26 + $0x4d8] sm:$0xff] }
 0x392   : > { %3927 = vmatpush.msrb.mxu1 %v3528_v2  ;;  %3949 = vmatpush.msrb.mxu2 %v3584_v3  ;;  %v3624_v50 = vld [vmem:[%s6090_s26 + $0x6f8] sm:$0xff] }
 0x393   : > { %3968 = vmatpush.msrb.mxu3 %v3652_v4  ;;  %3908 = vmatpush.msrb.mxu0 %v3460_v5  ;;  %v3432_v31 = vld [vmem:[%s6090_s26 + $0xf8] sm:$0xff] }
 0x394   : > { %3928 = vmatpush.msrb.mxu1 %v3524_v62  ;;  %3950 = vmatpush.msrb.mxu2 %v3580_v6  ;;  %v3496_v39 = vld [vmem:[%s6090_s26 + $0x2f8] sm:$0xff]  ;;  %v2710_v62 = vpop.f32.mrf.mxu0  ;;  %v2730_v6 = vpop.f32.mrf.mxu1 }
 0x395   : > { %3969 = vmatpush.msrb.mxu3 %v3648_v7  ;;  %3909 = vmatpush.msrb.mxu0 %v3456_v9  ;;  %v3552_v27 = vld [vmem:[%s6090_s26 + $0x4b8] sm:$0xff]  ;;  %v2750_v7 = vpop.f32.mrf.mxu2 }
 0x396   : > { %3929 = vmatpush.msrb.mxu1 %v3520_v11  ;;  %3951 = vmatpush.msrb.mxu2 %v3576_v13  ;;  %v3620_v48 = vld [vmem:[%s6090_s26 + $0x6d8] sm:$0xff] }
 0x397   : > { %3970 = vmatpush.msrb.mxu3 %v3644_v37  ;;  %3910 = vmatpush.msrb.mxu0 %v3452_v14  ;;  %v3428_v43 = vld [vmem:[%s6090_s26 + $0xd8] sm:$0xff] }
 0x398   : > { %3930 = vmatpush.msrb.mxu1 %v3516_v15  ;;  %3952 = vmatpush.msrb.mxu2 %v3572_v53  ;;  %v3492_v59 = vld [vmem:[%s6090_s26 + $0x2d8] sm:$0xff] }
 0x399   : > { %3971 = vmatpush.msrb.mxu3 %v3640_v63  ;;  %3911 = vmatpush.msrb.mxu0 %v3448_v38  ;;  %v3548_v28 = vld [vmem:[%s6090_s26 + $0x498] sm:$0xff] }
 0x39a   : > { %3931 = vmatpush.msrb.mxu1 %v3512_v16  ;;  %3953 = vmatpush.msrb.mxu2 %v3568_v18  ;;  %v3616_v32 = vld [vmem:[%s6090_s26 + $0x6b8] sm:$0xff] }
 0x39b   : > { %3972 = vmatpush.msrb.mxu3 %v3636_v19  ;;  %3912 = vmatpush.msrb.mxu0 %v3444_v20  ;;  %v3424_v45 = vld [vmem:[%s6090_s26 + $0xb8] sm:$0xff] }
 0x39c   : > { %3932 = vmatpush.msrb.mxu1 %v3508_v21  ;;  %3954 = vmatpush.msrb.mxu2 %v3564_v22  ;;  %v3488_v46 = vld [vmem:[%s6090_s26 + $0x2b8] sm:$0xff]  ;;  %v3077_v9 = vpop.f32.mrf.mxu0  ;;  %v3097_v11 = vpop.f32.mrf.mxu1 }
 0x39d   : > { %3973 = vmatpush.msrb.mxu3 %v3632_v23  ;;  %3913 = vmatpush.msrb.mxu0 %v3440_v24  ;;  %v3544_v17 = vld [vmem:[%s6090_s26 + $0x478] sm:$0xff]  ;;  %v3117_v13 = vpop.f32.mrf.mxu2  ;;  %v3098_v24 = vadd.f32 %v3097_v11, %v3077_v9 }
 0x39e   : > { %3933 = vmatpush.msrb.mxu1 %v3504_v26  ;;  %3955 = vmatpush.msrb.mxu2 %v3560_v33  ;;  %v3612_v47 = vld [vmem:[%s6090_s26 + $0x698] sm:$0xff] }
 0x39f   : > { %3974 = vmatpush.msrb.mxu3 %v3628_v0  ;;  %3914 = vmatpush.msrb.mxu0 %v3436_v34  ;;  %v3420_v30 = vld [vmem:[%s6090_s26 + $0x98] sm:$0xff]  ;;  %v3118_v34 = vadd.f32 %v3117_v13, %v3098_v24 }
 0x3a0   : > { %3934 = vmatpush.msrb.mxu1 %v3500_v35  ;;  %3956 = vmatpush.msrb.mxu2 %v3556_v36  ;;  %v3484_v51 = vld [vmem:[%s6090_s26 + $0x298] sm:$0xff] }
 0x3a1   : > { %3975 = vmatpush.msrb.mxu3 %v3624_v50  ;;  %3915 = vmatpush.msrb.mxu0 %v3432_v31  ;;  %v3540_v49 = vld [vmem:[%s6090_s26 + $0x458] sm:$0xff] }
 0x3a2   : > { %3935 = vmatpush.msrb.mxu1 %v3496_v39  ;;  %3957 = vmatpush.msrb.mxu2 %v3552_v27  ;;  %v3608_v52 = vld [vmem:[%s6090_s26 + $0x678] sm:$0xff] }
 0x3a3   : > { %3976 = vmatpush.msrb.mxu3 %v3620_v48  ;;  %3916 = vmatpush.msrb.mxu0 %v3428_v43  ;;  %v3416_v1 = vld [vmem:[%s6090_s26 + $0x78] sm:$0xff] }
 0x3a4   : > { %3936 = vmatpush.msrb.mxu1 %v3492_v59  ;;  %3958 = vmatpush.msrb.mxu2 %v3548_v28  ;;  %v3480_v54 = vld [vmem:[%s6090_s26 + $0x278] sm:$0xff]  ;;  %v3157_v14 = vpop.f32.mrf.mxu0  ;;  %v3177_v15 = vpop.f32.mrf.mxu1 }
 0x3a5   : > { %3977 = vmatpush.msrb.mxu3 %v3616_v32  ;;  %3917 = vmatpush.msrb.mxu0 %v3424_v45  ;;  %v3536_v55 = vld [vmem:[%s6090_s26 + $0x438] sm:$0xff]  ;;  %v3197_v53 = vpop.f32.mrf.mxu2  ;;  %v3178_v26 = vadd.f32 %v3177_v15, %v3157_v14 }
 0x3a6   : > { %3937 = vmatpush.msrb.mxu1 %v3488_v46  ;;  %3959 = vmatpush.msrb.mxu2 %v3544_v17  ;;  %v3604_v57 = vld [vmem:[%s6090_s26 + $0x658] sm:$0xff] }
 0x3a7   : > { %3978 = vmatpush.msrb.mxu3 %v3612_v47  ;;  %3918 = vmatpush.msrb.mxu0 %v3420_v30  ;;  %v3412_v10 = vld [vmem:[%s6090_s26 + $0x58] sm:$0xff]  ;;  %v3198_v35 = vadd.f32 %v3197_v53, %v3178_v26 }
 0x3a8   : > { %3938 = vmatpush.msrb.mxu1 %v3484_v51  ;;  %3960 = vmatpush.msrb.mxu2 %v3540_v49  ;;  %v3476_v58 = vld [vmem:[%s6090_s26 + $0x258] sm:$0xff] }
 0x3a9   : > { %3979 = vmatpush.msrb.mxu3 %v3608_v52  ;;  %3919 = vmatpush.msrb.mxu0 %v3416_v1  ;;  %v3532_v60 = vld [vmem:[%s6090_s26 + $0x418] sm:$0xff] }
 0x3aa   : > { %3939 = vmatpush.msrb.mxu1 %v3480_v54  ;;  %3961 = vmatpush.msrb.mxu2 %v3536_v55  ;;  %v3600_v41 = vld [vmem:[%s6090_s26 + $0x638] sm:$0xff] }
 0x3ab   : > { %3980 = vmatpush.msrb.mxu3 %v3604_v57  ;;  %3920 = vmatpush.msrb.mxu0 %v3412_v10  ;;  %v3408_v61 = vld [vmem:[%s6090_s26 + $0x38] sm:$0xff]  ;;  %v2731_v10 = vadd.f32 %v2730_v6, %v2710_v62 }
 0x3ac   : > { %3940 = vmatpush.msrb.mxu1 %v3476_v58  ;;  %3962 = vmatpush.msrb.mxu2 %v3532_v60  ;;  %v3472_v2 = vld [vmem:[%s6090_s26 + $0x238] sm:$0xff]  ;;  %v3257_v38 = vpop.f32.mrf.mxu1 }
 0x3ad   : > { %3981 = vmatpush.msrb.mxu3 %v3600_v41  ;;  %3963 = vmatmul.f32.vlgmr.msrb.gmra.mxu2 %v6156_v8  ;;  %v3596_v3 = vld [vmem:[%s6090_s26 + $0x618] sm:$0xff]  ;;  %v2770_v8 = vpop.f32.mrf.mxu3  ;;  %v3277_v16 = vpop.f32.mrf.mxu2 }
 0x3ae   : > { %3921 = vmatpush.msrb.mxu0 %v3408_v61  ;;  %3941 = vmatpush.msrb.mxu1 %v3472_v2  ;;  %v3404_v4 = vld [vmem:[%s6090_s26 + $0x18] sm:$0xff] }
 0x3af   : > { %3982 = vmatpush.msrb.mxu3 %v3596_v3  ;;  %v3468_v5 = vld [vmem:[%s6090_s26 + $0x218] sm:$0xff] }
 0x3b0   : > { %3983 = vmatmul.f32.vlgmr.msrb.gmra.mxu3 %v6164_v40  ;;  %3922 = vmatpush.msrb.mxu0 %v3404_v4  ;;  %v3237_v40 = vpop.f32.mrf.mxu0 }
 0x3b1   : > { %3942 = vmatpush.msrb.mxu1 %v3468_v5  ;;  %3923 = vmatmul.f32.vlgmr.msrb.gmra.mxu0 %v6169_v44  ;;  %v3258_v57 = vadd.f32 %v3257_v38, %v3237_v40 }
 0x3b2   : > { %3943 = vmatmul.f32.vlgmr.msrb.gmra.mxu1 %v6174_v29 }
 0x3b3   : > { %v3278_v41 = vadd.f32 %v3277_v16, %v3258_v57 }
 0x3b4   : > { %v3337_v44 = vpop.f32.mrf.mxu1 }
 0x3b5   : > { %v3137_v37 = vpop.f32.mrf.mxu3  ;;  %v3357_v20 = vpop.f32.mrf.mxu2 }
 0x3b6   : > { %v3138_v27 = vadd.f32 %v3137_v37, %v3118_v34 }
 0x3b8   : > { %v3317_v19 = vpop.f32.mrf.mxu0  ;;  %v3380_v45 = vadd.f32 %v3138_v27, %v5870_v56  ;;  %v2751_v56 = vadd.f32 %v2750_v7, %v2731_v10 }
 0x3b9   : > { %v3338_v61 = vadd.f32 %v3337_v44, %v3317_v19 }
 0x3ba   : > { %v2771_v5 = vadd.f32 %v2770_v8, %v2751_v56 }
 0x3bb   : > { %v3358_v4 = vadd.f32 %v3357_v20, %v3338_v61 }
 0x3bc   : > { %v2776_v62 = vadd.f32 %v2771_v5, %v5786_v42 }
 0x3bd   : > { %v3217_v63 = vpop.f32.mrf.mxu3 }
 0x3be   : > { %v3218_v48 = vadd.f32 %v3217_v63, %v3198_v35 }
 0x3c0   : > { %v3381_v46 = vadd.f32 %v3218_v48, %v5941_v12 }
 0x3c5   : > { %v3297_v18 = vpop.f32.mrf.mxu3 }
 0x3c6   : > { %v3298_v3 = vadd.f32 %v3297_v18, %v3278_v41 }
 0x3c8   : > { %v3382_v37 = vadd.f32 %v3298_v3, %v6012_v25 }
 0x3c9   : > { %v3684_v21 = vpop.f32.mrf.mxu0 }
 0x3ca   : > { %v3704_v22 = vpop.f32.mrf.mxu1  ;;  %v3724_v23 = vpop.f32.mrf.mxu2 }
 0x3cb   : > { %v3705_v33 = vadd.f32 %v3704_v22, %v3684_v21 }
 0x3cd   : > { %v3377_v29 = vpop.f32.mrf.mxu3  ;;  %v3725_v36 = vadd.f32 %v3724_v23, %v3705_v33 }
 0x3ce   : > { %v3378_v14 = vadd.f32 %v3377_v29, %v3358_v4 }
 0x3d0   : > { %v3383_v40 = vadd.f32 %v3378_v14, %v2776_v62 }
 0x3d5   : > { %v3744_v0 = vpop.f32.mrf.mxu3 }
 0x3d6   : > { %v3745_v59 = vadd.f32 %v3744_v0, %v3725_v36 }
 0x3d8   : > { %v3987_v47 = vadd.f32 %v3745_v59, %v3380_v45 }
 0x3da   : > { %v3991_v49 = vmax.f32 %v3987_v47, 0.0 }
 0x3eb   : > { %v3764_v50 = vpop.f32.mrf.mxu0 }
 0x3ec   : > { %v3784_v31 = vpop.f32.mrf.mxu1  ;;  %v3804_v39 = vpop.f32.mrf.mxu2 }
 0x3ed   : > { %v3785_v43 = vadd.f32 %v3784_v31, %v3764_v50 }
 0x3ef   : > { %v3805_v28 = vadd.f32 %v3804_v39, %v3785_v43  ;;  %v3824_v32 = vpop.f32.mrf.mxu3 }
 0x3f1   : > { %v3825_v17 = vadd.f32 %v3824_v32, %v3805_v28 }
 0x3f3   : > { %v3988_v30 = vadd.f32 %v3825_v17, %v3381_v46 }
 0x3f5   : > { %v3992_v51 = vmax.f32 %v3988_v30, 0.0 }
 0x3f7   : > { %v3999_v52 = vrot.slane %v3992_v51, 6 }
 0x3f9   : > { %v4002_v1 = vsel %vm302_vm0, %v3991_v49, %v3999_v52 }
 0x40d   : > { %v3844_v54 = vpop.f32.mrf.mxu0 }
 0x40e   : > { %v3864_v55 = vpop.f32.mrf.mxu1  ;;  %v3884_v60 = vpop.f32.mrf.mxu2 }
 0x40f   : > { %v3865_v58 = vadd.f32 %v3864_v55, %v3844_v54 }
 0x411   : > { %v3885_v2 = vadd.f32 %v3884_v60, %v3865_v58  ;;  %v3904_v12 = vpop.f32.mrf.mxu3 }
 0x413   : > { %v3905_v9 = vadd.f32 %v3904_v12, %v3885_v2 }
 0x415   : > { %v3989_v6 = vadd.f32 %v3905_v9, %v3382_v37 }
 0x417   : > { %v3993_v16 = vmax.f32 %v3989_v6, 0.0 }
 0x419   : > { %v4000_v19 = vrot.slane %v3993_v16, 4 }
 0x42e   : > { %v3924_v11 = vpop.f32.mrf.mxu0 }
 0x42f   : > { %v3944_v13 = vpop.f32.mrf.mxu1 }
 0x430   : > { %v3945_v15 = vadd.f32 %v3944_v13, %v3924_v11  ;;  %v3964_v53 = vpop.f32.mrf.mxu2 }
 0x432   : > { %v3965_v63 = vadd.f32 %v3964_v53, %v3945_v15 }
 0x433   : > { %v3984_v7 = vpop.f32.mrf.mxu3 }
 0x434   : > { %v3985_v38 = vadd.f32 %v3984_v7, %v3965_v63 }
 0x436   : > { %v3990_v18 = vadd.f32 %v3985_v38, %v3383_v40 }
 0x438   : > { %v3994_v8 = vmax.f32 %v3990_v18, 0.0 }
 0x43a   : > { %v4001_v44 = vrot.slane %v3994_v8, 2 }
 0x43c   : > { %v4003_v25 = vsel %vm304_vm1, %v4000_v19, %v4001_v44 }
 0x43d   : > { %v4004_v42 = vsel %vm306_vm2, %v4002_v1, %v4003_v25 }
 0x43e   : > { %4006 = vst [vmem:[%s246_s30] sm:$0xff] %v4004_v42 }
 0x43f PF: > { %p13_p10 = scmp.ge.s32.totalorder %s4449_s8, 8   ;;  %s6412_s15 = smov %s4364_s16 }
 0x440   : > { %s6413_s16 = smov %s4368_s17  ;;  %s6414_s17 = smov %s4458_s11 }
 0x441   : > { %s6415_s18 = smov %s4449_s8  ;;  %15 = sbr.rel (!%p13_p10) target bundleno = 3 (0x3), region = 89 }
 0x446   :  { %4029 = vsyncpa [#allocation3], 1 }
 0x447   :  { %4031 = vsyncpa [#allocation3 + $0x1], 1 }
 0x448   :  { %4032 = vsyncpa [#allocation5], 1 }

</bundles_post_ra>
